<compile_context>
chip_gen: v6e
topology: v6e:2x2x1
jax: 0.10.0
libtpu: 0.0.40
codegen_flags: <defaults>
</compile_context>

<pallas_src>
import math
import numpy as np
import jax
import jax.numpy as jnp
from jax.experimental import pallas as pl
from jax.experimental.pallas import tpu as pltpu

# ---- module hyper-parameters (mirrors task2_MDF-SA-DDI.py) -----------------
N_HEADS = 4
LEN_AFTER_AE = 700                 # hardcoded in the reference module
VECTOR_SIZE = 200                  # ADDAE(vector_size) -- small synthetic width
VS = VECTOR_SIZE // 2              # self.vector_size = 100
HID = (VS + LEN_AFTER_AE) // 2     # 400, divisible by n_heads
DK = HID // N_HEADS                # 100 = true per-head dim (used in 1/sqrt(dk))
DKP = 128                          # lane-aligned padded per-head dim
B = 8                              # batch (= attention "sequence" length)
ROWS_PER_HEAD = B // N_HEADS       # 2   (rows of the merged ctx fed by one head)
CHUNK = (N_HEADS * DK) // B        # 50  (d_v elements per merged row)
X_OUT_PAD = 768                    # lane-dense padding of 700
XAE_PAD = 128                      # lane-dense padding of 100
LN_EPS = 1e-5
BN_EPS = 1e-5
MM_DTYPE = jnp.bfloat16            # MXU input dtype (accumulation stays f32)


def _gelu(x):
    # exact erf-based gelu, same as the reference `gelu`
    return x * 0.5 * (1.0 + jax.lax.erf(x / math.sqrt(2.0)))


def _layernorm(x, g, b):
    mean = jnp.mean(x, axis=-1, keepdims=True)
    var = jnp.mean(jnp.square(x - mean), axis=-1, keepdims=True)
    return (x - mean) * jax.lax.rsqrt(var + LN_EPS) * g + b


# ---------------------------------------------------------------------------
# Constant 0/1 matrices that reproduce the PyTorch head-merge scramble
#   merged[r, c] = context[h=r//2, b=c%B, d=(r%2)*CHUNK + c//B]
# via   merged = sum_h  A[h] @ ((ctxT_h @ E) * VMASK)
# where ctxT_h[d, b] = context[h, b, d]  (computed natively transposed).
# ---------------------------------------------------------------------------
def _scramble_constants():
    c = np.arange(N_HEADS * DK)                                   # 0..399
    e = (c[None, :] % B == np.arange(B)[:, None]).astype(np.float32)          # [B, HID]
    i = np.arange(DKP)
    vmask = ((i[:, None] < DK) &
             ((c[None, :] // B) == (i[:, None] % CHUNK))).astype(np.float32)  # [DKP, HID]
    a = np.zeros((N_HEADS, B, DKP), np.float32)
    for h in range(N_HEADS):
        for ii in range(DK):
            a[h, h * ROWS_PER_HEAD + ii // CHUNK, ii] = 1.0                   # [H, B, DKP]
    return jnp.asarray(e), jnp.asarray(vmask), jnp.asarray(a)


# ---------------------------------------------------------------------------
# Single fused kernel: l1 -> gelu -> bn1 -> multi-head attention (incl. the
# module's scrambled head merge + fc) -> Add&Norm x2 -> l2 (X) -> l3 -> gelu
# -> bn3(folded) -> l4 (X_AE half).
# ---------------------------------------------------------------------------
def _addae_kernel(x1_ref, x2_ref, w1_ref, b1_ref, bn1s_ref, bn1t_ref,
                  wq_ref, wk_ref, wvt_ref, e_ref, vmask_ref, a_ref,
                  wfc_ref, ln1g_ref, ln1b_ref, wl1_ref, bl1_ref,
                  ln2g_ref, ln2b_ref, w2_ref, b2_ref, w3_ref, b3_ref,
                  w4_ref, b4_ref,
                  xout_ref, xae_ref):
    f32 = jnp.float32

    def mm(act_f32, w_bf16):     # bf16 x bf16 MXU matmul, f32 accumulation
        return jnp.dot(act_f32.astype(MM_DTYPE), w_bf16,
                       preferred_element_type=f32)

    # --- X1 + X2 -> l1 -> gelu -> bn1(eval) ; dropout = identity ----------
    h0 = x1_ref[...] + x2_ref[...]                       # [B, VS]
    h = mm(h0, w1_ref[...]) + b1_ref[...]
    h = _gelu(h)
    h = h * bn1s_ref[...] + bn1t_ref[...]                # [B, HID] f32 (residual)
    hb = h.astype(MM_DTYPE)

    # --- multi-head self-attention over the batch axis ---------------------
    q = jnp.dot(hb, wq_ref[...], preferred_element_type=f32)   # [B, H*DKP]
    k = jnp.dot(hb, wk_ref[...], preferred_element_type=f32)
    inv_sqrt_dk = 1.0 / math.sqrt(DK)

    e_mat = e_ref[...]
    vmask = vmask_ref[...]
    merged = jnp.zeros((B, HID), f32)
    for hd in range(N_HEADS):                            # static, 128-aligned slices
        sl = slice(hd * DKP, (hd + 1) * DKP)
        qh = q[:, sl]                                    # [B, DKP] (free view)
        kh = k[:, sl]
        s = jax.lax.dot_general(qh, kh, (((1,), (1,)), ((), ())),
                                preferred_element_type=f32) * inv_sqrt_dk
        s = s - jnp.max(s, axis=-1, keepdims=True)
        p = jnp.exp(s)
        attn = p * pl.reciprocal(jnp.sum(p, axis=-1, keepdims=True), approx=True)

        # transposed per-head context:  ctxT[d, b] = sum_b2 V[b2, d] * attn[b, b2]
        vt = jax.lax.dot_general(wvt_ref[hd], hb, (((1,), (1,)), ((), ())),
                                 preferred_element_type=f32)      # [DKP, B]
        ctxt = jax.lax.dot_general(vt, attn, (((1,), (1,)), ((), ())),
                                   preferred_element_type=f32)    # [DKP, B]

        # PyTorch `context.transpose(1,2).reshape(-1, H*d_v)` via 0/1 matmuls
        t = jnp.dot(ctxt, e_mat, preferred_element_type=f32)      # [DKP, HID]
        t = t * vmask
        merged = merged + jnp.dot(a_ref[hd], t, preferred_element_type=f32)  # [B, HID]

    att = mm(merged, wfc_ref[...])                       # attention fc
    x = _layernorm(att + h, ln1g_ref[...], ln1b_ref[...])
    o = mm(x, wl1_ref[...]) + bl1_ref[...]
    x = _layernorm(o + x, ln2g_ref[...], ln2b_ref[...])

    # --- l2 : first output X (padded to 768 lanes) --------------------------
    xout = mm(x, w2_ref[...]) + b2_ref[...]              # [B, 768]
    xout_ref[...] = xout

    # --- l3 -> gelu -> bn3(+dropout) folded into l4 -------------------------
    h3 = _gelu(mm(xout, w3_ref[...]) + b3_ref[...])      # [B, HID]
    xae_ref[...] = mm(h3, w4_ref[...]) + b4_ref[...]     # [B, 128]


# ---------------------------------------------------------------------------
# wrapper: param padding/folding (layout only, exact math) + pallas_call
# ---------------------------------------------------------------------------
def _prep_params(p):
    def pad_cols(w, n):
        return jnp.pad(w, ((0, 0), (0, n - w.shape[1])))

    def pad_rows(w, n):
        return jnp.pad(w, ((0, n - w.shape[0]), (0, 0)))

    def head_pad(w):  # [HID, HID] -> [HID, H*DKP] with 128-aligned head blocks
        w3 = jnp.pad(w.reshape(HID, N_HEADS, DK), ((0, 0), (0, 0), (0, DKP - DK)))
        return w3.reshape(HID, N_HEADS * DKP)

    q = {}
    q['w1'] = p['w1'].astype(MM_DTYPE)
    q['b1'] = p['b1']
    q['bn1_scale'], q['bn1_shift'] = p['bn1_scale'], p['bn1_shift']
    q['wq'] = head_pad(p['wq']).astype(MM_DTYPE)
    q['wk'] = head_pad(p['wk']).astype(MM_DTYPE)
    # V weights pre-transposed per head: wvT[h, d, f] = wv[f, h*DK + d]
    wvt = p['wv'].reshape(HID, N_HEADS, DK).transpose(1, 2, 0)        # [H, DK, HID]
    q['wvT'] = jnp.pad(wvt, ((0, 0), (0, DKP - DK), (0, 0))).astype(MM_DTYPE)
    q['wfc'] = p['wfc'].astype(MM_DTYPE)
    q['ln1_g'], q['ln1_b'] = p['ln1_g'], p['ln1_b']
    q['wl1'] = p['wl1'].astype(MM_DTYPE)
    q['bl1'] = p['bl1']
    q['ln2_g'], q['ln2_b'] = p['ln2_g'], p['ln2_b']
    q['w2'] = pad_cols(p['w2'], X_OUT_PAD).astype(MM_DTYPE)
    q['b2'] = pad_cols(p['b2'], X_OUT_PAD)
    q['w3'] = pad_rows(p['w3'], X_OUT_PAD).astype(MM_DTYPE)
    q['b3'] = p['b3']
    # fold bn3 (eval): (h*s + t) @ W4 + b4 == h @ (s^T * W4) + (t @ W4 + b4)
    w4_eff = p['bn3_scale'].reshape(HID, 1) * p['w4']
    b4_eff = p['bn3_shift'] @ p['w4'] + p['b4']
    q['w4'] = pad_cols(w4_eff, XAE_PAD).astype(MM_DTYPE)
    q['b4'] = pad_cols(b4_eff, XAE_PAD)
    return q


def addae_forward(x, p):
    """Pallas implementation of ADDAE.forward (eval-mode). Returns (X, X_AE)."""
    assert x.shape == (B, VECTOR_SIZE)
    q = _prep_params(p)
    e_mat, vmask, a_mat = _scramble_constants()
    x1 = x[:, :VS]
    x2 = x[:, VS:]

    ins = (x1, x2, q['w1'], q['b1'], q['bn1_scale'], q['bn1_shift'],
           q['wq'], q['wk'], q['wvT'], e_mat, vmask, a_mat,
           q['wfc'], q['ln1_g'], q['ln1_b'], q['wl1'], q['bl1'],
           q['ln2_g'], q['ln2_b'], q['w2'], q['b2'], q['w3'], q['b3'],
           q['w4'], q['b4'])

    vmem = pltpu.MemorySpace.VMEM
    xout_pad, xae_pad = pl.pallas_call(
        _addae_kernel,
        out_shape=(jax.ShapeDtypeStruct((B, X_OUT_PAD), jnp.float32),
                   jax.ShapeDtypeStruct((B, XAE_PAD), jnp.float32)),
        in_specs=[pl.BlockSpec(memory_space=vmem) for _ in ins],
        out_specs=(pl.BlockSpec(memory_space=vmem),
                   pl.BlockSpec(memory_space=vmem)),
    )(*ins)

    x_out = xout_pad[:, :LEN_AFTER_AE]
    xae = xae_pad[:, :VS]
    return x_out, jnp.concatenate([xae, xae], axis=1)   # torch.cat((X_AE, X_AE), 1)


# ---------------------------------------------------------------------------
# deterministic parameter construction (PyTorch-style Linear init)
# ---------------------------------------------------------------------------
def init_params(key):
    def linear(k, fan_in, fan_out, bias=True):
        kw, kb = jax.random.split(k)
        bound = 1.0 / math.sqrt(fan_in)
        w = jax.random.uniform(kw, (fan_in, fan_out), jnp.float32, -bound, bound)
        b = (jax.random.uniform(kb, (1, fan_out), jnp.float32, -bound, bound)
             if bias else None)
        return w, b

    keys = jax.random.split(key, 9)
    p = {}
    p['w1'], p['b1'] = linear(keys[0], VS, HID)
    p['wq'], _ = linear(keys[1], HID, HID, bias=False)
    p['wk'], _ = linear(keys[2], HID, HID, bias=False)
    p['wv'], _ = linear(keys[3], HID, HID, bias=False)
    p['wfc'], _ = linear(keys[4], HID, HID, bias=False)
    p['wl1'], p['bl1'] = linear(keys[5], HID, HID)
    p['w2'], p['b2'] = linear(keys[6], HID, LEN_AFTER_AE)
    p['w3'], p['b3'] = linear(keys[7], LEN_AFTER_AE, HID)
    p['w4'], p['b4'] = linear(keys[8], HID, VS)

    # LayerNorm affine (PyTorch default: gamma=1, beta=0)
    for name in ('ln1', 'ln2'):
        p[f'{name}_g'] = jnp.ones((1, HID), jnp.float32)
        p[f'{name}_b'] = jnp.zeros((1, HID), jnp.float32)

    # BatchNorm1d eval-mode fold: scale = gamma/sqrt(rv+eps), shift = beta - rm*scale
    for name in ('bn1', 'bn3'):
        gamma = jnp.ones((1, HID), jnp.float32)
        beta = jnp.zeros((1, HID), jnp.float32)
        rm = jnp.zeros((1, HID), jnp.float32)
        rv = jnp.ones((1, HID), jnp.float32)
        scale = gamma / jnp.sqrt(rv + BN_EPS)
        p[f'{name}_scale'] = scale
        p[f'{name}_shift'] = beta - rm * scale
    return p


# ---------------------------------------------------------------------------
# pure-JAX f32 reference (mirrors the PyTorch module line by line)
# ---------------------------------------------------------------------------
def addae_reference(x, p):
    def ln(v, g, b):
        m = jnp.mean(v, -1, keepdims=True)
        var = jnp.mean((v - m) ** 2, -1, keepdims=True)
        return (v - m) / jnp.sqrt(var + LN_EPS) * g + b

    bsz = x.shape[0]
    h = x[:, :VS] + x[:, VS:]
    h = _gelu(h @ p['w1'] + p['b1'])
    h = h * p['bn1_scale'] + p['bn1_shift']
    q = (h @ p['wq']).reshape(bsz, N_HEADS, DK).transpose(1, 0, 2)
    k = (h @ p['wk']).reshape(bsz, N_HEADS, DK).transpose(1, 0, 2)
    v = (h @ p['wv']).reshape(bsz, N_HEADS, DK).transpose(1, 0, 2)
    s = jnp.einsum('hbd,hcd->hbc', q, k) / np.sqrt(DK)
    a = jax.nn.softmax(s, axis=-1)
    ctx = jnp.einsum('hbc,hcd->hbd', a, v)
    # module's context.transpose(1, 2).reshape(-1, H*d_v) batch/head scramble
    ctx = ctx.transpose(0, 2, 1).reshape(-1, N_HEADS * DK)
    att = ctx @ p['wfc']
    xh = ln(att + h, p['ln1_g'], p['ln1_b'])
    o = xh @ p['wl1'] + p['bl1']
    xh = ln(o + xh, p['ln2_g'], p['ln2_b'])
    x_out = xh @ p['w2'] + p['b2']
    hh = _gelu(x_out @ p['w3'] + p['b3'])
    hh = hh * p['bn3_scale'] + p['bn3_shift']
    xae = hh @ p['w4'] + p['b4']
    return x_out, jnp.concatenate([xae, xae], axis=1)


if __name__ == "__main__":
    key = jax.random.PRNGKey(0)
    kx, kp = jax.random.split(key)
    x = jax.random.normal(kx, (B, VECTOR_SIZE), jnp.float32)
    params = init_params(kp)

    fwd = jax.jit(addae_forward)
    x_out, x_ae = fwd(x, params)
    jax.block_until_ready((x_out, x_ae))

    assert x_out.shape == (B, LEN_AFTER_AE)
    assert x_ae.shape == (B, VECTOR_SIZE)

    ref_out, ref_ae = addae_reference(x, params)
    np.testing.assert_allclose(np.asarray(x_out), np.asarray(ref_out), rtol=2e-2, atol=2e-2)
    np.testing.assert_allclose(np.asarray(x_ae), np.asarray(ref_ae), rtol=2e-2, atol=2e-2)

    print("KERNEL_OK")
</pallas_src>

<mosaic_0001>
module attributes {stable_mosaic.version = 11 : i64} {
  func.func @_addae_kernel(%arg0: memref<8x100xf32, #tpu.memory_space<vmem>>, %arg1: memref<8x100xf32, #tpu.memory_space<vmem>>, %arg2: memref<100x400xbf16, #tpu.memory_space<vmem>>, %arg3: memref<1x400xf32, #tpu.memory_space<vmem>>, %arg4: memref<1x400xf32, #tpu.memory_space<vmem>>, %arg5: memref<1x400xf32, #tpu.memory_space<vmem>>, %arg6: memref<400x512xbf16, #tpu.memory_space<vmem>>, %arg7: memref<400x512xbf16, #tpu.memory_space<vmem>>, %arg8: memref<4x128x400xbf16, #tpu.memory_space<vmem>>, %arg9: memref<8x400xf32, #tpu.memory_space<vmem>>, %arg10: memref<128x400xf32, #tpu.memory_space<vmem>>, %arg11: memref<4x8x128xf32, #tpu.memory_space<vmem>>, %arg12: memref<400x400xbf16, #tpu.memory_space<vmem>>, %arg13: memref<1x400xf32, #tpu.memory_space<vmem>>, %arg14: memref<1x400xf32, #tpu.memory_space<vmem>>, %arg15: memref<400x400xbf16, #tpu.memory_space<vmem>>, %arg16: memref<1x400xf32, #tpu.memory_space<vmem>>, %arg17: memref<1x400xf32, #tpu.memory_space<vmem>>, %arg18: memref<1x400xf32, #tpu.memory_space<vmem>>, %arg19: memref<400x768xbf16, #tpu.memory_space<vmem>>, %arg20: memref<1x768xf32, #tpu.memory_space<vmem>>, %arg21: memref<768x400xbf16, #tpu.memory_space<vmem>>, %arg22: memref<1x400xf32, #tpu.memory_space<vmem>>, %arg23: memref<400x128xbf16, #tpu.memory_space<vmem>>, %arg24: memref<1x128xf32, #tpu.memory_space<vmem>>, %arg25: memref<8x768xf32, #tpu.memory_space<vmem>>, %arg26: memref<8x128xf32, #tpu.memory_space<vmem>>) attributes {dimension_semantics = [], scalar_prefetch = 0 : i64, scratch_operands = 0 : i64, tpu.core_type = #tpu.core_type<tc>} {
    %c0 = arith.constant 0 : index
    %c0_0 = arith.constant 0 : index
    %0 = vector.load %arg0[%c0, %c0_0] : memref<8x100xf32, #tpu.memory_space<vmem>>, vector<8x100xf32>
    %c0_1 = arith.constant 0 : index
    %c0_2 = arith.constant 0 : index
    %1 = vector.load %arg1[%c0_1, %c0_2] : memref<8x100xf32, #tpu.memory_space<vmem>>, vector<8x100xf32>
    %2 = arith.addf %0, %1 : vector<8x100xf32>
    %c0_3 = arith.constant 0 : index
    %c0_4 = arith.constant 0 : index
    %3 = vector.load %arg2[%c0_3, %c0_4] : memref<100x400xbf16, #tpu.memory_space<vmem>>, vector<100x400xbf16>
    %4 = arith.truncf %2 : vector<8x100xf32> to vector<8x100xbf16>
    %cst = arith.constant dense<0.000000e+00> : vector<8x400xf32>
    %5 = tpu.matmul %4, %3, %cst {dimension_numbers = #tpu.dot_dimension_numbers<[1], [0], [0], [1], [0, 0, 1, 1], [], []>} : vector<8x100xbf16>, vector<100x400xbf16>, vector<8x400xf32> -> vector<8x400xf32>
    %c0_5 = arith.constant 0 : index
    %c0_6 = arith.constant 0 : index
    %6 = vector.load %arg3[%c0_5, %c0_6] : memref<1x400xf32, #tpu.memory_space<vmem>>, vector<1x400xf32>
    %7 = vector.broadcast %6 : vector<1x400xf32> to vector<8x400xf32>
    %8 = arith.addf %5, %7 : vector<8x400xf32>
    %cst_7 = arith.constant 5.000000e-01 : f32
    %9 = vector.broadcast %cst_7 : f32 to vector<8x400xf32>
    %10 = arith.mulf %8, %9 : vector<8x400xf32>
    %cst_8 = arith.constant 1.41421354 : f32
    %11 = vector.broadcast %cst_8 : f32 to vector<8x400xf32>
    %12 = arith.divf %8, %11 : vector<8x400xf32>
    %13 = math.erf %12 : vector<8x400xf32>
    %cst_9 = arith.constant 1.000000e+00 : f32
    %14 = vector.broadcast %cst_9 : f32 to vector<8x400xf32>
    %15 = arith.addf %14, %13 : vector<8x400xf32>
    %16 = arith.mulf %10, %15 : vector<8x400xf32>
    %c0_10 = arith.constant 0 : index
    %c0_11 = arith.constant 0 : index
    %17 = vector.load %arg4[%c0_10, %c0_11] : memref<1x400xf32, #tpu.memory_space<vmem>>, vector<1x400xf32>
    %18 = vector.broadcast %17 : vector<1x400xf32> to vector<8x400xf32>
    %19 = arith.mulf %16, %18 : vector<8x400xf32>
    %c0_12 = arith.constant 0 : index
    %c0_13 = arith.constant 0 : index
    %20 = vector.load %arg5[%c0_12, %c0_13] : memref<1x400xf32, #tpu.memory_space<vmem>>, vector<1x400xf32>
    %21 = vector.broadcast %20 : vector<1x400xf32> to vector<8x400xf32>
    %22 = arith.addf %19, %21 : vector<8x400xf32>
    %23 = arith.truncf %22 : vector<8x400xf32> to vector<8x400xbf16>
    %c0_14 = arith.constant 0 : index
    %c0_15 = arith.constant 0 : index
    %24 = vector.load %arg6[%c0_14, %c0_15] : memref<400x512xbf16, #tpu.memory_space<vmem>>, vector<400x512xbf16>
    %cst_16 = arith.constant dense<0.000000e+00> : vector<8x512xf32>
    %25 = tpu.matmul %23, %24, %cst_16 {dimension_numbers = #tpu.dot_dimension_numbers<[1], [0], [0], [1], [0, 0, 1, 1], [], []>} : vector<8x400xbf16>, vector<400x512xbf16>, vector<8x512xf32> -> vector<8x512xf32>
    %c0_17 = arith.constant 0 : index
    %c0_18 = arith.constant 0 : index
    %26 = vector.load %arg7[%c0_17, %c0_18] : memref<400x512xbf16, #tpu.memory_space<vmem>>, vector<400x512xbf16>
    %cst_19 = arith.constant dense<0.000000e+00> : vector<8x512xf32>
    %27 = tpu.matmul %23, %26, %cst_19 {dimension_numbers = #tpu.dot_dimension_numbers<[1], [0], [0], [1], [0, 0, 1, 1], [], []>} : vector<8x400xbf16>, vector<400x512xbf16>, vector<8x512xf32> -> vector<8x512xf32>
    %c0_20 = arith.constant 0 : index
    %c0_21 = arith.constant 0 : index
    %28 = vector.load %arg9[%c0_20, %c0_21] : memref<8x400xf32, #tpu.memory_space<vmem>>, vector<8x400xf32>
    %c0_22 = arith.constant 0 : index
    %c0_23 = arith.constant 0 : index
    %29 = vector.load %arg10[%c0_22, %c0_23] : memref<128x400xf32, #tpu.memory_space<vmem>>, vector<128x400xf32>
    %cst_24 = arith.constant 0.000000e+00 : f32
    %30 = vector.broadcast %cst_24 : f32 to vector<8x400xf32>
    %31 = vector.extract_strided_slice %25 {offsets = [0, 0], sizes = [8, 128], strides = [1, 1]} : vector<8x512xf32> to vector<8x128xf32>
    %32 = vector.extract_strided_slice %27 {offsets = [0, 0], sizes = [8, 128], strides = [1, 1]} : vector<8x512xf32> to vector<8x128xf32>
    %cst_25 = arith.constant dense<0.000000e+00> : vector<8x8xf32>
    %33 = tpu.matmul %31, %32, %cst_25 {dimension_numbers = #tpu.dot_dimension_numbers<[1], [1], [0], [0], [0, 0, 1, 0], [], []>} : vector<8x128xf32>, vector<8x128xf32>, vector<8x8xf32> -> vector<8x8xf32>
    %cst_26 = arith.constant 1.000000e-01 : f32
    %34 = vector.broadcast %cst_26 : f32 to vector<8x8xf32>
    %35 = arith.mulf %33, %34 : vector<8x8xf32>
    %cst_27 = arith.constant dense<0xFF800000> : vector<8xf32>
    %36 = vector.multi_reduction <maximumf>, %35, %cst_27 [1] : vector<8x8xf32> to vector<8xf32>
    %37 = vector.shape_cast %36 : vector<8xf32> to vector<8x1xf32>
    %38 = vector.broadcast %37 : vector<8x1xf32> to vector<8x8xf32>
    %39 = arith.subf %35, %38 : vector<8x8xf32>
    %40 = math.exp %39 : vector<8x8xf32>
    %cst_28 = arith.constant dense<0.000000e+00> : vector<8xf32>
    %41 = vector.multi_reduction <add>, %40, %cst_28 [1] : vector<8x8xf32> to vector<8xf32>
    %42 = vector.shape_cast %41 : vector<8xf32> to vector<8x1xf32>
    %43 = tpu.reciprocal %42 {approx = true} : vector<8x1xf32> -> vector<8x1xf32>
    %44 = vector.broadcast %43 : vector<8x1xf32> to vector<8x8xf32>
    %45 = arith.mulf %40, %44 : vector<8x8xf32>
    %c0_29 = arith.constant 0 : index
    %c0_30 = arith.constant 0 : index
    %c0_31 = arith.constant 0 : index
    %46 = vector.load %arg8[%c0_29, %c0_30, %c0_31] : memref<4x128x400xbf16, #tpu.memory_space<vmem>>, vector<1x128x400xbf16>
    %47 = vector.shape_cast %46 : vector<1x128x400xbf16> to vector<128x400xbf16>
    %cst_32 = arith.constant dense<0.000000e+00> : vector<128x8xf32>
    %48 = tpu.matmul %47, %23, %cst_32 {dimension_numbers = #tpu.dot_dimension_numbers<[1], [1], [0], [0], [0, 0, 1, 0], [], []>} : vector<128x400xbf16>, vector<8x400xbf16>, vector<128x8xf32> -> vector<128x8xf32>
    %cst_33 = arith.constant dense<0.000000e+00> : vector<128x8xf32>
    %49 = tpu.matmul %48, %45, %cst_33 {dimension_numbers = #tpu.dot_dimension_numbers<[1], [1], [0], [0], [0, 0, 1, 0], [], []>} : vector<128x8xf32>, vector<8x8xf32>, vector<128x8xf32> -> vector<128x8xf32>
    %cst_34 = arith.constant dense<0.000000e+00> : vector<128x400xf32>
    %50 = tpu.matmul %49, %28, %cst_34 {dimension_numbers = #tpu.dot_dimension_numbers<[1], [0], [0], [1], [0, 0, 1, 1], [], []>} : vector<128x8xf32>, vector<8x400xf32>, vector<128x400xf32> -> vector<128x400xf32>
    %51 = arith.mulf %50, %29 : vector<128x400xf32>
    %c0_35 = arith.constant 0 : index
    %c0_36 = arith.constant 0 : index
    %c0_37 = arith.constant 0 : index
    %52 = vector.load %arg11[%c0_35, %c0_36, %c0_37] : memref<4x8x128xf32, #tpu.memory_space<vmem>>, vector<1x8x128xf32>
    %53 = vector.shape_cast %52 : vector<1x8x128xf32> to vector<8x128xf32>
    %cst_38 = arith.constant dense<0.000000e+00> : vector<8x400xf32>
    %54 = tpu.matmul %53, %51, %cst_38 {dimension_numbers = #tpu.dot_dimension_numbers<[1], [0], [0], [1], [0, 0, 1, 1], [], []>} : vector<8x128xf32>, vector<128x400xf32>, vector<8x400xf32> -> vector<8x400xf32>
    %55 = arith.addf %30, %54 : vector<8x400xf32>
    %56 = vector.extract_strided_slice %25 {offsets = [0, 128], sizes = [8, 128], strides = [1, 1]} : vector<8x512xf32> to vector<8x128xf32>
    %57 = vector.extract_strided_slice %27 {offsets = [0, 128], sizes = [8, 128], strides = [1, 1]} : vector<8x512xf32> to vector<8x128xf32>
    %cst_39 = arith.constant dense<0.000000e+00> : vector<8x8xf32>
    %58 = tpu.matmul %56, %57, %cst_39 {dimension_numbers = #tpu.dot_dimension_numbers<[1], [1], [0], [0], [0, 0, 1, 0], [], []>} : vector<8x128xf32>, vector<8x128xf32>, vector<8x8xf32> -> vector<8x8xf32>
    %cst_40 = arith.constant 1.000000e-01 : f32
    %59 = vector.broadcast %cst_40 : f32 to vector<8x8xf32>
    %60 = arith.mulf %58, %59 : vector<8x8xf32>
    %cst_41 = arith.constant dense<0xFF800000> : vector<8xf32>
    %61 = vector.multi_reduction <maximumf>, %60, %cst_41 [1] : vector<8x8xf32> to vector<8xf32>
    %62 = vector.shape_cast %61 : vector<8xf32> to vector<8x1xf32>
    %63 = vector.broadcast %62 : vector<8x1xf32> to vector<8x8xf32>
    %64 = arith.subf %60, %63 : vector<8x8xf32>
    %65 = math.exp %64 : vector<8x8xf32>
    %cst_42 = arith.constant dense<0.000000e+00> : vector<8xf32>
    %66 = vector.multi_reduction <add>, %65, %cst_42 [1] : vector<8x8xf32> to vector<8xf32>
    %67 = vector.shape_cast %66 : vector<8xf32> to vector<8x1xf32>
    %68 = tpu.reciprocal %67 {approx = true} : vector<8x1xf32> -> vector<8x1xf32>
    %69 = vector.broadcast %68 : vector<8x1xf32> to vector<8x8xf32>
    %70 = arith.mulf %65, %69 : vector<8x8xf32>
    %c1 = arith.constant 1 : index
    %c0_43 = arith.constant 0 : index
    %c0_44 = arith.constant 0 : index
    %71 = vector.load %arg8[%c1, %c0_43, %c0_44] : memref<4x128x400xbf16, #tpu.memory_space<vmem>>, vector<1x128x400xbf16>
    %72 = vector.shape_cast %71 : vector<1x128x400xbf16> to vector<128x400xbf16>
    %cst_45 = arith.constant dense<0.000000e+00> : vector<128x8xf32>
    %73 = tpu.matmul %72, %23, %cst_45 {dimension_numbers = #tpu.dot_dimension_numbers<[1], [1], [0], [0], [0, 0, 1, 0], [], []>} : vector<128x400xbf16>, vector<8x400xbf16>, vector<128x8xf32> -> vector<128x8xf32>
    %cst_46 = arith.constant dense<0.000000e+00> : vector<128x8xf32>
    %74 = tpu.matmul %73, %70, %cst_46 {dimension_numbers = #tpu.dot_dimension_numbers<[1], [1], [0], [0], [0, 0, 1, 0], [], []>} : vector<128x8xf32>, vector<8x8xf32>, vector<128x8xf32> -> vector<128x8xf32>
    %cst_47 = arith.constant dense<0.000000e+00> : vector<128x400xf32>
    %75 = tpu.matmul %74, %28, %cst_47 {dimension_numbers = #tpu.dot_dimension_numbers<[1], [0], [0], [1], [0, 0, 1, 1], [], []>} : vector<128x8xf32>, vector<8x400xf32>, vector<128x400xf32> -> vector<128x400xf32>
    %76 = arith.mulf %75, %29 : vector<128x400xf32>
    %c1_48 = arith.constant 1 : index
    %c0_49 = arith.constant 0 : index
    %c0_50 = arith.constant 0 : index
    %77 = vector.load %arg11[%c1_48, %c0_49, %c0_50] : memref<4x8x128xf32, #tpu.memory_space<vmem>>, vector<1x8x128xf32>
    %78 = vector.shape_cast %77 : vector<1x8x128xf32> to vector<8x128xf32>
    %cst_51 = arith.constant dense<0.000000e+00> : vector<8x400xf32>
    %79 = tpu.matmul %78, %76, %cst_51 {dimension_numbers = #tpu.dot_dimension_numbers<[1], [0], [0], [1], [0, 0, 1, 1], [], []>} : vector<8x128xf32>, vector<128x400xf32>, vector<8x400xf32> -> vector<8x400xf32>
    %80 = arith.addf %55, %79 : vector<8x400xf32>
    %81 = vector.extract_strided_slice %25 {offsets = [0, 256], sizes = [8, 128], strides = [1, 1]} : vector<8x512xf32> to vector<8x128xf32>
    %82 = vector.extract_strided_slice %27 {offsets = [0, 256], sizes = [8, 128], strides = [1, 1]} : vector<8x512xf32> to vector<8x128xf32>
    %cst_52 = arith.constant dense<0.000000e+00> : vector<8x8xf32>
    %83 = tpu.matmul %81, %82, %cst_52 {dimension_numbers = #tpu.dot_dimension_numbers<[1], [1], [0], [0], [0, 0, 1, 0], [], []>} : vector<8x128xf32>, vector<8x128xf32>, vector<8x8xf32> -> vector<8x8xf32>
    %cst_53 = arith.constant 1.000000e-01 : f32
    %84 = vector.broadcast %cst_53 : f32 to vector<8x8xf32>
    %85 = arith.mulf %83, %84 : vector<8x8xf32>
    %cst_54 = arith.constant dense<0xFF800000> : vector<8xf32>
    %86 = vector.multi_reduction <maximumf>, %85, %cst_54 [1] : vector<8x8xf32> to vector<8xf32>
    %87 = vector.shape_cast %86 : vector<8xf32> to vector<8x1xf32>
    %88 = vector.broadcast %87 : vector<8x1xf32> to vector<8x8xf32>
    %89 = arith.subf %85, %88 : vector<8x8xf32>
    %90 = math.exp %89 : vector<8x8xf32>
    %cst_55 = arith.constant dense<0.000000e+00> : vector<8xf32>
    %91 = vector.multi_reduction <add>, %90, %cst_55 [1] : vector<8x8xf32> to vector<8xf32>
    %92 = vector.shape_cast %91 : vector<8xf32> to vector<8x1xf32>
    %93 = tpu.reciprocal %92 {approx = true} : vector<8x1xf32> -> vector<8x1xf32>
    %94 = vector.broadcast %93 : vector<8x1xf32> to vector<8x8xf32>
    %95 = arith.mulf %90, %94 : vector<8x8xf32>
    %c2 = arith.constant 2 : index
    %c0_56 = arith.constant 0 : index
    %c0_57 = arith.constant 0 : index
    %96 = vector.load %arg8[%c2, %c0_56, %c0_57] : memref<4x128x400xbf16, #tpu.memory_space<vmem>>, vector<1x128x400xbf16>
    %97 = vector.shape_cast %96 : vector<1x128x400xbf16> to vector<128x400xbf16>
    %cst_58 = arith.constant dense<0.000000e+00> : vector<128x8xf32>
    %98 = tpu.matmul %97, %23, %cst_58 {dimension_numbers = #tpu.dot_dimension_numbers<[1], [1], [0], [0], [0, 0, 1, 0], [], []>} : vector<128x400xbf16>, vector<8x400xbf16>, vector<128x8xf32> -> vector<128x8xf32>
    %cst_59 = arith.constant dense<0.000000e+00> : vector<128x8xf32>
    %99 = tpu.matmul %98, %95, %cst_59 {dimension_numbers = #tpu.dot_dimension_numbers<[1], [1], [0], [0], [0, 0, 1, 0], [], []>} : vector<128x8xf32>, vector<8x8xf32>, vector<128x8xf32> -> vector<128x8xf32>
    %cst_60 = arith.constant dense<0.000000e+00> : vector<128x400xf32>
    %100 = tpu.matmul %99, %28, %cst_60 {dimension_numbers = #tpu.dot_dimension_numbers<[1], [0], [0], [1], [0, 0, 1, 1], [], []>} : vector<128x8xf32>, vector<8x400xf32>, vector<128x400xf32> -> vector<128x400xf32>
    %101 = arith.mulf %100, %29 : vector<128x400xf32>
    %c2_61 = arith.constant 2 : index
    %c0_62 = arith.constant 0 : index
    %c0_63 = arith.constant 0 : index
    %102 = vector.load %arg11[%c2_61, %c0_62, %c0_63] : memref<4x8x128xf32, #tpu.memory_space<vmem>>, vector<1x8x128xf32>
    %103 = vector.shape_cast %102 : vector<1x8x128xf32> to vector<8x128xf32>
    %cst_64 = arith.constant dense<0.000000e+00> : vector<8x400xf32>
    %104 = tpu.matmul %103, %101, %cst_64 {dimension_numbers = #tpu.dot_dimension_numbers<[1], [0], [0], [1], [0, 0, 1, 1], [], []>} : vector<8x128xf32>, vector<128x400xf32>, vector<8x400xf32> -> vector<8x400xf32>
    %105 = arith.addf %80, %104 : vector<8x400xf32>
    %106 = vector.extract_strided_slice %25 {offsets = [0, 384], sizes = [8, 128], strides = [1, 1]} : vector<8x512xf32> to vector<8x128xf32>
    %107 = vector.extract_strided_slice %27 {offsets = [0, 384], sizes = [8, 128], strides = [1, 1]} : vector<8x512xf32> to vector<8x128xf32>
    %cst_65 = arith.constant dense<0.000000e+00> : vector<8x8xf32>
    %108 = tpu.matmul %106, %107, %cst_65 {dimension_numbers = #tpu.dot_dimension_numbers<[1], [1], [0], [0], [0, 0, 1, 0], [], []>} : vector<8x128xf32>, vector<8x128xf32>, vector<8x8xf32> -> vector<8x8xf32>
    %cst_66 = arith.constant 1.000000e-01 : f32
    %109 = vector.broadcast %cst_66 : f32 to vector<8x8xf32>
    %110 = arith.mulf %108, %109 : vector<8x8xf32>
    %cst_67 = arith.constant dense<0xFF800000> : vector<8xf32>
    %111 = vector.multi_reduction <maximumf>, %110, %cst_67 [1] : vector<8x8xf32> to vector<8xf32>
    %112 = vector.shape_cast %111 : vector<8xf32> to vector<8x1xf32>
    %113 = vector.broadcast %112 : vector<8x1xf32> to vector<8x8xf32>
    %114 = arith.subf %110, %113 : vector<8x8xf32>
    %115 = math.exp %114 : vector<8x8xf32>
    %cst_68 = arith.constant dense<0.000000e+00> : vector<8xf32>
    %116 = vector.multi_reduction <add>, %115, %cst_68 [1] : vector<8x8xf32> to vector<8xf32>
    %117 = vector.shape_cast %116 : vector<8xf32> to vector<8x1xf32>
    %118 = tpu.reciprocal %117 {approx = true} : vector<8x1xf32> -> vector<8x1xf32>
    %119 = vector.broadcast %118 : vector<8x1xf32> to vector<8x8xf32>
    %120 = arith.mulf %115, %119 : vector<8x8xf32>
    %c3 = arith.constant 3 : index
    %c0_69 = arith.constant 0 : index
    %c0_70 = arith.constant 0 : index
    %121 = vector.load %arg8[%c3, %c0_69, %c0_70] : memref<4x128x400xbf16, #tpu.memory_space<vmem>>, vector<1x128x400xbf16>
    %122 = vector.shape_cast %121 : vector<1x128x400xbf16> to vector<128x400xbf16>
    %cst_71 = arith.constant dense<0.000000e+00> : vector<128x8xf32>
    %123 = tpu.matmul %122, %23, %cst_71 {dimension_numbers = #tpu.dot_dimension_numbers<[1], [1], [0], [0], [0, 0, 1, 0], [], []>} : vector<128x400xbf16>, vector<8x400xbf16>, vector<128x8xf32> -> vector<128x8xf32>
    %cst_72 = arith.constant dense<0.000000e+00> : vector<128x8xf32>
    %124 = tpu.matmul %123, %120, %cst_72 {dimension_numbers = #tpu.dot_dimension_numbers<[1], [1], [0], [0], [0, 0, 1, 0], [], []>} : vector<128x8xf32>, vector<8x8xf32>, vector<128x8xf32> -> vector<128x8xf32>
    %cst_73 = arith.constant dense<0.000000e+00> : vector<128x400xf32>
    %125 = tpu.matmul %124, %28, %cst_73 {dimension_numbers = #tpu.dot_dimension_numbers<[1], [0], [0], [1], [0, 0, 1, 1], [], []>} : vector<128x8xf32>, vector<8x400xf32>, vector<128x400xf32> -> vector<128x400xf32>
    %126 = arith.mulf %125, %29 : vector<128x400xf32>
    %c3_74 = arith.constant 3 : index
    %c0_75 = arith.constant 0 : index
    %c0_76 = arith.constant 0 : index
    %127 = vector.load %arg11[%c3_74, %c0_75, %c0_76] : memref<4x8x128xf32, #tpu.memory_space<vmem>>, vector<1x8x128xf32>
    %128 = vector.shape_cast %127 : vector<1x8x128xf32> to vector<8x128xf32>
    %cst_77 = arith.constant dense<0.000000e+00> : vector<8x400xf32>
    %129 = tpu.matmul %128, %126, %cst_77 {dimension_numbers = #tpu.dot_dimension_numbers<[1], [0], [0], [1], [0, 0, 1, 1], [], []>} : vector<8x128xf32>, vector<128x400xf32>, vector<8x400xf32> -> vector<8x400xf32>
    %130 = arith.addf %105, %129 : vector<8x400xf32>
    %c0_78 = arith.constant 0 : index
    %c0_79 = arith.constant 0 : index
    %131 = vector.load %arg12[%c0_78, %c0_79] : memref<400x400xbf16, #tpu.memory_space<vmem>>, vector<400x400xbf16>
    %132 = arith.truncf %130 : vector<8x400xf32> to vector<8x400xbf16>
    %cst_80 = arith.constant dense<0.000000e+00> : vector<8x400xf32>
    %133 = tpu.matmul %132, %131, %cst_80 {dimension_numbers = #tpu.dot_dimension_numbers<[1], [0], [0], [1], [0, 0, 1, 1], [], []>} : vector<8x400xbf16>, vector<400x400xbf16>, vector<8x400xf32> -> vector<8x400xf32>
    %134 = arith.addf %133, %22 : vector<8x400xf32>
    %c0_81 = arith.constant 0 : index
    %c0_82 = arith.constant 0 : index
    %135 = vector.load %arg13[%c0_81, %c0_82] : memref<1x400xf32, #tpu.memory_space<vmem>>, vector<1x400xf32>
    %c0_83 = arith.constant 0 : index
    %c0_84 = arith.constant 0 : index
    %136 = vector.load %arg14[%c0_83, %c0_84] : memref<1x400xf32, #tpu.memory_space<vmem>>, vector<1x400xf32>
    %cst_85 = arith.constant dense<0.000000e+00> : vector<8xf32>
    %137 = vector.multi_reduction <add>, %134, %cst_85 [1] : vector<8x400xf32> to vector<8xf32>
    %138 = vector.shape_cast %137 : vector<8xf32> to vector<8x1xf32>
    %cst_86 = arith.constant 4.000000e+02 : f32
    %139 = vector.broadcast %cst_86 : f32 to vector<8x1xf32>
    %140 = arith.divf %138, %139 : vector<8x1xf32>
    %141 = vector.broadcast %140 : vector<8x1xf32> to vector<8x400xf32>
    %142 = arith.subf %134, %141 : vector<8x400xf32>
    %143 = arith.mulf %142, %142 : vector<8x400xf32>
    %cst_87 = arith.constant dense<0.000000e+00> : vector<8xf32>
    %144 = vector.multi_reduction <add>, %143, %cst_87 [1] : vector<8x400xf32> to vector<8xf32>
    %145 = vector.shape_cast %144 : vector<8xf32> to vector<8x1xf32>
    %cst_88 = arith.constant 4.000000e+02 : f32
    %146 = vector.broadcast %cst_88 : f32 to vector<8x1xf32>
    %147 = arith.divf %145, %146 : vector<8x1xf32>
    %148 = vector.broadcast %140 : vector<8x1xf32> to vector<8x400xf32>
    %149 = arith.subf %134, %148 : vector<8x400xf32>
    %cst_89 = arith.constant 9.99999974E-6 : f32
    %150 = vector.broadcast %cst_89 : f32 to vector<8x1xf32>
    %151 = arith.addf %147, %150 : vector<8x1xf32>
    %152 = math.rsqrt %151 : vector<8x1xf32>
    %153 = vector.broadcast %152 : vector<8x1xf32> to vector<8x400xf32>
    %154 = arith.mulf %149, %153 : vector<8x400xf32>
    %155 = vector.broadcast %135 : vector<1x400xf32> to vector<8x400xf32>
    %156 = arith.mulf %154, %155 : vector<8x400xf32>
    %157 = vector.broadcast %136 : vector<1x400xf32> to vector<8x400xf32>
    %158 = arith.addf %156, %157 : vector<8x400xf32>
    %c0_90 = arith.constant 0 : index
    %c0_91 = arith.constant 0 : index
    %159 = vector.load %arg15[%c0_90, %c0_91] : memref<400x400xbf16, #tpu.memory_space<vmem>>, vector<400x400xbf16>
    %160 = arith.truncf %158 : vector<8x400xf32> to vector<8x400xbf16>
    %cst_92 = arith.constant dense<0.000000e+00> : vector<8x400xf32>
    %161 = tpu.matmul %160, %159, %cst_92 {dimension_numbers = #tpu.dot_dimension_numbers<[1], [0], [0], [1], [0, 0, 1, 1], [], []>} : vector<8x400xbf16>, vector<400x400xbf16>, vector<8x400xf32> -> vector<8x400xf32>
    %c0_93 = arith.constant 0 : index
    %c0_94 = arith.constant 0 : index
    %162 = vector.load %arg16[%c0_93, %c0_94] : memref<1x400xf32, #tpu.memory_space<vmem>>, vector<1x400xf32>
    %163 = vector.broadcast %162 : vector<1x400xf32> to vector<8x400xf32>
    %164 = arith.addf %161, %163 : vector<8x400xf32>
    %165 = arith.addf %164, %158 : vector<8x400xf32>
    %c0_95 = arith.constant 0 : index
    %c0_96 = arith.constant 0 : index
    %166 = vector.load %arg17[%c0_95, %c0_96] : memref<1x400xf32, #tpu.memory_space<vmem>>, vector<1x400xf32>
    %c0_97 = arith.constant 0 : index
    %c0_98 = arith.constant 0 : index
    %167 = vector.load %arg18[%c0_97, %c0_98] : memref<1x400xf32, #tpu.memory_space<vmem>>, vector<1x400xf32>
    %cst_99 = arith.constant dense<0.000000e+00> : vector<8xf32>
    %168 = vector.multi_reduction <add>, %165, %cst_99 [1] : vector<8x400xf32> to vector<8xf32>
    %169 = vector.shape_cast %168 : vector<8xf32> to vector<8x1xf32>
    %cst_100 = arith.constant 4.000000e+02 : f32
    %170 = vector.broadcast %cst_100 : f32 to vector<8x1xf32>
    %171 = arith.divf %169, %170 : vector<8x1xf32>
    %172 = vector.broadcast %171 : vector<8x1xf32> to vector<8x400xf32>
    %173 = arith.subf %165, %172 : vector<8x400xf32>
    %174 = arith.mulf %173, %173 : vector<8x400xf32>
    %cst_101 = arith.constant dense<0.000000e+00> : vector<8xf32>
    %175 = vector.multi_reduction <add>, %174, %cst_101 [1] : vector<8x400xf32> to vector<8xf32>
    %176 = vector.shape_cast %175 : vector<8xf32> to vector<8x1xf32>
    %cst_102 = arith.constant 4.000000e+02 : f32
    %177 = vector.broadcast %cst_102 : f32 to vector<8x1xf32>
    %178 = arith.divf %176, %177 : vector<8x1xf32>
    %179 = vector.broadcast %171 : vector<8x1xf32> to vector<8x400xf32>
    %180 = arith.subf %165, %179 : vector<8x400xf32>
    %cst_103 = arith.constant 9.99999974E-6 : f32
    %181 = vector.broadcast %cst_103 : f32 to vector<8x1xf32>
    %182 = arith.addf %178, %181 : vector<8x1xf32>
    %183 = math.rsqrt %182 : vector<8x1xf32>
    %184 = vector.broadcast %183 : vector<8x1xf32> to vector<8x400xf32>
    %185 = arith.mulf %180, %184 : vector<8x400xf32>
    %186 = vector.broadcast %166 : vector<1x400xf32> to vector<8x400xf32>
    %187 = arith.mulf %185, %186 : vector<8x400xf32>
    %188 = vector.broadcast %167 : vector<1x400xf32> to vector<8x400xf32>
    %189 = arith.addf %187, %188 : vector<8x400xf32>
    %c0_104 = arith.constant 0 : index
    %c0_105 = arith.constant 0 : index
    %190 = vector.load %arg19[%c0_104, %c0_105] : memref<400x768xbf16, #tpu.memory_space<vmem>>, vector<400x768xbf16>
    %191 = arith.truncf %189 : vector<8x400xf32> to vector<8x400xbf16>
    %cst_106 = arith.constant dense<0.000000e+00> : vector<8x768xf32>
    %192 = tpu.matmul %191, %190, %cst_106 {dimension_numbers = #tpu.dot_dimension_numbers<[1], [0], [0], [1], [0, 0, 1, 1], [], []>} : vector<8x400xbf16>, vector<400x768xbf16>, vector<8x768xf32> -> vector<8x768xf32>
    %c0_107 = arith.constant 0 : index
    %c0_108 = arith.constant 0 : index
    %193 = vector.load %arg20[%c0_107, %c0_108] : memref<1x768xf32, #tpu.memory_space<vmem>>, vector<1x768xf32>
    %194 = vector.broadcast %193 : vector<1x768xf32> to vector<8x768xf32>
    %195 = arith.addf %192, %194 : vector<8x768xf32>
    %c0_109 = arith.constant 0 : index
    %c0_110 = arith.constant 0 : index
    %196 = vector.load %arg25[%c0_109, %c0_110] : memref<8x768xf32, #tpu.memory_space<vmem>>, vector<8x768xf32>
    tpu.vector_store %arg25[%c0_109, %c0_110], %195 {strides = array<i32>} : memref<8x768xf32, #tpu.memory_space<vmem>>, vector<8x768xf32>,
    %c0_111 = arith.constant 0 : index
    %c0_112 = arith.constant 0 : index
    %197 = vector.load %arg21[%c0_111, %c0_112] : memref<768x400xbf16, #tpu.memory_space<vmem>>, vector<768x400xbf16>
    %198 = arith.truncf %195 : vector<8x768xf32> to vector<8x768xbf16>
    %cst_113 = arith.constant dense<0.000000e+00> : vector<8x400xf32>
    %199 = tpu.matmul %198, %197, %cst_113 {dimension_numbers = #tpu.dot_dimension_numbers<[1], [0], [0], [1], [0, 0, 1, 1], [], []>} : vector<8x768xbf16>, vector<768x400xbf16>, vector<8x400xf32> -> vector<8x400xf32>
    %c0_114 = arith.constant 0 : index
    %c0_115 = arith.constant 0 : index
    %200 = vector.load %arg22[%c0_114, %c0_115] : memref<1x400xf32, #tpu.memory_space<vmem>>, vector<1x400xf32>
    %201 = vector.broadcast %200 : vector<1x400xf32> to vector<8x400xf32>
    %202 = arith.addf %199, %201 : vector<8x400xf32>
    %cst_116 = arith.constant 5.000000e-01 : f32
    %203 = vector.broadcast %cst_116 : f32 to vector<8x400xf32>
    %204 = arith.mulf %202, %203 : vector<8x400xf32>
    %cst_117 = arith.constant 1.41421354 : f32
    %205 = vector.broadcast %cst_117 : f32 to vector<8x400xf32>
    %206 = arith.divf %202, %205 : vector<8x400xf32>
    %207 = math.erf %206 : vector<8x400xf32>
    %cst_118 = arith.constant 1.000000e+00 : f32
    %208 = vector.broadcast %cst_118 : f32 to vector<8x400xf32>
    %209 = arith.addf %208, %207 : vector<8x400xf32>
    %210 = arith.mulf %204, %209 : vector<8x400xf32>
    %c0_119 = arith.constant 0 : index
    %c0_120 = arith.constant 0 : index
    %211 = vector.load %arg23[%c0_119, %c0_120] : memref<400x128xbf16, #tpu.memory_space<vmem>>, vector<400x128xbf16>
    %212 = arith.truncf %210 : vector<8x400xf32> to vector<8x400xbf16>
    %cst_121 = arith.constant dense<0.000000e+00> : vector<8x128xf32>
    %213 = tpu.matmul %212, %211, %cst_121 {dimension_numbers = #tpu.dot_dimension_numbers<[1], [0], [0], [1], [0, 0, 1, 1], [], []>} : vector<8x400xbf16>, vector<400x128xbf16>, vector<8x128xf32> -> vector<8x128xf32>
    %c0_122 = arith.constant 0 : index
    %c0_123 = arith.constant 0 : index
    %214 = vector.load %arg24[%c0_122, %c0_123] : memref<1x128xf32, #tpu.memory_space<vmem>>, vector<1x128xf32>
    %215 = vector.broadcast %214 : vector<1x128xf32> to vector<8x128xf32>
    %216 = arith.addf %213, %215 : vector<8x128xf32>
    %c0_124 = arith.constant 0 : index
    %c0_125 = arith.constant 0 : index
    %217 = vector.load %arg26[%c0_124, %c0_125] : memref<8x128xf32, #tpu.memory_space<vmem>>, vector<8x128xf32>
    tpu.vector_store %arg26[%c0_124, %c0_125], %216 {strides = array<i32>} : memref<8x128xf32, #tpu.memory_space<vmem>>, vector<8x128xf32>,
    return
  }
}

</mosaic_0001>

<bundles_post_ra>
// kernel: addae_forward.1
= control target key start
LH: loop header
LB: loop body
LE: loop exit
PB: predicated region body
PF: predicated region fallthrough
CT: control target
= control target key end

     0   :  { %s20115_s0 = inlined_call_operand.vmem [shape: f32[8,100], index: 0, kind: input, shape index: {}]   ;;  %s20116_s1 = inlined_call_operand.vmem [shape: f32[8,100], index: 1, kind: input, shape index: {}]   ;;  %s20117_s2 = inlined_call_operand.vmem [shape: bf16[100,400], index: 2, kind: input, shape index: {}]   ;;  %s20118_s3 = inlined_call_operand.vmem [shape: f32[1,400], index: 3, kind: input, shape index: {}]   ;;  %s20119_s4 = inlined_call_operand.vmem [shape: f32[1,400], index: 4, kind: input, shape index: {}]   ;;  %s20120_s5 = inlined_call_operand.vmem [shape: f32[1,400], index: 5, kind: input, shape index: {}]   ;;  %s20121_s6 = inlined_call_operand.vmem [shape: bf16[400,512], index: 6, kind: input, shape index: {}]   ;;  %s20122_s7 = inlined_call_operand.vmem [shape: bf16[400,512], index: 7, kind: input, shape index: {}]   ;;  %s20123_s8 = inlined_call_operand.vmem [shape: bf16[4,128,400], index: 8, kind: input, shape index: {}]   ;;  %s20124_s9 = inlined_call_operand.vmem [shape: f32[8,400], index: 9, kind: input, shape index: {}]   ;;  %s20125_s10 = inlined_call_operand.vmem [shape: f32[128,400], index: 10, kind: input, shape index: {}]   ;;  %s20126_s11 = inlined_call_operand.vmem [shape: f32[4,8,128], index: 11, kind: input, shape index: {}]   ;;  %s20127_s12 = inlined_call_operand.vmem [shape: bf16[400,400], index: 12, kind: input, shape index: {}]   ;;  %s20128_s13 = inlined_call_operand.vmem [shape: f32[1,400], index: 13, kind: input, shape index: {}]   ;;  %s20129_s14 = inlined_call_operand.vmem [shape: f32[1,400], index: 14, kind: input, shape index: {}]   ;;  %s20130_s15 = inlined_call_operand.vmem [shape: bf16[400,400], index: 15, kind: input, shape index: {}]   ;;  %s20131_s16 = inlined_call_operand.vmem [shape: f32[1,400], index: 16, kind: input, shape index: {}]   ;;  %s20132_s17 = inlined_call_operand.vmem [shape: f32[1,400], index: 17, kind: input, shape index: {}]   ;;  %s20133_s18 = inlined_call_operand.vmem [shape: f32[1,400], index: 18, kind: input, shape index: {}]   ;;  %s20134_s19 = inlined_call_operand.vmem [shape: bf16[400,768], index: 19, kind: input, shape index: {}]   ;;  %s20135_s20 = inlined_call_operand.vmem [shape: f32[1,768], index: 20, kind: input, shape index: {}]   ;;  %s20136_s21 = inlined_call_operand.vmem [shape: bf16[768,400], index: 21, kind: input, shape index: {}]   ;;  %s20137_s22 = inlined_call_operand.vmem [shape: f32[1,400], index: 22, kind: input, shape index: {}]   ;;  %s20138_s23 = inlined_call_operand.vmem [shape: bf16[400,128], index: 23, kind: input, shape index: {}]   ;;  %s20139_s24 = inlined_call_operand.vmem [shape: f32[1,128], index: 24, kind: input, shape index: {}]   ;;  %s20140_s25 = inlined_call_operand.hbm [shape: f32[8,768], index: 25, kind: output, shape index: {0}]   ;;  %s20141_s26 = inlined_call_operand.vmem [shape: f32[8,128], index: 26, kind: output, shape index: {1}]  }
   0x1   :  { %20239 = sst [smem:[#allocation110_spill]] %s20115_s0 }
   0x2   :  { %20240 = sst [smem:[#allocation111_spill]] %s20116_s1 }
   0x3   :  { %20241 = sst [smem:[#allocation112_spill]] %s20117_s2 }
   0x4   :  { %20242 = sst [smem:[#allocation113_spill]] %s20118_s3 }
   0x5   :  { %20243 = sst [smem:[#allocation114_spill]] %s20119_s4 }
   0x6   :  { %20244 = sst [smem:[#allocation115_spill]] %s20120_s5 }
   0x7   :  { %20245 = sst [smem:[#allocation116_spill]] %s20121_s6 }
   0x8   :  { %20246 = sst [smem:[#allocation117_spill]] %s20122_s7 }
   0x9   :  { %20247 = sst [smem:[#allocation118_spill]] %s20123_s8 }
   0xa   :  { %20248 = sst [smem:[#allocation119_spill]] %s20124_s9 }
   0xb   :  { %20249 = sst [smem:[#allocation120_spill]] %s20125_s10 }
   0xc   :  { %s20250_s7 = sld [smem:[#allocation112_spill]]  ;;  %vm270_vm0 = vcmask 1041408   ;;  %v20148_v14 = vmov 0   ;;  %vm266_vm1 = vcmask 818176   ;;  %vm1042_vm2 = vcmask 130048  }
   0xd   :  { %315 = vmatprep.mubr.bf16.mxu0 %v20148_v14  ;;  %356 = vmatprep.mubr.bf16.mxu1 %v20148_v14  ;;  %s20251_s0 = sld [smem:[#allocation110_spill]] }
   0xe   :  { %s20252_s2 = sld [smem:[#allocation111_spill]] }
   0xf   :  { %s20253_s4 = sld [smem:[#allocation116_spill]] }
  0x10   :  { %s20255_s5 = sld [smem:[#allocation113_spill]] }
  0x11   :  { %s20260_s1 = sld [smem:[#allocation114_spill]] }
  0x12   :  { %v111_v0 = vld [vmem:[%s20250_s7 + $0xc0] sm:$0x33]  ;;  %v112_v1 = vld [vmem:[%s20250_s7 + $0xc8] sm:$0x33]  ;;  %s20261_s28 = sld [smem:[#allocation115_spill]] }
  0x13   :  { %v11789_v2 = vcombine.high %v111_v0, %v111_v0  ;;  %v11791_v3 = vcombine.high %v112_v1, %v112_v1  ;;  %v11788_v4 = vcombine.low %v111_v0, %v111_v0  ;;  %v11790_v5 = vcombine.low %v112_v1, %v112_v1  ;;  %v13267_v6 = vld [vmem:[%s20250_s7 + $0xa4] ss:$16 sps:$4 sm:$0xff]   ;;  %v13269_v7 = vld [vmem:[%s20250_s7 + $0xac] ss:$16 sps:$4 sm:$0xff]   ;;  %v13271_v8 = vld [vmem:[%s20250_s7 + $0xa0] ss:$16 sps:$4 sm:$0xff]  }
  0x14   :  { %v13272_v11 = vld [vmem:[%s20250_s7 + $0xa8] ss:$16 sps:$4 sm:$0xff]   ;;  %v13273_v12 = vld [vmem:[%s20250_s7 + $0x84] ss:$16 sps:$4 sm:$0xff]   ;;  %v13275_v13 = vld [vmem:[%s20250_s7 + $0x8c] ss:$16 sps:$4 sm:$0xff]  }
  0x15   :  { %11792 = vmatprep.subr.msk.bf16.mxu0 %vm270_vm0, %v11789_v2  ;;  %11794 = vmatprep.subr.msk.bf16.mxu1 %vm270_vm0, %v11791_v3  ;;  %v272_v9 = vsel %vm270_vm0, %v11788_v4, 0  ;;  %v278_v10 = vsel %vm270_vm0, %v11790_v5, 0  ;;  %v13277_v15 = vld [vmem:[%s20250_s7 + $0x80] ss:$16 sps:$4 sm:$0xff]   ;;  %v13278_v16 = vld [vmem:[%s20250_s7 + $0x88] ss:$16 sps:$4 sm:$0xff]  }
  0x16   :  { %286 = vmatpush1.bf16.msra.mxu0 %v272_v9  ;;  %327 = vmatpush1.bf16.msra.mxu1 %v278_v10  ;;  %v13279_v17 = vld [vmem:[%s20250_s7 + $0x64] ss:$16 sps:$4 sm:$0xff]   ;;  %v13281_v18 = vld [vmem:[%s20250_s7 + $0x6c] ss:$16 sps:$4 sm:$0xff]   ;;  %v13283_v19 = vld [vmem:[%s20250_s7 + $0x60] ss:$16 sps:$4 sm:$0xff]  }
  0x17   :  { %287 = vmatprep.subr.bf16.mxu0 %v13267_v6  ;;  %328 = vmatprep.subr.bf16.mxu1 %v13269_v7  ;;  %v13284_v20 = vld [vmem:[%s20250_s7 + $0x68] ss:$16 sps:$4 sm:$0xff]   ;;  %v13285_v21 = vld [vmem:[%s20250_s7 + $0x44] ss:$16 sps:$4 sm:$0xff]   ;;  %v13287_v22 = vld [vmem:[%s20250_s7 + $0x4c] ss:$16 sps:$4 sm:$0xff]  }
  0x18   :  { %v13289_v23 = vld [vmem:[%s20250_s7 + $0x40] ss:$16 sps:$4 sm:$0xff]   ;;  %v13290_v24 = vld [vmem:[%s20250_s7 + $0x48] ss:$16 sps:$4 sm:$0xff]   ;;  %v13291_v25 = vld [vmem:[%s20250_s7 + $0x24] ss:$16 sps:$4 sm:$0xff]  }
  0x19   :  { %v13293_v26 = vld [vmem:[%s20250_s7 + $0x2c] ss:$16 sps:$4 sm:$0xff]   ;;  %v13295_v27 = vld [vmem:[%s20250_s7 + $0x20] ss:$16 sps:$4 sm:$0xff]   ;;  %v13296_v28 = vld [vmem:[%s20250_s7 + $0x28] ss:$16 sps:$4 sm:$0xff]  }
  0x1a   :  { %288 = vmatpush1.bf16.msra.mxu0 %v13271_v8  ;;  %329 = vmatpush1.bf16.msra.mxu1 %v13272_v11  ;;  %v13297_v29 = vld [vmem:[%s20250_s7 + $0x4] ss:$16 sps:$4 sm:$0xff]   ;;  %v13299_v32 = vld [vmem:[%s20250_s7 + $0xc] ss:$16 sps:$4 sm:$0xff]   ;;  %v13301_v33 = vld [vmem:[%s20250_s7] ss:$16 sps:$4 sm:$0xff]  }
  0x1b   :  { %289 = vmatprep.subr.bf16.mxu0 %v13273_v12  ;;  %330 = vmatprep.subr.bf16.mxu1 %v13275_v13  ;;  %v84_v30 = vld [vmem:[%s20251_s0] sm:$0xff]  ;;  %v13302_v35 = vld [vmem:[%s20250_s7 + $0x8] ss:$16 sps:$4 sm:$0xff]   ;;  %s20270_s0 = sld [smem:[#allocation117_spill]] }
  0x1c   :  { %v85_v31 = vld [vmem:[%s20252_s2] sm:$0xff] }
  0x1d   :  { %v86_v34 = vadd.f32 %v85_v31, %v84_v30  ;;  %v13305_v36 = vld [vmem:[%s20253_s4 + $0xe4] ss:$16 sps:$4 sm:$0xff]   ;;  %v13303_v38 = vld [vmem:[%s20253_s4 + $0xe0] ss:$16 sps:$4 sm:$0xff]  }
  0x1e   :  { %290 = vmatpush1.bf16.msra.mxu0 %v13277_v15  ;;  %331 = vmatpush1.bf16.msra.mxu1 %v13278_v16  ;;  %v13308_v39 = vld [vmem:[%s20253_s4 + $0xc4] ss:$16 sps:$4 sm:$0xff]   ;;  %v13327_v40 = vld [vmem:[%s20253_s4 + $0x2e0] ss:$16 sps:$4 sm:$0xff]  }
  0x1f   :  { %291 = vmatprep.subr.bf16.mxu0 %v13279_v17  ;;  %332 = vmatprep.subr.bf16.mxu1 %v13281_v18  ;;  %v113_v37 = vpack.c.bf16 %v86_v34, %v86_v34  ;;  %v13329_v41 = vld [vmem:[%s20253_s4 + $0x2e4] ss:$16 sps:$4 sm:$0xff]   ;;  %v13306_v42 = vld [vmem:[%s20253_s4 + $0xc0] ss:$16 sps:$4 sm:$0xff]  }
  0x20   :  { %v13311_v43 = vld [vmem:[%s20253_s4 + $0xa4] ss:$16 sps:$4 sm:$0xff]   ;;  %v13333_v45 = vld [vmem:[%s20253_s4 + $0x2c0] ss:$16 sps:$4 sm:$0xff]  }
  0x21   :  { %v13335_v44 = vld [vmem:[%s20253_s4 + $0x2c4] ss:$16 sps:$4 sm:$0xff]   ;;  %v13309_v46 = vld [vmem:[%s20253_s4 + $0xa0] ss:$16 sps:$4 sm:$0xff]  }
  0x22   :  { %292 = vmatpush1.bf16.msra.mxu0 %v13283_v19  ;;  %333 = vmatpush1.bf16.msra.mxu1 %v13284_v20  ;;  %v13314_v47 = vld [vmem:[%s20253_s4 + $0x84] ss:$16 sps:$4 sm:$0xff]   ;;  %v13312_v48 = vld [vmem:[%s20253_s4 + $0x80] ss:$16 sps:$4 sm:$0xff]  }
  0x23   :  { %293 = vmatprep.subr.bf16.mxu0 %v13285_v21  ;;  %334 = vmatprep.subr.bf16.mxu1 %v13287_v22  ;;  %v13317_v49 = vld [vmem:[%s20253_s4 + $0x64] ss:$16 sps:$4 sm:$0xff]   ;;  %v13315_v50 = vld [vmem:[%s20253_s4 + $0x60] ss:$16 sps:$4 sm:$0xff]  }
  0x24   :  { %v13320_v51 = vld [vmem:[%s20253_s4 + $0x44] ss:$16 sps:$4 sm:$0xff]   ;;  %v13318_v52 = vld [vmem:[%s20253_s4 + $0x40] ss:$16 sps:$4 sm:$0xff]  }
  0x25   :  { %v13323_v53 = vld [vmem:[%s20253_s4 + $0x24] ss:$16 sps:$4 sm:$0xff]   ;;  %v13321_v54 = vld [vmem:[%s20253_s4 + $0x20] ss:$16 sps:$4 sm:$0xff]  }
  0x26   :  { %294 = vmatpush1.bf16.msra.mxu0 %v13289_v23  ;;  %335 = vmatpush1.bf16.msra.mxu1 %v13290_v24  ;;  %v13326_v55 = vld [vmem:[%s20253_s4 + $0x4] ss:$16 sps:$4 sm:$0xff]   ;;  %v13324_v56 = vld [vmem:[%s20253_s4] ss:$16 sps:$4 sm:$0xff]   ;;  %v13380_v24 = vld [vmem:[%s20253_s4 + $0xec] ss:$16 sps:$4 sm:$0xff]  }
  0x27   :  { %295 = vmatprep.subr.bf16.mxu0 %v13291_v25  ;;  %336 = vmatprep.subr.bf16.mxu1 %v13293_v26  ;;  %v13332_v57 = vld [vmem:[%s20253_s4 + $0x1e4] ss:$16 sps:$4 sm:$0xff]   ;;  %v13330_v58 = vld [vmem:[%s20253_s4 + $0x1e0] ss:$16 sps:$4 sm:$0xff]   ;;  %v13383_v25 = vld [vmem:[%s20253_s4 + $0x2ec] ss:$16 sps:$4 sm:$0xff]   ;;  %v116_v26 = vlaneseq }
  0x28   :  { %v13338_v59 = vld [vmem:[%s20253_s4 + $0x1c4] ss:$16 sps:$4 sm:$0xff]   ;;  %v13336_v61 = vld [vmem:[%s20253_s4 + $0x1c0] ss:$16 sps:$4 sm:$0xff]  }
  0x29   :  { %v13341_v60 = vld [vmem:[%s20253_s4 + $0x2a4] ss:$16 sps:$4 sm:$0xff]   ;;  %v13339_v62 = vld [vmem:[%s20253_s4 + $0x2a0] ss:$16 sps:$4 sm:$0xff]  }
  0x2a   :  { %296 = vmatpush1.bf16.msra.mxu0 %v13295_v27  ;;  %337 = vmatpush1.bf16.msra.mxu1 %v13296_v28  ;;  %v13344_v63 = vld [vmem:[%s20253_s4 + $0x1a4] ss:$16 sps:$4 sm:$0xff]   ;;  %v13342_v1 = vld [vmem:[%s20253_s4 + $0x1a0] ss:$16 sps:$4 sm:$0xff]   ;;  %v15140_v27 = vshrl.u32 %v116_v26, 7 }
  0x2b   :  { %297 = vmatprep.subr.bf16.mxu0 %v13297_v29  ;;  %338 = vmatprep.subr.bf16.mxu1 %v13299_v32  ;;  %v13347_v0 = vld [vmem:[%s20253_s4 + $0x284] ss:$16 sps:$4 sm:$0xff]   ;;  %v13345_v2 = vld [vmem:[%s20253_s4 + $0x280] ss:$16 sps:$4 sm:$0xff]  }
  0x2c   :  { %v13350_v3 = vld [vmem:[%s20253_s4 + $0x184] ss:$16 sps:$4 sm:$0xff]   ;;  %v13348_v5 = vld [vmem:[%s20253_s4 + $0x180] ss:$16 sps:$4 sm:$0xff]   ;;  %20254 = vst [vmem:[#allocation5_spill] sm:$0xff] %v15140_v27  ;;  %v15146_v29 = vsub.s32 0, %v15140_v27 }
  0x2d   :  { %v13353_v4 = vld [vmem:[%s20253_s4 + $0x264] ss:$16 sps:$4 sm:$0xff]   ;;  %v13351_v6 = vld [vmem:[%s20253_s4 + $0x260] ss:$16 sps:$4 sm:$0xff]   ;;  %v15149_v30 = vsub.s32 2, %v15140_v27  ;;  %v15152_v31 = vsub.s32 1, %v15140_v27 }
  0x2e   :  { %298 = vmatpush1.bf16.msra.mxu0 %v13301_v33  ;;  %339 = vmatpush1.bf16.msra.mxu1 %v13302_v35  ;;  %v13356_v7 = vld [vmem:[%s20253_s4 + $0x164] ss:$16 sps:$4 sm:$0xff]   ;;  %v13354_v9 = vld [vmem:[%s20253_s4 + $0x160] ss:$16 sps:$4 sm:$0xff]   ;;  %20256 = vst [vmem:[#allocation6_spill] sm:$0xff] %v15146_v29  ;;  %v15155_v32 = vsub.s32 3, %v15140_v27 }
  0x2f   :  { %1046 = vmatprep.subr.bf16.mxu0 %v13305_v36  ;;  %1087 = vmatprep.subr.bf16.mxu1 %v13329_v41  ;;  %v13359_v8 = vld [vmem:[%s20253_s4 + $0x244] ss:$16 sps:$4 sm:$0xff]   ;;  %v13357_v10 = vld [vmem:[%s20253_s4 + $0x240] ss:$16 sps:$4 sm:$0xff]   ;;  %20257 = vst [vmem:[#allocation7_spill] sm:$0xff] %v15149_v30  ;;  %20258 = vst [vmem:[#allocation8_spill] sm:$0xff] %v15152_v31 }
  0x30   :  { %v13362_v11 = vld [vmem:[%s20253_s4 + $0x144] ss:$16 sps:$4 sm:$0xff]   ;;  %v13360_v13 = vld [vmem:[%s20253_s4 + $0x140] ss:$16 sps:$4 sm:$0xff]   ;;  %20259 = vst [vmem:[#allocation9_spill] sm:$0xff] %v15155_v32 }
  0x31   :  { %11793 = vmatmul.mubr.msk.bf16.vlgmr.msra.gmra.mxu0 %vm266_vm1, %v113_v37  ;;  %11795 = vmatmul.mubr.msk.bf16.vlgmr.msra.gmra.mxu1 %vm266_vm1, %v113_v37  ;;  %v13365_v12 = vld [vmem:[%s20253_s4 + $0x224] ss:$16 sps:$4 sm:$0xff]   ;;  %v13363_v15 = vld [vmem:[%s20253_s4 + $0x220] ss:$16 sps:$4 sm:$0xff]  }
  0x32   :  { %1047 = vmatpush1.bf16.msra.mxu0 %v13303_v38  ;;  %1088 = vmatpush1.bf16.msra.mxu1 %v13327_v40  ;;  %v13368_v16 = vld [vmem:[%s20253_s4 + $0x124] ss:$16 sps:$4 sm:$0xff]   ;;  %v13366_v18 = vld [vmem:[%s20253_s4 + $0x120] ss:$16 sps:$4 sm:$0xff]  }
  0x33   :  { %1048 = vmatprep.subr.bf16.mxu0 %v13308_v39  ;;  %1089 = vmatprep.subr.bf16.mxu1 %v13335_v44  ;;  %v13371_v17 = vld [vmem:[%s20253_s4 + $0x204] ss:$16 sps:$4 sm:$0xff]   ;;  %v13369_v19 = vld [vmem:[%s20253_s4 + $0x200] ss:$16 sps:$4 sm:$0xff]  }
  0x34   :  { %v13374_v20 = vld [vmem:[%s20253_s4 + $0x104] ss:$16 sps:$4 sm:$0xff]   ;;  %v13372_v22 = vld [vmem:[%s20253_s4 + $0x100] ss:$16 sps:$4 sm:$0xff]  }
  0x35   :  { %v13377_v21 = vld [vmem:[%s20253_s4 + $0x304] ss:$16 sps:$4 sm:$0xff]   ;;  %v13375_v23 = vld [vmem:[%s20253_s4 + $0x300] ss:$16 sps:$4 sm:$0xff]  }
  0x36   :  { %1049 = vmatpush1.bf16.msra.mxu0 %v13306_v42  ;;  %1090 = vmatpush1.bf16.msra.mxu1 %v13333_v45  ;;  %v114_v28 = vld [vmem:[%s20255_s5] sm:$0xf] }
  0x37   :  { %1050 = vmatprep.subr.bf16.mxu0 %v13311_v43  ;;  %1091 = vmatprep.subr.bf16.mxu1 %v13341_v60  ;;  %v119_v33 = vrot.slane %v114_v28, %v15146_v29  ;;  %v127_v34 = vrot.slane %v114_v28, %v15149_v30  ;;  %v123_v37 = vrot.slane %v114_v28, %v15152_v31 }
  0x38   :  { %v131_v38 = vrot.slane %v114_v28, %v15155_v32 }
  0x3a   :  { %1051 = vmatpush1.bf16.msra.mxu0 %v13309_v46  ;;  %1092 = vmatpush1.bf16.msra.mxu1 %v13339_v62 }
  0x3b   :  { %1052 = vmatprep.subr.bf16.mxu0 %v13314_v47  ;;  %1093 = vmatprep.subr.bf16.mxu1 %v13347_v0 }
  0x3e   :  { %1053 = vmatpush1.bf16.msra.mxu0 %v13312_v48  ;;  %1094 = vmatpush1.bf16.msra.mxu1 %v13345_v2 }
  0x3f   :  { %1054 = vmatprep.subr.bf16.mxu0 %v13317_v49  ;;  %1095 = vmatprep.subr.bf16.mxu1 %v13353_v4 }
  0x42   :  { %1055 = vmatpush1.bf16.msra.mxu0 %v13315_v50  ;;  %1096 = vmatpush1.bf16.msra.mxu1 %v13351_v6 }
  0x43   :  { %1056 = vmatprep.subr.bf16.mxu0 %v13320_v51  ;;  %1097 = vmatprep.subr.bf16.mxu1 %v13359_v8 }
  0x46   :  { %1057 = vmatpush1.bf16.msra.mxu0 %v13318_v52  ;;  %1098 = vmatpush1.bf16.msra.mxu1 %v13357_v10 }
  0x47   :  { %1058 = vmatprep.subr.bf16.mxu0 %v13323_v53  ;;  %1099 = vmatprep.subr.bf16.mxu1 %v13365_v12  ;;  %v386_v53 = vld [vmem:[%s20260_s1] sm:$0xf] }
  0x48   :  { %v399_v62 = vrot.slane %v386_v53, %v15149_v30  ;;  %v395_v6 = vrot.slane %v386_v53, %v15152_v31  ;;  %v403_v10 = vrot.slane %v386_v53, %v15155_v32 }
  0x4a   :  { %1059 = vmatpush1.bf16.msra.mxu0 %v13321_v54  ;;  %1100 = vmatpush1.bf16.msra.mxu1 %v13363_v15  ;;  %v412_v54 = vld [vmem:[%s20261_s28] sm:$0xf] }
  0x4b   :  { %1060 = vmatprep.subr.bf16.mxu0 %v13326_v55  ;;  %1101 = vmatprep.subr.bf16.mxu1 %v13371_v17  ;;  %v425_v12 = vrot.slane %v412_v54, %v15149_v30  ;;  %v421_v15 = vrot.slane %v412_v54, %v15152_v31  ;;  %v429_v17 = vrot.slane %v412_v54, %v15155_v32 }
  0x4e   :  { %1061 = vmatpush1.bf16.msra.mxu0 %v13324_v56  ;;  %1102 = vmatpush1.bf16.msra.mxu1 %v13369_v19 }
  0x4f   :  { %1062 = vmatprep.subr.bf16.mxu0 %v13332_v57  ;;  %1117 = vmatprep.subr.bf16.mxu1 %v13377_v21 }
  0x52   :  { %1063 = vmatpush2.bf16.msra.mxu0 %v13330_v58  ;;  %1118 = vmatpush2.bf16.msra.mxu1 %v13375_v23  ;;  %v13381_v23 = vld [vmem:[%s20253_s4 + $0x2e8] ss:$16 sps:$4 sm:$0xff]  }
  0x53   :  { %1064 = vmatprep.subr.bf16.mxu0 %v13338_v59  ;;  %1128 = vmatprep.subr.bf16.mxu1 %v13380_v24  ;;  %v391_v59 = vrot.slane %v386_v53, %v15146_v29  ;;  %v13411_v53 = vld [vmem:[%s20253_s4 + $0x248] ss:$16 sps:$4 sm:$0xff]  }
  0x56   :  { %1065 = vmatpush2.bf16.msra.mxu0 %v13336_v61 }
  0x57   :  { %1066 = vmatprep.subr.bf16.mxu0 %v13344_v63 }
  0x5a   :  { %1067 = vmatpush2.bf16.msra.mxu0 %v13342_v1  ;;  %v417_v1 = vrot.slane %v412_v54, %v15146_v29  ;;  %v13408_v54 = vld [vmem:[%s20253_s4 + $0x48] ss:$16 sps:$4 sm:$0xff]  }
  0x5b   :  { %1068 = vmatprep.subr.bf16.mxu0 %v13350_v3 }
  0x5e   :  { %1069 = vmatpush2.bf16.msra.mxu0 %v13348_v5 }
  0x5f   :  { %1070 = vmatprep.subr.bf16.mxu0 %v13356_v7 }
  0x62   :  { %1071 = vmatpush2.bf16.msra.mxu0 %v13354_v9 }
  0x63   :  { %1072 = vmatprep.subr.bf16.mxu0 %v13362_v11 }
  0x66   :  { %1073 = vmatpush2.bf16.msra.mxu0 %v13360_v13 }
  0x67   :  { %1074 = vmatprep.subr.bf16.mxu0 %v13368_v16 }
  0x6a   :  { %1075 = vmatpush2.bf16.msra.mxu0 %v13366_v18 }
  0x6b   :  { %1076 = vmatprep.subr.bf16.mxu0 %v13374_v20 }
  0x6e   :  { %1077 = vmatpush2.bf16.msra.mxu0 %v13372_v22 }
  0x6f   :  { %1169 = vmatprep.subr.bf16.mxu0 %v13383_v25 }
  0xf1   :  { %v317_v35 = vpop.f32.mrf.mxu0  ;;  %v358_v36 = vpop.f32.mrf.mxu1 }
  0xf2   :  { %v318_v39 = vadd.f32 %v317_v35, %v119_v33  ;;  %v359_v40 = vadd.f32 %v358_v36, %v127_v34  ;;  %v13378_v33 = vld [vmem:[%s20253_s4 + $0xe8] ss:$16 sps:$4 sm:$0xff]   ;;  %v13386_v34 = vld [vmem:[%s20253_s4 + $0xcc] ss:$16 sps:$4 sm:$0xff]  }
  0xf3   :  { %v319_v41 = vpop.f32.mrf.mxu0  ;;  %v360_v42 = vpop.f32.mrf.mxu1  ;;  %v13387_v36 = vld [vmem:[%s20253_s4 + $0x2c8] ss:$16 sps:$4 sm:$0xff]  }
  0xf4   :  { %v370_v43 = vmul.f32 0.70710677, %v318_v39  ;;  %v372_v44 = vmul.f32 0.70710677, %v359_v40  ;;  %v320_v45 = vadd.f32 %v319_v41, %v123_v37  ;;  %v361_v46 = vadd.f32 %v360_v42, %v131_v38  ;;  %v13389_v37 = vld [vmem:[%s20253_s4 + $0x2cc] ss:$16 sps:$4 sm:$0xff]  }
  0xf5   :  { %v321_v47 = vpop.f32.mrf.mxu0  ;;  %v362_v48 = vpop.f32.mrf.mxu1  ;;  %v365_v57 = vmul.f32 0.5, %v318_v39  ;;  %v367_v60 = vmul.f32 0.5, %v359_v40  ;;  %v13384_v38 = vld [vmem:[%s20253_s4 + $0xc8] ss:$16 sps:$4 sm:$0xff]   ;;  %v13395_v39 = vld [vmem:[%s20253_s4 + $0x2ac] ss:$16 sps:$4 sm:$0xff]  }
  0xf6   :  { %14633 = verf.f32 %v370_v43  ;;  %v371_v49 = vmul.f32 0.70710677, %v320_v45  ;;  %v373_v52 = vmul.f32 0.70710677, %v361_v46  ;;  %v366_v4 = vmul.f32 0.5, %v320_v45 }
  0xf7   :  { %14635 = verf.f32 %v372_v44  ;;  %v322_v50 = vpop.f32.mrf.mxu0  ;;  %v363_v51 = vpop.f32.mrf.mxu1  ;;  %v368_v8 = vmul.f32 0.5, %v361_v46  ;;  %v13392_v40 = vld [vmem:[%s20253_s4 + $0xac] ss:$16 sps:$4 sm:$0xff]   ;;  %v13393_v41 = vld [vmem:[%s20253_s4 + $0x2a8] ss:$16 sps:$4 sm:$0xff]  }
  0xf8   :  { %14637 = verf.f32 %v371_v49  ;;  %v13390_v42 = vld [vmem:[%s20253_s4 + $0xa8] ss:$16 sps:$4 sm:$0xff]   ;;  %v13398_v43 = vld [vmem:[%s20253_s4 + $0x8c] ss:$16 sps:$4 sm:$0xff]  }
  0xf9   :  { %14639 = verf.f32 %v373_v52  ;;  %v13401_v44 = vld [vmem:[%s20253_s4 + $0x28c] ss:$16 sps:$4 sm:$0xff]   ;;  %v13399_v45 = vld [vmem:[%s20253_s4 + $0x288] ss:$16 sps:$4 sm:$0xff]  }
  0xfa   :  { %v13396_v46 = vld [vmem:[%s20253_s4 + $0x88] ss:$16 sps:$4 sm:$0xff]   ;;  %v13404_v47 = vld [vmem:[%s20253_s4 + $0x6c] ss:$16 sps:$4 sm:$0xff]  }
  0xfb   :  { %v13407_v48 = vld [vmem:[%s20253_s4 + $0x26c] ss:$16 sps:$4 sm:$0xff]   ;;  %v13405_v49 = vld [vmem:[%s20253_s4 + $0x268] ss:$16 sps:$4 sm:$0xff]  }
  0xfc   :  { %v13402_v50 = vld [vmem:[%s20253_s4 + $0x68] ss:$16 sps:$4 sm:$0xff]   ;;  %v13410_v51 = vld [vmem:[%s20253_s4 + $0x4c] ss:$16 sps:$4 sm:$0xff]  }
  0xfd   :  { %v13413_v52 = vld [vmem:[%s20253_s4 + $0x24c] ss:$16 sps:$4 sm:$0xff]  }
 0x103   :  { %v14634_v55 = vpop.eup %14633 }
 0x104   :  { %v14636_v56 = vpop.eup %14635  ;;  %v378_v58 = vadd.f32 1.0, %v14634_v55  ;;  %v13416_v55 = vld [vmem:[%s20253_s4 + $0x2c] ss:$16 sps:$4 sm:$0xff]  }
 0x105   :  { %v380_v61 = vadd.f32 1.0, %v14636_v56  ;;  %v14638_v63 = vpop.eup %14637  ;;  %v13419_v56 = vld [vmem:[%s20253_s4 + $0x22c] ss:$16 sps:$4 sm:$0xff]  }
 0x106   :  { %v382_v0 = vmul.f32 %v378_v58, %v365_v57  ;;  %v14640_v2 = vpop.eup %14639  ;;  %v379_v5 = vadd.f32 1.0, %v14638_v63  ;;  %v13417_v57 = vld [vmem:[%s20253_s4 + $0x228] ss:$16 sps:$4 sm:$0xff]   ;;  %v13428_v63 = vld [vmem:[%s20253_s4 + $0x1ec] ss:$16 sps:$4 sm:$0xff]  }
 0x107   :  { %v384_v3 = vmul.f32 %v380_v61, %v367_v60  ;;  %v381_v9 = vadd.f32 1.0, %v14640_v2  ;;  %v13414_v58 = vld [vmem:[%s20253_s4 + $0x28] ss:$16 sps:$4 sm:$0xff]   ;;  %v13425_v60 = vld [vmem:[%s20253_s4 + $0x20c] ss:$16 sps:$4 sm:$0xff]  }
 0x108   :  { %v408_v7 = vmul.f32 %v391_v59, %v382_v0  ;;  %v383_v13 = vmul.f32 %v379_v5, %v366_v4  ;;  %v13422_v59 = vld [vmem:[%s20253_s4 + $0xc] ss:$16 sps:$4 sm:$0xff]   ;;  %v13423_v61 = vld [vmem:[%s20253_s4 + $0x208] ss:$16 sps:$4 sm:$0xff]   ;;  %v13437_v4 = vld [vmem:[%s20270_s0 + $0xe4] ss:$16 sps:$4 sm:$0xff]  }
 0x109   :  { %v410_v11 = vmul.f32 %v399_v62, %v384_v3  ;;  %v385_v16 = vmul.f32 %v381_v9, %v368_v8  ;;  %v13420_v62 = vld [vmem:[%s20253_s4 + $0x8] ss:$16 sps:$4 sm:$0xff]   ;;  %v13431_v0 = vld [vmem:[%s20253_s4 + $0x30c] ss:$16 sps:$4 sm:$0xff]   ;;  %v13435_v5 = vld [vmem:[%s20270_s0 + $0xe0] ss:$16 sps:$4 sm:$0xff]  }
 0x10a   :  { %v409_v18 = vmul.f32 %v395_v6, %v383_v13  ;;  %v15175_v19 = vadd.f32 %v417_v1, %v408_v7  ;;  %v13429_v1 = vld [vmem:[%s20253_s4 + $0x308] ss:$16 sps:$4 sm:$0xff]   ;;  %v13434_v3 = vld [vmem:[%s20253_s4 + $0x1cc] ss:$16 sps:$4 sm:$0xff]   ;;  %v13443_v7 = vld [vmem:[%s20270_s0 + $0xc4] ss:$16 sps:$4 sm:$0xff]  }
 0x10b   :  { %v411_v20 = vmul.f32 %v403_v10, %v385_v16  ;;  %v15177_v21 = vadd.f32 %v425_v12, %v410_v11  ;;  %v13426_v2 = vld [vmem:[%s20253_s4 + $0x1e8] ss:$16 sps:$4 sm:$0xff]   ;;  %v13440_v8 = vld [vmem:[%s20253_s4 + $0x1ac] ss:$16 sps:$4 sm:$0xff]   ;;  %v13441_v9 = vld [vmem:[%s20270_s0 + $0xc0] ss:$16 sps:$4 sm:$0xff]  }
 0x10c   :  { %20262 = vst [vmem:[#allocation10_spill] sm:$0xff] %v15175_v19  ;;  %v15179_v22 = vadd.f32 %v421_v15, %v409_v18  ;;  %v15192_v26 = vpack.c.bf16 %v15175_v19, %v15175_v19  ;;  %v13432_v6 = vld [vmem:[%s20253_s4 + $0x1c8] ss:$16 sps:$4 sm:$0xff]   ;;  %v13449_v11 = vld [vmem:[%s20270_s0 + $0xa4] ss:$16 sps:$4 sm:$0xff]  }
 0x10d   :  { %20263 = vst [vmem:[#allocation11_spill] sm:$0xff] %v15177_v21  ;;  %v15184_v24 = vadd.f32 %v429_v17, %v411_v20  ;;  %v15206_v35 = vpack.c.bf16 %v15177_v21, %v15177_v21  ;;  %v13438_v10 = vld [vmem:[%s20253_s4 + $0x1a8] ss:$16 sps:$4 sm:$0xff]   ;;  %v13446_v12 = vld [vmem:[%s20253_s4 + $0x18c] ss:$16 sps:$4 sm:$0xff]  }
 0x10e   :  { %20264 = vst [vmem:[#allocation12_spill] sm:$0xff] %v15179_v22  ;;  %v15188_v25 = vpack.c.bf16 %v15179_v22, %v15179_v22  ;;  %20267 = vst [vmem:[#allocation15_spill] sm:$0xff] %v15192_v26  ;;  %v13447_v13 = vld [vmem:[%s20270_s0 + $0xa0] ss:$16 sps:$4 sm:$0xff]   ;;  %v13444_v15 = vld [vmem:[%s20253_s4 + $0x188] ss:$16 sps:$4 sm:$0xff]  }
 0x10f   :  { %20265 = vst [vmem:[#allocation13_spill] sm:$0xff] %v15184_v24  ;;  %v15196_v28 = vpack.c.bf16 %v15184_v24, %v15184_v24  ;;  %20269 = vst [vmem:[#allocation17_spill] sm:$0xff] %v15206_v35  ;;  %v13455_v16 = vld [vmem:[%s20270_s0 + $0x84] ss:$16 sps:$4 sm:$0xff]   ;;  %v13452_v17 = vld [vmem:[%s20253_s4 + $0x16c] ss:$16 sps:$4 sm:$0xff]  }
 0x110   :  { %20266 = vst [vmem:[#allocation14_spill] sm:$0xff] %v15188_v25  ;;  %1078 = vmatprep.mubr.bf16.mxu0 %v15188_v25  ;;  %v13453_v18 = vld [vmem:[%s20270_s0 + $0x80] ss:$16 sps:$4 sm:$0xff]   ;;  %v13450_v20 = vld [vmem:[%s20253_s4 + $0x168] ss:$16 sps:$4 sm:$0xff]  }
 0x111   :  { %20268 = vst [vmem:[#allocation16_spill] sm:$0xff] %v15196_v28  ;;  %11896 = vmatprep.mubr.msk.bf16.mxu1 %vm1042_vm2, %v15196_v28  ;;  %1079 = vmatmul.mubr.bf16.vlgmr.msra.gmra.mxu0 %v15192_v26 }
 0x112   :  { %1120 = vmatmul.mubr.bf16.vlgmr.msra.gmra.mxu1 %v15206_v35  ;;  %1170 = vmatpush1.bf16.msra.mxu0 %v13381_v23  ;;  %v13461_v23 = vld [vmem:[%s20270_s0 + $0x64] ss:$16 sps:$4 sm:$0xff]  }
 0x113   :  { %1129 = vmatpush1.bf16.msra.mxu1 %v13378_v33  ;;  %1160 = vmatprep.mubr.bf16.mxu1 %v15188_v25  ;;  %v13458_v33 = vld [vmem:[%s20253_s4 + $0x14c] ss:$16 sps:$4 sm:$0xff]  }
 0x114   :  { %11897 = vmatprep.mubr.msk.bf16.mxu0 %vm1042_vm2, %v15196_v28  ;;  %1130 = vmatprep.subr.bf16.mxu1 %v13386_v34  ;;  %v13459_v34 = vld [vmem:[%s20270_s0 + $0x60] ss:$16 sps:$4 sm:$0xff]  }
 0x115   :  { %1171 = vmatprep.subr.bf16.mxu0 %v13389_v37  ;;  %v13467_v37 = vld [vmem:[%s20270_s0 + $0x44] ss:$16 sps:$4 sm:$0xff]  }
 0x116   :  { %1172 = vmatpush1.bf16.msra.mxu0 %v13387_v36  ;;  %v13456_v36 = vld [vmem:[%s20253_s4 + $0x148] ss:$16 sps:$4 sm:$0xff]  }
 0x117   :  { %1131 = vmatpush1.bf16.msra.mxu1 %v13384_v38  ;;  %1173 = vmatprep.subr.bf16.mxu0 %v13395_v39  ;;  %v13464_v38 = vld [vmem:[%s20253_s4 + $0x12c] ss:$16 sps:$4 sm:$0xff]   ;;  %v13465_v39 = vld [vmem:[%s20270_s0 + $0x40] ss:$16 sps:$4 sm:$0xff]  }
 0x118   :  { %1132 = vmatprep.subr.bf16.mxu1 %v13392_v40  ;;  %v13462_v40 = vld [vmem:[%s20253_s4 + $0x128] ss:$16 sps:$4 sm:$0xff]  }
 0x11a   :  { %1174 = vmatpush1.bf16.msra.mxu0 %v13393_v41  ;;  %v13473_v41 = vld [vmem:[%s20270_s0 + $0x24] ss:$16 sps:$4 sm:$0xff]  }
 0x11b   :  { %1133 = vmatpush1.bf16.msra.mxu1 %v13390_v42  ;;  %1175 = vmatprep.subr.bf16.mxu0 %v13401_v44  ;;  %v13470_v42 = vld [vmem:[%s20253_s4 + $0x10c] ss:$16 sps:$4 sm:$0xff]   ;;  %v13468_v44 = vld [vmem:[%s20253_s4 + $0x108] ss:$16 sps:$4 sm:$0xff]  }
 0x11c   :  { %1134 = vmatprep.subr.bf16.mxu1 %v13398_v43  ;;  %v13471_v43 = vld [vmem:[%s20270_s0 + $0x20] ss:$16 sps:$4 sm:$0xff]  }
 0x11e   :  { %1176 = vmatpush1.bf16.msra.mxu0 %v13399_v45  ;;  %v13476_v45 = vld [vmem:[%s20270_s0 + $0x4] ss:$16 sps:$4 sm:$0xff]  }
 0x11f   :  { %1135 = vmatpush1.bf16.msra.mxu1 %v13396_v46  ;;  %1177 = vmatprep.subr.bf16.mxu0 %v13407_v48  ;;  %v13479_v46 = vld [vmem:[%s20270_s0 + $0x2e4] ss:$16 sps:$4 sm:$0xff]   ;;  %v13477_v48 = vld [vmem:[%s20270_s0 + $0x2e0] ss:$16 sps:$4 sm:$0xff]  }
 0x120   :  { %1136 = vmatprep.subr.bf16.mxu1 %v13404_v47  ;;  %v13474_v47 = vld [vmem:[%s20270_s0] ss:$16 sps:$4 sm:$0xff]  }
 0x122   :  { %1178 = vmatpush1.bf16.msra.mxu0 %v13405_v49  ;;  %v13482_v49 = vld [vmem:[%s20270_s0 + $0x1e4] ss:$16 sps:$4 sm:$0xff]  }
 0x123   :  { %1137 = vmatpush1.bf16.msra.mxu1 %v13402_v50  ;;  %1179 = vmatprep.subr.bf16.mxu0 %v13413_v52  ;;  %v13485_v50 = vld [vmem:[%s20270_s0 + $0x2c4] ss:$16 sps:$4 sm:$0xff]   ;;  %v13483_v52 = vld [vmem:[%s20270_s0 + $0x2c0] ss:$16 sps:$4 sm:$0xff]  }
 0x124   :  { %1138 = vmatprep.subr.bf16.mxu1 %v13410_v51  ;;  %v13480_v51 = vld [vmem:[%s20270_s0 + $0x1e0] ss:$16 sps:$4 sm:$0xff]  }
 0x126   :  { %1180 = vmatpush1.bf16.msra.mxu0 %v13411_v53  ;;  %v13488_v53 = vld [vmem:[%s20270_s0 + $0x1c4] ss:$16 sps:$4 sm:$0xff]  }
 0x127   :  { %1139 = vmatpush1.bf16.msra.mxu1 %v13408_v54  ;;  %1181 = vmatprep.subr.bf16.mxu0 %v13419_v56  ;;  %v13491_v54 = vld [vmem:[%s20270_s0 + $0x2a4] ss:$16 sps:$4 sm:$0xff]   ;;  %v13489_v56 = vld [vmem:[%s20270_s0 + $0x2a0] ss:$16 sps:$4 sm:$0xff]  }
 0x128   :  { %1140 = vmatprep.subr.bf16.mxu1 %v13416_v55  ;;  %v13486_v55 = vld [vmem:[%s20270_s0 + $0x1c0] ss:$16 sps:$4 sm:$0xff]  }
 0x12a   :  { %1182 = vmatpush1.bf16.msra.mxu0 %v13417_v57  ;;  %v13494_v57 = vld [vmem:[%s20270_s0 + $0x1a4] ss:$16 sps:$4 sm:$0xff]  }
 0x12b   :  { %1141 = vmatpush1.bf16.msra.mxu1 %v13414_v58  ;;  %1183 = vmatprep.subr.bf16.mxu0 %v13425_v60  ;;  %v13497_v58 = vld [vmem:[%s20270_s0 + $0x284] ss:$16 sps:$4 sm:$0xff]   ;;  %v13495_v60 = vld [vmem:[%s20270_s0 + $0x280] ss:$16 sps:$4 sm:$0xff]  }
 0x12c   :  { %1142 = vmatprep.subr.bf16.mxu1 %v13422_v59  ;;  %v13492_v59 = vld [vmem:[%s20270_s0 + $0x1a0] ss:$16 sps:$4 sm:$0xff]  }
 0x12e   :  { %1184 = vmatpush1.bf16.msra.mxu0 %v13423_v61  ;;  %v13500_v61 = vld [vmem:[%s20270_s0 + $0x184] ss:$16 sps:$4 sm:$0xff]  }
 0x12f   :  { %1143 = vmatpush1.bf16.msra.mxu1 %v13420_v62  ;;  %1199 = vmatprep.subr.bf16.mxu0 %v13431_v0  ;;  %v13503_v62 = vld [vmem:[%s20270_s0 + $0x264] ss:$16 sps:$4 sm:$0xff]   ;;  %v13501_v0 = vld [vmem:[%s20270_s0 + $0x260] ss:$16 sps:$4 sm:$0xff]  }
 0x130   :  { %1144 = vmatprep.subr.bf16.mxu1 %v13428_v63  ;;  %v13498_v63 = vld [vmem:[%s20270_s0 + $0x180] ss:$16 sps:$4 sm:$0xff]  }
 0x132   :  { %1200 = vmatpush2.bf16.msra.mxu0 %v13429_v1  ;;  %v13506_v1 = vld [vmem:[%s20270_s0 + $0x164] ss:$16 sps:$4 sm:$0xff]  }
 0x133   :  { %1145 = vmatpush2.bf16.msra.mxu1 %v13426_v2  ;;  %1810 = vmatprep.subr.bf16.mxu0 %v13437_v4  ;;  %v13509_v2 = vld [vmem:[%s20270_s0 + $0x244] ss:$16 sps:$4 sm:$0xff]   ;;  %v13507_v4 = vld [vmem:[%s20270_s0 + $0x240] ss:$16 sps:$4 sm:$0xff]  }
 0x134   :  { %1146 = vmatprep.subr.bf16.mxu1 %v13434_v3  ;;  %v13504_v3 = vld [vmem:[%s20270_s0 + $0x160] ss:$16 sps:$4 sm:$0xff]  }
 0x135   :  { %1202 = vmatmul.mubr.bf16.vlgmr.msra.gmra.mxu0 %v15206_v35 }
 0x136   :  { %1811 = vmatpush1.bf16.msra.mxu0 %v13435_v5  ;;  %1842 = vmatprep.mubr.bf16.mxu0 %v15188_v25  ;;  %v13512_v5 = vld [vmem:[%s20270_s0 + $0x144] ss:$16 sps:$4 sm:$0xff]  }
 0x137   :  { %1147 = vmatpush2.bf16.msra.mxu1 %v13432_v6  ;;  %1812 = vmatprep.subr.bf16.mxu0 %v13443_v7  ;;  %v13515_v6 = vld [vmem:[%s20270_s0 + $0x224] ss:$16 sps:$4 sm:$0xff]   ;;  %v13510_v7 = vld [vmem:[%s20270_s0 + $0x140] ss:$16 sps:$4 sm:$0xff]  }
 0x138   :  { %1148 = vmatprep.subr.bf16.mxu1 %v13440_v8  ;;  %v13513_v8 = vld [vmem:[%s20270_s0 + $0x220] ss:$16 sps:$4 sm:$0xff]  }
 0x13a   :  { %1813 = vmatpush1.bf16.msra.mxu0 %v13441_v9  ;;  %v13518_v9 = vld [vmem:[%s20270_s0 + $0x124] ss:$16 sps:$4 sm:$0xff]  }
 0x13b   :  { %1149 = vmatpush2.bf16.msra.mxu1 %v13438_v10  ;;  %1814 = vmatprep.subr.bf16.mxu0 %v13449_v11  ;;  %v13521_v10 = vld [vmem:[%s20270_s0 + $0x204] ss:$16 sps:$4 sm:$0xff]   ;;  %v13516_v11 = vld [vmem:[%s20270_s0 + $0x120] ss:$16 sps:$4 sm:$0xff]  }
 0x13c   :  { %1150 = vmatprep.subr.bf16.mxu1 %v13446_v12  ;;  %v13519_v12 = vld [vmem:[%s20270_s0 + $0x200] ss:$16 sps:$4 sm:$0xff]  }
 0x13e   :  { %1815 = vmatpush1.bf16.msra.mxu0 %v13447_v13  ;;  %v13524_v13 = vld [vmem:[%s20270_s0 + $0x104] ss:$16 sps:$4 sm:$0xff]  }
 0x13f   :  { %1151 = vmatpush2.bf16.msra.mxu1 %v13444_v15  ;;  %1816 = vmatprep.subr.bf16.mxu0 %v13455_v16  ;;  %v13527_v15 = vld [vmem:[%s20270_s0 + $0x304] ss:$16 sps:$4 sm:$0xff]   ;;  %v13522_v16 = vld [vmem:[%s20270_s0 + $0x100] ss:$16 sps:$4 sm:$0xff]  }
 0x140   :  { %1152 = vmatprep.subr.bf16.mxu1 %v13452_v17  ;;  %v13525_v17 = vld [vmem:[%s20270_s0 + $0x300] ss:$16 sps:$4 sm:$0xff]  }
 0x142   :  { %1817 = vmatpush1.bf16.msra.mxu0 %v13453_v18  ;;  %v13533_v18 = vld [vmem:[%s20270_s0 + $0x2ec] ss:$16 sps:$4 sm:$0xff]  }
 0x143   :  { %1153 = vmatpush2.bf16.msra.mxu1 %v13450_v20  ;;  %1818 = vmatprep.subr.bf16.mxu0 %v13461_v23  ;;  %v13530_v20 = vld [vmem:[%s20270_s0 + $0xec] ss:$16 sps:$4 sm:$0xff]   ;;  %v13531_v23 = vld [vmem:[%s20270_s0 + $0x2e8] ss:$16 sps:$4 sm:$0xff]  }
 0x144   :  { %1154 = vmatprep.subr.bf16.mxu1 %v13458_v33  ;;  %v13528_v33 = vld [vmem:[%s20270_s0 + $0xe8] ss:$16 sps:$4 sm:$0xff]  }
 0x146   :  { %1819 = vmatpush1.bf16.msra.mxu0 %v13459_v34  ;;  %v13536_v34 = vld [vmem:[%s20270_s0 + $0xcc] ss:$16 sps:$4 sm:$0xff]  }
 0x147   :  { %1155 = vmatpush2.bf16.msra.mxu1 %v13456_v36  ;;  %1820 = vmatprep.subr.bf16.mxu0 %v13467_v37  ;;  %v13539_v36 = vld [vmem:[%s20270_s0 + $0x2cc] ss:$16 sps:$4 sm:$0xff]   ;;  %v13537_v37 = vld [vmem:[%s20270_s0 + $0x2c8] ss:$16 sps:$4 sm:$0xff]  }
 0x148   :  { %1156 = vmatprep.subr.bf16.mxu1 %v13464_v38  ;;  %v13534_v38 = vld [vmem:[%s20270_s0 + $0xc8] ss:$16 sps:$4 sm:$0xff]  }
 0x14a   :  { %1821 = vmatpush1.bf16.msra.mxu0 %v13465_v39  ;;  %v13545_v39 = vld [vmem:[%s20270_s0 + $0x2ac] ss:$16 sps:$4 sm:$0xff]  }
 0x14b   :  { %1157 = vmatpush2.bf16.msra.mxu1 %v13462_v40  ;;  %1822 = vmatprep.subr.bf16.mxu0 %v13473_v41  ;;  %v13542_v40 = vld [vmem:[%s20270_s0 + $0xac] ss:$16 sps:$4 sm:$0xff]   ;;  %v13543_v41 = vld [vmem:[%s20270_s0 + $0x2a8] ss:$16 sps:$4 sm:$0xff]  }
 0x14c   :  { %1158 = vmatprep.subr.bf16.mxu1 %v13470_v42  ;;  %v13540_v42 = vld [vmem:[%s20270_s0 + $0xa8] ss:$16 sps:$4 sm:$0xff]  }
 0x14e   :  { %1823 = vmatpush1.bf16.msra.mxu0 %v13471_v43  ;;  %v13551_v43 = vld [vmem:[%s20270_s0 + $0x28c] ss:$16 sps:$4 sm:$0xff]  }
 0x14f   :  { %1159 = vmatpush2.bf16.msra.mxu1 %v13468_v44  ;;  %1824 = vmatprep.subr.bf16.mxu0 %v13476_v45  ;;  %v13548_v44 = vld [vmem:[%s20270_s0 + $0x8c] ss:$16 sps:$4 sm:$0xff]   ;;  %v13549_v45 = vld [vmem:[%s20270_s0 + $0x288] ss:$16 sps:$4 sm:$0xff]  }
 0x150   :  { %1851 = vmatprep.subr.bf16.mxu1 %v13479_v46  ;;  %v13546_v46 = vld [vmem:[%s20270_s0 + $0x88] ss:$16 sps:$4 sm:$0xff]  }
 0x152   :  { %1161 = vmatmul.mubr.bf16.vlgmr.msra.gmra.mxu1 %v15192_v26  ;;  %1825 = vmatpush1.bf16.msra.mxu0 %v13474_v47  ;;  %v13557_v47 = vld [vmem:[%s20270_s0 + $0x26c] ss:$16 sps:$4 sm:$0xff]  }
 0x153   :  { %1852 = vmatpush1.bf16.msra.mxu1 %v13477_v48  ;;  %11998 = vmatprep.mubr.msk.bf16.mxu1 %vm1042_vm2, %v15196_v28  ;;  %v13554_v48 = vld [vmem:[%s20270_s0 + $0x6c] ss:$16 sps:$4 sm:$0xff]  }
 0x154   :  { %1826 = vmatprep.subr.bf16.mxu0 %v13482_v49  ;;  %1853 = vmatprep.subr.bf16.mxu1 %v13485_v50  ;;  %v13555_v49 = vld [vmem:[%s20270_s0 + $0x268] ss:$16 sps:$4 sm:$0xff]  }
 0x155   :  { %v13552_v50 = vld [vmem:[%s20270_s0 + $0x68] ss:$16 sps:$4 sm:$0xff]  }
 0x156   :  { %1827 = vmatpush2.bf16.msra.mxu0 %v13480_v51  ;;  %v13563_v51 = vld [vmem:[%s20270_s0 + $0x24c] ss:$16 sps:$4 sm:$0xff]  }
 0x157   :  { %1854 = vmatpush1.bf16.msra.mxu1 %v13483_v52  ;;  %1828 = vmatprep.subr.bf16.mxu0 %v13488_v53  ;;  %v13560_v52 = vld [vmem:[%s20270_s0 + $0x4c] ss:$16 sps:$4 sm:$0xff]   ;;  %v13561_v53 = vld [vmem:[%s20270_s0 + $0x248] ss:$16 sps:$4 sm:$0xff]  }
 0x158   :  { %1855 = vmatprep.subr.bf16.mxu1 %v13491_v54  ;;  %v13558_v54 = vld [vmem:[%s20270_s0 + $0x48] ss:$16 sps:$4 sm:$0xff]  }
 0x15a   :  { %1829 = vmatpush2.bf16.msra.mxu0 %v13486_v55  ;;  %v13569_v55 = vld [vmem:[%s20270_s0 + $0x22c] ss:$16 sps:$4 sm:$0xff]  }
 0x15b   :  { %1856 = vmatpush1.bf16.msra.mxu1 %v13489_v56  ;;  %1830 = vmatprep.subr.bf16.mxu0 %v13494_v57  ;;  %v13566_v56 = vld [vmem:[%s20270_s0 + $0x2c] ss:$16 sps:$4 sm:$0xff]   ;;  %v13567_v57 = vld [vmem:[%s20270_s0 + $0x228] ss:$16 sps:$4 sm:$0xff]  }
 0x15c   :  { %1857 = vmatprep.subr.bf16.mxu1 %v13497_v58  ;;  %v13564_v58 = vld [vmem:[%s20270_s0 + $0x28] ss:$16 sps:$4 sm:$0xff]  }
 0x15e   :  { %1831 = vmatpush2.bf16.msra.mxu0 %v13492_v59  ;;  %v13575_v59 = vld [vmem:[%s20270_s0 + $0x20c] ss:$16 sps:$4 sm:$0xff]  }
 0x15f   :  { %1858 = vmatpush1.bf16.msra.mxu1 %v13495_v60  ;;  %1832 = vmatprep.subr.bf16.mxu0 %v13500_v61  ;;  %v13572_v60 = vld [vmem:[%s20270_s0 + $0xc] ss:$16 sps:$4 sm:$0xff]   ;;  %v13573_v61 = vld [vmem:[%s20270_s0 + $0x208] ss:$16 sps:$4 sm:$0xff]  }
 0x160   :  { %1859 = vmatprep.subr.bf16.mxu1 %v13503_v62  ;;  %v13570_v62 = vld [vmem:[%s20270_s0 + $0x8] ss:$16 sps:$4 sm:$0xff]  }
 0x162   :  { %1833 = vmatpush2.bf16.msra.mxu0 %v13498_v63  ;;  %v13581_v63 = vld [vmem:[%s20270_s0 + $0x30c] ss:$16 sps:$4 sm:$0xff]  }
 0x163   :  { %1860 = vmatpush1.bf16.msra.mxu1 %v13501_v0  ;;  %1834 = vmatprep.subr.bf16.mxu0 %v13506_v1  ;;  %v13578_v0 = vld [vmem:[%s20270_s0 + $0x1ec] ss:$16 sps:$4 sm:$0xff]   ;;  %v13579_v1 = vld [vmem:[%s20270_s0 + $0x308] ss:$16 sps:$4 sm:$0xff]  }
 0x164   :  { %1861 = vmatprep.subr.bf16.mxu1 %v13509_v2  ;;  %v13576_v2 = vld [vmem:[%s20270_s0 + $0x1e8] ss:$16 sps:$4 sm:$0xff]  }
 0x166   :  { %1835 = vmatpush2.bf16.msra.mxu0 %v13504_v3  ;;  %v13584_v3 = vld [vmem:[%s20270_s0 + $0x1cc] ss:$16 sps:$4 sm:$0xff]  }
 0x167   :  { %1862 = vmatpush1.bf16.msra.mxu1 %v13507_v4  ;;  %1836 = vmatprep.subr.bf16.mxu0 %v13512_v5  ;;  %v13582_v4 = vld [vmem:[%s20270_s0 + $0x1c8] ss:$16 sps:$4 sm:$0xff]   ;;  %v13587_v5 = vld [vmem:[%s20270_s0 + $0x1ac] ss:$16 sps:$4 sm:$0xff]  }
 0x168   :  { %1863 = vmatprep.subr.bf16.mxu1 %v13515_v6 }
 0x16a   :  { %1837 = vmatpush2.bf16.msra.mxu0 %v13510_v7 }
 0x16b   :  { %1864 = vmatpush1.bf16.msra.mxu1 %v13513_v8  ;;  %1838 = vmatprep.subr.bf16.mxu0 %v13518_v9 }
 0x16c   :  { %1865 = vmatprep.subr.bf16.mxu1 %v13521_v10 }
 0x16e   :  { %1839 = vmatpush2.bf16.msra.mxu0 %v13516_v11 }
 0x16f   :  { %1866 = vmatpush1.bf16.msra.mxu1 %v13519_v12  ;;  %1840 = vmatprep.subr.bf16.mxu0 %v13524_v13 }
 0x170   :  { %1881 = vmatprep.subr.bf16.mxu1 %v13527_v15 }
 0x172   :  { %1841 = vmatpush2.bf16.msra.mxu0 %v13522_v16 }
 0x173   :  { %1882 = vmatpush2.bf16.msra.mxu1 %v13525_v17  ;;  %1933 = vmatprep.subr.bf16.mxu0 %v13533_v18 }
 0x174   :  { %1892 = vmatprep.subr.bf16.mxu1 %v13530_v20 }
 0x175   :  { %1843 = vmatmul.mubr.bf16.vlgmr.msra.gmra.mxu0 %v15192_v26 }
 0x176   :  { %1884 = vmatmul.mubr.bf16.vlgmr.msra.gmra.mxu1 %v15206_v35  ;;  %1934 = vmatpush1.bf16.msra.mxu0 %v13531_v23 }
 0x177   :  { %1893 = vmatpush1.bf16.msra.mxu1 %v13528_v33  ;;  %1924 = vmatprep.mubr.bf16.mxu1 %v15188_v25 }
 0x178   :  { %11999 = vmatprep.mubr.msk.bf16.mxu0 %vm1042_vm2, %v15196_v28  ;;  %1894 = vmatprep.subr.bf16.mxu1 %v13536_v34 }
 0x179   :  { %1935 = vmatprep.subr.bf16.mxu0 %v13539_v36 }
 0x17a   :  { %1936 = vmatpush1.bf16.msra.mxu0 %v13537_v37 }
 0x17b   :  { %1895 = vmatpush1.bf16.msra.mxu1 %v13534_v38  ;;  %1937 = vmatprep.subr.bf16.mxu0 %v13545_v39 }
 0x17c   :  { %1896 = vmatprep.subr.bf16.mxu1 %v13542_v40 }
 0x17e   :  { %1938 = vmatpush1.bf16.msra.mxu0 %v13543_v41 }
 0x17f   :  { %1897 = vmatpush1.bf16.msra.mxu1 %v13540_v42  ;;  %1939 = vmatprep.subr.bf16.mxu0 %v13551_v43 }
 0x180   :  { %1898 = vmatprep.subr.bf16.mxu1 %v13548_v44 }
 0x182   :  { %1940 = vmatpush1.bf16.msra.mxu0 %v13549_v45 }
 0x183   :  { %1899 = vmatpush1.bf16.msra.mxu1 %v13546_v46  ;;  %1941 = vmatprep.subr.bf16.mxu0 %v13557_v47 }
 0x184   :  { %1900 = vmatprep.subr.bf16.mxu1 %v13554_v48 }
 0x186   :  { %1942 = vmatpush1.bf16.msra.mxu0 %v13555_v49 }
 0x187   :  { %1901 = vmatpush1.bf16.msra.mxu1 %v13552_v50  ;;  %1943 = vmatprep.subr.bf16.mxu0 %v13563_v51 }
 0x188   :  { %1902 = vmatprep.subr.bf16.mxu1 %v13560_v52 }
 0x18a   :  { %1944 = vmatpush1.bf16.msra.mxu0 %v13561_v53 }
 0x18b   :  { %1903 = vmatpush1.bf16.msra.mxu1 %v13558_v54  ;;  %1945 = vmatprep.subr.bf16.mxu0 %v13569_v55 }
 0x18c   :  { %1904 = vmatprep.subr.bf16.mxu1 %v13566_v56 }
 0x18e   :  { %1946 = vmatpush1.bf16.msra.mxu0 %v13567_v57 }
 0x18f   :  { %1905 = vmatpush1.bf16.msra.mxu1 %v13564_v58  ;;  %1947 = vmatprep.subr.bf16.mxu0 %v13575_v59 }
 0x190   :  { %1906 = vmatprep.subr.bf16.mxu1 %v13572_v60 }
 0x192   :  { %1948 = vmatpush1.bf16.msra.mxu0 %v13573_v61 }
 0x193   :  { %1907 = vmatpush1.bf16.msra.mxu1 %v13570_v62  ;;  %1963 = vmatprep.subr.bf16.mxu0 %v13581_v63 }
 0x194   :  { %1908 = vmatprep.subr.bf16.mxu1 %v13578_v0 }
 0x196   :  { %1964 = vmatpush2.bf16.msra.mxu0 %v13579_v1 }
 0x197   :  { %1909 = vmatpush2.bf16.msra.mxu1 %v13576_v2 }
 0x198   :  { %1910 = vmatprep.subr.bf16.mxu1 %v13584_v3 }
 0x199   :  { %1966 = vmatmul.mubr.bf16.vlgmr.msra.gmra.mxu0 %v15206_v35 }
 0x19a   :  { %32 = vsyncpa [#allocation3], 0  ;;  %v13585_v6 = vld [vmem:[%s20270_s0 + $0x1a8] ss:$16 sps:$4 sm:$0xff]   ;;  %v13590_v7 = vld [vmem:[%s20270_s0 + $0x18c] ss:$16 sps:$4 sm:$0xff]  }
 0x19b   :  { %1911 = vmatpush2.bf16.msra.mxu1 %v13582_v4  ;;  %v13588_v8 = vld [vmem:[%s20270_s0 + $0x188] ss:$16 sps:$4 sm:$0xff]   ;;  %v13593_v9 = vld [vmem:[%s20270_s0 + $0x16c] ss:$16 sps:$4 sm:$0xff]   ;;  %v20150_v18 = vmov 0.0   ;;  %vm14761_vm3 = vmmov 0  }
 0x19c   :  { %1912 = vmatprep.subr.bf16.mxu1 %v13587_v5  ;;  %v13591_v10 = vld [vmem:[%s20270_s0 + $0x168] ss:$16 sps:$4 sm:$0xff]   ;;  %v13596_v11 = vld [vmem:[%s20270_s0 + $0x14c] ss:$16 sps:$4 sm:$0xff]   ;;  %13133 = vmatprep.subr.mxu0 %v20150_v18  ;;  %s20273_s10 = sld [smem:[#allocation118_spill]]  ;;  %vm2113_vm4 = vcmask 64512  }
 0x19d   :  { %v13594_v12 = vld [vmem:[%s20270_s0 + $0x148] ss:$16 sps:$4 sm:$0xff]   ;;  %v13599_v13 = vld [vmem:[%s20270_s0 + $0x12c] ss:$16 sps:$4 sm:$0xff]   ;;  %13135 = vmatprep.mubr.msk.f32.mxu0 %vm14761_vm3, %v20150_v18  ;;  %s20277_s9 = sld [smem:[#allocation119_spill]] }
 0x19e   :  { %v13597_v15 = vld [vmem:[%s20270_s0 + $0x128] ss:$16 sps:$4 sm:$0xff]   ;;  %v13602_v16 = vld [vmem:[%s20270_s0 + $0x10c] ss:$16 sps:$4 sm:$0xff]   ;;  %s20353_s4 = sld [smem:[#allocation120_spill]] }
 0x19f   :  { %1913 = vmatpush2.bf16.msra.mxu1 %v13585_v6  ;;  %v13600_v17 = vld [vmem:[%s20270_s0 + $0x108] ss:$16 sps:$4 sm:$0xff]  }
 0x1a0   :  { %1914 = vmatprep.subr.bf16.mxu1 %v13590_v7 }
 0x1a2   :  { %v13605_v58 = vld [vmem:[%s20273_s10 + $0x4] ss:$16 sps:$4 sm:$0xff]   ;;  %v13603_v62 = vld [vmem:[%s20273_s10] ss:$16 sps:$4 sm:$0xff]  }
 0x1a3   :  { %1915 = vmatpush2.bf16.msra.mxu1 %v13588_v8  ;;  %v13606_v8 = vld [vmem:[%s20273_s10 + $0xc] ss:$16 sps:$4 sm:$0xff]  }
 0x1a4   :  { %1916 = vmatprep.subr.bf16.mxu1 %v13593_v9  ;;  %v13608_v9 = vld [vmem:[%s20273_s10 + $0x8] ss:$16 sps:$4 sm:$0xff]  }
 0x1a7   :  { %1917 = vmatpush2.bf16.msra.mxu1 %v13591_v10  ;;  %v13609_v10 = vld [vmem:[%s20273_s10 + $0x20] ss:$16 sps:$4 sm:$0xff]  }
 0x1a8   :  { %1918 = vmatprep.subr.bf16.mxu1 %v13596_v11  ;;  %v13611_v11 = vld [vmem:[%s20273_s10 + $0x24] ss:$16 sps:$4 sm:$0xff]  }
 0x1ab   :  { %1919 = vmatpush2.bf16.msra.mxu1 %v13594_v12  ;;  %v13612_v12 = vld [vmem:[%s20273_s10 + $0x2c] ss:$16 sps:$4 sm:$0xff]  }
 0x1ac   :  { %1920 = vmatprep.subr.bf16.mxu1 %v13599_v13  ;;  %v13615_v13 = vld [vmem:[%s20273_s10 + $0x44] ss:$16 sps:$4 sm:$0xff]  }
 0x1af   :  { %1921 = vmatpush2.bf16.msra.mxu1 %v13597_v15  ;;  %v13614_v15 = vld [vmem:[%s20273_s10 + $0x28] ss:$16 sps:$4 sm:$0xff]  }
 0x1b0   :  { %1922 = vmatprep.subr.bf16.mxu1 %v13602_v16  ;;  %v13617_v16 = vld [vmem:[%s20273_s10 + $0x4c] ss:$16 sps:$4 sm:$0xff]  }
 0x1b3   :  { %1923 = vmatpush2.bf16.msra.mxu1 %v13600_v17  ;;  %v13619_v17 = vld [vmem:[%s20273_s10 + $0x40] ss:$16 sps:$4 sm:$0xff]  }
 0x1b4   :  { %13257 = vmatprep.subr.bf16.mxu1 %v15188_v25 }
 0x1b6   :  { %1925 = vmatmul.mubr.bf16.vlgmr.msra.gmra.mxu1 %v15192_v26 }
 0x1b7   :  { %13258 = vmatpush1.bf16.xpose.msra.mxu1 %v15192_v26  ;;  %2373 = vmatprep.mubr.bf16.mxu1 %v13611_v11 }
 0x1be   :  { %2374 = vmatmul.mubr.bf16.vlgmr.msra.gmra.mxu1 %v13609_v10 }
 0x1bf   :  { %2381 = vmatprep.mubr.bf16.mxu1 %v13615_v13 }
 0x1c6   :  { %2382 = vmatmul.mubr.bf16.gmra.mxu1 %v13619_v17 }
 0x1d1   :  { %v1080_v20 = vpop.f32.mrf.mxu0 }
 0x1d2   :  { %v1121_v23 = vpop.f32.mrf.mxu1 }
 0x1d3   :  { %v1122_v33 = vadd.f32 %v1121_v23, %v1080_v20  ;;  %v1082_v34 = vpop.f32.mrf.mxu0  ;;  %v13621_v20 = vld [vmem:[%s20273_s10 + $0x64] ss:$16 sps:$4 sm:$0xff]   ;;  %v13620_v23 = vld [vmem:[%s20273_s10 + $0x48] ss:$16 sps:$4 sm:$0xff]  }
 0x1d4   :  { %v1123_v36 = vpop.f32.mrf.mxu1  ;;  %2389 = vmatprep.mubr.bf16.mxu1 %v13621_v20 }
 0x1d5   :  { %v15668_v37 = vadd.f32 %v1123_v36, %v1082_v34  ;;  %v1084_v38 = vpop.f32.mrf.mxu0  ;;  %v13625_v34 = vld [vmem:[%s20273_s10 + $0x60] ss:$16 sps:$4 sm:$0xff]   ;;  %v13626_v36 = vld [vmem:[%s20273_s10 + $0x68] ss:$16 sps:$4 sm:$0xff]  }
 0x1d6   :  { %v1125_v39 = vpop.f32.mrf.mxu1  ;;  %2390 = vmatmul.mubr.bf16.gmra.mxu1 %v13625_v34 }
 0x1d7   :  { %v1085_v40 = vpop.f32.mrf.mxu0 }
 0x1d8   :  { %v1126_v41 = vpop.f32.mrf.mxu1 }
 0x1f5   :  { %v1203_v42 = vpop.f32.mrf.mxu0 }
 0x1f7   :  { %v1205_v43 = vpop.f32.mrf.mxu0 }
 0x1f9   :  { %v1207_v44 = vpop.f32.mrf.mxu0 }
 0x1fa   :  { %v13631_v44 = vld [vmem:[%s20273_s10 + $0x80] ss:$16 sps:$4 sm:$0xff]  }
 0x1fb   :  { %v1208_v45 = vpop.f32.mrf.mxu0 }
 0x1fc   :  { %v13632_v45 = vld [vmem:[%s20273_s10 + $0x88] ss:$16 sps:$4 sm:$0xff]  }
 0x212   :  { %v1162_v46 = vpop.f32.mrf.mxu1 }
 0x213   :  { %v15670_v47 = vadd.f32 %v1203_v42, %v1162_v46  ;;  %v13627_v42 = vld [vmem:[%s20273_s10 + $0x84] ss:$16 sps:$4 sm:$0xff]  }
 0x214   :  { %v1164_v48 = vpop.f32.mrf.mxu1  ;;  %2397 = vmatprep.mubr.bf16.mxu1 %v13627_v42  ;;  %v13633_v46 = vld [vmem:[%s20273_s10 + $0xa4] ss:$16 sps:$4 sm:$0xff]  }
 0x215   :  { %20271 = vst [vmem:[#allocation18_spill] sm:$0xff] %v15670_v47  ;;  %v15672_v49 = vadd.f32 %v1205_v43, %v1164_v48  ;;  %v13629_v43 = vld [vmem:[%s20273_s10 + $0x8c] ss:$16 sps:$4 sm:$0xff]   ;;  %2398 = vmatmul.mubr.bf16.gmra.mxu1 %v13631_v44 }
 0x216   :  { %v1166_v50 = vpop.f32.mrf.mxu1  ;;  %v13635_v48 = vld [vmem:[%s20273_s10 + $0xac] ss:$16 sps:$4 sm:$0xff]   ;;  %2405 = vmatprep.mubr.bf16.mxu1 %v13633_v46 }
 0x217   :  { %20272 = vst [vmem:[#allocation19_spill] sm:$0xff] %v15672_v49  ;;  %v13637_v50 = vld [vmem:[%s20273_s10 + $0xa0] ss:$16 sps:$4 sm:$0xff]  }
 0x218   :  { %v1167_v51 = vpop.f32.mrf.mxu1 }
 0x219   :  { %v13638_v51 = vld [vmem:[%s20273_s10 + $0xa8] ss:$16 sps:$4 sm:$0xff]  }
 0x21d   :  { %2406 = vmatmul.mubr.bf16.gmra.mxu1 %v13637_v50 }
 0x235   :  { %v1844_v52 = vpop.f32.mrf.mxu0 }
 0x236   :  { %v1885_v53 = vpop.f32.mrf.mxu1 }
 0x237   :  { %v1886_v54 = vadd.f32 %v1885_v53, %v1844_v52  ;;  %v15674_v55 = vpop.f32.mrf.mxu0  ;;  %v13639_v52 = vld [vmem:[%s20273_s10 + $0xc4] ss:$16 sps:$4 sm:$0xff]   ;;  %v13641_v53 = vld [vmem:[%s20273_s10 + $0xcc] ss:$16 sps:$4 sm:$0xff]  }
 0x238   :  { %v15676_v56 = vpop.f32.mrf.mxu1  ;;  %2413 = vmatprep.mubr.bf16.mxu1 %v13639_v52 }
 0x239   :  { %13134 = vmatpush3.xpose.msra.mxu0 %v1886_v54  ;;  %v1848_v57 = vpop.f32.mrf.mxu0  ;;  %v13643_v54 = vld [vmem:[%s20273_s10 + $0xc0] ss:$16 sps:$4 sm:$0xff]  }
 0x23a   :  { %v1889_v59 = vpop.f32.mrf.mxu1  ;;  %2347 = vmatprep.subr.bf16.mxu0 %v15188_v25  ;;  %v13644_v57 = vld [vmem:[%s20273_s10 + $0xc8] ss:$16 sps:$4 sm:$0xff]   ;;  %2414 = vmatmul.mubr.bf16.gmra.mxu1 %v13643_v54 }
 0x23b   :  { %v1849_v60 = vpop.f32.mrf.mxu0 }
 0x23c   :  { %v1890_v61 = vpop.f32.mrf.mxu1  ;;  %13136 = vmatmul.mubr.f32.vlgmr.msra.gmra.mxu0 %v1122_v33  ;;  %v13623_v33 = vld [vmem:[%s20273_s10 + $0x6c] ss:$16 sps:$4 sm:$0xff]  }
 0x23d   :  { %2348 = vmatpush1.bf16.xpose.msra.mxu0 %v15192_v26  ;;  %2365 = vmatprep.mubr.bf16.mxu0 %v13605_v58  ;;  %v13645_v58 = vld [vmem:[%s20273_s10 + $0xe4] ss:$16 sps:$4 sm:$0xff]   ;;  %v13647_v60 = vld [vmem:[%s20273_s10 + $0xec] ss:$16 sps:$4 sm:$0xff]  }
 0x23e   :  { %12032 = vmatprep.subr.msk.bf16.mxu0 %vm1042_vm2, %v15196_v28  ;;  %2421 = vmatprep.mubr.bf16.mxu1 %v13645_v58 }
 0x244   :  { %2366 = vmatmul.mubr.bf16.vlgmr.msra.gmra.mxu0 %v13603_v62 }
 0x245   :  { %2445 = vmatpush1.bf16.xpose.msra.mxu0 %v15206_v35  ;;  %12033 = vmatprep.mubr.msk.bf16.mxu0 %vm1042_vm2, %v13606_v8 }
 0x24c   :  { %2463 = vmatmul.mubr.bf16.vlgmr.msra.gmra.mxu0 %v13608_v9 }
 0x24d   :  { %12034 = vmatprep.mubr.msk.bf16.mxu0 %vm1042_vm2, %v13612_v12 }
 0x254   :  { %2471 = vmatmul.mubr.bf16.gmra.mxu0 %v13614_v15 }
 0x255   :  { %12035 = vmatprep.mubr.msk.bf16.mxu0 %vm1042_vm2, %v13617_v16 }
 0x259   :  { %v1967_v63 = vpop.f32.mrf.mxu0 }
 0x25b   :  { %v15689_v0 = vpop.f32.mrf.mxu0 }
 0x25c   :  { %20274 = vst [vmem:[#allocation20_spill] sm:$0xff] %v15689_v0  ;;  %2479 = vmatmul.mubr.bf16.gmra.mxu0 %v13620_v23 }
 0x25d   :  { %v1971_v1 = vpop.f32.mrf.mxu0  ;;  %12036 = vmatprep.mubr.msk.bf16.mxu0 %vm1042_vm2, %v13623_v33 }
 0x25e   :  { %v13650_v1 = vld [vmem:[%s20273_s10 + $0xe8] ss:$16 sps:$4 sm:$0xff]  }
 0x25f   :  { %v1972_v2 = vpop.f32.mrf.mxu0 }
 0x264   :  { %2487 = vmatmul.mubr.bf16.gmra.mxu0 %v13626_v36 }
 0x265   :  { %12037 = vmatprep.mubr.msk.bf16.mxu0 %vm1042_vm2, %v13629_v43 }
 0x26c   :  { %2495 = vmatmul.mubr.bf16.gmra.mxu0 %v13632_v45 }
 0x26d   :  { %12038 = vmatprep.mubr.msk.bf16.mxu0 %vm1042_vm2, %v13635_v48 }
 0x274   :  { %2503 = vmatmul.mubr.bf16.gmra.mxu0 %v13638_v51 }
 0x275   :  { %12039 = vmatprep.mubr.msk.bf16.mxu0 %vm1042_vm2, %v13641_v53 }
 0x276   :  { %v1926_v3 = vpop.f32.mrf.mxu1 }
 0x277   :  { %v15691_v4 = vadd.f32 %v1967_v63, %v1926_v3  ;;  %v13649_v63 = vld [vmem:[%s20273_s10 + $0xe0] ss:$16 sps:$4 sm:$0xff]  }
 0x278   :  { %v15693_v5 = vpop.f32.mrf.mxu1  ;;  %2422 = vmatmul.mubr.bf16.gmra.mxu1 %v13649_v63 }
 0x279   :  { %20275 = vst [vmem:[#allocation21_spill] sm:$0xff] %v15691_v4  ;;  %20276 = vst [vmem:[#allocation22_spill] sm:$0xff] %v15693_v5 }
 0x27a   :  { %v1930_v6 = vpop.f32.mrf.mxu1 }
 0x27c   :  { %v1931_v7 = vpop.f32.mrf.mxu1  ;;  %2511 = vmatmul.mubr.bf16.gmra.mxu0 %v13644_v57 }
 0x27d   :  { %12040 = vmatprep.mubr.msk.bf16.mxu0 %vm1042_vm2, %v13647_v60 }
 0x27e   :  { %v2375_v11 = vpop.f32.mrf.mxu1 }
 0x280   :  { %v2377_v15 = vpop.f32.mrf.mxu1 }
 0x282   :  { %v2378_v34 = vpop.f32.mrf.mxu1 }
 0x284   :  { %2519 = vmatmul.mubr.bf16.gmra.mxu0 %v13650_v1 }
 0x285   :  { %2835 = vmatprep.mubr.f32.mxu0 %v20150_v18 }
 0x2fc   :  { %v2108_v38 = vpop.f32.mrf.mxu0 }
 0x2fd   :  { %v2112_v39 = vmul.f32 0.1, %v2108_v38 }
 0x2fe   :  { %v13137_v40 = vpop.f32.mrf.mxu0 }
 0x2ff   :  { %v2114_v41 = vsel %vm2113_vm4, %v2112_v39, -inf }
 0x300   :  { %2115 = vmax.xlane.f32.xlu0 %v2114_v41 }
 0x304   :  { %v2367_v59 = vpop.f32.mrf.mxu0 }
 0x306   :  { %v2369_v61 = vpop.f32.mrf.mxu0 }
 0x308   :  { %v15788_v62 = vpop.f32.mrf.mxu0 }
 0x30a   :  { %v2372_v2 = vpop.f32.mrf.mxu0 }
 0x30c   :  { %v2464_v10 = vpop.f32.mrf.mxu0 }
 0x30d   :  { %v2465_v12 = vadd.f32 %v2464_v10, %v2367_v59 }
 0x30e   :  { %v2466_v13 = vpop.f32.mrf.mxu0 }
 0x30f   :  { %13140 = vmatprep.mubr.msk.f32.mxu1 %vm2113_vm4, %v2465_v12 }
 0x310   :  { %v15802_v16 = vpop.f32.mrf.mxu0 }
 0x312   :  { %v2469_v17 = vpop.f32.mrf.mxu0 }
 0x314   :  { %v2472_v20 = vpop.f32.mrf.mxu0 }
 0x315   :  { %v15804_v23 = vadd.f32 %v2472_v20, %v2375_v11 }
 0x316   :  { %v2474_v33 = vpop.f32.mrf.mxu0 }
 0x318   :  { %v2475_v36 = vpop.f32.mrf.mxu0 }
 0x319   :  { %v15806_v38 = vadd.f32 %v2475_v36, %v2378_v34  ;;  %v15819_v34 = vld [vmem:[%s20277_s9 + $0x8] sm:$0xff] }
 0x31a   :  { %v2477_v40 = vpop.f32.mrf.mxu0  ;;  %2801 = vmatprep.subr.mxu0 %v15819_v34 }
 0x31c   :  { %v2480_v42 = vpop.f32.mrf.mxu0 }
 0x31e   :  { %v2482_v45 = vpop.f32.mrf.mxu0 }
 0x320   :  { %v2483_v48 = vpop.f32.mrf.mxu0 }
 0x322   :  { %v2485_v52 = vpop.f32.mrf.mxu0 }
 0x324   :  { %v2488_v54 = vpop.f32.mrf.mxu0 }
 0x326   :  { %v2490_v59 = vpop.f32.mrf.mxu0 }
 0x328   :  { %v2491_v61 = vpop.f32.mrf.mxu0 }
 0x32a   :  { %v2493_v2 = vpop.f32.mrf.mxu0 }
 0x389   :  { %v2116_v3 = vpop.xlane.xlu0 %2115 }
 0x38a   :  { %v2117_v6 = vsub.f32 %v2112_v39, %v2116_v3  ;;  %v2380_v39 = vpop.f32.mrf.mxu1 }
 0x38c   :  { %v2118_v7 = vmul.f32 1.442695, %v2117_v6  ;;  %v2383_v41 = vpop.f32.mrf.mxu1  ;;  %v2496_v6 = vpop.f32.mrf.mxu0 }
 0x38d   :  { %v15808_v43 = vadd.f32 %v2480_v42, %v2383_v41 }
 0x38e   :  { %14641 = vpow2.f32 %v2118_v7  ;;  %v2385_v44 = vpop.f32.mrf.mxu1  ;;  %v2498_v10 = vpop.f32.mrf.mxu0 }
 0x390   :  { %v2386_v46 = vpop.f32.mrf.mxu1  ;;  %v2499_v12 = vpop.f32.mrf.mxu0 }
 0x391   :  { %v15810_v50 = vadd.f32 %v2483_v48, %v2386_v46 }
 0x392   :  { %v2388_v51 = vpop.f32.mrf.mxu1  ;;  %v2501_v17 = vpop.f32.mrf.mxu0 }
 0x394   :  { %v2391_v53 = vpop.f32.mrf.mxu1  ;;  %v2504_v33 = vpop.f32.mrf.mxu0 }
 0x395   :  { %v15812_v57 = vadd.f32 %v2488_v54, %v2391_v53 }
 0x396   :  { %v2393_v58 = vpop.f32.mrf.mxu1  ;;  %v2506_v40 = vpop.f32.mrf.mxu0 }
 0x398   :  { %v2394_v60 = vpop.f32.mrf.mxu1  ;;  %v2507_v42 = vpop.f32.mrf.mxu0 }
 0x399   :  { %v15814_v63 = vadd.f32 %v2491_v61, %v2394_v60 }
 0x39a   :  { %v2396_v1 = vpop.f32.mrf.mxu1  ;;  %v2509_v46 = vpop.f32.mrf.mxu0 }
 0x39b   :  { %v15797_v8 = vpop.eup %14641 }
 0x39c   :  { %v2120_v9 = vsel %vm2113_vm4, %v15797_v8, 0.0  ;;  %v2399_v3 = vpop.f32.mrf.mxu1  ;;  %v2512_v51 = vpop.f32.mrf.mxu0 }
 0x39d   :  { %2121 = vadd.xlane.f32.xlu0 %v2120_v9  ;;  %v2497_v7 = vadd.f32 %v2496_v6, %v2399_v3 }
 0x39e   :  { %v2401_v9 = vpop.f32.mrf.mxu1  ;;  %v2514_v54 = vpop.f32.mrf.mxu0 }
 0x39f   :  { %v13656_v54 = vld [vmem:[%s20273_s10 + $0x10c] ss:$16 sps:$4 sm:$0xff]  }
 0x3a0   :  { %v2402_v11 = vpop.f32.mrf.mxu1  ;;  %v2515_v59 = vpop.f32.mrf.mxu0 }
 0x3a1   :  { %v2500_v13 = vadd.f32 %v2499_v12, %v2402_v11 }
 0x3a2   :  { %v2404_v15 = vpop.f32.mrf.mxu1  ;;  %v2517_v1 = vpop.f32.mrf.mxu0 }
 0x3a3   :  { %v13665_v1 = vld [vmem:[%s20273_s10 + $0x14c] ss:$16 sps:$4 sm:$0xff]  }
 0x3a4   :  { %v2407_v20 = vpop.f32.mrf.mxu1  ;;  %v2520_v3 = vpop.f32.mrf.mxu0 }
 0x3a5   :  { %v2505_v36 = vadd.f32 %v2504_v33, %v2407_v20 }
 0x3a6   :  { %v2409_v39 = vpop.f32.mrf.mxu1  ;;  %v2522_v10 = vpop.f32.mrf.mxu0 }
 0x3a7   :  { %v13673_v10 = vld [vmem:[%s20273_s10 + $0x160] ss:$16 sps:$4 sm:$0xff]  }
 0x3a8   :  { %v2410_v41 = vpop.f32.mrf.mxu1  ;;  %v2523_v12 = vpop.f32.mrf.mxu0 }
 0x3a9   :  { %v2508_v44 = vadd.f32 %v2507_v42, %v2410_v41  ;;  %v15826_v41 = vld [vmem:[%s20277_s9 + $0x18] sm:$0xff]  ;;  %v2468_v42 = vadd.f32 %v15802_v16, %v15788_v62  ;;  %v15866_v62 = vld [vmem:[%s20277_s9] sm:$0xff]  ;;  %v1888_v16 = vadd.f32 %v15676_v56, %v15674_v55 }
 0x3aa   :  { %v2412_v45 = vpop.f32.mrf.mxu1  ;;  %v2525_v20 = vpop.f32.mrf.mxu0  ;;  %2802 = vmatpush1.msra.mxu0 %v15866_v62 }
 0x3ab   :  { %v15836_v45 = vld [vmem:[%s20277_s9 + $0x10] sm:$0xff]  ;;  %13164 = vmatprep.subr.mxu0 %v20150_v18 }
 0x3ac   :  { %v2415_v48 = vpop.f32.mrf.mxu1 }
 0x3ad   :  { %v2513_v52 = vadd.f32 %v2512_v51, %v2415_v48  ;;  %v13651_v51 = vld [vmem:[%s20273_s10 + $0x100] ss:$16 sps:$4 sm:$0xff]  }
 0x3ae   :  { %v2417_v53 = vpop.f32.mrf.mxu1 }
 0x3af   :  { %v13654_v53 = vld [vmem:[%s20273_s10 + $0x108] ss:$16 sps:$4 sm:$0xff]  }
 0x3b0   :  { %v2418_v58 = vpop.f32.mrf.mxu1 }
 0x3b1   :  { %v2516_v60 = vadd.f32 %v2515_v59, %v2418_v58  ;;  %v13659_v58 = vld [vmem:[%s20273_s10 + $0x12c] ss:$16 sps:$4 sm:$0xff]   ;;  %v13661_v59 = vld [vmem:[%s20273_s10 + $0x120] ss:$16 sps:$4 sm:$0xff]  }
 0x3b2   :  { %v2420_v61 = vpop.f32.mrf.mxu1 }
 0x3b3   :  { %v13663_v61 = vld [vmem:[%s20273_s10 + $0x144] ss:$16 sps:$4 sm:$0xff]  }
 0x3b4   :  { %v2423_v2 = vpop.f32.mrf.mxu1 }
 0x3b5   :  { %v2521_v6 = vadd.f32 %v2520_v3, %v2423_v2  ;;  %v13667_v2 = vld [vmem:[%s20273_s10 + $0x140] ss:$16 sps:$4 sm:$0xff]   ;;  %v13668_v3 = vld [vmem:[%s20273_s10 + $0x148] ss:$16 sps:$4 sm:$0xff]  }
 0x3b6   :  { %v2425_v9 = vpop.f32.mrf.mxu1 }
 0x3b7   :  { %v13671_v9 = vld [vmem:[%s20273_s10 + $0x16c] ss:$16 sps:$4 sm:$0xff]  }
 0x3b8   :  { %v2426_v11 = vpop.f32.mrf.mxu1 }
 0x3b9   :  { %v2524_v15 = vadd.f32 %v2523_v12, %v2426_v11  ;;  %v13674_v11 = vld [vmem:[%s20273_s10 + $0x168] ss:$16 sps:$4 sm:$0xff]  }
 0x3ba   :  { %v2428_v17 = vpop.f32.mrf.mxu1 }
 0x426   :  { %v2122_v33 = vpop.xlane.xlu0 %2121 }
 0x427   :  { %14643 = vrcp.f32 %v2122_v33 }
 0x434   :  { %v14644_v39 = vpop.eup %14643 }
 0x435   :  { %v2124_v40 = vmul.f32 %v14644_v39, %v15797_v8 }
 0x437   :  { %13138 = vmatprep.subr.msk.mxu1 %vm2113_vm4, %v2124_v40 }
 0x438   :  { %13139 = vmatpush3.xpose.msk.msra.mxu1 %vm2113_vm4, %v2124_v40 }
 0x439   :  { %2962 = vmatprep.subr.mxu1 %v15826_v41 }
 0x43b   :  { %13141 = vmatmul.mubr.msk.f32.vlgmr.msra.gmra.mxu1 %vm2113_vm4, %v2468_v42 }
 0x43c   :  { %2963 = vmatpush1.msra.mxu1 %v15836_v45  ;;  %13143 = vmatprep.mubr.msk.f32.mxu1 %vm2113_vm4, %v15804_v23 }
 0x43d   :  { %12154 = vmatprep.subr.msk.bf16.mxu1 %vm1042_vm2, %v15196_v28 }
 0x43f   :  { %13144 = vmatmul.mubr.msk.f32.gmra.mxu1 %vm2113_vm4, %v15806_v38 }
 0x440   :  { %13146 = vmatprep.mubr.msk.f32.mxu1 %vm2113_vm4, %v15808_v43 }
 0x443   :  { %13147 = vmatmul.mubr.msk.f32.gmra.mxu1 %vm2113_vm4, %v15810_v50 }
 0x444   :  { %13149 = vmatprep.mubr.msk.f32.mxu1 %vm2113_vm4, %v15812_v57 }
 0x447   :  { %13150 = vmatmul.mubr.msk.f32.gmra.mxu1 %vm2113_vm4, %v15814_v63 }
 0x448   :  { %13152 = vmatprep.mubr.msk.f32.mxu1 %vm2113_vm4, %v2497_v7 }
 0x44b   :  { %13153 = vmatmul.mubr.msk.f32.gmra.mxu1 %vm2113_vm4, %v2500_v13 }
 0x44c   :  { %13155 = vmatprep.mubr.msk.f32.mxu1 %vm2113_vm4, %v2505_v36 }
 0x44f   :  { %13156 = vmatmul.mubr.msk.f32.gmra.mxu1 %vm2113_vm4, %v2508_v44 }
 0x450   :  { %13158 = vmatprep.mubr.msk.f32.mxu1 %vm2113_vm4, %v2513_v52  ;;  %v13653_v52 = vld [vmem:[%s20273_s10 + $0x104] ss:$16 sps:$4 sm:$0xff]  }
 0x453   :  { %13159 = vmatmul.mubr.msk.f32.gmra.mxu1 %vm2113_vm4, %v2516_v60  ;;  %v13662_v60 = vld [vmem:[%s20273_s10 + $0x128] ss:$16 sps:$4 sm:$0xff]  }
 0x454   :  { %13161 = vmatprep.mubr.msk.f32.mxu1 %vm2113_vm4, %v2521_v6  ;;  %v13669_v6 = vld [vmem:[%s20273_s10 + $0x164] ss:$16 sps:$4 sm:$0xff]  }
 0x457   :  { %13162 = vmatmul.mubr.msk.f32.gmra.mxu1 %vm2113_vm4, %v2524_v15 }
 0x458   :  { %2996 = vmatprep.mubr.f32.mxu1 %v20150_v18 }
 0x4fb   :  { %v13142_v8 = vpop.f32.mrf.mxu1 }
 0x4fd   :  { %v2644_v23 = vpop.f32.mrf.mxu1 }
 0x4fe   :  { %12058 = vmatmul.mubr.msk.f32.vlgmr.msra.gmra.mxu0 %vm2113_vm4, %v2644_v23  ;;  %12074 = vmatmul.mubr.msk.f32.vlgmr.msra.gmra.mxu1 %vm2113_vm4, %v2644_v23 }
 0x4ff   :  { %13165 = vmatpush3.xpose.msra.mxu0 %v1888_v16  ;;  %3561 = vmatpush1.bf16.xpose.msra.mxu1 %v15206_v35  ;;  %v13145_v38 = vpop.f32.mrf.mxu1 }
 0x500   :  { %3463 = vmatprep.subr.bf16.mxu0 %v15188_v25  ;;  %2841 = vmatprep.mubr.f32.mxu0 %v20150_v18 }
 0x501   :  { %3002 = vmatprep.mubr.f32.mxu1 %v20150_v18  ;;  %3917 = vmatprep.subr.mxu1 %v15819_v34  ;;  %v2654_v55 = vpop.f32.mrf.mxu1 }
 0x502   :  { %12059 = vmatmul.mubr.msk.f32.gmra.mxu0 %vm2113_vm4, %v13142_v8  ;;  %12075 = vmatmul.mubr.msk.f32.gmra.mxu1 %vm2113_vm4, %v13142_v8 }
 0x503   :  { %2847 = vmatprep.mubr.f32.mxu0 %v20150_v18  ;;  %3008 = vmatprep.mubr.f32.mxu1 %v20150_v18  ;;  %v13148_v56 = vpop.f32.mrf.mxu1 }
 0x505   :  { %v2664_v43 = vpop.f32.mrf.mxu1 }
 0x506   :  { %12060 = vmatmul.mubr.msk.f32.gmra.mxu0 %vm2113_vm4, %v2654_v55  ;;  %12076 = vmatmul.mubr.msk.f32.gmra.mxu1 %vm2113_vm4, %v2654_v55 }
 0x507   :  { %2853 = vmatprep.mubr.f32.mxu0 %v20150_v18  ;;  %3014 = vmatprep.mubr.f32.mxu1 %v20150_v18  ;;  %v13151_v50 = vpop.f32.mrf.mxu1 }
 0x509   :  { %v2674_v57 = vpop.f32.mrf.mxu1 }
 0x50a   :  { %12061 = vmatmul.mubr.msk.f32.gmra.mxu0 %vm2113_vm4, %v13145_v38  ;;  %12077 = vmatmul.mubr.msk.f32.gmra.mxu1 %vm2113_vm4, %v13145_v38 }
 0x50b   :  { %2859 = vmatprep.mubr.f32.mxu0 %v20150_v18  ;;  %3020 = vmatprep.mubr.f32.mxu1 %v20150_v18  ;;  %v13154_v63 = vpop.f32.mrf.mxu1 }
 0x50d   :  { %v2684_v7 = vpop.f32.mrf.mxu1 }
 0x50e   :  { %12062 = vmatmul.mubr.msk.f32.gmra.mxu0 %vm2113_vm4, %v2664_v43  ;;  %12078 = vmatmul.mubr.msk.f32.gmra.mxu1 %vm2113_vm4, %v2664_v43 }
 0x50f   :  { %2865 = vmatprep.mubr.f32.mxu0 %v20150_v18  ;;  %3026 = vmatprep.mubr.f32.mxu1 %v20150_v18  ;;  %v13157_v13 = vpop.f32.mrf.mxu1 }
 0x511   :  { %v2694_v34 = vpop.f32.mrf.mxu1 }
 0x512   :  { %12063 = vmatmul.mubr.msk.f32.gmra.mxu0 %vm2113_vm4, %v13148_v56  ;;  %12079 = vmatmul.mubr.msk.f32.gmra.mxu1 %vm2113_vm4, %v13148_v56 }
 0x513   :  { %2871 = vmatprep.mubr.f32.mxu0 %v20150_v18  ;;  %3032 = vmatprep.mubr.f32.mxu1 %v20150_v18  ;;  %v13160_v36 = vpop.f32.mrf.mxu1 }
 0x515   :  { %v2704_v44 = vpop.f32.mrf.mxu1 }
 0x516   :  { %12064 = vmatmul.mubr.msk.f32.gmra.mxu0 %vm2113_vm4, %v2674_v57  ;;  %12080 = vmatmul.mubr.msk.f32.gmra.mxu1 %vm2113_vm4, %v2674_v57 }
 0x517   :  { %2877 = vmatprep.mubr.f32.mxu0 %v20150_v18  ;;  %3038 = vmatprep.mubr.f32.mxu1 %v20150_v18  ;;  %v13163_v46 = vpop.f32.mrf.mxu1 }
 0x519   :  { %v2714_v48 = vpop.f32.mrf.mxu1 }
 0x51a   :  { %12065 = vmatmul.mubr.msk.f32.gmra.mxu0 %vm2113_vm4, %v13151_v50  ;;  %12081 = vmatmul.mubr.msk.f32.gmra.mxu1 %vm2113_vm4, %v13151_v50 }
 0x51b   :  { %2883 = vmatprep.mubr.f32.mxu0 %v20150_v18  ;;  %3044 = vmatprep.mubr.f32.mxu1 %v20150_v18 }
 0x51e   :  { %12066 = vmatmul.mubr.msk.f32.gmra.mxu0 %vm2113_vm4, %v2684_v7  ;;  %12082 = vmatmul.mubr.msk.f32.gmra.mxu1 %vm2113_vm4, %v2684_v7 }
 0x51f   :  { %2889 = vmatprep.mubr.f32.mxu0 %v20150_v18  ;;  %3050 = vmatprep.mubr.f32.mxu1 %v20150_v18 }
 0x522   :  { %12067 = vmatmul.mubr.msk.f32.gmra.mxu0 %vm2113_vm4, %v13154_v63  ;;  %12083 = vmatmul.mubr.msk.f32.gmra.mxu1 %vm2113_vm4, %v13154_v63 }
 0x523   :  { %2895 = vmatprep.mubr.f32.mxu0 %v20150_v18  ;;  %3056 = vmatprep.mubr.f32.mxu1 %v20150_v18 }
 0x526   :  { %12068 = vmatmul.mubr.msk.f32.gmra.mxu0 %vm2113_vm4, %v2694_v34  ;;  %12084 = vmatmul.mubr.msk.f32.gmra.mxu1 %vm2113_vm4, %v2694_v34 }
 0x527   :  { %2901 = vmatprep.mubr.f32.mxu0 %v20150_v18  ;;  %3062 = vmatprep.mubr.f32.mxu1 %v20150_v18 }
 0x52a   :  { %12069 = vmatmul.mubr.msk.f32.gmra.mxu0 %vm2113_vm4, %v13157_v13  ;;  %12085 = vmatmul.mubr.msk.f32.gmra.mxu1 %vm2113_vm4, %v13157_v13 }
 0x52b   :  { %2907 = vmatprep.mubr.f32.mxu0 %v20150_v18  ;;  %3068 = vmatprep.mubr.f32.mxu1 %v20150_v18 }
 0x52e   :  { %12070 = vmatmul.mubr.msk.f32.gmra.mxu0 %vm2113_vm4, %v2704_v44  ;;  %12086 = vmatmul.mubr.msk.f32.gmra.mxu1 %vm2113_vm4, %v2704_v44 }
 0x52f   :  { %2913 = vmatprep.mubr.f32.mxu0 %v20150_v18  ;;  %3074 = vmatprep.mubr.f32.mxu1 %v20150_v18 }
 0x532   :  { %12071 = vmatmul.mubr.msk.f32.gmra.mxu0 %vm2113_vm4, %v13160_v36  ;;  %12087 = vmatmul.mubr.msk.f32.gmra.mxu1 %vm2113_vm4, %v13160_v36 }
 0x533   :  { %2919 = vmatprep.mubr.f32.mxu0 %v20150_v18  ;;  %3080 = vmatprep.mubr.f32.mxu1 %v20150_v18 }
 0x536   :  { %12072 = vmatmul.mubr.msk.f32.gmra.mxu0 %vm2113_vm4, %v2714_v48  ;;  %12088 = vmatmul.mubr.msk.f32.gmra.mxu1 %vm2113_vm4, %v2714_v48 }
 0x537   :  { %2925 = vmatprep.mubr.f32.mxu0 %v20150_v18  ;;  %3086 = vmatprep.mubr.f32.mxu1 %v20150_v18 }
 0x53a   :  { %12073 = vmatmul.mubr.msk.f32.gmra.mxu0 %vm2113_vm4, %v13163_v46  ;;  %12089 = vmatmul.mubr.msk.f32.gmra.mxu1 %vm2113_vm4, %v13163_v46 }
 0x53b   :  { %13166 = vmatprep.mubr.msk.f32.mxu0 %vm14761_vm3, %v20150_v18  ;;  %12155 = vmatprep.mubr.msk.bf16.mxu1 %vm1042_vm2, %v13656_v54 }
 0x53e   :  { %13167 = vmatmul.mubr.f32.vlgmr.msra.gmra.mxu0 %v15668_v37  ;;  %v13657_v37 = vld [vmem:[%s20273_s10 + $0x124] ss:$16 sps:$4 sm:$0xff]   ;;  %3579 = vmatmul.mubr.bf16.vlgmr.msra.gmra.mxu1 %v13654_v53 }
 0x53f   :  { %3464 = vmatpush1.bf16.xpose.msra.mxu0 %v15192_v26  ;;  %3481 = vmatprep.mubr.bf16.mxu0 %v13653_v52 }
 0x540   :  { %12156 = vmatprep.mubr.msk.bf16.mxu1 %vm1042_vm2, %v13659_v58  ;;  %3918 = vmatpush1.msra.mxu1 %v15866_v62 }
 0x546   :  { %3482 = vmatmul.mubr.bf16.vlgmr.msra.gmra.mxu0 %v13651_v51  ;;  %3587 = vmatmul.mubr.bf16.gmra.mxu1 %v13662_v60 }
 0x547   :  { %3489 = vmatprep.mubr.bf16.mxu0 %v13657_v37  ;;  %12157 = vmatprep.mubr.msk.bf16.mxu1 %vm1042_vm2, %v13665_v1 }
 0x54e   :  { %3490 = vmatmul.mubr.bf16.gmra.mxu0 %v13661_v59  ;;  %3595 = vmatmul.mubr.bf16.gmra.mxu1 %v13668_v3  ;;  %v13677_v3 = vld [vmem:[%s20273_s10 + $0x18c] ss:$16 sps:$4 sm:$0xff]  }
 0x54f   :  { %3497 = vmatprep.mubr.bf16.mxu0 %v13663_v61  ;;  %12158 = vmatprep.mubr.msk.bf16.mxu1 %vm1042_vm2, %v13671_v9  ;;  %v13680_v9 = vld [vmem:[%s20273_s10 + $0x188] ss:$16 sps:$4 sm:$0xff]  }
 0x556   :  { %3498 = vmatmul.mubr.bf16.gmra.mxu0 %v13667_v2  ;;  %3603 = vmatmul.mubr.bf16.gmra.mxu1 %v13674_v11  ;;  %v13675_v2 = vld [vmem:[%s20273_s10 + $0x184] ss:$16 sps:$4 sm:$0xff]   ;;  %v13684_v11 = vld [vmem:[%s20273_s10 + $0x1ac] ss:$16 sps:$4 sm:$0xff]  }
 0x557   :  { %3505 = vmatprep.mubr.bf16.mxu0 %v13669_v6  ;;  %v13679_v6 = vld [vmem:[%s20273_s10 + $0x180] ss:$16 sps:$4 sm:$0xff]   ;;  %12159 = vmatprep.mubr.msk.bf16.mxu1 %vm1042_vm2, %v13677_v3 }
 0x558   :  { %v13687_v3 = vld [vmem:[%s20273_s10 + $0x1c0] ss:$16 sps:$4 sm:$0xff]  }
 0x55e   :  { %3506 = vmatmul.mubr.bf16.gmra.mxu0 %v13673_v10  ;;  %v13683_v10 = vld [vmem:[%s20273_s10 + $0x1a4] ss:$16 sps:$4 sm:$0xff]   ;;  %3611 = vmatmul.mubr.bf16.gmra.mxu1 %v13680_v9 }
 0x55f   :  { %3513 = vmatprep.mubr.bf16.mxu0 %v13675_v2  ;;  %12160 = vmatprep.mubr.msk.bf16.mxu1 %vm1042_vm2, %v13684_v11  ;;  %v13690_v2 = vld [vmem:[%s20273_s10 + $0x1cc] ss:$16 sps:$4 sm:$0xff]   ;;  %v13695_v9 = vld [vmem:[%s20273_s10 + $0x1e4] ss:$16 sps:$4 sm:$0xff]   ;;  %v13693_v11 = vld [vmem:[%s20273_s10 + $0x1e0] ss:$16 sps:$4 sm:$0xff]  }
 0x566   :  { %3514 = vmatmul.mubr.bf16.gmra.mxu0 %v13679_v6  ;;  %v13692_v6 = vld [vmem:[%s20273_s10 + $0x1c8] ss:$16 sps:$4 sm:$0xff]  }
 0x567   :  { %3521 = vmatprep.mubr.bf16.mxu0 %v13683_v10  ;;  %v13696_v10 = vld [vmem:[%s20273_s10 + $0x1ec] ss:$16 sps:$4 sm:$0xff]  }
 0x5be   :  { %v15994_v12 = vpop.f32.mrf.mxu0 }
 0x5bf   :  { %20278 = vst [vmem:[#allocation23_spill] sm:$0xff] %v15994_v12 }
 0x5c0   :  { %v15996_v15 = vpop.f32.mrf.mxu0 }
 0x5c1   :  { %20279 = vst [vmem:[#allocation24_spill] sm:$0xff] %v15996_v15 }
 0x5c2   :  { %v15998_v17 = vpop.f32.mrf.mxu0 }
 0x5c3   :  { %20280 = vst [vmem:[#allocation25_spill] sm:$0xff] %v15998_v17 }
 0x5c4   :  { %v16000_v20 = vpop.f32.mrf.mxu0 }
 0x5c5   :  { %20281 = vst [vmem:[#allocation26_spill] sm:$0xff] %v16000_v20 }
 0x5c6   :  { %v16002_v33 = vpop.f32.mrf.mxu0 }
 0x5c7   :  { %20282 = vst [vmem:[#allocation27_spill] sm:$0xff] %v16002_v33 }
 0x5c8   :  { %v16004_v39 = vpop.f32.mrf.mxu0 }
 0x5c9   :  { %20283 = vst [vmem:[#allocation28_spill] sm:$0xff] %v16004_v39 }
 0x5ca   :  { %v16006_v40 = vpop.f32.mrf.mxu0 }
 0x5cb   :  { %20284 = vst [vmem:[#allocation29_spill] sm:$0xff] %v16006_v40 }
 0x5cc   :  { %v16008_v42 = vpop.f32.mrf.mxu0 }
 0x5cd   :  { %20285 = vst [vmem:[#allocation30_spill] sm:$0xff] %v16008_v42 }
 0x5ce   :  { %v16010_v62 = vpop.f32.mrf.mxu0 }
 0x5cf   :  { %20286 = vst [vmem:[#allocation31_spill] sm:$0xff] %v16010_v62 }
 0x5d0   :  { %v16012_v8 = vpop.f32.mrf.mxu0 }
 0x5d1   :  { %20287 = vst [vmem:[#allocation32_spill] sm:$0xff] %v16012_v8 }
 0x5d2   :  { %v16014_v16 = vpop.f32.mrf.mxu0 }
 0x5d3   :  { %20288 = vst [vmem:[#allocation33_spill] sm:$0xff] %v16014_v16 }
 0x5d4   :  { %v16016_v23 = vpop.f32.mrf.mxu0 }
 0x5d5   :  { %20289 = vst [vmem:[#allocation34_spill] sm:$0xff] %v16016_v23 }
 0x5d6   :  { %v16018_v38 = vpop.f32.mrf.mxu0 }
 0x5d7   :  { %20290 = vst [vmem:[#allocation35_spill] sm:$0xff] %v16018_v38 }
 0x5d8   :  { %v16020_v55 = vpop.f32.mrf.mxu0 }
 0x5d9   :  { %20291 = vst [vmem:[#allocation36_spill] sm:$0xff] %v16020_v55 }
 0x5da   :  { %v16022_v56 = vpop.f32.mrf.mxu0 }
 0x5db   :  { %20292 = vst [vmem:[#allocation37_spill] sm:$0xff] %v16022_v56 }
 0x5dc   :  { %v16024_v43 = vpop.f32.mrf.mxu0 }
 0x5dd   :  { %20293 = vst [vmem:[#allocation38_spill] sm:$0xff] %v16024_v43 }
 0x5de   :  { %v16026_v50 = vpop.f32.mrf.mxu0 }
 0x5df   :  { %20294 = vst [vmem:[#allocation39_spill] sm:$0xff] %v16026_v50 }
 0x5e0   :  { %v16028_v57 = vpop.f32.mrf.mxu0 }
 0x5e1   :  { %20295 = vst [vmem:[#allocation40_spill] sm:$0xff] %v16028_v57 }
 0x5e2   :  { %v16030_v63 = vpop.f32.mrf.mxu0 }
 0x5e3   :  { %20296 = vst [vmem:[#allocation41_spill] sm:$0xff] %v16030_v63 }
 0x5e4   :  { %v16032_v7 = vpop.f32.mrf.mxu0 }
 0x5e5   :  { %20297 = vst [vmem:[#allocation42_spill] sm:$0xff] %v16032_v7 }
 0x5e6   :  { %v16034_v13 = vpop.f32.mrf.mxu0 }
 0x5e7   :  { %20298 = vst [vmem:[#allocation43_spill] sm:$0xff] %v16034_v13 }
 0x5e8   :  { %v16036_v34 = vpop.f32.mrf.mxu0 }
 0x5e9   :  { %20299 = vst [vmem:[#allocation44_spill] sm:$0xff] %v16036_v34 }
 0x5ea   :  { %v16038_v36 = vpop.f32.mrf.mxu0 }
 0x5eb   :  { %20300 = vst [vmem:[#allocation45_spill] sm:$0xff] %v16038_v36 }
 0x5ec   :  { %v16040_v44 = vpop.f32.mrf.mxu0 }
 0x5ed   :  { %20301 = vst [vmem:[#allocation46_spill] sm:$0xff] %v16040_v44 }
 0x5ee   :  { %v16042_v46 = vpop.f32.mrf.mxu0 }
 0x5ef   :  { %20302 = vst [vmem:[#allocation47_spill] sm:$0xff] %v16042_v46 }
 0x5f0   :  { %v16044_v48 = vpop.f32.mrf.mxu0 }
 0x5f1   :  { %20303 = vst [vmem:[#allocation48_spill] sm:$0xff] %v16044_v48 }
 0x5f2   :  { %v16046_v51 = vpop.f32.mrf.mxu0 }
 0x5f3   :  { %20304 = vst [vmem:[#allocation49_spill] sm:$0xff] %v16046_v51 }
 0x5f4   :  { %v16048_v52 = vpop.f32.mrf.mxu0 }
 0x5f5   :  { %20305 = vst [vmem:[#allocation50_spill] sm:$0xff] %v16048_v52 }
 0x5f6   :  { %v16050_v53 = vpop.f32.mrf.mxu0 }
 0x5f7   :  { %20306 = vst [vmem:[#allocation51_spill] sm:$0xff] %v16050_v53 }
 0x5f8   :  { %v16052_v54 = vpop.f32.mrf.mxu0 }
 0x5f9   :  { %20307 = vst [vmem:[#allocation52_spill] sm:$0xff] %v16052_v54 }
 0x5fa   :  { %v16054_v37 = vpop.f32.mrf.mxu0 }
 0x5fb   :  { %20308 = vst [vmem:[#allocation53_spill] sm:$0xff] %v16054_v37 }
 0x5fc   :  { %v16056_v58 = vpop.f32.mrf.mxu0 }
 0x5fd   :  { %20309 = vst [vmem:[#allocation54_spill] sm:$0xff] %v16056_v58  ;;  %v16389_v58 = vld [vmem:[%s20353_s4 + $0x1f8] sm:$0xff] }
 0x5fe   :  { %v3224_v59 = vpop.f32.mrf.mxu0  ;;  %20355 = vst [vmem:[#allocation98_spill] sm:$0xff] %v16389_v58 }
 0x5ff   :  { %v16058_v60 = vmul.f32 0.1, %v3224_v59  ;;  %v13681_v59 = vld [vmem:[%s20273_s10 + $0x1a0] ss:$16 sps:$4 sm:$0xff]  }
 0x600   :  { %v13168_v61 = vpop.f32.mrf.mxu0  ;;  %3522 = vmatmul.mubr.bf16.gmra.mxu0 %v13681_v59  ;;  %v13698_v59 = vld [vmem:[%s20273_s10 + $0x1e8] ss:$16 sps:$4 sm:$0xff]  }
 0x601   :  { %v3229_v1 = vsel %vm2113_vm4, %v16058_v60, -inf  ;;  %v13686_v61 = vld [vmem:[%s20273_s10 + $0x1a8] ss:$16 sps:$4 sm:$0xff]  }
 0x602   :  { %3230 = vmax.xlane.f32.xlu1 %v3229_v1  ;;  %v13689_v1 = vld [vmem:[%s20273_s10 + $0x1c4] ss:$16 sps:$4 sm:$0xff]   ;;  %3619 = vmatmul.mubr.bf16.gmra.mxu1 %v13686_v61  ;;  %v16115_v61 = vpop.f32.mrf.mxu1 }
 0x603   :  { %3529 = vmatprep.mubr.bf16.mxu0 %v13689_v1  ;;  %12161 = vmatprep.mubr.msk.bf16.mxu1 %vm1042_vm2, %v13690_v2  ;;  %20310 = vst [vmem:[#allocation55_spill] sm:$0xff] %v16115_v61 }
 0x604   :  { %v16117_v1 = vpop.f32.mrf.mxu1 }
 0x605   :  { %20311 = vst [vmem:[#allocation56_spill] sm:$0xff] %v16117_v1 }
 0x606   :  { %v16119_v2 = vpop.f32.mrf.mxu1 }
 0x607   :  { %20312 = vst [vmem:[#allocation57_spill] sm:$0xff] %v16119_v2 }
 0x608   :  { %3530 = vmatmul.mubr.bf16.gmra.mxu0 %v13687_v3  ;;  %v16121_v3 = vpop.f32.mrf.mxu1 }
 0x609   :  { %3537 = vmatprep.mubr.bf16.mxu0 %v13695_v9  ;;  %20313 = vst [vmem:[#allocation58_spill] sm:$0xff] %v16121_v3 }
 0x60a   :  { %3627 = vmatmul.mubr.bf16.gmra.mxu1 %v13692_v6  ;;  %v16123_v6 = vpop.f32.mrf.mxu1 }
 0x60b   :  { %12162 = vmatprep.mubr.msk.bf16.mxu1 %vm1042_vm2, %v13696_v10  ;;  %20314 = vst [vmem:[#allocation59_spill] sm:$0xff] %v16123_v6 }
 0x60c   :  { %v16125_v9 = vpop.f32.mrf.mxu1 }
 0x60d   :  { %20315 = vst [vmem:[#allocation60_spill] sm:$0xff] %v16125_v9 }
 0x60e   :  { %v16127_v10 = vpop.f32.mrf.mxu1 }
 0x60f   :  { %20316 = vst [vmem:[#allocation61_spill] sm:$0xff] %v16127_v10 }
 0x610   :  { %3538 = vmatmul.mubr.bf16.gmra.mxu0 %v13693_v11  ;;  %v16129_v14 = vpop.f32.mrf.mxu1 }
 0x611   :  { %20317 = vst [vmem:[#allocation62_spill] sm:$0xff] %v16129_v14 }
 0x612   :  { %3635 = vmatmul.mubr.bf16.gmra.mxu1 %v13698_v59  ;;  %v16131_v11 = vpop.f32.mrf.mxu1 }
 0x613   :  { %3951 = vmatprep.mubr.f32.mxu1 %v20150_v18  ;;  %20318 = vst [vmem:[#allocation63_spill] sm:$0xff] %v16131_v11 }
 0x614   :  { %v16133_v59 = vpop.f32.mrf.mxu1 }
 0x615   :  { %20319 = vst [vmem:[#allocation64_spill] sm:$0xff] %v16133_v59 }
 0x616   :  { %v16135_v18 = vpop.f32.mrf.mxu1 }
 0x617   :  { %20320 = vst [vmem:[#allocation65_spill] sm:$0xff] %v16135_v18 }
 0x618   :  { %v16137_v27 = vpop.f32.mrf.mxu1 }
 0x619   :  { %20321 = vst [vmem:[#allocation66_spill] sm:$0xff] %v16137_v27 }
 0x61a   :  { %v16139_v30 = vpop.f32.mrf.mxu1 }
 0x61b   :  { %20322 = vst [vmem:[#allocation67_spill] sm:$0xff] %v16139_v30 }
 0x61c   :  { %v16141_v29 = vpop.f32.mrf.mxu1 }
 0x61d   :  { %20323 = vst [vmem:[#allocation68_spill] sm:$0xff] %v16141_v29 }
 0x61e   :  { %v16143_v32 = vpop.f32.mrf.mxu1 }
 0x61f   :  { %20324 = vst [vmem:[#allocation69_spill] sm:$0xff] %v16143_v32 }
 0x620   :  { %v16145_v31 = vpop.f32.mrf.mxu1 }
 0x621   :  { %20325 = vst [vmem:[#allocation70_spill] sm:$0xff] %v16145_v31 }
 0x622   :  { %v16147_v24 = vpop.f32.mrf.mxu1 }
 0x623   :  { %20326 = vst [vmem:[#allocation71_spill] sm:$0xff] %v16147_v24 }
 0x624   :  { %v16149_v21 = vpop.f32.mrf.mxu1 }
 0x625   :  { %20327 = vst [vmem:[#allocation72_spill] sm:$0xff] %v16149_v21 }
 0x626   :  { %v16151_v19 = vpop.f32.mrf.mxu1 }
 0x627   :  { %20328 = vst [vmem:[#allocation73_spill] sm:$0xff] %v16151_v19 }
 0x628   :  { %v16153_v22 = vpop.f32.mrf.mxu1 }
 0x629   :  { %20329 = vst [vmem:[#allocation74_spill] sm:$0xff] %v16153_v22 }
 0x62a   :  { %v16155_v49 = vpop.f32.mrf.mxu1 }
 0x62b   :  { %20330 = vst [vmem:[#allocation75_spill] sm:$0xff] %v16155_v49 }
 0x62c   :  { %v16157_v0 = vpop.f32.mrf.mxu1 }
 0x62d   :  { %20331 = vst [vmem:[#allocation76_spill] sm:$0xff] %v16157_v0 }
 0x62e   :  { %v16159_v5 = vpop.f32.mrf.mxu1 }
 0x62f   :  { %20332 = vst [vmem:[#allocation77_spill] sm:$0xff] %v16159_v5 }
 0x630   :  { %v16161_v26 = vpop.f32.mrf.mxu1 }
 0x631   :  { %20333 = vst [vmem:[#allocation78_spill] sm:$0xff] %v16161_v26 }
 0x632   :  { %v16163_v47 = vpop.f32.mrf.mxu1 }
 0x633   :  { %20334 = vst [vmem:[#allocation79_spill] sm:$0xff] %v16163_v47 }
 0x634   :  { %v16166_v28 = vpop.f32.mrf.mxu1 }
 0x635   :  { %20335 = vst [vmem:[#allocation80_spill] sm:$0xff] %v16166_v28 }
 0x636   :  { %v16168_v61 = vpop.f32.mrf.mxu1 }
 0x637   :  { %20336 = vst [vmem:[#allocation81_spill] sm:$0xff] %v16168_v61 }
 0x638   :  { %v16170_v12 = vpop.f32.mrf.mxu1 }
 0x639   :  { %20337 = vst [vmem:[#allocation82_spill] sm:$0xff] %v16170_v12 }
 0x63a   :  { %v16172_v1 = vpop.f32.mrf.mxu1 }
 0x63b   :  { %20338 = vst [vmem:[#allocation83_spill] sm:$0xff] %v16172_v1 }
 0x63c   :  { %v16178_v17 = vpop.f32.mrf.mxu1 }
 0x63d   :  { %20339 = vst [vmem:[#allocation84_spill] sm:$0xff] %v16178_v17 }
 0x63e   :  { %v16180_v3 = vpop.f32.mrf.mxu1 }
 0x63f   :  { %20340 = vst [vmem:[#allocation85_spill] sm:$0xff] %v16180_v3 }
 0x68b   :  { %v3231_v25 = vpop.xlane.xlu1 %3230 }
 0x68c   :  { %v3232_v35 = vsub.f32 %v16058_v60, %v3231_v25  ;;  %v16182_v25 = vpop.f32.mrf.mxu1 }
 0x68d   :  { %20341 = vst [vmem:[#allocation86_spill] sm:$0xff] %v16182_v25  ;;  %v16384_v25 = vld [vmem:[%s20353_s4 + $0x1e8] sm:$0xff] }
 0x68e   :  { %v3233_v4 = vmul.f32 1.442695, %v3232_v35  ;;  %v3483_v35 = vpop.f32.mrf.mxu0  ;;  %20354 = vst [vmem:[#allocation97_spill] sm:$0xff] %v16384_v25 }
 0x690   :  { %14645 = vpow2.f32 %v3233_v4  ;;  %v3580_v4 = vpop.f32.mrf.mxu1  ;;  %v3485_v20 = vpop.f32.mrf.mxu0 }
 0x691   :  { %v3581_v60 = vadd.f32 %v3580_v4, %v3483_v35 }
 0x692   :  { %v3582_v6 = vpop.f32.mrf.mxu1  ;;  %v3486_v33 = vpop.f32.mrf.mxu0 }
 0x693   :  { %13171 = vmatprep.mubr.msk.f32.mxu0 %vm2113_vm4, %v3581_v60 }
 0x694   :  { %v3583_v9 = vpop.f32.mrf.mxu1  ;;  %v3488_v10 = vpop.f32.mrf.mxu0 }
 0x695   :  { %v16185_v39 = vadd.f32 %v3583_v9, %v3486_v33 }
 0x696   :  { %v3585_v40 = vpop.f32.mrf.mxu1  ;;  %v3491_v14 = vpop.f32.mrf.mxu0 }
 0x698   :  { %v3588_v42 = vpop.f32.mrf.mxu1  ;;  %v3493_v11 = vpop.f32.mrf.mxu0 }
 0x69a   :  { %v3590_v62 = vpop.f32.mrf.mxu1  ;;  %v3494_v59 = vpop.f32.mrf.mxu0 }
 0x69c   :  { %v3591_v8 = vpop.f32.mrf.mxu1  ;;  %v3496_v20 = vpop.f32.mrf.mxu0 }
 0x69d   :  { %v16174_v15 = vpop.eup %14645  ;;  %v16189_v18 = vadd.f32 %v3591_v8, %v3494_v59 }
 0x69e   :  { %v3235_v2 = vsel %vm2113_vm4, %v16174_v15, 0.0  ;;  %v3593_v6 = vpop.f32.mrf.mxu1  ;;  %v3499_v35 = vpop.f32.mrf.mxu0 }
 0x69f   :  { %3236 = vadd.xlane.f32.xlu1 %v3235_v2  ;;  %v16187_v2 = vadd.f32 %v3588_v42, %v3491_v14 }
 0x6a0   :  { %v3596_v4 = vpop.f32.mrf.mxu1  ;;  %v3501_v33 = vpop.f32.mrf.mxu0 }
 0x6a1   :  { %v16191_v60 = vadd.f32 %v3596_v4, %v3499_v35 }
 0x6a2   :  { %v3598_v9 = vpop.f32.mrf.mxu1  ;;  %v3502_v10 = vpop.f32.mrf.mxu0 }
 0x6a4   :  { %v3599_v40 = vpop.f32.mrf.mxu1  ;;  %v3504_v14 = vpop.f32.mrf.mxu0 }
 0x6a5   :  { %v16193_v16 = vadd.f32 %v3599_v40, %v3502_v10 }
 0x6a6   :  { %v3601_v42 = vpop.f32.mrf.mxu1  ;;  %v3507_v11 = vpop.f32.mrf.mxu0 }
 0x6a8   :  { %v3604_v62 = vpop.f32.mrf.mxu1  ;;  %v3509_v23 = vpop.f32.mrf.mxu0 }
 0x6a9   :  { %v3605_v27 = vadd.f32 %v3604_v62, %v3507_v11 }
 0x6aa   :  { %v3606_v8 = vpop.f32.mrf.mxu1  ;;  %v3510_v59 = vpop.f32.mrf.mxu0 }
 0x6ac   :  { %v3607_v20 = vpop.f32.mrf.mxu1  ;;  %v3512_v30 = vpop.f32.mrf.mxu0 }
 0x6ad   :  { %v3608_v6 = vadd.f32 %v3607_v20, %v3510_v59 }
 0x6ae   :  { %v3609_v38 = vpop.f32.mrf.mxu1  ;;  %v3515_v35 = vpop.f32.mrf.mxu0 }
 0x6b0   :  { %v3612_v4 = vpop.f32.mrf.mxu1  ;;  %v3517_v9 = vpop.f32.mrf.mxu0 }
 0x6b1   :  { %v3613_v33 = vadd.f32 %v3612_v4, %v3515_v35 }
 0x6b2   :  { %v3614_v29 = vpop.f32.mrf.mxu1  ;;  %v3518_v55 = vpop.f32.mrf.mxu0 }
 0x6b4   :  { %v3615_v10 = vpop.f32.mrf.mxu1  ;;  %v3520_v14 = vpop.f32.mrf.mxu0 }
 0x6b5   :  { %v3616_v40 = vadd.f32 %v3615_v10, %v3518_v55 }
 0x6b6   :  { %v3617_v42 = vpop.f32.mrf.mxu1 }
 0x6c0   :  { %v3523_v32 = vpop.f32.mrf.mxu0 }
 0x6c2   :  { %v3620_v56 = vpop.f32.mrf.mxu1  ;;  %v3525_v23 = vpop.f32.mrf.mxu0 }
 0x6c3   :  { %v3621_v11 = vadd.f32 %v3620_v56, %v3523_v32 }
 0x6c4   :  { %v3622_v62 = vpop.f32.mrf.mxu1  ;;  %v3526_v8 = vpop.f32.mrf.mxu0 }
 0x6c6   :  { %v3623_v31 = vpop.f32.mrf.mxu1  ;;  %v3528_v30 = vpop.f32.mrf.mxu0 }
 0x6c7   :  { %v3624_v59 = vadd.f32 %v3623_v31, %v3526_v8 }
 0x6c8   :  { %v3625_v38 = vpop.f32.mrf.mxu1  ;;  %v3531_v20 = vpop.f32.mrf.mxu0 }
 0x6ca   :  { %v3628_v43 = vpop.f32.mrf.mxu1  ;;  %v3533_v4 = vpop.f32.mrf.mxu0 }
 0x6cb   :  { %v3629_v35 = vadd.f32 %v3628_v43, %v3531_v20 }
 0x6cc   :  { %v3630_v29 = vpop.f32.mrf.mxu1  ;;  %v3534_v9 = vpop.f32.mrf.mxu0 }
 0x6ce   :  { %v3631_v24 = vpop.f32.mrf.mxu1  ;;  %v3536_v10 = vpop.f32.mrf.mxu0 }
 0x6cf   :  { %v3632_v55 = vadd.f32 %v3631_v24, %v3534_v9 }
 0x6d0   :  { %v3633_v14 = vpop.f32.mrf.mxu1  ;;  %v3539_v42 = vpop.f32.mrf.mxu0 }
 0x6d2   :  { %v3636_v50 = vpop.f32.mrf.mxu1  ;;  %v3541_v56 = vpop.f32.mrf.mxu0 }
 0x6d3   :  { %v3637_v32 = vadd.f32 %v3636_v50, %v3539_v42 }
 0x6d4   :  { %v3638_v23 = vpop.f32.mrf.mxu1  ;;  %v3542_v62 = vpop.f32.mrf.mxu0 }
 0x6d6   :  { %v3639_v21 = vpop.f32.mrf.mxu1  ;;  %v3544_v8 = vpop.f32.mrf.mxu0 }
 0x6d7   :  { %v3640_v31 = vadd.f32 %v3639_v21, %v3542_v62  ;;  %v20342_v21 = vmov 0.0  }
 0x6d8   :  { %v3641_v30 = vpop.f32.mrf.mxu1 }
 0x728   :  { %v3237_v38 = vpop.xlane.xlu1 %3236 }
 0x729   :  { %14647 = vrcp.f32 %v3237_v38 }
 0x736   :  { %v14648_v43 = vpop.eup %14647 }
 0x737   :  { %v3239_v20 = vmul.f32 %v14648_v43, %v16174_v15 }
 0x739   :  { %13169 = vmatprep.subr.msk.mxu0 %vm2113_vm4, %v3239_v20 }
 0x73a   :  { %13170 = vmatpush3.xpose.msk.msra.mxu0 %vm2113_vm4, %v3239_v20 }
 0x73b   :  { %4078 = vmatprep.subr.mxu0 %v15826_v41 }
 0x73d   :  { %13172 = vmatmul.mubr.msk.f32.vlgmr.msra.gmra.mxu0 %vm2113_vm4, %v16185_v39 }
 0x73e   :  { %13174 = vmatprep.mubr.msk.f32.mxu0 %vm2113_vm4, %v16187_v2  ;;  %4079 = vmatpush1.msra.mxu0 %v15836_v45 }
 0x741   :  { %13175 = vmatmul.mubr.msk.f32.gmra.mxu0 %vm2113_vm4, %v16189_v18 }
 0x742   :  { %13177 = vmatprep.mubr.msk.f32.mxu0 %vm2113_vm4, %v16191_v60 }
 0x745   :  { %13178 = vmatmul.mubr.msk.f32.gmra.mxu0 %vm2113_vm4, %v16193_v16 }
 0x746   :  { %13180 = vmatprep.mubr.msk.f32.mxu0 %vm2113_vm4, %v3605_v27 }
 0x749   :  { %13181 = vmatmul.mubr.msk.f32.gmra.mxu0 %vm2113_vm4, %v3608_v6 }
 0x74a   :  { %13183 = vmatprep.mubr.msk.f32.mxu0 %vm2113_vm4, %v3613_v33 }
 0x74d   :  { %13184 = vmatmul.mubr.msk.f32.gmra.mxu0 %vm2113_vm4, %v3616_v40 }
 0x74e   :  { %13186 = vmatprep.mubr.msk.f32.mxu0 %vm2113_vm4, %v3621_v11 }
 0x751   :  { %13187 = vmatmul.mubr.msk.f32.gmra.mxu0 %vm2113_vm4, %v3624_v59 }
 0x752   :  { %13189 = vmatprep.mubr.msk.f32.mxu0 %vm2113_vm4, %v3629_v35 }
 0x755   :  { %13190 = vmatmul.mubr.msk.f32.gmra.mxu0 %vm2113_vm4, %v3632_v55 }
 0x756   :  { %13192 = vmatprep.mubr.msk.f32.mxu0 %vm2113_vm4, %v3637_v32 }
 0x759   :  { %13193 = vmatmul.mubr.msk.f32.gmra.mxu0 %vm2113_vm4, %v3640_v31 }
 0x75a   :  { %4112 = vmatprep.mubr.f32.mxu0 %v20342_v21 }
 0x7fd   :  { %v13173_v27 = vpop.f32.mrf.mxu0 }
 0x7ff   :  { %v3760_v24 = vpop.f32.mrf.mxu0 }
 0x800   :  { %12180 = vmatmul.mubr.msk.f32.vlgmr.msra.gmra.mxu1 %vm2113_vm4, %v3760_v24  ;;  %12196 = vmatmul.mubr.msk.f32.vlgmr.msra.gmra.mxu0 %vm2113_vm4, %v3760_v24 }
 0x801   :  { %3957 = vmatprep.mubr.f32.mxu1 %v20342_v21  ;;  %4118 = vmatprep.mubr.f32.mxu0 %v20342_v21  ;;  %v13176_v18 = vpop.f32.mrf.mxu0 }
 0x803   :  { %v3770_v41 = vpop.f32.mrf.mxu0 }
 0x804   :  { %12181 = vmatmul.mubr.msk.f32.gmra.mxu1 %vm2113_vm4, %v13173_v27  ;;  %12197 = vmatmul.mubr.msk.f32.gmra.mxu0 %vm2113_vm4, %v13173_v27 }
 0x805   :  { %3963 = vmatprep.mubr.f32.mxu1 %v20342_v21  ;;  %4124 = vmatprep.mubr.f32.mxu0 %v20342_v21  ;;  %v13179_v45 = vpop.f32.mrf.mxu0 }
 0x807   :  { %v3780_v15 = vpop.f32.mrf.mxu0 }
 0x808   :  { %12182 = vmatmul.mubr.msk.f32.gmra.mxu1 %vm2113_vm4, %v3770_v41  ;;  %12198 = vmatmul.mubr.msk.f32.gmra.mxu0 %vm2113_vm4, %v3770_v41 }
 0x809   :  { %3969 = vmatprep.mubr.f32.mxu1 %v20342_v21  ;;  %4130 = vmatprep.mubr.f32.mxu0 %v20342_v21  ;;  %v13182_v39 = vpop.f32.mrf.mxu0 }
 0x80b   :  { %v3790_v16 = vpop.f32.mrf.mxu0 }
 0x80c   :  { %12183 = vmatmul.mubr.msk.f32.gmra.mxu1 %vm2113_vm4, %v13176_v18  ;;  %12199 = vmatmul.mubr.msk.f32.gmra.mxu0 %vm2113_vm4, %v13176_v18 }
 0x80d   :  { %3975 = vmatprep.mubr.f32.mxu1 %v20342_v21  ;;  %4136 = vmatprep.mubr.f32.mxu0 %v20342_v21  ;;  %v13185_v50 = vpop.f32.mrf.mxu0 }
 0x80f   :  { %v3800_v2 = vpop.f32.mrf.mxu0 }
 0x810   :  { %12184 = vmatmul.mubr.msk.f32.gmra.mxu1 %vm2113_vm4, %v3780_v15  ;;  %12200 = vmatmul.mubr.msk.f32.gmra.mxu0 %vm2113_vm4, %v3780_v15 }
 0x811   :  { %3981 = vmatprep.mubr.f32.mxu1 %v20342_v21  ;;  %4142 = vmatprep.mubr.f32.mxu0 %v20342_v21  ;;  %v13188_v60 = vpop.f32.mrf.mxu0 }
 0x813   :  { %v3810_v6 = vpop.f32.mrf.mxu0 }
 0x814   :  { %12185 = vmatmul.mubr.msk.f32.gmra.mxu1 %vm2113_vm4, %v13179_v45  ;;  %12201 = vmatmul.mubr.msk.f32.gmra.mxu0 %vm2113_vm4, %v13179_v45 }
 0x815   :  { %3987 = vmatprep.mubr.f32.mxu1 %v20342_v21  ;;  %4148 = vmatprep.mubr.f32.mxu0 %v20342_v21  ;;  %v13191_v33 = vpop.f32.mrf.mxu0 }
 0x817   :  { %v3820_v40 = vpop.f32.mrf.mxu0 }
 0x818   :  { %12186 = vmatmul.mubr.msk.f32.gmra.mxu1 %vm2113_vm4, %v3790_v16  ;;  %12202 = vmatmul.mubr.msk.f32.gmra.mxu0 %vm2113_vm4, %v3790_v16 }
 0x819   :  { %3993 = vmatprep.mubr.f32.mxu1 %v20342_v21  ;;  %4154 = vmatprep.mubr.f32.mxu0 %v20342_v21  ;;  %v13194_v11 = vpop.f32.mrf.mxu0 }
 0x81b   :  { %v3830_v59 = vpop.f32.mrf.mxu0 }
 0x81c   :  { %12187 = vmatmul.mubr.msk.f32.gmra.mxu1 %vm2113_vm4, %v13182_v39  ;;  %12203 = vmatmul.mubr.msk.f32.gmra.mxu0 %vm2113_vm4, %v13182_v39 }
 0x81d   :  { %3999 = vmatprep.mubr.f32.mxu1 %v20342_v21  ;;  %4160 = vmatprep.mubr.f32.mxu0 %v20342_v21 }
 0x820   :  { %12188 = vmatmul.mubr.msk.f32.gmra.mxu1 %vm2113_vm4, %v3800_v2  ;;  %12204 = vmatmul.mubr.msk.f32.gmra.mxu0 %vm2113_vm4, %v3800_v2 }
 0x821   :  { %4005 = vmatprep.mubr.f32.mxu1 %v20342_v21  ;;  %4166 = vmatprep.mubr.f32.mxu0 %v20342_v21 }
 0x824   :  { %12189 = vmatmul.mubr.msk.f32.gmra.mxu1 %vm2113_vm4, %v13185_v50  ;;  %12205 = vmatmul.mubr.msk.f32.gmra.mxu0 %vm2113_vm4, %v13185_v50 }
 0x825   :  { %4011 = vmatprep.mubr.f32.mxu1 %v20342_v21  ;;  %4172 = vmatprep.mubr.f32.mxu0 %v20342_v21 }
 0x828   :  { %12190 = vmatmul.mubr.msk.f32.gmra.mxu1 %vm2113_vm4, %v3810_v6  ;;  %12206 = vmatmul.mubr.msk.f32.gmra.mxu0 %vm2113_vm4, %v3810_v6 }
 0x829   :  { %4017 = vmatprep.mubr.f32.mxu1 %v20342_v21  ;;  %4178 = vmatprep.mubr.f32.mxu0 %v20342_v21 }
 0x82c   :  { %12191 = vmatmul.mubr.msk.f32.gmra.mxu1 %vm2113_vm4, %v13188_v60  ;;  %12207 = vmatmul.mubr.msk.f32.gmra.mxu0 %vm2113_vm4, %v13188_v60 }
 0x82d   :  { %4023 = vmatprep.mubr.f32.mxu1 %v20342_v21  ;;  %4184 = vmatprep.mubr.f32.mxu0 %v20342_v21 }
 0x830   :  { %12192 = vmatmul.mubr.msk.f32.gmra.mxu1 %vm2113_vm4, %v3820_v40  ;;  %12208 = vmatmul.mubr.msk.f32.gmra.mxu0 %vm2113_vm4, %v3820_v40 }
 0x831   :  { %4029 = vmatprep.mubr.f32.mxu1 %v20342_v21  ;;  %4190 = vmatprep.mubr.f32.mxu0 %v20342_v21 }
 0x834   :  { %12193 = vmatmul.mubr.msk.f32.gmra.mxu1 %vm2113_vm4, %v13191_v33  ;;  %12209 = vmatmul.mubr.msk.f32.gmra.mxu0 %vm2113_vm4, %v13191_v33 }
 0x835   :  { %4035 = vmatprep.mubr.f32.mxu1 %v20342_v21  ;;  %4196 = vmatprep.mubr.f32.mxu0 %v20342_v21 }
 0x838   :  { %12194 = vmatmul.mubr.msk.f32.gmra.mxu1 %vm2113_vm4, %v3830_v59  ;;  %12210 = vmatmul.mubr.msk.f32.gmra.mxu0 %vm2113_vm4, %v3830_v59 }
 0x839   :  { %4041 = vmatprep.mubr.f32.mxu1 %v20342_v21  ;;  %4202 = vmatprep.mubr.f32.mxu0 %v20342_v21 }
 0x83c   :  { %12195 = vmatmul.mubr.msk.f32.gmra.mxu1 %vm2113_vm4, %v13194_v11  ;;  %12211 = vmatmul.mubr.msk.f32.gmra.mxu0 %vm2113_vm4, %v13194_v11 }
 0x83d   :  { %4339 = vmatprep.mubr.f32.mxu1 %v20342_v21  ;;  %4410 = vmatprep.mubr.f32.mxu0 %v20342_v21 }
 0x8c0   :  { %v16285_v35 = vpop.f32.mrf.mxu1  ;;  %v16287_v4 = vpop.f32.mrf.mxu0 }
 0x8c1   :  { %20343 = vst [vmem:[#allocation87_spill] sm:$0xff] %v16285_v35  ;;  %20344 = vst [vmem:[#allocation88_spill] sm:$0xff] %v16287_v4 }
 0x8c2   :  { %v16289_v29 = vpop.f32.mrf.mxu1  ;;  %v16291_v9 = vpop.f32.mrf.mxu0 }
 0x8c3   :  { %20345 = vst [vmem:[#allocation89_spill] sm:$0xff] %v16289_v29  ;;  %20346 = vst [vmem:[#allocation90_spill] sm:$0xff] %v16291_v9  ;;  %v16394_v9 = vld [vmem:[%s20353_s4 + $0x1e0] sm:$0xff]  ;;  %v16399_v29 = vld [vmem:[%s20353_s4 + $0x1f0] sm:$0xff] }
 0x8c4   :  { %v16293_v55 = vpop.f32.mrf.mxu1  ;;  %v16295_v10 = vpop.f32.mrf.mxu0  ;;  %20356 = vst [vmem:[#allocation99_spill] sm:$0xff] %v16394_v9  ;;  %20357 = vst [vmem:[#allocation100_spill] sm:$0xff] %v16399_v29 }
 0x8c5   :  { %20347 = vst [vmem:[#allocation91_spill] sm:$0xff] %v16293_v55  ;;  %20348 = vst [vmem:[#allocation92_spill] sm:$0xff] %v16295_v10 }
 0x8c6   :  { %v16297_v14 = vpop.f32.mrf.mxu1  ;;  %v16299_v42 = vpop.f32.mrf.mxu0 }
 0x8c7   :  { %20349 = vst [vmem:[#allocation93_spill] sm:$0xff] %v16297_v14  ;;  %20350 = vst [vmem:[#allocation94_spill] sm:$0xff] %v16299_v42  ;;  %v16406_v42 = vld [vmem:[%s20353_s4 + $0x1c8] sm:$0xff]  ;;  %v16411_v14 = vld [vmem:[%s20353_s4 + $0x1d8] sm:$0xff] }
 0x8c8   :  { %v16301_v32 = vpop.f32.mrf.mxu1  ;;  %v16303_v56 = vpop.f32.mrf.mxu0 }
 0x8c9   :  { %20351 = vst [vmem:[#allocation95_spill] sm:$0xff] %v16301_v32  ;;  %20352 = vst [vmem:[#allocation96_spill] sm:$0xff] %v16303_v56 }
 0x8ca   :  { %v16305_v23 = vpop.f32.mrf.mxu1  ;;  %v16307_v62 = vpop.f32.mrf.mxu0 }
 0x8cc   :  { %v16309_v31 = vpop.f32.mrf.mxu1  ;;  %v16311_v8 = vpop.f32.mrf.mxu0 }
 0x8ce   :  { %v16313_v30 = vpop.f32.mrf.mxu1  ;;  %v16315_v38 = vpop.f32.mrf.mxu0 }
 0x8d0   :  { %v16317_v43 = vpop.f32.mrf.mxu1  ;;  %v16319_v20 = vpop.f32.mrf.mxu0 }
 0x8d2   :  { %v16321_v27 = vpop.f32.mrf.mxu1  ;;  %v16323_v24 = vpop.f32.mrf.mxu0 }
 0x8d4   :  { %v16325_v18 = vpop.f32.mrf.mxu1  ;;  %v16327_v41 = vpop.f32.mrf.mxu0 }
 0x8d6   :  { %v16329_v45 = vpop.f32.mrf.mxu1  ;;  %v16331_v15 = vpop.f32.mrf.mxu0 }
 0x8d8   :  { %v16333_v39 = vpop.f32.mrf.mxu1  ;;  %v16335_v16 = vpop.f32.mrf.mxu0 }
 0x8da   :  { %v16337_v50 = vpop.f32.mrf.mxu1  ;;  %v16339_v2 = vpop.f32.mrf.mxu0 }
 0x8dc   :  { %v16341_v60 = vpop.f32.mrf.mxu1  ;;  %v16343_v6 = vpop.f32.mrf.mxu0 }
 0x8de   :  { %v16345_v33 = vpop.f32.mrf.mxu1  ;;  %v16347_v40 = vpop.f32.mrf.mxu0 }
 0x8e0   :  { %v16349_v11 = vpop.f32.mrf.mxu1  ;;  %v16351_v59 = vpop.f32.mrf.mxu0 }
 0x8e2   :  { %v16353_v21 = vpop.f32.mrf.mxu1  ;;  %v16355_v57 = vpop.f32.mrf.mxu0 }
 0x8e4   :  { %v16357_v19 = vpop.f32.mrf.mxu1  ;;  %v16359_v63 = vpop.f32.mrf.mxu0 }
 0x8e6   :  { %v16361_v22 = vpop.f32.mrf.mxu1  ;;  %v16363_v7 = vpop.f32.mrf.mxu0 }
 0x8e8   :  { %v16365_v49 = vpop.f32.mrf.mxu1  ;;  %v16367_v13 = vpop.f32.mrf.mxu0 }
 0x8ea   :  { %v16369_v0 = vpop.f32.mrf.mxu1  ;;  %v16371_v34 = vpop.f32.mrf.mxu0 }
 0x8ec   :  { %v16373_v5 = vpop.f32.mrf.mxu1  ;;  %v16375_v36 = vpop.f32.mrf.mxu0 }
 0x8ee   :  { %v16377_v26 = vpop.f32.mrf.mxu1  ;;  %v16379_v44 = vpop.f32.mrf.mxu0 }
 0x8f0   :  { %v4025_v47 = vpop.f32.mrf.mxu1  ;;  %v4186_v46 = vpop.f32.mrf.mxu0 }
 0x8f2   :  { %v4027_v28 = vpop.f32.mrf.mxu1  ;;  %v4188_v48 = vpop.f32.mrf.mxu0 }
 0x8f4   :  { %v4031_v61 = vpop.f32.mrf.mxu1  ;;  %v4192_v51 = vpop.f32.mrf.mxu0 }
 0x8f6   :  { %v4033_v12 = vpop.f32.mrf.mxu1  ;;  %v4194_v52 = vpop.f32.mrf.mxu0 }
 0x8f8   :  { %v4037_v1 = vpop.f32.mrf.mxu1  ;;  %v4198_v53 = vpop.f32.mrf.mxu0 }
 0x8fa   :  { %v4039_v17 = vpop.f32.mrf.mxu1  ;;  %v4200_v54 = vpop.f32.mrf.mxu0 }
 0x8fc   :  { %v4043_v3 = vpop.f32.mrf.mxu1  ;;  %v4204_v37 = vpop.f32.mrf.mxu0 }
 0x8fd   :  { %v4269_v56 = vmul.f32 %v4043_v3, %v16394_v9  ;;  %v4271_v32 = vmul.f32 %v4204_v37, %v16399_v29  ;;  %v16430_v37 = vld [vmem:[%s20353_s4 + $0x1a8] sm:$0xff]  ;;  %v16435_v3 = vld [vmem:[%s20353_s4 + $0x1b8] sm:$0xff] }
 0x8fe   :  { %v4045_v4 = vpop.f32.mrf.mxu1  ;;  %v4206_v35 = vpop.f32.mrf.mxu0 }
 0x8ff   :  { %v4270_v10 = vmul.f32 %v4045_v4, %v16384_v25  ;;  %v4272_v55 = vmul.f32 %v4206_v35, %v16389_v58  ;;  %v16418_v4 = vld [vmem:[%s20353_s4 + $0x1c0] sm:$0xff]  ;;  %v16423_v35 = vld [vmem:[%s20353_s4 + $0x1d0] sm:$0xff]  ;;  %v4266_v58 = vmul.f32 %v4039_v17, %v16406_v42  ;;  %v4268_v25 = vmul.f32 %v4200_v54, %v16411_v14 }
 0x900   :  { %v4265_v29 = vmul.f32 %v4037_v1, %v16418_v4  ;;  %v4267_v9 = vmul.f32 %v4198_v53, %v16423_v35  ;;  %v16442_v17 = vld [vmem:[%s20353_s4 + $0x1a0] sm:$0xff]  ;;  %v16447_v54 = vld [vmem:[%s20353_s4 + $0x1b0] sm:$0xff]  ;;  %v16454_v53 = vld [vmem:[%s20353_s4 + $0x188] sm:$0xff] }
 0x901   :  { %4275 = vmatprep.subr.mxu1 %v4270_v10  ;;  %4346 = vmatprep.subr.mxu0 %v4272_v55  ;;  %v4262_v55 = vmul.f32 %v4033_v12, %v16430_v37  ;;  %v4264_v10 = vmul.f32 %v4194_v52, %v16435_v3  ;;  %v16459_v1 = vld [vmem:[%s20353_s4 + $0x198] sm:$0xff]  ;;  %v16466_v12 = vld [vmem:[%s20353_s4 + $0x180] sm:$0xff]  ;;  %v16471_v52 = vld [vmem:[%s20353_s4 + $0x190] sm:$0xff] }
 0x902   :  { %4276 = vmatpush1.msra.mxu1 %v4269_v56  ;;  %4347 = vmatpush1.msra.mxu0 %v4271_v32  ;;  %v4261_v32 = vmul.f32 %v4031_v61, %v16442_v17  ;;  %v4263_v56 = vmul.f32 %v4192_v51, %v16447_v54  ;;  %v16478_v51 = vld [vmem:[%s20353_s4 + $0x168] sm:$0xff]  ;;  %v16483_v61 = vld [vmem:[%s20353_s4 + $0x178] sm:$0xff] }
 0x903   :  { %4277 = vmatprep.subr.mxu1 %v4266_v58  ;;  %4348 = vmatprep.subr.mxu0 %v4268_v25  ;;  %v4258_v58 = vmul.f32 %v4027_v28, %v16454_v53  ;;  %v4260_v25 = vmul.f32 %v4188_v48, %v16459_v1  ;;  %v16490_v28 = vld [vmem:[%s20353_s4 + $0x160] sm:$0xff]  ;;  %v16495_v48 = vld [vmem:[%s20353_s4 + $0x170] sm:$0xff] }
 0x904   :  { %4278 = vmatpush1.msra.mxu1 %v4265_v29  ;;  %4349 = vmatpush1.msra.mxu0 %v4267_v9  ;;  %v4257_v29 = vmul.f32 %v4025_v47, %v16466_v12  ;;  %v4259_v9 = vmul.f32 %v4186_v46, %v16471_v52  ;;  %v4256_v47 = vmul.f32 %v16379_v44, %v16483_v61  ;;  %v16504_v46 = vld [vmem:[%s20353_s4 + $0x148] sm:$0xff]  ;;  %v16518_v44 = vld [vmem:[%s20353_s4 + $0x140] sm:$0xff] }
 0x905   :  { %4279 = vmatprep.subr.mxu1 %v4262_v55  ;;  %4350 = vmatprep.subr.mxu0 %v4264_v10  ;;  %v4254_v55 = vmul.f32 %v16377_v26, %v16478_v51  ;;  %v16509_v10 = vld [vmem:[%s20353_s4 + $0x158] sm:$0xff]  ;;  %v4255_v26 = vmul.f32 %v16375_v36, %v16495_v48  ;;  %v16532_v36 = vld [vmem:[%s20353_s4 + $0x128] sm:$0xff] }
 0x906   :  { %4280 = vmatpush1.msra.mxu1 %v4261_v32  ;;  %4351 = vmatpush1.msra.mxu0 %v4263_v56  ;;  %v4253_v32 = vmul.f32 %v16373_v5, %v16490_v28  ;;  %v16523_v56 = vld [vmem:[%s20353_s4 + $0x150] sm:$0xff]  ;;  %v4252_v5 = vmul.f32 %v16371_v34, %v16509_v10  ;;  %v16546_v34 = vld [vmem:[%s20353_s4 + $0x120] sm:$0xff] }
 0x907   :  { %4281 = vmatprep.subr.mxu1 %v4258_v58  ;;  %4352 = vmatprep.subr.mxu0 %v4260_v25  ;;  %v4250_v58 = vmul.f32 %v16369_v0, %v16504_v46  ;;  %v16537_v25 = vld [vmem:[%s20353_s4 + $0x138] sm:$0xff]  ;;  %v4251_v0 = vmul.f32 %v16367_v13, %v16523_v56  ;;  %v16560_v13 = vld [vmem:[%s20353_s4 + $0x108] sm:$0xff] }
 0x908   :  { %4282 = vmatpush1.msra.mxu1 %v4257_v29  ;;  %4353 = vmatpush1.msra.mxu0 %v4259_v9  ;;  %v4249_v29 = vmul.f32 %v16365_v49, %v16518_v44  ;;  %v16551_v9 = vld [vmem:[%s20353_s4 + $0x130] sm:$0xff]  ;;  %v4248_v49 = vmul.f32 %v16363_v7, %v16537_v25  ;;  %v16574_v7 = vld [vmem:[%s20353_s4 + $0x100] sm:$0xff] }
 0x909   :  { %4283 = vmatprep.subr.mxu1 %v4254_v55  ;;  %4354 = vmatprep.subr.mxu0 %v4256_v47  ;;  %v4246_v55 = vmul.f32 %v16361_v22, %v16532_v36  ;;  %v16565_v47 = vld [vmem:[%s20353_s4 + $0x118] sm:$0xff]  ;;  %v4247_v22 = vmul.f32 %v16359_v63, %v16551_v9  ;;  %v16588_v63 = vld [vmem:[%s20353_s4 + $0xe8] sm:$0xff] }
 0x90a   :  { %4284 = vmatpush1.msra.mxu1 %v4253_v32  ;;  %4355 = vmatpush1.msra.mxu0 %v4255_v26  ;;  %v4245_v32 = vmul.f32 %v16357_v19, %v16546_v34  ;;  %v16579_v26 = vld [vmem:[%s20353_s4 + $0x110] sm:$0xff]  ;;  %v4244_v19 = vmul.f32 %v16355_v57, %v16565_v47  ;;  %v16602_v57 = vld [vmem:[%s20353_s4 + $0xe0] sm:$0xff] }
 0x90b   :  { %4285 = vmatprep.subr.mxu1 %v4250_v58  ;;  %4356 = vmatprep.subr.mxu0 %v4252_v5  ;;  %v4242_v58 = vmul.f32 %v16353_v21, %v16560_v13  ;;  %v16593_v5 = vld [vmem:[%s20353_s4 + $0xf8] sm:$0xff]  ;;  %v4243_v21 = vmul.f32 %v16351_v59, %v16579_v26  ;;  %v16616_v59 = vld [vmem:[%s20353_s4 + $0xc8] sm:$0xff] }
 0x90c   :  { %4286 = vmatpush1.msra.mxu1 %v4249_v29  ;;  %4357 = vmatpush1.msra.mxu0 %v4251_v0  ;;  %v4241_v29 = vmul.f32 %v16349_v11, %v16574_v7  ;;  %v16607_v0 = vld [vmem:[%s20353_s4 + $0xf0] sm:$0xff]  ;;  %v4240_v11 = vmul.f32 %v16347_v40, %v16593_v5  ;;  %v16630_v40 = vld [vmem:[%s20353_s4 + $0xc0] sm:$0xff] }
 0x90d   :  { %4287 = vmatprep.subr.mxu1 %v4246_v55  ;;  %4358 = vmatprep.subr.mxu0 %v4248_v49  ;;  %v4238_v55 = vmul.f32 %v16345_v33, %v16588_v63  ;;  %v16621_v49 = vld [vmem:[%s20353_s4 + $0xd8] sm:$0xff]  ;;  %v4239_v33 = vmul.f32 %v16343_v6, %v16607_v0  ;;  %v16644_v6 = vld [vmem:[%s20353_s4 + $0xa8] sm:$0xff] }
 0x90e   :  { %4288 = vmatpush1.msra.mxu1 %v4245_v32  ;;  %4359 = vmatpush1.msra.mxu0 %v4247_v22  ;;  %v4237_v32 = vmul.f32 %v16341_v60, %v16602_v57  ;;  %v16635_v22 = vld [vmem:[%s20353_s4 + $0xd0] sm:$0xff]  ;;  %v4236_v60 = vmul.f32 %v16339_v2, %v16621_v49  ;;  %v16658_v2 = vld [vmem:[%s20353_s4 + $0xa0] sm:$0xff] }
 0x90f   :  { %4289 = vmatprep.subr.mxu1 %v4242_v58  ;;  %4360 = vmatprep.subr.mxu0 %v4244_v19  ;;  %v4234_v58 = vmul.f32 %v16337_v50, %v16616_v59  ;;  %v16649_v19 = vld [vmem:[%s20353_s4 + $0xb8] sm:$0xff]  ;;  %v4235_v50 = vmul.f32 %v16335_v16, %v16635_v22  ;;  %v16672_v16 = vld [vmem:[%s20353_s4 + $0x88] sm:$0xff] }
 0x910   :  { %4290 = vmatpush1.msra.mxu1 %v4241_v29  ;;  %4361 = vmatpush1.msra.mxu0 %v4243_v21  ;;  %v4233_v29 = vmul.f32 %v16333_v39, %v16630_v40  ;;  %v16663_v21 = vld [vmem:[%s20353_s4 + $0xb0] sm:$0xff]  ;;  %v4232_v39 = vmul.f32 %v16331_v15, %v16649_v19  ;;  %v16686_v15 = vld [vmem:[%s20353_s4 + $0x80] sm:$0xff] }
 0x911   :  { %4291 = vmatprep.subr.mxu1 %v4238_v55  ;;  %4362 = vmatprep.subr.mxu0 %v4240_v11  ;;  %v4230_v55 = vmul.f32 %v16329_v45, %v16644_v6  ;;  %v16677_v11 = vld [vmem:[%s20353_s4 + $0x98] sm:$0xff]  ;;  %v4231_v45 = vmul.f32 %v16327_v41, %v16663_v21  ;;  %v16700_v41 = vld [vmem:[%s20353_s4 + $0x68] sm:$0xff] }
 0x912   :  { %4292 = vmatpush1.msra.mxu1 %v4237_v32  ;;  %4363 = vmatpush1.msra.mxu0 %v4239_v33  ;;  %v4229_v32 = vmul.f32 %v16325_v18, %v16658_v2  ;;  %v16691_v33 = vld [vmem:[%s20353_s4 + $0x90] sm:$0xff]  ;;  %v4228_v18 = vmul.f32 %v16323_v24, %v16677_v11  ;;  %v16714_v24 = vld [vmem:[%s20353_s4 + $0x60] sm:$0xff] }
 0x913   :  { %4293 = vmatprep.subr.mxu1 %v4234_v58  ;;  %4364 = vmatprep.subr.mxu0 %v4236_v60  ;;  %v4226_v58 = vmul.f32 %v16321_v27, %v16672_v16  ;;  %v16705_v60 = vld [vmem:[%s20353_s4 + $0x78] sm:$0xff]  ;;  %v4227_v27 = vmul.f32 %v16319_v20, %v16691_v33  ;;  %20359 = vst [vmem:[#allocation102_spill] sm:$0xff] %v16714_v24  ;;  %v16728_v20 = vld [vmem:[%s20353_s4 + $0x48] sm:$0xff] }
 0x914   :  { %4294 = vmatpush1.msra.mxu1 %v4233_v29  ;;  %4365 = vmatpush1.msra.mxu0 %v4235_v50  ;;  %20358 = vst [vmem:[#allocation101_spill] sm:$0xff] %v16705_v60  ;;  %v4225_v29 = vmul.f32 %v16317_v43, %v16686_v15  ;;  %v16719_v50 = vld [vmem:[%s20353_s4 + $0x70] sm:$0xff]  ;;  %v4224_v43 = vmul.f32 %v16315_v38, %v16705_v60  ;;  %20361 = vst [vmem:[#allocation104_spill] sm:$0xff] %v16728_v20  ;;  %v16742_v38 = vld [vmem:[%s20353_s4 + $0x40] sm:$0xff] }
 0x915   :  { %4295 = vmatprep.subr.mxu1 %v4230_v55  ;;  %4366 = vmatprep.subr.mxu0 %v4232_v39  ;;  %20360 = vst [vmem:[#allocation103_spill] sm:$0xff] %v16719_v50  ;;  %v4222_v55 = vmul.f32 %v16313_v30, %v16700_v41  ;;  %v16733_v39 = vld [vmem:[%s20353_s4 + $0x58] sm:$0xff]  ;;  %v4223_v30 = vmul.f32 %v16311_v8, %v16719_v50  ;;  %20363 = vst [vmem:[#allocation106_spill] sm:$0xff] %v16742_v38  ;;  %v16756_v8 = vld [vmem:[%s20353_s4 + $0x28] sm:$0xff] }
 0x916   :  { %4296 = vmatpush1.msra.mxu1 %v4229_v32  ;;  %4367 = vmatpush1.msra.mxu0 %v4231_v45  ;;  %20362 = vst [vmem:[#allocation105_spill] sm:$0xff] %v16733_v39  ;;  %v4221_v32 = vmul.f32 %v16309_v31, %v16714_v24  ;;  %v16747_v45 = vld [vmem:[%s20353_s4 + $0x50] sm:$0xff]  ;;  %v4220_v31 = vmul.f32 %v16307_v62, %v16733_v39  ;;  %20365 = vst [vmem:[#allocation108_spill] sm:$0xff] %v16756_v8  ;;  %v16770_v62 = vld [vmem:[%s20353_s4 + $0x20] sm:$0xff] }
 0x917   :  { %4297 = vmatprep.subr.mxu1 %v4226_v58  ;;  %4368 = vmatprep.subr.mxu0 %v4228_v18  ;;  %20364 = vst [vmem:[#allocation107_spill] sm:$0xff] %v16747_v45  ;;  %v4218_v58 = vmul.f32 %v16305_v23, %v16728_v20  ;;  %v16761_v18 = vld [vmem:[%s20353_s4 + $0x38] sm:$0xff]  ;;  %v20368_v23 = vld [vmem:[#allocation96_spill] sm:$0xff]  ;;  %v20383_v24 = vld [vmem:[#allocation97_spill] sm:$0xff] }
 0x918   :  { %4298 = vmatpush1.msra.mxu1 %v4225_v29  ;;  %4369 = vmatpush1.msra.mxu0 %v4227_v27  ;;  %20366 = vst [vmem:[#allocation109_spill] sm:$0xff] %v16761_v18  ;;  %v20367_v29 = vld [vmem:[#allocation95_spill] sm:$0xff]  ;;  %v4219_v20 = vmul.f32 %v20368_v23, %v16747_v45  ;;  %v12212_v50 = vld [vmem:[%s20126_s11 + $0x8] sm:$0xff]  ;;  %v20384_v60 = vld [vmem:[#allocation54_spill] sm:$0xff] }
 0x919   :  { %4299 = vmatprep.subr.mxu1 %v4222_v55  ;;  %4370 = vmatprep.subr.mxu0 %v4224_v43  ;;  %v4217_v27 = vmul.f32 %v20367_v29, %v16742_v38  ;;  %20369 = vst [vmem:[#allocation95_spill] sm:$0xff] %v16770_v62  ;;  %v16775_v55 = vld [vmem:[%s20353_s4 + $0x30] sm:$0xff]  ;;  %v20372_v29 = vld [vmem:[#allocation94_spill] sm:$0xff]  ;;  %v20375_v23 = vld [vmem:[#allocation91_spill] sm:$0xff] }
 0x91a   :  { %4300 = vmatpush1.msra.mxu1 %v4221_v32  ;;  %4371 = vmatpush1.msra.mxu0 %v4223_v30  ;;  %20370 = vst [vmem:[#allocation96_spill] sm:$0xff] %v16775_v55  ;;  %v20371_v43 = vld [vmem:[#allocation93_spill] sm:$0xff]  ;;  %v4216_v38 = vmul.f32 %v20372_v29, %v16761_v18  ;;  %v16784_v32 = vld [vmem:[%s20353_s4 + $0x8] sm:$0xff]  ;;  %v16789_v30 = vld [vmem:[%s20353_s4 + $0x18] sm:$0xff]  ;;  %v4213_v45 = vmul.f32 %v20375_v23, %v16770_v62 }
 0x91b   :  { %v4214_v39 = vmul.f32 %v20371_v43, %v16756_v8  ;;  %4301 = vmatprep.subr.mxu1 %v4218_v58  ;;  %4372 = vmatprep.subr.mxu0 %v4220_v31  ;;  %20373 = vst [vmem:[#allocation93_spill] sm:$0xff] %v16784_v32  ;;  %20374 = vst [vmem:[#allocation94_spill] sm:$0xff] %v16789_v30  ;;  %v20376_v43 = vld [vmem:[#allocation92_spill] sm:$0xff]  ;;  %v16798_v58 = vld [vmem:[%s20353_s4] sm:$0xff] }
 0x91c   :  { %v4215_v8 = vmul.f32 %v20376_v43, %v16775_v55  ;;  %4302 = vmatpush1.msra.mxu1 %v4217_v27  ;;  %4373 = vmatpush1.msra.mxu0 %v4219_v20  ;;  %20377 = vst [vmem:[#allocation91_spill] sm:$0xff] %v16798_v58  ;;  %v16803_v31 = vld [vmem:[%s20353_s4 + $0x10] sm:$0xff]  ;;  %v20380_v23 = vld [vmem:[#allocation90_spill] sm:$0xff]  ;;  %v20381_v20 = vld [vmem:[#allocation87_spill] sm:$0xff] }
 0x91d   :  { %20378 = vst [vmem:[#allocation92_spill] sm:$0xff] %v16803_v31  ;;  %v20379_v29 = vld [vmem:[#allocation89_spill] sm:$0xff]  ;;  %v4212_v62 = vmul.f32 %v20380_v23, %v16789_v30  ;;  %4303 = vmatprep.subr.mxu1 %v4214_v39  ;;  %4374 = vmatprep.subr.mxu0 %v4216_v38  ;;  %v4209_v27 = vmul.f32 %v20381_v20, %v16798_v58  ;;  %v20382_v43 = vld [vmem:[#allocation88_spill] sm:$0xff]  ;;  %v20385_v23 = vld [vmem:[#allocation98_spill] sm:$0xff] }
 0x91e   :  { %v4210_v18 = vmul.f32 %v20379_v29, %v16784_v32  ;;  %v4211_v55 = vmul.f32 %v20382_v43, %v16803_v31  ;;  %4304 = vmatpush1.msra.mxu1 %v4213_v45  ;;  %4375 = vmatpush1.msra.mxu0 %v4215_v8  ;;  %v3154_v29 = vmul.f32 %v20384_v60, %v20383_v24  ;;  %v20386_v39 = vld [vmem:[#allocation86_spill] sm:$0xff]  ;;  %v20387_v20 = vld [vmem:[#allocation99_spill] sm:$0xff]  ;;  %v20388_v58 = vld [vmem:[#allocation53_spill] sm:$0xff] }
 0x91f   :  { %4376 = vmatprep.subr.mxu0 %v4212_v62  ;;  %v3156_v38 = vmul.f32 %v20386_v39, %v20385_v23  ;;  %v3153_v30 = vmul.f32 %v20388_v58, %v20387_v20  ;;  %v20389_v43 = vld [vmem:[#allocation100_spill] sm:$0xff]  ;;  %v20390_v45 = vld [vmem:[#allocation85_spill] sm:$0xff]  ;;  %v20395_v58 = vld [vmem:[#allocation50_spill] sm:$0xff] }
 0x920   :  { %4305 = vmatprep.subr.mxu1 %v4210_v18  ;;  %4377 = vmatpush1.msra.mxu0 %v4211_v55  ;;  %v3155_v8 = vmul.f32 %v20390_v45, %v20389_v43  ;;  %v20391_v31 = vld [vmem:[#allocation52_spill] sm:$0xff]  ;;  %v20393_v18 = vld [vmem:[#allocation51_spill] sm:$0xff]  ;;  %v3146_v23 = vmul.f32 %v20395_v58, %v16430_v37  ;;  %v20404_v43 = vld [vmem:[#allocation78_spill] sm:$0xff] }
 0x921   :  { %4306 = vmatpush1.msra.mxu1 %v4209_v27  ;;  %v3150_v32 = vmul.f32 %v20391_v31, %v16406_v42  ;;  %v20392_v60 = vld [vmem:[#allocation84_spill] sm:$0xff]  ;;  %4488 = vmatprep.subr.mxu0 %v3156_v38  ;;  %v3149_v62 = vmul.f32 %v20393_v18, %v16418_v4  ;;  %v20394_v55 = vld [vmem:[#allocation83_spill] sm:$0xff]  ;;  %v3140_v45 = vmul.f32 %v20404_v43, %v16483_v61 }
 0x922   :  { %4340 = vmatmul.mubr.f32.vlgmr.msra.gmra.mxu1 %v12212_v50  ;;  %4417 = vmatprep.subr.mxu1 %v3154_v29  ;;  %v3152_v24 = vmul.f32 %v20392_v60, %v16411_v14  ;;  %v3151_v27 = vmul.f32 %v20394_v55, %v16423_v35  ;;  %v20396_v29 = vld [vmem:[#allocation82_spill] sm:$0xff]  ;;  %v20397_v14 = vld [vmem:[#allocation49_spill] sm:$0xff]  ;;  %v20399_v4 = vld [vmem:[#allocation48_spill] sm:$0xff] }
 0x923   :  { %4411 = vmatmul.mubr.f32.vlgmr.msra.gmra.mxu0 %v12212_v50  ;;  %4418 = vmatpush1.msra.mxu1 %v3153_v30  ;;  %v3148_v39 = vmul.f32 %v20396_v29, %v16435_v3  ;;  %v3145_v42 = vmul.f32 %v20397_v14, %v16442_v17  ;;  %v20398_v50 = vld [vmem:[#allocation81_spill] sm:$0xff]  ;;  %v3142_v35 = vmul.f32 %v20399_v4, %v16454_v53  ;;  %v20400_v30 = vld [vmem:[#allocation80_spill] sm:$0xff]  ;;  %v20401_v37 = vld [vmem:[#allocation47_spill] sm:$0xff] }
 0x924   :  { %4489 = vmatpush1.msra.mxu0 %v3155_v8  ;;  %4419 = vmatprep.subr.mxu1 %v3150_v32  ;;  %v3147_v31 = vmul.f32 %v20398_v50, %v16447_v54  ;;  %v3144_v38 = vmul.f32 %v20400_v30, %v16459_v1  ;;  %v3141_v3 = vmul.f32 %v20401_v37, %v16466_v12  ;;  %v20402_v32 = vld [vmem:[#allocation79_spill] sm:$0xff]  ;;  %v20403_v17 = vld [vmem:[#allocation46_spill] sm:$0xff]  ;;  %v20405_v53 = vld [vmem:[#allocation45_spill] sm:$0xff] }
 0x925   :  { %4490 = vmatprep.subr.mxu0 %v3152_v24  ;;  %4420 = vmatpush1.msra.mxu1 %v3149_v62  ;;  %v3143_v20 = vmul.f32 %v20402_v32, %v16471_v52  ;;  %v3138_v54 = vmul.f32 %v20403_v17, %v16478_v51  ;;  %v3137_v1 = vmul.f32 %v20405_v53, %v16490_v28  ;;  %v20406_v8 = vld [vmem:[#allocation77_spill] sm:$0xff]  ;;  %v20407_v12 = vld [vmem:[#allocation44_spill] sm:$0xff]  ;;  %v20409_v51 = vld [vmem:[#allocation43_spill] sm:$0xff] }
 0x926   :  { %4491 = vmatpush1.msra.mxu0 %v3151_v27  ;;  %4421 = vmatprep.subr.mxu1 %v3146_v23  ;;  %v3139_v60 = vmul.f32 %v20406_v8, %v16495_v48  ;;  %v3134_v52 = vmul.f32 %v20407_v12, %v16504_v46  ;;  %v20408_v24 = vld [vmem:[#allocation76_spill] sm:$0xff]  ;;  %v3133_v61 = vmul.f32 %v20409_v51, %v16518_v44  ;;  %v20410_v62 = vld [vmem:[#allocation75_spill] sm:$0xff]  ;;  %v20411_v28 = vld [vmem:[#allocation42_spill] sm:$0xff] }
 0x927   :  { %4492 = vmatprep.subr.mxu0 %v3148_v39  ;;  %4422 = vmatpush1.msra.mxu1 %v3145_v42  ;;  %v3136_v18 = vmul.f32 %v20408_v24, %v16509_v10  ;;  %v3135_v55 = vmul.f32 %v20410_v62, %v16523_v56  ;;  %v3130_v48 = vmul.f32 %v20411_v28, %v16532_v36  ;;  %v20412_v27 = vld [vmem:[#allocation74_spill] sm:$0xff]  ;;  %v20413_v46 = vld [vmem:[#allocation41_spill] sm:$0xff]  ;;  %v20415_v44 = vld [vmem:[#allocation40_spill] sm:$0xff] }
 0x928   :  { %4493 = vmatpush1.msra.mxu0 %v3147_v31  ;;  %4423 = vmatprep.subr.mxu1 %v3142_v35  ;;  %v3132_v58 = vmul.f32 %v20412_v27, %v16537_v25  ;;  %v3129_v10 = vmul.f32 %v20413_v46, %v16546_v34  ;;  %v20414_v23 = vld [vmem:[#allocation73_spill] sm:$0xff]  ;;  %v3126_v56 = vmul.f32 %v20415_v44, %v16560_v13  ;;  %v20416_v39 = vld [vmem:[#allocation72_spill] sm:$0xff]  ;;  %v20417_v36 = vld [vmem:[#allocation39_spill] sm:$0xff] }
 0x929   :  { %4494 = vmatprep.subr.mxu0 %v3144_v38  ;;  %4424 = vmatpush1.msra.mxu1 %v3141_v3  ;;  %v3131_v29 = vmul.f32 %v20414_v23, %v16551_v9  ;;  %v3128_v14 = vmul.f32 %v20416_v39, %v16565_v47  ;;  %v3125_v25 = vmul.f32 %v20417_v36, %v16574_v7  ;;  %v20418_v42 = vld [vmem:[#allocation71_spill] sm:$0xff]  ;;  %v20419_v34 = vld [vmem:[#allocation38_spill] sm:$0xff]  ;;  %v20421_v13 = vld [vmem:[#allocation37_spill] sm:$0xff] }
 0x92a   :  { %4495 = vmatpush1.msra.mxu0 %v3143_v20  ;;  %4425 = vmatprep.subr.mxu1 %v3138_v54  ;;  %v3127_v50 = vmul.f32 %v20418_v42, %v16579_v26  ;;  %v3122_v9 = vmul.f32 %v20419_v34, %v16588_v63  ;;  %v20420_v31 = vld [vmem:[#allocation70_spill] sm:$0xff]  ;;  %v3121_v47 = vmul.f32 %v20421_v13, %v16602_v57  ;;  %v20422_v35 = vld [vmem:[#allocation69_spill] sm:$0xff]  ;;  %v20423_v7 = vld [vmem:[#allocation36_spill] sm:$0xff] }
 0x92b   :  { %4496 = vmatprep.subr.mxu0 %v3140_v45  ;;  %4426 = vmatpush1.msra.mxu1 %v3137_v1  ;;  %v3124_v4 = vmul.f32 %v20420_v31, %v16593_v5  ;;  %v3123_v30 = vmul.f32 %v20422_v35, %v16607_v0  ;;  %v3118_v26 = vmul.f32 %v20423_v7, %v16616_v59  ;;  %v20424_v38 = vld [vmem:[#allocation68_spill] sm:$0xff]  ;;  %v20425_v63 = vld [vmem:[#allocation35_spill] sm:$0xff]  ;;  %v20427_v57 = vld [vmem:[#allocation34_spill] sm:$0xff] }
 0x92c   :  { %4497 = vmatpush1.msra.mxu0 %v3139_v60  ;;  %4427 = vmatprep.subr.mxu1 %v3134_v52  ;;  %v3120_v37 = vmul.f32 %v20424_v38, %v16621_v49  ;;  %v3117_v5 = vmul.f32 %v20425_v63, %v16630_v40  ;;  %v20426_v3 = vld [vmem:[#allocation67_spill] sm:$0xff]  ;;  %v3114_v0 = vmul.f32 %v20427_v57, %v16644_v6  ;;  %v20428_v20 = vld [vmem:[#allocation66_spill] sm:$0xff]  ;;  %v20429_v59 = vld [vmem:[#allocation33_spill] sm:$0xff]  ;;  %v20466_v57 = vmov 0.0  }
 0x92d   :  { %4498 = vmatprep.subr.mxu0 %v3136_v18  ;;  %4428 = vmatpush1.msra.mxu1 %v3133_v61  ;;  %v3119_v32 = vmul.f32 %v20426_v3, %v16635_v22  ;;  %v3116_v17 = vmul.f32 %v20428_v20, %v16649_v19  ;;  %v3113_v49 = vmul.f32 %v20429_v59, %v16658_v2  ;;  %v20430_v54 = vld [vmem:[#allocation65_spill] sm:$0xff]  ;;  %v20431_v40 = vld [vmem:[#allocation32_spill] sm:$0xff]  ;;  %v20433_v6 = vld [vmem:[#allocation31_spill] sm:$0xff] }
 0x92e   :  { %4499 = vmatpush1.msra.mxu0 %v3135_v55  ;;  %4429 = vmatprep.subr.mxu1 %v3130_v48  ;;  %v3115_v43 = vmul.f32 %v20430_v54, %v16663_v21  ;;  %v3110_v22 = vmul.f32 %v20431_v40, %v16672_v16  ;;  %v20432_v45 = vld [vmem:[#allocation64_spill] sm:$0xff]  ;;  %v3109_v19 = vmul.f32 %v20433_v6, %v16686_v15  ;;  %v20434_v1 = vld [vmem:[#allocation63_spill] sm:$0xff]  ;;  %v20435_v2 = vld [vmem:[#allocation30_spill] sm:$0xff] }
 0x92f   :  { %4500 = vmatprep.subr.mxu0 %v3132_v58  ;;  %4430 = vmatpush1.msra.mxu1 %v3129_v10  ;;  %v3112_v53 = vmul.f32 %v20432_v45, %v16677_v11  ;;  %v3111_v8 = vmul.f32 %v20434_v1, %v16691_v33  ;;  %v3106_v21 = vmul.f32 %v20435_v2, %v16700_v41  ;;  %v20436_v60 = vld [vmem:[#allocation101_spill] sm:$0xff]  ;;  %v20437_v12 = vld [vmem:[#allocation62_spill] sm:$0xff]  ;;  %v20440_v18 = vld [vmem:[#allocation103_spill] sm:$0xff] }
 0x930   :  { %4501 = vmatpush1.msra.mxu0 %v3131_v29  ;;  %4431 = vmatprep.subr.mxu1 %v3126_v56  ;;  %v3108_v52 = vmul.f32 %v20437_v12, %v20436_v60  ;;  %v20438_v16 = vld [vmem:[#allocation102_spill] sm:$0xff]  ;;  %v20439_v11 = vld [vmem:[#allocation29_spill] sm:$0xff]  ;;  %v20442_v15 = vld [vmem:[#allocation104_spill] sm:$0xff] }
 0x931   :  { %4502 = vmatprep.subr.mxu0 %v3128_v14  ;;  %4432 = vmatpush1.msra.mxu1 %v3125_v25  ;;  %v3105_v24 = vmul.f32 %v20439_v11, %v20438_v16  ;;  %v20441_v51 = vld [vmem:[#allocation61_spill] sm:$0xff]  ;;  %v20443_v33 = vld [vmem:[#allocation28_spill] sm:$0xff]  ;;  %v20446_v41 = vld [vmem:[#allocation106_spill] sm:$0xff] }
 0x932   :  { %4503 = vmatpush1.msra.mxu0 %v3127_v50  ;;  %4433 = vmatprep.subr.mxu1 %v3122_v9  ;;  %v3107_v61 = vmul.f32 %v20441_v51, %v20440_v18  ;;  %v3102_v62 = vmul.f32 %v20443_v33, %v20442_v15  ;;  %v20444_v55 = vld [vmem:[#allocation105_spill] sm:$0xff]  ;;  %v20445_v28 = vld [vmem:[#allocation60_spill] sm:$0xff]  ;;  %v20447_v27 = vld [vmem:[#allocation27_spill] sm:$0xff] }
 0x933   :  { %4504 = vmatprep.subr.mxu0 %v3124_v4  ;;  %4434 = vmatpush1.msra.mxu1 %v3121_v47  ;;  %v3104_v48 = vmul.f32 %v20445_v28, %v20444_v55  ;;  %v3101_v58 = vmul.f32 %v20447_v27, %v20446_v41  ;;  %v20448_v46 = vld [vmem:[#allocation107_spill] sm:$0xff]  ;;  %v20450_v29 = vld [vmem:[#allocation108_spill] sm:$0xff]  ;;  %v20451_v44 = vld [vmem:[#allocation26_spill] sm:$0xff] }
 0x934   :  { %4505 = vmatpush1.msra.mxu0 %v3123_v30  ;;  %4435 = vmatprep.subr.mxu1 %v3118_v26  ;;  %v20449_v10 = vld [vmem:[#allocation59_spill] sm:$0xff]  ;;  %v3098_v56 = vmul.f32 %v20451_v44, %v20450_v29  ;;  %v20452_v39 = vld [vmem:[#allocation109_spill] sm:$0xff]  ;;  %v20453_v14 = vld [vmem:[#allocation58_spill] sm:$0xff] }
 0x935   :  { %4506 = vmatprep.subr.mxu0 %v3120_v37  ;;  %4436 = vmatpush1.msra.mxu1 %v3117_v5  ;;  %v3103_v23 = vmul.f32 %v20449_v10, %v20448_v46  ;;  %v3100_v36 = vmul.f32 %v20453_v14, %v20452_v39  ;;  %v20454_v25 = vld [vmem:[#allocation95_spill] sm:$0xff]  ;;  %v20455_v42 = vld [vmem:[#allocation25_spill] sm:$0xff]  ;;  %v20456_v34 = vld [vmem:[#allocation96_spill] sm:$0xff] }
 0x936   :  { %4507 = vmatpush1.msra.mxu0 %v3119_v32  ;;  %4437 = vmatprep.subr.mxu1 %v3114_v0  ;;  %v3097_v50 = vmul.f32 %v20455_v42, %v20454_v25  ;;  %v20457_v9 = vld [vmem:[#allocation57_spill] sm:$0xff]  ;;  %v20459_v13 = vld [vmem:[#allocation24_spill] sm:$0xff]  ;;  %v20460_v35 = vld [vmem:[#allocation94_spill] sm:$0xff] }
 0x937   :  { %4508 = vmatprep.subr.mxu0 %v3116_v17  ;;  %4438 = vmatpush1.msra.mxu1 %v3113_v49  ;;  %v3099_v31 = vmul.f32 %v20457_v9, %v20456_v34  ;;  %v20458_v4 = vld [vmem:[#allocation93_spill] sm:$0xff]  ;;  %v20461_v30 = vld [vmem:[#allocation56_spill] sm:$0xff]  ;;  %v20462_v26 = vld [vmem:[#allocation91_spill] sm:$0xff] }
 0x938   :  { %4509 = vmatpush1.msra.mxu0 %v3115_v43  ;;  %4439 = vmatprep.subr.mxu1 %v3110_v22  ;;  %v3094_v47 = vmul.f32 %v20459_v13, %v20458_v4  ;;  %v3096_v7 = vmul.f32 %v20461_v30, %v20460_v35  ;;  %v20463_v38 = vld [vmem:[#allocation23_spill] sm:$0xff]  ;;  %v20464_v5 = vld [vmem:[#allocation92_spill] sm:$0xff]  ;;  %v20468_v20 = vld [vmem:[#allocation21_spill] sm:$0xff] }
 0x939   :  { %4510 = vmatprep.subr.mxu0 %v3112_v53  ;;  %4440 = vmatpush1.msra.mxu1 %v3109_v19  ;;  %v3093_v37 = vmul.f32 %v20463_v38, %v20462_v26  ;;  %v3157_v63 = vld [vmem:[%s20126_s11] sm:$0xff]  ;;  %v20467_v0 = vld [vmem:[#allocation16_spill] sm:$0xff]  ;;  %v20469_v17 = vld [vmem:[#allocation17_spill] sm:$0xff] }
 0x93a   :  { %4511 = vmatpush1.msra.mxu0 %v3111_v8  ;;  %4441 = vmatprep.subr.mxu1 %v3106_v21  ;;  %v20465_v3 = vld [vmem:[#allocation55_spill] sm:$0xff]  ;;  %v20470_v59 = vld [vmem:[#allocation14_spill] sm:$0xff]  ;;  %v16960_v49 = vld [vmem:[%s20277_s9 + $0x8] sm:$0xff] }
 0x93b   :  { %4512 = vmatprep.subr.mxu0 %v3108_v52  ;;  %4442 = vmatpush1.msra.mxu1 %v3105_v24  ;;  %v3095_v32 = vmul.f32 %v20465_v3, %v20464_v5  ;;  %20471 = vst [vmem:[#allocation89_spill] sm:$0xff] %v16960_v49  ;;  %v20472_v54 = vld [vmem:[#allocation18_spill] sm:$0xff]  ;;  %v20473_v43 = vld [vmem:[#allocation15_spill] sm:$0xff] }
 0x93c   :  { %4513 = vmatpush1.msra.mxu0 %v3107_v61  ;;  %4443 = vmatprep.subr.mxu1 %v3102_v62  ;;  %v13699_v40 = vld [vmem:[%s20273_s10 + $0x200] ss:$16 sps:$4 sm:$0xff]   ;;  %v13701_v22 = vld [vmem:[%s20273_s10 + $0x204] ss:$16 sps:$4 sm:$0xff]   ;;  %v13702_v45 = vld [vmem:[%s20273_s10 + $0x208] ss:$16 sps:$4 sm:$0xff]  }
 0x93d   :  { %4514 = vmatprep.subr.mxu0 %v3104_v48  ;;  %4444 = vmatpush1.msra.mxu1 %v3101_v58  ;;  %v13704_v53 = vld [vmem:[%s20273_s10 + $0x20c] ss:$16 sps:$4 sm:$0xff]   ;;  %v13707_v6 = vld [vmem:[%s20273_s10 + $0x224] ss:$16 sps:$4 sm:$0xff]   ;;  %v13705_v8 = vld [vmem:[%s20273_s10 + $0x220] ss:$16 sps:$4 sm:$0xff]  }
 0x93e   :  { %4515 = vmatpush1.msra.mxu0 %v3103_v23  ;;  %4445 = vmatprep.subr.mxu1 %v3098_v56  ;;  %v13708_v19 = vld [vmem:[%s20273_s10 + $0x22c] ss:$16 sps:$4 sm:$0xff]   ;;  %v16988_v1 = vld [vmem:[%s20277_s9] sm:$0xff]  ;;  %v13710_v2 = vld [vmem:[%s20273_s10 + $0x228] ss:$16 sps:$4 sm:$0xff]  }
 0x93f   :  { %4516 = vmatprep.subr.mxu0 %v3100_v36  ;;  %4446 = vmatpush1.msra.mxu1 %v3097_v50  ;;  %20474 = vst [vmem:[#allocation90_spill] sm:$0xff] %v16988_v1  ;;  %v13713_v21 = vld [vmem:[%s20273_s10 + $0x244] ss:$16 sps:$4 sm:$0xff]   ;;  %v13714_v60 = vld [vmem:[%s20273_s10 + $0x24c] ss:$16 sps:$4 sm:$0xff]  }
 0x940   :  { %4517 = vmatpush1.msra.mxu0 %v3099_v31  ;;  %4447 = vmatprep.subr.mxu1 %v3094_v47  ;;  %v13711_v12 = vld [vmem:[%s20273_s10 + $0x240] ss:$16 sps:$4 sm:$0xff]   ;;  %v13716_v52 = vld [vmem:[%s20273_s10 + $0x248] ss:$16 sps:$4 sm:$0xff]   ;;  %v13719_v16 = vld [vmem:[%s20273_s10 + $0x264] ss:$16 sps:$4 sm:$0xff]  }
 0x941   :  { %4518 = vmatprep.subr.mxu0 %v3096_v7  ;;  %4448 = vmatpush1.msra.mxu1 %v3093_v37  ;;  %v13720_v11 = vld [vmem:[%s20273_s10 + $0x26c] ss:$16 sps:$4 sm:$0xff]   ;;  %v13717_v24 = vld [vmem:[%s20273_s10 + $0x260] ss:$16 sps:$4 sm:$0xff]   ;;  %v13722_v18 = vld [vmem:[%s20273_s10 + $0x268] ss:$16 sps:$4 sm:$0xff]  }
 0x942   :  { %4481 = vmatprep.mubr.f32.mxu1 %v20466_v57  ;;  %4519 = vmatpush1.msra.mxu0 %v3095_v32  ;;  %v13725_v27 = vld [vmem:[%s20273_s10 + $0x284] ss:$16 sps:$4 sm:$0xff]   ;;  %v13726_v58 = vld [vmem:[%s20273_s10 + $0x28c] ss:$16 sps:$4 sm:$0xff]   ;;  %v13723_v46 = vld [vmem:[%s20273_s10 + $0x280] ss:$16 sps:$4 sm:$0xff]  }
 0x943   :  { %4482 = vmatmul.mubr.f32.vlgmr.msra.gmra.mxu1 %v3157_v63  ;;  %4552 = vmatprep.mubr.f32.mxu0 %v20466_v57  ;;  %v13728_v10 = vld [vmem:[%s20273_s10 + $0x288] ss:$16 sps:$4 sm:$0xff]   ;;  %v13731_v23 = vld [vmem:[%s20273_s10 + $0x2a4] ss:$16 sps:$4 sm:$0xff]   ;;  %v13732_v29 = vld [vmem:[%s20273_s10 + $0x2ac] ss:$16 sps:$4 sm:$0xff]  }
 0x944   :  { %13195 = vmatprep.subr.mxu1 %v20466_v57  ;;  %12277 = vmatprep.subr.msk.bf16.mxu0 %vm1042_vm2, %v20467_v0  ;;  %v13729_v44 = vld [vmem:[%s20273_s10 + $0x2a0] ss:$16 sps:$4 sm:$0xff]   ;;  %v13734_v56 = vld [vmem:[%s20273_s10 + $0x2a8] ss:$16 sps:$4 sm:$0xff]   ;;  %v13737_v39 = vld [vmem:[%s20273_s10 + $0x2c4] ss:$16 sps:$4 sm:$0xff]  }
 0x945   :  { %4553 = vmatmul.mubr.f32.vlgmr.msra.gmra.mxu0 %v3157_v63  ;;  %13196 = vmatpush3.xpose.msra.mxu1 %v20468_v20  ;;  %v13738_v14 = vld [vmem:[%s20273_s10 + $0x2cc] ss:$16 sps:$4 sm:$0xff]   ;;  %v13735_v36 = vld [vmem:[%s20273_s10 + $0x2c0] ss:$16 sps:$4 sm:$0xff]   ;;  %v13740_v25 = vld [vmem:[%s20273_s10 + $0x2c8] ss:$16 sps:$4 sm:$0xff]  }
 0x946   :  { %4962 = vmatpush1.bf16.xpose.msra.mxu0 %v20469_v17  ;;  %4864 = vmatprep.subr.bf16.mxu1 %v20470_v59  ;;  %v13743_v42 = vld [vmem:[%s20273_s10 + $0x2e4] ss:$16 sps:$4 sm:$0xff]   ;;  %v13744_v50 = vld [vmem:[%s20273_s10 + $0x2ec] ss:$16 sps:$4 sm:$0xff]   ;;  %v13741_v4 = vld [vmem:[%s20273_s10 + $0x2e0] ss:$16 sps:$4 sm:$0xff]  }
 0x947   :  { %13197 = vmatprep.mubr.msk.f32.mxu1 %vm14761_vm3, %v20466_v57  ;;  %5318 = vmatprep.subr.mxu0 %v16960_v49  ;;  %v13746_v13 = vld [vmem:[%s20273_s10 + $0x2e8] ss:$16 sps:$4 sm:$0xff]  }
 0x948   :  { %13198 = vmatmul.mubr.f32.vlgmr.msra.gmra.mxu1 %v20472_v54  ;;  %12278 = vmatprep.mubr.msk.bf16.mxu0 %vm1042_vm2, %v13704_v53 }
 0x949   :  { %4865 = vmatpush1.bf16.xpose.msra.mxu1 %v20473_v43  ;;  %4882 = vmatprep.mubr.bf16.mxu1 %v13701_v22 }
 0x94d   :  { %4980 = vmatmul.mubr.bf16.vlgmr.msra.gmra.mxu0 %v13702_v45 }
 0x94e   :  { %12279 = vmatprep.mubr.msk.bf16.mxu0 %vm1042_vm2, %v13708_v19  ;;  %5319 = vmatpush1.msra.mxu0 %v16988_v1 }
 0x950   :  { %4883 = vmatmul.mubr.bf16.vlgmr.msra.gmra.mxu1 %v13699_v40 }
 0x951   :  { %4890 = vmatprep.mubr.bf16.mxu1 %v13707_v6 }
 0x955   :  { %4988 = vmatmul.mubr.bf16.gmra.mxu0 %v13710_v2 }
 0x956   :  { %12280 = vmatprep.mubr.msk.bf16.mxu0 %vm1042_vm2, %v13714_v60 }
 0x958   :  { %4891 = vmatmul.mubr.bf16.gmra.mxu1 %v13705_v8 }
 0x959   :  { %4898 = vmatprep.mubr.bf16.mxu1 %v13713_v21 }
 0x95d   :  { %4996 = vmatmul.mubr.bf16.gmra.mxu0 %v13716_v52 }
 0x95e   :  { %12281 = vmatprep.mubr.msk.bf16.mxu0 %vm1042_vm2, %v13720_v11 }
 0x960   :  { %4899 = vmatmul.mubr.bf16.gmra.mxu1 %v13711_v12 }
 0x961   :  { %4906 = vmatprep.mubr.bf16.mxu1 %v13719_v16 }
 0x965   :  { %5004 = vmatmul.mubr.bf16.gmra.mxu0 %v13722_v18 }
 0x966   :  { %12282 = vmatprep.mubr.msk.bf16.mxu0 %vm1042_vm2, %v13726_v58 }
 0x968   :  { %4907 = vmatmul.mubr.bf16.gmra.mxu1 %v13717_v24 }
 0x969   :  { %4914 = vmatprep.mubr.bf16.mxu1 %v13725_v27 }
 0x96d   :  { %5012 = vmatmul.mubr.bf16.gmra.mxu0 %v13728_v10 }
 0x96e   :  { %12283 = vmatprep.mubr.msk.bf16.mxu0 %vm1042_vm2, %v13732_v29 }
 0x970   :  { %4915 = vmatmul.mubr.bf16.gmra.mxu1 %v13723_v46 }
 0x971   :  { %4922 = vmatprep.mubr.bf16.mxu1 %v13731_v23 }
 0x975   :  { %5020 = vmatmul.mubr.bf16.gmra.mxu0 %v13734_v56 }
 0x976   :  { %12284 = vmatprep.mubr.msk.bf16.mxu0 %vm1042_vm2, %v13738_v14 }
 0x978   :  { %4923 = vmatmul.mubr.bf16.gmra.mxu1 %v13729_v44 }
 0x979   :  { %4930 = vmatprep.mubr.bf16.mxu1 %v13737_v39 }
 0x97d   :  { %5028 = vmatmul.mubr.bf16.gmra.mxu0 %v13740_v25 }
 0x97e   :  { %12285 = vmatprep.mubr.msk.bf16.mxu0 %vm1042_vm2, %v13744_v50 }
 0x980   :  { %4931 = vmatmul.mubr.bf16.gmra.mxu1 %v13735_v36 }
 0x981   :  { %4938 = vmatprep.mubr.bf16.mxu1 %v13743_v42 }
 0x985   :  { %5036 = vmatmul.mubr.bf16.gmra.mxu0 %v13746_v13 }
 0x986   :  { %5352 = vmatprep.mubr.f32.mxu0 %v20466_v57 }
 0x988   :  { %4939 = vmatmul.mubr.bf16.gmra.mxu1 %v13741_v4 }
 0x9e2   :  { %v4341_v51 = vpop.f32.mrf.mxu1 }
 0x9e3   :  { %v4412_v34 = vpop.f32.mrf.mxu0 }
 0x9e4   :  { %v17023_v61 = vpop.f32.mrf.mxu1 }
 0x9e5   :  { %20475 = vst [vmem:[#allocation87_spill] sm:$0xff] %v17023_v61  ;;  %v17076_v9 = vpop.f32.mrf.mxu0 }
 0x9e6   :  { %20478 = vst [vmem:[#allocation54_spill] sm:$0xff] %v17076_v9 }
 0xa03   :  { %v4483_v15 = vpop.f32.mrf.mxu1 }
 0xa04   :  { %v17025_v33 = vadd.f32 %v4483_v15, %v4341_v51 }
 0xa05   :  { %v17027_v62 = vpop.f32.mrf.mxu1  ;;  %v4554_v31 = vpop.f32.mrf.mxu0 }
 0xa06   :  { %20476 = vst [vmem:[#allocation88_spill] sm:$0xff] %v17025_v33  ;;  %20477 = vst [vmem:[#allocation97_spill] sm:$0xff] %v17027_v62  ;;  %v17084_v47 = vadd.f32 %v4554_v31, %v4412_v34 }
 0xa07   :  { %v17091_v37 = vpop.f32.mrf.mxu0 }
 0xa08   :  { %v4625_v55 = vpop.f32.mrf.mxu1  ;;  %20479 = vst [vmem:[#allocation98_spill] sm:$0xff] %v17084_v47  ;;  %20480 = vst [vmem:[#allocation86_spill] sm:$0xff] %v17091_v37 }
 0xa09   :  { %v4629_v28 = vmul.f32 0.1, %v4625_v55 }
 0xa0a   :  { %v13199_v48 = vpop.f32.mrf.mxu1 }
 0xa0b   :  { %v4630_v41 = vsel %vm2113_vm4, %v4629_v28, -inf }
 0xa0c   :  { %4631 = vmax.xlane.f32.xlu0 %v4630_v41 }
 0xa0d   :  { %v4981_v5 = vpop.f32.mrf.mxu0 }
 0xa0f   :  { %v4983_v20 = vpop.f32.mrf.mxu0 }
 0xa10   :  { %v4884_v63 = vpop.f32.mrf.mxu1 }
 0xa11   :  { %v4982_v3 = vadd.f32 %v4981_v5, %v4884_v63  ;;  %v4984_v40 = vpop.f32.mrf.mxu0 }
 0xa12   :  { %v4886_v32 = vpop.f32.mrf.mxu1 }
 0xa13   :  { %13202 = vmatprep.mubr.msk.f32.mxu1 %vm2113_vm4, %v4982_v3  ;;  %v4986_v53 = vpop.f32.mrf.mxu0 }
 0xa14   :  { %v4887_v54 = vpop.f32.mrf.mxu1 }
 0xa15   :  { %v17094_v22 = vadd.f32 %v4984_v40, %v4887_v54  ;;  %v4989_v19 = vpop.f32.mrf.mxu0 }
 0xa16   :  { %v4889_v45 = vpop.f32.mrf.mxu1 }
 0xa17   :  { %v4991_v21 = vpop.f32.mrf.mxu0 }
 0xa18   :  { %v4892_v6 = vpop.f32.mrf.mxu1 }
 0xa19   :  { %v17096_v8 = vadd.f32 %v4989_v19, %v4892_v6  ;;  %v4992_v12 = vpop.f32.mrf.mxu0 }
 0xa1a   :  { %v4894_v2 = vpop.f32.mrf.mxu1 }
 0xa1b   :  { %v4994_v11 = vpop.f32.mrf.mxu0 }
 0xa1c   :  { %v4895_v60 = vpop.f32.mrf.mxu1 }
 0xa1d   :  { %v17098_v52 = vadd.f32 %v4992_v12, %v4895_v60  ;;  %v4997_v18 = vpop.f32.mrf.mxu0 }
 0xa1e   :  { %v4897_v16 = vpop.f32.mrf.mxu1 }
 0xa1f   :  { %v4999_v55 = vpop.f32.mrf.mxu0 }
 0xa20   :  { %v4900_v24 = vpop.f32.mrf.mxu1 }
 0xa21   :  { %v17100_v51 = vadd.f32 %v4997_v18, %v4900_v24  ;;  %v5000_v48 = vpop.f32.mrf.mxu0 }
 0xa22   :  { %v4902_v15 = vpop.f32.mrf.mxu1 }
 0xa23   :  { %v5002_v58 = vpop.f32.mrf.mxu0 }
 0xa25   :  { %v5005_v10 = vpop.f32.mrf.mxu0 }
 0xa27   :  { %v5007_v44 = vpop.f32.mrf.mxu0 }
 0xa29   :  { %v5008_v39 = vpop.f32.mrf.mxu0 }
 0xa2b   :  { %v5010_v25 = vpop.f32.mrf.mxu0 }
 0xa2d   :  { %v5013_v50 = vpop.f32.mrf.mxu0 }
 0xa2f   :  { %v5015_v4 = vpop.f32.mrf.mxu0 }
 0xa95   :  { %v4632_v35 = vpop.xlane.xlu0 %4631 }
 0xa96   :  { %v4633_v30 = vsub.f32 %v4629_v28, %v4632_v35  ;;  %v4903_v28 = vpop.f32.mrf.mxu1  ;;  %v5016_v35 = vpop.f32.mrf.mxu0 }
 0xa97   :  { %v17102_v41 = vadd.f32 %v5000_v48, %v4903_v28 }
 0xa98   :  { %v4634_v7 = vmul.f32 1.442695, %v4633_v30  ;;  %v4905_v27 = vpop.f32.mrf.mxu1 }
 0xa9a   :  { %14649 = vpow2.f32 %v4634_v7  ;;  %v4908_v46 = vpop.f32.mrf.mxu1 }
 0xa9b   :  { %v17104_v23 = vadd.f32 %v5005_v10, %v4908_v46 }
 0xa9c   :  { %v4910_v29 = vpop.f32.mrf.mxu1 }
 0xa9e   :  { %v4911_v56 = vpop.f32.mrf.mxu1 }
 0xa9f   :  { %v5009_v14 = vadd.f32 %v5008_v39, %v4911_v56 }
 0xaa0   :  { %v4913_v36 = vpop.f32.mrf.mxu1 }
 0xaa2   :  { %v4916_v42 = vpop.f32.mrf.mxu1 }
 0xaa3   :  { %v5014_v34 = vadd.f32 %v5013_v50, %v4916_v42  ;;  %v17112_v42 = vld [vmem:[%s20277_s9 + $0x18] sm:$0xff] }
 0xaa4   :  { %v4918_v31 = vpop.f32.mrf.mxu1  ;;  %20481 = vst [vmem:[#allocation99_spill] sm:$0xff] %v17112_v42 }
 0xaa6   :  { %v4919_v13 = vpop.f32.mrf.mxu1 }
 0xaa7   :  { %v17087_v26 = vpop.eup %14649  ;;  %v5017_v30 = vadd.f32 %v5016_v35, %v4919_v13 }
 0xaa8   :  { %v4636_v38 = vsel %vm2113_vm4, %v17087_v26, 0.0  ;;  %v4921_v7 = vpop.f32.mrf.mxu1 }
 0xaa9   :  { %4637 = vadd.xlane.f32.xlu1 %v4636_v38  ;;  %v5018_v38 = vpop.f32.mrf.mxu0 }
 0xaaa   :  { %v4924_v63 = vpop.f32.mrf.mxu1 }
 0xaab   :  { %v5021_v5 = vpop.f32.mrf.mxu0 }
 0xaac   :  { %v5022_v3 = vadd.f32 %v5021_v5, %v4924_v63  ;;  %v4926_v32 = vpop.f32.mrf.mxu1 }
 0xaad   :  { %v5023_v20 = vpop.f32.mrf.mxu0 }
 0xaae   :  { %v4927_v54 = vpop.f32.mrf.mxu1 }
 0xaaf   :  { %v5024_v40 = vpop.f32.mrf.mxu0 }
 0xab0   :  { %v5025_v45 = vadd.f32 %v5024_v40, %v4927_v54  ;;  %v4929_v53 = vpop.f32.mrf.mxu1 }
 0xab1   :  { %v5026_v6 = vpop.f32.mrf.mxu0 }
 0xab2   :  { %v4932_v19 = vpop.f32.mrf.mxu1 }
 0xab3   :  { %v5029_v2 = vpop.f32.mrf.mxu0 }
 0xab4   :  { %v5030_v21 = vadd.f32 %v5029_v2, %v4932_v19  ;;  %v4934_v60 = vpop.f32.mrf.mxu1 }
 0xab5   :  { %v5031_v12 = vpop.f32.mrf.mxu0 }
 0xab6   :  { %v4935_v16 = vpop.f32.mrf.mxu1 }
 0xab7   :  { %v5032_v11 = vpop.f32.mrf.mxu0 }
 0xab8   :  { %v5033_v24 = vadd.f32 %v5032_v11, %v4935_v16  ;;  %v4937_v18 = vpop.f32.mrf.mxu1 }
 0xab9   :  { %v5034_v15 = vpop.f32.mrf.mxu0 }
 0xaba   :  { %v4940_v55 = vpop.f32.mrf.mxu1 }
 0xabb   :  { %v5037_v28 = vpop.f32.mrf.mxu0 }
 0xabc   :  { %v5038_v48 = vadd.f32 %v5037_v28, %v4940_v55  ;;  %v4942_v27 = vpop.f32.mrf.mxu1 }
 0xabd   :  { %v5039_v58 = vpop.f32.mrf.mxu0 }
 0xabe   :  { %v4943_v46 = vpop.f32.mrf.mxu1 }
 0xabf   :  { %v5040_v10 = vpop.f32.mrf.mxu0 }
 0xac0   :  { %v5041_v29 = vadd.f32 %v5040_v10, %v4943_v46  ;;  %v4945_v44 = vpop.f32.mrf.mxu1 }
 0xac1   :  { %v5042_v56 = vpop.f32.mrf.mxu0 }
 0xb32   :  { %v4638_v39 = vpop.xlane.xlu1 %4637 }
 0xb33   :  { %14651 = vrcp.f32 %v4638_v39 }
 0xb40   :  { %v14652_v36 = vpop.eup %14651 }
 0xb41   :  { %v4640_v25 = vmul.f32 %v14652_v36, %v17087_v26  ;;  %v17122_v26 = vld [vmem:[%s20277_s9 + $0x10] sm:$0xff] }
 0xb42   :  { %20482 = vst [vmem:[#allocation53_spill] sm:$0xff] %v17122_v26 }
 0xb43   :  { %13200 = vmatprep.subr.msk.mxu1 %vm2113_vm4, %v4640_v25 }
 0xb44   :  { %13201 = vmatpush3.xpose.msk.msra.mxu1 %vm2113_vm4, %v4640_v25 }
 0xb45   :  { %5479 = vmatprep.subr.mxu1 %v17112_v42 }
 0xb47   :  { %13203 = vmatmul.mubr.msk.f32.vlgmr.msra.gmra.mxu1 %vm2113_vm4, %v17094_v22 }
 0xb48   :  { %13205 = vmatprep.mubr.msk.f32.mxu1 %vm2113_vm4, %v17096_v8  ;;  %5480 = vmatpush1.msra.mxu1 %v17122_v26 }
 0xb4b   :  { %13206 = vmatmul.mubr.msk.f32.gmra.mxu1 %vm2113_vm4, %v17098_v52 }
 0xb4c   :  { %13208 = vmatprep.mubr.msk.f32.mxu1 %vm2113_vm4, %v17100_v51 }
 0xb4f   :  { %13209 = vmatmul.mubr.msk.f32.gmra.mxu1 %vm2113_vm4, %v17102_v41 }
 0xb50   :  { %13211 = vmatprep.mubr.msk.f32.mxu1 %vm2113_vm4, %v17104_v23 }
 0xb53   :  { %13212 = vmatmul.mubr.msk.f32.gmra.mxu1 %vm2113_vm4, %v5009_v14 }
 0xb54   :  { %13214 = vmatprep.mubr.msk.f32.mxu1 %vm2113_vm4, %v5014_v34 }
 0xb57   :  { %13215 = vmatmul.mubr.msk.f32.gmra.mxu1 %vm2113_vm4, %v5017_v30 }
 0xb58   :  { %13217 = vmatprep.mubr.msk.f32.mxu1 %vm2113_vm4, %v5022_v3 }
 0xb5b   :  { %13218 = vmatmul.mubr.msk.f32.gmra.mxu1 %vm2113_vm4, %v5025_v45 }
 0xb5c   :  { %13220 = vmatprep.mubr.msk.f32.mxu1 %vm2113_vm4, %v5030_v21 }
 0xb5f   :  { %13221 = vmatmul.mubr.msk.f32.gmra.mxu1 %vm2113_vm4, %v5033_v24 }
 0xb60   :  { %13223 = vmatprep.mubr.msk.f32.mxu1 %vm2113_vm4, %v5038_v48 }
 0xb63   :  { %13224 = vmatmul.mubr.msk.f32.gmra.mxu1 %vm2113_vm4, %v5041_v29 }
 0xb64   :  { %5513 = vmatprep.mubr.f32.mxu1 %v20466_v57 }
 0xc07   :  { %v13204_v22 = vpop.f32.mrf.mxu1 }
 0xc09   :  { %v5161_v8 = vpop.f32.mrf.mxu1 }
 0xc0a   :  { %12303 = vmatmul.mubr.msk.f32.vlgmr.msra.gmra.mxu0 %vm2113_vm4, %v5161_v8  ;;  %12319 = vmatmul.mubr.msk.f32.vlgmr.msra.gmra.mxu1 %vm2113_vm4, %v5161_v8 }
 0xc0b   :  { %5358 = vmatprep.mubr.f32.mxu0 %v20466_v57  ;;  %5519 = vmatprep.mubr.f32.mxu1 %v20466_v57  ;;  %v13207_v52 = vpop.f32.mrf.mxu1 }
 0xc0d   :  { %v5171_v51 = vpop.f32.mrf.mxu1 }
 0xc0e   :  { %12304 = vmatmul.mubr.msk.f32.gmra.mxu0 %vm2113_vm4, %v13204_v22  ;;  %12320 = vmatmul.mubr.msk.f32.gmra.mxu1 %vm2113_vm4, %v13204_v22 }
 0xc0f   :  { %5364 = vmatprep.mubr.f32.mxu0 %v20466_v57  ;;  %5525 = vmatprep.mubr.f32.mxu1 %v20466_v57  ;;  %v13210_v41 = vpop.f32.mrf.mxu1 }
 0xc11   :  { %v5181_v23 = vpop.f32.mrf.mxu1 }
 0xc12   :  { %12305 = vmatmul.mubr.msk.f32.gmra.mxu0 %vm2113_vm4, %v5171_v51  ;;  %12321 = vmatmul.mubr.msk.f32.gmra.mxu1 %vm2113_vm4, %v5171_v51 }
 0xc13   :  { %5370 = vmatprep.mubr.f32.mxu0 %v20466_v57  ;;  %5531 = vmatprep.mubr.f32.mxu1 %v20466_v57  ;;  %v13213_v14 = vpop.f32.mrf.mxu1 }
 0xc15   :  { %v5191_v50 = vpop.f32.mrf.mxu1 }
 0xc16   :  { %12306 = vmatmul.mubr.msk.f32.gmra.mxu0 %vm2113_vm4, %v13207_v52  ;;  %12322 = vmatmul.mubr.msk.f32.gmra.mxu1 %vm2113_vm4, %v13207_v52 }
 0xc17   :  { %5376 = vmatprep.mubr.f32.mxu0 %v20466_v57  ;;  %5537 = vmatprep.mubr.f32.mxu1 %v20466_v57  ;;  %v13216_v34 = vpop.f32.mrf.mxu1 }
 0xc19   :  { %v5201_v31 = vpop.f32.mrf.mxu1 }
 0xc1a   :  { %12307 = vmatmul.mubr.msk.f32.gmra.mxu0 %vm2113_vm4, %v5181_v23  ;;  %12323 = vmatmul.mubr.msk.f32.gmra.mxu1 %vm2113_vm4, %v5181_v23 }
 0xc1b   :  { %5382 = vmatprep.mubr.f32.mxu0 %v20466_v57  ;;  %5543 = vmatprep.mubr.f32.mxu1 %v20466_v57  ;;  %v13219_v4 = vpop.f32.mrf.mxu1 }
 0xc1d   :  { %v5211_v13 = vpop.f32.mrf.mxu1 }
 0xc1e   :  { %12308 = vmatmul.mubr.msk.f32.gmra.mxu0 %vm2113_vm4, %v13210_v41  ;;  %12324 = vmatmul.mubr.msk.f32.gmra.mxu1 %vm2113_vm4, %v13210_v41 }
 0xc1f   :  { %5388 = vmatprep.mubr.f32.mxu0 %v20466_v57  ;;  %5549 = vmatprep.mubr.f32.mxu1 %v20466_v57  ;;  %v13222_v35 = vpop.f32.mrf.mxu1 }
 0xc21   :  { %v5221_v30 = vpop.f32.mrf.mxu1 }
 0xc22   :  { %12309 = vmatmul.mubr.msk.f32.gmra.mxu0 %vm2113_vm4, %v5191_v50  ;;  %12325 = vmatmul.mubr.msk.f32.gmra.mxu1 %vm2113_vm4, %v5191_v50 }
 0xc23   :  { %5394 = vmatprep.mubr.f32.mxu0 %v20466_v57  ;;  %5555 = vmatprep.mubr.f32.mxu1 %v20466_v57  ;;  %v13225_v7 = vpop.f32.mrf.mxu1 }
 0xc25   :  { %v5231_v38 = vpop.f32.mrf.mxu1 }
 0xc26   :  { %12310 = vmatmul.mubr.msk.f32.gmra.mxu0 %vm2113_vm4, %v13213_v14  ;;  %12326 = vmatmul.mubr.msk.f32.gmra.mxu1 %vm2113_vm4, %v13213_v14 }
 0xc27   :  { %5400 = vmatprep.mubr.f32.mxu0 %v20466_v57  ;;  %5561 = vmatprep.mubr.f32.mxu1 %v20466_v57 }
 0xc2a   :  { %12311 = vmatmul.mubr.msk.f32.gmra.mxu0 %vm2113_vm4, %v5201_v31  ;;  %12327 = vmatmul.mubr.msk.f32.gmra.mxu1 %vm2113_vm4, %v5201_v31 }
 0xc2b   :  { %5406 = vmatprep.mubr.f32.mxu0 %v20466_v57  ;;  %5567 = vmatprep.mubr.f32.mxu1 %v20466_v57 }
 0xc2e   :  { %12312 = vmatmul.mubr.msk.f32.gmra.mxu0 %vm2113_vm4, %v13216_v34  ;;  %12328 = vmatmul.mubr.msk.f32.gmra.mxu1 %vm2113_vm4, %v13216_v34 }
 0xc2f   :  { %5412 = vmatprep.mubr.f32.mxu0 %v20466_v57  ;;  %5573 = vmatprep.mubr.f32.mxu1 %v20466_v57 }
 0xc32   :  { %12313 = vmatmul.mubr.msk.f32.gmra.mxu0 %vm2113_vm4, %v5211_v13  ;;  %12329 = vmatmul.mubr.msk.f32.gmra.mxu1 %vm2113_vm4, %v5211_v13 }
 0xc33   :  { %5418 = vmatprep.mubr.f32.mxu0 %v20466_v57  ;;  %5579 = vmatprep.mubr.f32.mxu1 %v20466_v57 }
 0xc36   :  { %12314 = vmatmul.mubr.msk.f32.gmra.mxu0 %vm2113_vm4, %v13219_v4  ;;  %12330 = vmatmul.mubr.msk.f32.gmra.mxu1 %vm2113_vm4, %v13219_v4 }
 0xc37   :  { %5424 = vmatprep.mubr.f32.mxu0 %v20466_v57  ;;  %5585 = vmatprep.mubr.f32.mxu1 %v20466_v57 }
 0xc3a   :  { %12315 = vmatmul.mubr.msk.f32.gmra.mxu0 %vm2113_vm4, %v5221_v30  ;;  %12331 = vmatmul.mubr.msk.f32.gmra.mxu1 %vm2113_vm4, %v5221_v30 }
 0xc3b   :  { %5430 = vmatprep.mubr.f32.mxu0 %v20466_v57  ;;  %5591 = vmatprep.mubr.f32.mxu1 %v20466_v57 }
 0xc3e   :  { %12316 = vmatmul.mubr.msk.f32.gmra.mxu0 %vm2113_vm4, %v13222_v35  ;;  %12332 = vmatmul.mubr.msk.f32.gmra.mxu1 %vm2113_vm4, %v13222_v35 }
 0xc3f   :  { %5436 = vmatprep.mubr.f32.mxu0 %v20466_v57  ;;  %5597 = vmatprep.mubr.f32.mxu1 %v20466_v57 }
 0xc42   :  { %12317 = vmatmul.mubr.msk.f32.gmra.mxu0 %vm2113_vm4, %v5231_v38  ;;  %12333 = vmatmul.mubr.msk.f32.gmra.mxu1 %vm2113_vm4, %v5231_v38 }
 0xc43   :  { %5442 = vmatprep.mubr.f32.mxu0 %v20466_v57  ;;  %5603 = vmatprep.mubr.f32.mxu1 %v20466_v57 }
 0xc46   :  { %12318 = vmatmul.mubr.msk.f32.gmra.mxu0 %vm2113_vm4, %v13225_v7  ;;  %12334 = vmatmul.mubr.msk.f32.gmra.mxu1 %vm2113_vm4, %v13225_v7 }
 0xc47   :  { %5740 = vmatprep.mubr.f32.mxu0 %v20466_v57  ;;  %5811 = vmatprep.mubr.f32.mxu1 %v20466_v57 }
 0xcca   :  { %v17207_v63 = vpop.f32.mrf.mxu0  ;;  %v17209_v5 = vpop.f32.mrf.mxu1 }
 0xccb   :  { %20483 = vst [vmem:[#allocation100_spill] sm:$0xff] %v17207_v63  ;;  %20484 = vst [vmem:[#allocation85_spill] sm:$0xff] %v17209_v5  ;;  %v17306_v5 = vld [vmem:[%s20353_s4 + $0x1e8] sm:$0xff] }
 0xccc   :  { %v17211_v3 = vpop.f32.mrf.mxu0  ;;  %v17213_v32 = vpop.f32.mrf.mxu1  ;;  %20490 = vst [vmem:[#allocation82_spill] sm:$0xff] %v17306_v5 }
 0xccd   :  { %20485 = vst [vmem:[#allocation52_spill] sm:$0xff] %v17211_v3  ;;  %20486 = vst [vmem:[#allocation84_spill] sm:$0xff] %v17213_v32  ;;  %v17312_v32 = vld [vmem:[%s20353_s4 + $0x1f8] sm:$0xff] }
 0xcce   :  { %v17215_v20 = vpop.f32.mrf.mxu0  ;;  %v17217_v54 = vpop.f32.mrf.mxu1  ;;  %20491 = vst [vmem:[#allocation49_spill] sm:$0xff] %v17312_v32 }
 0xccf   :  { %20487 = vst [vmem:[#allocation51_spill] sm:$0xff] %v17215_v20  ;;  %20488 = vst [vmem:[#allocation83_spill] sm:$0xff] %v17217_v54  ;;  %v17318_v54 = vld [vmem:[%s20353_s4 + $0x1e0] sm:$0xff] }
 0xcd0   :  { %v17219_v40 = vpop.f32.mrf.mxu0  ;;  %v17221_v45 = vpop.f32.mrf.mxu1 }
 0xcd1   :  { %20489 = vst [vmem:[#allocation50_spill] sm:$0xff] %v17221_v45  ;;  %v17324_v45 = vld [vmem:[%s20353_s4 + $0x1f0] sm:$0xff] }
 0xcd2   :  { %v17223_v53 = vpop.f32.mrf.mxu0  ;;  %v17225_v6 = vpop.f32.mrf.mxu1  ;;  %20492 = vst [vmem:[#allocation81_spill] sm:$0xff] %v17324_v45 }
 0xcd4   :  { %v17227_v19 = vpop.f32.mrf.mxu0  ;;  %v17229_v2 = vpop.f32.mrf.mxu1 }
 0xcd6   :  { %v17231_v21 = vpop.f32.mrf.mxu0  ;;  %v17233_v60 = vpop.f32.mrf.mxu1 }
 0xcd8   :  { %v17235_v12 = vpop.f32.mrf.mxu0  ;;  %v17237_v16 = vpop.f32.mrf.mxu1 }
 0xcda   :  { %v17239_v11 = vpop.f32.mrf.mxu0  ;;  %v17241_v24 = vpop.f32.mrf.mxu1 }
 0xcdc   :  { %v17243_v18 = vpop.f32.mrf.mxu0  ;;  %v17245_v15 = vpop.f32.mrf.mxu1 }
 0xcde   :  { %v17247_v55 = vpop.f32.mrf.mxu0  ;;  %v17249_v28 = vpop.f32.mrf.mxu1 }
 0xce0   :  { %v17251_v48 = vpop.f32.mrf.mxu0  ;;  %v17253_v27 = vpop.f32.mrf.mxu1 }
 0xce2   :  { %v17255_v58 = vpop.f32.mrf.mxu0  ;;  %v17257_v46 = vpop.f32.mrf.mxu1 }
 0xce4   :  { %v17259_v10 = vpop.f32.mrf.mxu0  ;;  %v17261_v29 = vpop.f32.mrf.mxu1 }
 0xce6   :  { %v17263_v44 = vpop.f32.mrf.mxu0  ;;  %v17265_v56 = vpop.f32.mrf.mxu1 }
 0xce8   :  { %v17267_v39 = vpop.f32.mrf.mxu0  ;;  %v17269_v36 = vpop.f32.mrf.mxu1 }
 0xcea   :  { %v17271_v25 = vpop.f32.mrf.mxu0  ;;  %v17273_v22 = vpop.f32.mrf.mxu1 }
 0xcec   :  { %v17275_v8 = vpop.f32.mrf.mxu0  ;;  %v17277_v52 = vpop.f32.mrf.mxu1 }
 0xcee   :  { %v17279_v51 = vpop.f32.mrf.mxu0  ;;  %v17281_v41 = vpop.f32.mrf.mxu1 }
 0xcf0   :  { %v17283_v23 = vpop.f32.mrf.mxu0  ;;  %v17285_v14 = vpop.f32.mrf.mxu1 }
 0xcf2   :  { %v17287_v50 = vpop.f32.mrf.mxu0  ;;  %v17289_v34 = vpop.f32.mrf.mxu1 }
 0xcf4   :  { %v17291_v31 = vpop.f32.mrf.mxu0  ;;  %v17293_v4 = vpop.f32.mrf.mxu1 }
 0xcf6   :  { %v17295_v13 = vpop.f32.mrf.mxu0  ;;  %v17297_v35 = vpop.f32.mrf.mxu1 }
 0xcf8   :  { %v17299_v30 = vpop.f32.mrf.mxu0  ;;  %v17301_v7 = vpop.f32.mrf.mxu1 }
 0xcfa   :  { %v5426_v38 = vpop.f32.mrf.mxu0  ;;  %v5587_v37 = vpop.f32.mrf.mxu1 }
 0xcfc   :  { %v5428_v9 = vpop.f32.mrf.mxu0  ;;  %v5589_v62 = vpop.f32.mrf.mxu1 }
 0xcfe   :  { %v5432_v61 = vpop.f32.mrf.mxu0  ;;  %v5593_v26 = vpop.f32.mrf.mxu1 }
 0xd00   :  { %v5434_v42 = vpop.f32.mrf.mxu0  ;;  %v5595_v47 = vpop.f32.mrf.mxu1 }
 0xd02   :  { %v5438_v33 = vpop.f32.mrf.mxu0  ;;  %v5599_v1 = vpop.f32.mrf.mxu1 }
 0xd04   :  { %v5440_v43 = vpop.f32.mrf.mxu0  ;;  %v5601_v49 = vpop.f32.mrf.mxu1 }
 0xd06   :  { %v5444_v59 = vpop.f32.mrf.mxu0  ;;  %v5605_v17 = vpop.f32.mrf.mxu1 }
 0xd07   :  { %v5670_v20 = vmul.f32 %v17318_v54, %v5444_v59 }
 0xd08   :  { %v5446_v0 = vpop.f32.mrf.mxu0  ;;  %v5607_v57 = vpop.f32.mrf.mxu1 }
 0xd09   :  { %v5671_v63 = vmul.f32 %v17306_v5, %v5446_v0  ;;  %v5673_v3 = vmul.f32 %v17312_v32, %v5607_v57  ;;  %v5672_v0 = vmul.f32 %v17324_v45, %v5605_v17  ;;  %v17330_v5 = vld [vmem:[%s20353_s4 + $0x1c8] sm:$0xff]  ;;  %v17336_v32 = vld [vmem:[%s20353_s4 + $0x1d8] sm:$0xff]  ;;  %v17342_v17 = vld [vmem:[%s20353_s4 + $0x1c0] sm:$0xff] }
 0xd0a   :  { %20493 = vst [vmem:[#allocation48_spill] sm:$0xff] %v17330_v5  ;;  %v5667_v57 = vmul.f32 %v17330_v5, %v5440_v43  ;;  %v5669_v59 = vmul.f32 %v17336_v32, %v5601_v49  ;;  %v5666_v45 = vmul.f32 %v17342_v17, %v5438_v33  ;;  %v17348_v43 = vld [vmem:[%s20353_s4 + $0x1d0] sm:$0xff]  ;;  %v17354_v49 = vld [vmem:[%s20353_s4 + $0x1a8] sm:$0xff]  ;;  %v17360_v33 = vld [vmem:[%s20353_s4 + $0x1b8] sm:$0xff] }
 0xd0b   :  { %5676 = vmatprep.subr.mxu0 %v5671_v63  ;;  %5747 = vmatprep.subr.mxu1 %v5673_v3  ;;  %v5668_v5 = vmul.f32 %v17348_v43, %v5599_v1  ;;  %v5663_v63 = vmul.f32 %v17354_v49, %v5434_v42  ;;  %v5665_v3 = vmul.f32 %v17360_v33, %v5595_v47  ;;  %v17366_v1 = vld [vmem:[%s20353_s4 + $0x1a0] sm:$0xff]  ;;  %v17372_v42 = vld [vmem:[%s20353_s4 + $0x1b0] sm:$0xff]  ;;  %v17378_v47 = vld [vmem:[%s20353_s4 + $0x188] sm:$0xff] }
 0xd0c   :  { %5677 = vmatpush1.msra.mxu0 %v5670_v20  ;;  %5748 = vmatpush1.msra.mxu1 %v5672_v0  ;;  %v5662_v20 = vmul.f32 %v17366_v1, %v5432_v61  ;;  %v5664_v0 = vmul.f32 %v17372_v42, %v5593_v26  ;;  %v17384_v61 = vld [vmem:[%s20353_s4 + $0x198] sm:$0xff]  ;;  %v17390_v26 = vld [vmem:[%s20353_s4 + $0x180] sm:$0xff] }
 0xd0d   :  { %5678 = vmatprep.subr.mxu0 %v5667_v57  ;;  %5749 = vmatprep.subr.mxu1 %v5669_v59  ;;  %v5659_v57 = vmul.f32 %v17378_v47, %v5428_v9  ;;  %v5661_v59 = vmul.f32 %v17384_v61, %v5589_v62  ;;  %v17396_v9 = vld [vmem:[%s20353_s4 + $0x190] sm:$0xff]  ;;  %v17402_v62 = vld [vmem:[%s20353_s4 + $0x168] sm:$0xff] }
 0xd0e   :  { %5679 = vmatpush1.msra.mxu0 %v5666_v45  ;;  %5750 = vmatpush1.msra.mxu1 %v5668_v5  ;;  %v5658_v5 = vmul.f32 %v17390_v26, %v5426_v38  ;;  %v5660_v45 = vmul.f32 %v17396_v9, %v5587_v37  ;;  %v17409_v38 = vld [vmem:[%s20353_s4 + $0x178] sm:$0xff]  ;;  %v17416_v37 = vld [vmem:[%s20353_s4 + $0x160] sm:$0xff] }
 0xd0f   :  { %5680 = vmatprep.subr.mxu0 %v5663_v63  ;;  %5751 = vmatprep.subr.mxu1 %v5665_v3  ;;  %v5655_v63 = vmul.f32 %v17402_v62, %v17299_v30  ;;  %v5657_v3 = vmul.f32 %v17409_v38, %v17301_v7  ;;  %v17423_v30 = vld [vmem:[%s20353_s4 + $0x170] sm:$0xff]  ;;  %v17430_v7 = vld [vmem:[%s20353_s4 + $0x148] sm:$0xff] }
 0xd10   :  { %5681 = vmatpush1.msra.mxu0 %v5662_v20  ;;  %5752 = vmatpush1.msra.mxu1 %v5664_v0  ;;  %v5654_v20 = vmul.f32 %v17416_v37, %v17295_v13  ;;  %v5656_v0 = vmul.f32 %v17423_v30, %v17297_v35  ;;  %v17437_v13 = vld [vmem:[%s20353_s4 + $0x158] sm:$0xff]  ;;  %v17444_v35 = vld [vmem:[%s20353_s4 + $0x140] sm:$0xff] }
 0xd11   :  { %5682 = vmatprep.subr.mxu0 %v5659_v57  ;;  %5753 = vmatprep.subr.mxu1 %v5661_v59  ;;  %v5651_v57 = vmul.f32 %v17430_v7, %v17291_v31  ;;  %v5653_v59 = vmul.f32 %v17437_v13, %v17293_v4  ;;  %v17451_v31 = vld [vmem:[%s20353_s4 + $0x150] sm:$0xff]  ;;  %v17458_v4 = vld [vmem:[%s20353_s4 + $0x128] sm:$0xff] }
 0xd12   :  { %5683 = vmatpush1.msra.mxu0 %v5658_v5  ;;  %5754 = vmatpush1.msra.mxu1 %v5660_v45  ;;  %v5650_v5 = vmul.f32 %v17444_v35, %v17287_v50  ;;  %v5652_v45 = vmul.f32 %v17451_v31, %v17289_v34  ;;  %v17465_v50 = vld [vmem:[%s20353_s4 + $0x138] sm:$0xff]  ;;  %v17472_v34 = vld [vmem:[%s20353_s4 + $0x120] sm:$0xff] }
 0xd13   :  { %5684 = vmatprep.subr.mxu0 %v5655_v63  ;;  %5755 = vmatprep.subr.mxu1 %v5657_v3  ;;  %v5647_v63 = vmul.f32 %v17458_v4, %v17283_v23  ;;  %v5649_v3 = vmul.f32 %v17465_v50, %v17285_v14  ;;  %v17479_v23 = vld [vmem:[%s20353_s4 + $0x130] sm:$0xff]  ;;  %v17486_v14 = vld [vmem:[%s20353_s4 + $0x108] sm:$0xff] }
 0xd14   :  { %5685 = vmatpush1.msra.mxu0 %v5654_v20  ;;  %5756 = vmatpush1.msra.mxu1 %v5656_v0  ;;  %v5646_v20 = vmul.f32 %v17472_v34, %v17279_v51  ;;  %v5648_v0 = vmul.f32 %v17479_v23, %v17281_v41  ;;  %20494 = vst [vmem:[#allocation80_spill] sm:$0xff] %v17486_v14  ;;  %v17493_v51 = vld [vmem:[%s20353_s4 + $0x118] sm:$0xff]  ;;  %v17500_v41 = vld [vmem:[%s20353_s4 + $0x100] sm:$0xff] }
 0xd15   :  { %5686 = vmatprep.subr.mxu0 %v5651_v57  ;;  %5757 = vmatprep.subr.mxu1 %v5653_v59  ;;  %v5643_v57 = vmul.f32 %v17486_v14, %v17275_v8  ;;  %20495 = vst [vmem:[#allocation47_spill] sm:$0xff] %v17493_v51  ;;  %v5645_v59 = vmul.f32 %v17493_v51, %v17277_v52  ;;  %20496 = vst [vmem:[#allocation79_spill] sm:$0xff] %v17500_v41  ;;  %v17507_v8 = vld [vmem:[%s20353_s4 + $0x110] sm:$0xff]  ;;  %v17514_v52 = vld [vmem:[%s20353_s4 + $0xe8] sm:$0xff] }
 0xd16   :  { %5687 = vmatpush1.msra.mxu0 %v5650_v5  ;;  %5758 = vmatpush1.msra.mxu1 %v5652_v45  ;;  %v5642_v5 = vmul.f32 %v17500_v41, %v17271_v25  ;;  %20497 = vst [vmem:[#allocation46_spill] sm:$0xff] %v17507_v8  ;;  %v5644_v45 = vmul.f32 %v17507_v8, %v17273_v22  ;;  %20498 = vst [vmem:[#allocation78_spill] sm:$0xff] %v17514_v52  ;;  %v17521_v25 = vld [vmem:[%s20353_s4 + $0xf8] sm:$0xff]  ;;  %v17528_v22 = vld [vmem:[%s20353_s4 + $0xe0] sm:$0xff] }
 0xd17   :  { %5688 = vmatprep.subr.mxu0 %v5647_v63  ;;  %5759 = vmatprep.subr.mxu1 %v5649_v3  ;;  %v5639_v63 = vmul.f32 %v17514_v52, %v17267_v39  ;;  %20499 = vst [vmem:[#allocation45_spill] sm:$0xff] %v17521_v25  ;;  %v5641_v3 = vmul.f32 %v17521_v25, %v17269_v36  ;;  %20500 = vst [vmem:[#allocation77_spill] sm:$0xff] %v17528_v22  ;;  %v17535_v39 = vld [vmem:[%s20353_s4 + $0xf0] sm:$0xff]  ;;  %v17542_v36 = vld [vmem:[%s20353_s4 + $0xc8] sm:$0xff] }
 0xd18   :  { %5689 = vmatpush1.msra.mxu0 %v5646_v20  ;;  %5760 = vmatpush1.msra.mxu1 %v5648_v0  ;;  %v5638_v20 = vmul.f32 %v17528_v22, %v17263_v44  ;;  %20501 = vst [vmem:[#allocation44_spill] sm:$0xff] %v17535_v39  ;;  %v5640_v0 = vmul.f32 %v17535_v39, %v17265_v56  ;;  %20502 = vst [vmem:[#allocation76_spill] sm:$0xff] %v17542_v36  ;;  %v17549_v44 = vld [vmem:[%s20353_s4 + $0xd8] sm:$0xff]  ;;  %v17556_v56 = vld [vmem:[%s20353_s4 + $0xc0] sm:$0xff] }
 0xd19   :  { %5690 = vmatprep.subr.mxu0 %v5643_v57  ;;  %5761 = vmatprep.subr.mxu1 %v5645_v59  ;;  %v5635_v57 = vmul.f32 %v17542_v36, %v17259_v10  ;;  %20503 = vst [vmem:[#allocation43_spill] sm:$0xff] %v17549_v44  ;;  %v5637_v59 = vmul.f32 %v17549_v44, %v17261_v29  ;;  %20504 = vst [vmem:[#allocation75_spill] sm:$0xff] %v17556_v56  ;;  %v17563_v10 = vld [vmem:[%s20353_s4 + $0xd0] sm:$0xff]  ;;  %v17570_v29 = vld [vmem:[%s20353_s4 + $0xa8] sm:$0xff] }
 0xd1a   :  { %5691 = vmatpush1.msra.mxu0 %v5642_v5  ;;  %5762 = vmatpush1.msra.mxu1 %v5644_v45  ;;  %v5634_v5 = vmul.f32 %v17556_v56, %v17255_v58  ;;  %20505 = vst [vmem:[#allocation42_spill] sm:$0xff] %v17563_v10  ;;  %v5636_v45 = vmul.f32 %v17563_v10, %v17257_v46  ;;  %20506 = vst [vmem:[#allocation74_spill] sm:$0xff] %v17570_v29  ;;  %v17577_v58 = vld [vmem:[%s20353_s4 + $0xb8] sm:$0xff]  ;;  %v17584_v46 = vld [vmem:[%s20353_s4 + $0xa0] sm:$0xff] }
 0xd1b   :  { %5692 = vmatprep.subr.mxu0 %v5639_v63  ;;  %5763 = vmatprep.subr.mxu1 %v5641_v3  ;;  %v5631_v63 = vmul.f32 %v17570_v29, %v17251_v48  ;;  %20507 = vst [vmem:[#allocation41_spill] sm:$0xff] %v17577_v58  ;;  %v5633_v3 = vmul.f32 %v17577_v58, %v17253_v27  ;;  %20508 = vst [vmem:[#allocation73_spill] sm:$0xff] %v17584_v46  ;;  %v17591_v48 = vld [vmem:[%s20353_s4 + $0xb0] sm:$0xff]  ;;  %v17598_v27 = vld [vmem:[%s20353_s4 + $0x88] sm:$0xff] }
 0xd1c   :  { %5693 = vmatpush1.msra.mxu0 %v5638_v20  ;;  %5764 = vmatpush1.msra.mxu1 %v5640_v0  ;;  %v5630_v20 = vmul.f32 %v17584_v46, %v17247_v55  ;;  %20509 = vst [vmem:[#allocation40_spill] sm:$0xff] %v17591_v48  ;;  %v5632_v0 = vmul.f32 %v17591_v48, %v17249_v28  ;;  %20510 = vst [vmem:[#allocation72_spill] sm:$0xff] %v17598_v27  ;;  %v17605_v55 = vld [vmem:[%s20353_s4 + $0x98] sm:$0xff]  ;;  %v17612_v28 = vld [vmem:[%s20353_s4 + $0x80] sm:$0xff] }
 0xd1d   :  { %5694 = vmatprep.subr.mxu0 %v5635_v57  ;;  %5765 = vmatprep.subr.mxu1 %v5637_v59  ;;  %v5627_v57 = vmul.f32 %v17598_v27, %v17243_v18  ;;  %20511 = vst [vmem:[#allocation39_spill] sm:$0xff] %v17605_v55  ;;  %v5629_v59 = vmul.f32 %v17605_v55, %v17245_v15  ;;  %20512 = vst [vmem:[#allocation71_spill] sm:$0xff] %v17612_v28  ;;  %v17619_v18 = vld [vmem:[%s20353_s4 + $0x90] sm:$0xff]  ;;  %v17626_v15 = vld [vmem:[%s20353_s4 + $0x68] sm:$0xff] }
 0xd1e   :  { %5695 = vmatpush1.msra.mxu0 %v5634_v5  ;;  %5766 = vmatpush1.msra.mxu1 %v5636_v45  ;;  %v5626_v5 = vmul.f32 %v17612_v28, %v17239_v11  ;;  %20513 = vst [vmem:[#allocation38_spill] sm:$0xff] %v17619_v18  ;;  %v5628_v45 = vmul.f32 %v17619_v18, %v17241_v24  ;;  %20514 = vst [vmem:[#allocation70_spill] sm:$0xff] %v17626_v15  ;;  %v17633_v11 = vld [vmem:[%s20353_s4 + $0x78] sm:$0xff]  ;;  %v17640_v24 = vld [vmem:[%s20353_s4 + $0x60] sm:$0xff] }
 0xd1f   :  { %5696 = vmatprep.subr.mxu0 %v5631_v63  ;;  %5767 = vmatprep.subr.mxu1 %v5633_v3  ;;  %v5623_v63 = vmul.f32 %v17626_v15, %v17235_v12  ;;  %20515 = vst [vmem:[#allocation37_spill] sm:$0xff] %v17633_v11  ;;  %v5625_v3 = vmul.f32 %v17633_v11, %v17237_v16  ;;  %20516 = vst [vmem:[#allocation69_spill] sm:$0xff] %v17640_v24  ;;  %v17647_v12 = vld [vmem:[%s20353_s4 + $0x70] sm:$0xff]  ;;  %v17654_v16 = vld [vmem:[%s20353_s4 + $0x48] sm:$0xff] }
 0xd20   :  { %5697 = vmatpush1.msra.mxu0 %v5630_v20  ;;  %5768 = vmatpush1.msra.mxu1 %v5632_v0  ;;  %v5622_v20 = vmul.f32 %v17640_v24, %v17231_v21  ;;  %20517 = vst [vmem:[#allocation36_spill] sm:$0xff] %v17647_v12  ;;  %v5624_v0 = vmul.f32 %v17647_v12, %v17233_v60  ;;  %20518 = vst [vmem:[#allocation68_spill] sm:$0xff] %v17654_v16  ;;  %v17661_v21 = vld [vmem:[%s20353_s4 + $0x58] sm:$0xff]  ;;  %v17668_v60 = vld [vmem:[%s20353_s4 + $0x40] sm:$0xff] }
 0xd21   :  { %5698 = vmatprep.subr.mxu0 %v5627_v57  ;;  %5769 = vmatprep.subr.mxu1 %v5629_v59  ;;  %v5619_v57 = vmul.f32 %v17654_v16, %v17227_v19  ;;  %20519 = vst [vmem:[#allocation35_spill] sm:$0xff] %v17661_v21  ;;  %v5621_v59 = vmul.f32 %v17661_v21, %v17229_v2  ;;  %20520 = vst [vmem:[#allocation67_spill] sm:$0xff] %v17668_v60  ;;  %v17675_v19 = vld [vmem:[%s20353_s4 + $0x50] sm:$0xff]  ;;  %v17682_v2 = vld [vmem:[%s20353_s4 + $0x28] sm:$0xff] }
 0xd22   :  { %5699 = vmatpush1.msra.mxu0 %v5626_v5  ;;  %5770 = vmatpush1.msra.mxu1 %v5628_v45  ;;  %v5618_v5 = vmul.f32 %v17668_v60, %v17223_v53  ;;  %20521 = vst [vmem:[#allocation34_spill] sm:$0xff] %v17675_v19  ;;  %v5620_v45 = vmul.f32 %v17675_v19, %v17225_v6  ;;  %20522 = vst [vmem:[#allocation66_spill] sm:$0xff] %v17682_v2  ;;  %v17689_v53 = vld [vmem:[%s20353_s4 + $0x38] sm:$0xff]  ;;  %v17696_v6 = vld [vmem:[%s20353_s4 + $0x20] sm:$0xff] }
 0xd23   :  { %5700 = vmatprep.subr.mxu0 %v5623_v63  ;;  %5771 = vmatprep.subr.mxu1 %v5625_v3  ;;  %v5615_v63 = vmul.f32 %v17682_v2, %v17219_v40  ;;  %20523 = vst [vmem:[#allocation33_spill] sm:$0xff] %v17689_v53  ;;  %v20524_v3 = vld [vmem:[#allocation50_spill] sm:$0xff]  ;;  %20525 = vst [vmem:[#allocation65_spill] sm:$0xff] %v17696_v6  ;;  %v17703_v40 = vld [vmem:[%s20353_s4 + $0x30] sm:$0xff] }
 0xd24   :  { %5701 = vmatpush1.msra.mxu0 %v5622_v20  ;;  %5772 = vmatpush1.msra.mxu1 %v5624_v0  ;;  %v5617_v60 = vmul.f32 %v17689_v53, %v20524_v3  ;;  %v20526_v20 = vld [vmem:[#allocation51_spill] sm:$0xff]  ;;  %20527 = vst [vmem:[#allocation32_spill] sm:$0xff] %v17703_v40  ;;  %v20591_v25 = vld [vmem:[#allocation82_spill] sm:$0xff]  ;;  %v20592_v52 = vld [vmem:[#allocation49_spill] sm:$0xff] }
 0xd25   :  { %5702 = vmatprep.subr.mxu0 %v5619_v57  ;;  %5773 = vmatprep.subr.mxu1 %v5621_v59  ;;  %v5614_v0 = vmul.f32 %v17696_v6, %v20526_v20  ;;  %v20528_v2 = vld [vmem:[#allocation83_spill] sm:$0xff]  ;;  %v17710_v57 = vld [vmem:[%s20353_s4 + $0x8] sm:$0xff]  ;;  %v17717_v20 = vld [vmem:[%s20353_s4 + $0x18] sm:$0xff] }
 0xd26   :  { %v5616_v19 = vmul.f32 %v17703_v40, %v20528_v2  ;;  %5703 = vmatpush1.msra.mxu0 %v5618_v5  ;;  %5774 = vmatpush1.msra.mxu1 %v5620_v45  ;;  %20529 = vst [vmem:[#allocation64_spill] sm:$0xff] %v17710_v57  ;;  %v20530_v59 = vld [vmem:[#allocation52_spill] sm:$0xff]  ;;  %20531 = vst [vmem:[#allocation31_spill] sm:$0xff] %v17717_v20  ;;  %v17724_v5 = vld [vmem:[%s20353_s4] sm:$0xff] }
 0xd27   :  { %v5611_v3 = vmul.f32 %v17710_v57, %v20530_v59  ;;  %v20532_v6 = vld [vmem:[#allocation84_spill] sm:$0xff]  ;;  %5704 = vmatprep.subr.mxu0 %v5615_v63  ;;  %5775 = vmatprep.subr.mxu1 %v5617_v60  ;;  %20533 = vst [vmem:[#allocation63_spill] sm:$0xff] %v17724_v5  ;;  %v17731_v59 = vld [vmem:[%s20353_s4 + $0x10] sm:$0xff]  ;;  %v20537_v63 = vld [vmem:[#allocation22_spill] sm:$0xff] }
 0xd28   :  { %v5613_v53 = vmul.f32 %v17717_v20, %v20532_v6  ;;  %v20534_v45 = vld [vmem:[#allocation100_spill] sm:$0xff]  ;;  %20535 = vst [vmem:[#allocation30_spill] sm:$0xff] %v17731_v59  ;;  %v20536_v57 = vld [vmem:[#allocation85_spill] sm:$0xff]  ;;  %5705 = vmatpush1.msra.mxu0 %v5614_v0  ;;  %5776 = vmatpush1.msra.mxu1 %v5616_v19  ;;  %v20542_v0 = vld [vmem:[#allocation14_spill] sm:$0xff] }
 0xd29   :  { %v5610_v2 = vmul.f32 %v17724_v5, %v20534_v45  ;;  %v5612_v40 = vmul.f32 %v17731_v59, %v20536_v57  ;;  %v12335_v60 = vld [vmem:[%s20126_s11 + $0x10] sm:$0xff]  ;;  %5706 = vmatprep.subr.mxu0 %v5611_v3  ;;  %v20538_v6 = vld [vmem:[#allocation20_spill] sm:$0xff]  ;;  %v20539_v5 = vmov 0.0   ;;  %v20545_v57 = vld [vmem:[#allocation15_spill] sm:$0xff] }
 0xd2a   :  { %5777 = vmatprep.subr.mxu1 %v5613_v53  ;;  %v1970_v45 = vadd.f32 %v20538_v6, %v20537_v63  ;;  %v20540_v20 = vld [vmem:[#allocation16_spill] sm:$0xff]  ;;  %v20541_v19 = vld [vmem:[#allocation17_spill] sm:$0xff] }
 0xd2b   :  { %5707 = vmatpush1.msra.mxu0 %v5610_v2  ;;  %5778 = vmatpush1.msra.mxu1 %v5612_v40  ;;  %v20543_v53 = vld [vmem:[#allocation89_spill] sm:$0xff]  ;;  %v20544_v40 = vld [vmem:[#allocation19_spill] sm:$0xff]  ;;  %v13750_v2 = vld [vmem:[%s20273_s10 + $0x308] ss:$16 sps:$4 sm:$0xff]  }
 0xd2c   :  { %5741 = vmatmul.mubr.f32.vlgmr.msra.gmra.mxu0 %v12335_v60  ;;  %5812 = vmatmul.mubr.f32.vlgmr.msra.gmra.mxu1 %v12335_v60  ;;  %v13747_v3 = vld [vmem:[%s20273_s10 + $0x300] ss:$16 sps:$4 sm:$0xff]   ;;  %v13752_v60 = vld [vmem:[%s20273_s10 + $0x30c] ss:$16 sps:$4 sm:$0xff]   ;;  %v13755_v63 = vld [vmem:[%s20273_s10 + $0x324] ss:$16 sps:$4 sm:$0xff]  }
 0xd2d   :  { %13226 = vmatprep.subr.mxu0 %v20539_v5  ;;  %12400 = vmatprep.subr.msk.bf16.mxu1 %vm1042_vm2, %v20540_v20  ;;  %v13749_v20 = vld [vmem:[%s20273_s10 + $0x304] ss:$16 sps:$4 sm:$0xff]   ;;  %v13756_v6 = vld [vmem:[%s20273_s10 + $0x32c] ss:$16 sps:$4 sm:$0xff]  }
 0xd2e   :  { %13227 = vmatpush3.xpose.msra.mxu0 %v1970_v45  ;;  %6225 = vmatpush1.bf16.xpose.msra.mxu1 %v20541_v19  ;;  %v20546_v45 = vld [vmem:[#allocation90_spill] sm:$0xff]  ;;  %v13753_v19 = vld [vmem:[%s20273_s10 + $0x320] ss:$16 sps:$4 sm:$0xff]  }
 0xd2f   :  { %6127 = vmatprep.subr.bf16.mxu0 %v20542_v0  ;;  %13228 = vmatprep.mubr.msk.f32.mxu0 %vm14761_vm3, %v20539_v5  ;;  %v13758_v0 = vld [vmem:[%s20273_s10 + $0x328] ss:$16 sps:$4 sm:$0xff]  }
 0xd30   :  { %6581 = vmatprep.subr.mxu1 %v20543_v53  ;;  %12401 = vmatprep.mubr.msk.bf16.mxu1 %vm1042_vm2, %v13752_v60  ;;  %v13761_v53 = vld [vmem:[%s20273_s10 + $0x344] ss:$16 sps:$4 sm:$0xff]   ;;  %v20547_v60 = vld [vmem:[#allocation88_spill] sm:$0xff] }
 0xd31   :  { %13229 = vmatmul.mubr.f32.vlgmr.msra.gmra.mxu0 %v20544_v40  ;;  %v13762_v40 = vld [vmem:[%s20273_s10 + $0x34c] ss:$16 sps:$4 sm:$0xff]  }
 0xd32   :  { %6128 = vmatpush1.bf16.xpose.msra.mxu0 %v20545_v57  ;;  %6145 = vmatprep.mubr.bf16.mxu0 %v13749_v20  ;;  %v13759_v57 = vld [vmem:[%s20273_s10 + $0x340] ss:$16 sps:$4 sm:$0xff]  }
 0xd35   :  { %6243 = vmatmul.mubr.bf16.vlgmr.msra.gmra.mxu1 %v13750_v2 }
 0xd36   :  { %12402 = vmatprep.mubr.msk.bf16.mxu1 %vm1042_vm2, %v13756_v6  ;;  %6582 = vmatpush1.msra.mxu1 %v20546_v45  ;;  %v20549_v6 = vld [vmem:[#allocation98_spill] sm:$0xff] }
 0xd39   :  { %6146 = vmatmul.mubr.bf16.vlgmr.msra.gmra.mxu0 %v13747_v3  ;;  %v13764_v3 = vld [vmem:[%s20273_s10 + $0x348] ss:$16 sps:$4 sm:$0xff]  }
 0xd3a   :  { %6153 = vmatprep.mubr.bf16.mxu0 %v13755_v63 }
 0xd3d   :  { %6251 = vmatmul.mubr.bf16.gmra.mxu1 %v13758_v0 }
 0xd3e   :  { %12403 = vmatprep.mubr.msk.bf16.mxu1 %vm1042_vm2, %v13762_v40 }
 0xd41   :  { %6154 = vmatmul.mubr.bf16.gmra.mxu0 %v13753_v19 }
 0xd42   :  { %6161 = vmatprep.mubr.bf16.mxu0 %v13761_v53 }
 0xd45   :  { %6259 = vmatmul.mubr.bf16.gmra.mxu1 %v13764_v3  ;;  %v13768_v3 = vld [vmem:[%s20273_s10 + $0x36c] ss:$16 sps:$4 sm:$0xff]  }
 0xd46   :  { %12404 = vmatprep.mubr.msk.bf16.mxu1 %vm1042_vm2, %v13768_v3  ;;  %v13777_v3 = vld [vmem:[%s20273_s10 + $0x3a0] ss:$16 sps:$4 sm:$0xff]  }
 0xd49   :  { %6162 = vmatmul.mubr.bf16.gmra.mxu0 %v13759_v57  ;;  %v13767_v57 = vld [vmem:[%s20273_s10 + $0x364] ss:$16 sps:$4 sm:$0xff]  }
 0xd4a   :  { %6169 = vmatprep.mubr.bf16.mxu0 %v13767_v57  ;;  %v13780_v57 = vld [vmem:[%s20273_s10 + $0x3ac] ss:$16 sps:$4 sm:$0xff]  }
 0xdec   :  { %v5742_v20 = vpop.f32.mrf.mxu0  ;;  %v5813_v2 = vpop.f32.mrf.mxu1 }
 0xded   :  { %v17791_v63 = vadd.f32 %v5742_v20, %v20547_v60  ;;  %v17794_v45 = vadd.f32 %v5813_v2, %v20549_v6  ;;  %v13765_v20 = vld [vmem:[%s20273_s10 + $0x360] ss:$16 sps:$4 sm:$0xff]   ;;  %v13770_v2 = vld [vmem:[%s20273_s10 + $0x368] ss:$16 sps:$4 sm:$0xff]   ;;  %v13774_v60 = vld [vmem:[%s20273_s10 + $0x38c] ss:$16 sps:$4 sm:$0xff]  }
 0xdee   :  { %v17796_v19 = vpop.f32.mrf.mxu0  ;;  %6170 = vmatmul.mubr.bf16.gmra.mxu0 %v13765_v20  ;;  %6267 = vmatmul.mubr.bf16.gmra.mxu1 %v13770_v2  ;;  %v13771_v6 = vld [vmem:[%s20273_s10 + $0x380] ss:$16 sps:$4 sm:$0xff]   ;;  %v13782_v20 = vld [vmem:[%s20273_s10 + $0x3a8] ss:$16 sps:$4 sm:$0xff]   ;;  %v13785_v2 = vld [vmem:[%s20273_s10 + $0x3c4] ss:$16 sps:$4 sm:$0xff]  }
 0xdef   :  { %20548 = vst [vmem:[#allocation101_spill] sm:$0xff] %v17791_v63  ;;  %20550 = vst [vmem:[#allocation62_spill] sm:$0xff] %v17794_v45  ;;  %12405 = vmatprep.mubr.msk.bf16.mxu1 %vm1042_vm2, %v13774_v60  ;;  %v13783_v60 = vld [vmem:[%s20273_s10 + $0x3c0] ss:$16 sps:$4 sm:$0xff]  }
 0xdf0   :  { %20551 = vst [vmem:[#allocation102_spill] sm:$0xff] %v17796_v19 }
 0xdf1   :  { %v5888_v0 = vpop.f32.mrf.mxu0 }
 0xdf2   :  { %v5892_v53 = vmul.f32 0.1, %v5888_v0  ;;  %v13776_v0 = vld [vmem:[%s20273_s10 + $0x388] ss:$16 sps:$4 sm:$0xff]  }
 0xdf3   :  { %v13230_v40 = vpop.f32.mrf.mxu0 }
 0xdf4   :  { %v5893_v59 = vsel %vm2113_vm4, %v5892_v53, -inf  ;;  %v13779_v40 = vld [vmem:[%s20273_s10 + $0x3a4] ss:$16 sps:$4 sm:$0xff]  }
 0xdf5   :  { %5894 = vmax.xlane.f32.xlu0 %v5893_v59  ;;  %v13773_v59 = vld [vmem:[%s20273_s10 + $0x384] ss:$16 sps:$4 sm:$0xff]  }
 0xdf6   :  { %6177 = vmatprep.mubr.bf16.mxu0 %v13773_v59  ;;  %6275 = vmatmul.mubr.bf16.gmra.mxu1 %v13776_v0  ;;  %v13786_v59 = vld [vmem:[%s20273_s10 + $0x3cc] ss:$16 sps:$4 sm:$0xff]   ;;  %v13791_v0 = vld [vmem:[%s20273_s10 + $0x3e4] ss:$16 sps:$4 sm:$0xff]  }
 0xdf7   :  { %6178 = vmatmul.mubr.bf16.gmra.mxu0 %v13771_v6  ;;  %12406 = vmatprep.mubr.msk.bf16.mxu1 %vm1042_vm2, %v13780_v57  ;;  %v13788_v6 = vld [vmem:[%s20273_s10 + $0x3c8] ss:$16 sps:$4 sm:$0xff]   ;;  %v13789_v57 = vld [vmem:[%s20273_s10 + $0x3e0] ss:$16 sps:$4 sm:$0xff]  }
 0xdf8   :  { %6185 = vmatprep.mubr.bf16.mxu0 %v13779_v40  ;;  %v13792_v40 = vld [vmem:[%s20273_s10 + $0x3ec] ss:$16 sps:$4 sm:$0xff]  }
 0xdfe   :  { %6283 = vmatmul.mubr.bf16.gmra.mxu1 %v13782_v20 }
 0xdff   :  { %6186 = vmatmul.mubr.bf16.gmra.mxu0 %v13777_v3  ;;  %12407 = vmatprep.mubr.msk.bf16.mxu1 %vm1042_vm2, %v13786_v59  ;;  %v13794_v3 = vld [vmem:[%s20273_s10 + $0x3e8] ss:$16 sps:$4 sm:$0xff]  }
 0xe00   :  { %6193 = vmatprep.mubr.bf16.mxu0 %v13785_v2 }
 0xe06   :  { %6291 = vmatmul.mubr.bf16.gmra.mxu1 %v13788_v6 }
 0xe07   :  { %6194 = vmatmul.mubr.bf16.gmra.mxu0 %v13783_v60  ;;  %12408 = vmatprep.mubr.msk.bf16.mxu1 %vm1042_vm2, %v13792_v40  ;;  %v6147_v40 = vpop.f32.mrf.mxu0 }
 0xe08   :  { %6201 = vmatprep.mubr.bf16.mxu0 %v13791_v0  ;;  %v17869_v0 = vpop.f32.mrf.mxu1 }
 0xe09   :  { %20552 = vst [vmem:[#allocation29_spill] sm:$0xff] %v17869_v0  ;;  %v6149_v19 = vpop.f32.mrf.mxu0 }
 0xe0a   :  { %v6244_v45 = vpop.f32.mrf.mxu1 }
 0xe0b   :  { %v6245_v63 = vadd.f32 %v6244_v45, %v6147_v40 }
 0xe0e   :  { %6299 = vmatmul.mubr.bf16.gmra.mxu1 %v13794_v3  ;;  %v6150_v3 = vpop.f32.mrf.mxu0 }
 0xe0f   :  { %6202 = vmatmul.mubr.bf16.gmra.mxu0 %v13789_v57  ;;  %6615 = vmatprep.mubr.f32.mxu1 %v20539_v5  ;;  %v6246_v57 = vpop.f32.mrf.mxu1 }
 0xe10   :  { %13233 = vmatprep.mubr.msk.f32.mxu0 %vm2113_vm4, %v6245_v63 }
 0xe11   :  { %v6247_v21 = vpop.f32.mrf.mxu1 }
 0xe7e   :  { %v5895_v20 = vpop.xlane.xlu0 %5894 }
 0xe7f   :  { %v5896_v2 = vsub.f32 %v5892_v53, %v5895_v20  ;;  %v6152_v53 = vpop.f32.mrf.mxu0  ;;  %v6249_v20 = vpop.f32.mrf.mxu1 }
 0xe81   :  { %v5897_v59 = vmul.f32 1.442695, %v5896_v2  ;;  %v17872_v2 = vadd.f32 %v6247_v21, %v6150_v3  ;;  %v6252_v16 = vpop.f32.mrf.mxu1 }
 0xe83   :  { %14653 = vpow2.f32 %v5897_v59  ;;  %v6155_v59 = vpop.f32.mrf.mxu0  ;;  %v6254_v24 = vpop.f32.mrf.mxu1 }
 0xe84   :  { %v17874_v0 = vadd.f32 %v6252_v16, %v6155_v59 }
 0xe85   :  { %v6157_v12 = vpop.f32.mrf.mxu0  ;;  %v6255_v11 = vpop.f32.mrf.mxu1 }
 0xe87   :  { %v6257_v19 = vpop.f32.mrf.mxu1 }
 0xe89   :  { %v6260_v63 = vpop.f32.mrf.mxu1 }
 0xe8b   :  { %v6262_v20 = vpop.f32.mrf.mxu1 }
 0xe8d   :  { %v6263_v3 = vpop.f32.mrf.mxu1 }
 0xe8f   :  { %v6265_v24 = vpop.f32.mrf.mxu1 }
 0xe90   :  { %v17865_v60 = vpop.eup %14653 }
 0xe91   :  { %v5899_v6 = vsel %vm2113_vm4, %v17865_v60, 0.0 }
 0xe92   :  { %5900 = vadd.xlane.f32.xlu1 %v5899_v6  ;;  %v6158_v6 = vpop.f32.mrf.mxu0 }
 0xe93   :  { %v17876_v15 = vadd.f32 %v6255_v11, %v6158_v6 }
 0xe94   :  { %v6160_v45 = vpop.f32.mrf.mxu0 }
 0xe96   :  { %v6163_v40 = vpop.f32.mrf.mxu0 }
 0xe97   :  { %v17878_v57 = vadd.f32 %v6260_v63, %v6163_v40 }
 0xe98   :  { %v6165_v53 = vpop.f32.mrf.mxu0 }
 0xe9a   :  { %v6166_v21 = vpop.f32.mrf.mxu0 }
 0xe9b   :  { %v17880_v18 = vadd.f32 %v6263_v3, %v6166_v21 }
 0xe9c   :  { %v6168_v12 = vpop.f32.mrf.mxu0 }
 0xeae   :  { %v6171_v28 = vpop.f32.mrf.mxu0  ;;  %v6268_v55 = vpop.f32.mrf.mxu1 }
 0xeaf   :  { %v6269_v16 = vadd.f32 %v6268_v55, %v6171_v28 }
 0xeb0   :  { %v6173_v59 = vpop.f32.mrf.mxu0  ;;  %v6270_v11 = vpop.f32.mrf.mxu1 }
 0xeb2   :  { %v6174_v6 = vpop.f32.mrf.mxu0  ;;  %v6271_v45 = vpop.f32.mrf.mxu1 }
 0xeb3   :  { %v6272_v19 = vadd.f32 %v6271_v45, %v6174_v6 }
 0xeb4   :  { %v6176_v27 = vpop.f32.mrf.mxu0  ;;  %v6273_v48 = vpop.f32.mrf.mxu1 }
 0xeb6   :  { %v6276_v63 = vpop.f32.mrf.mxu1 }
 0xeb7   :  { %v6179_v40 = vpop.f32.mrf.mxu0 }
 0xeb8   :  { %v6277_v53 = vadd.f32 %v6276_v63, %v6179_v40  ;;  %v6278_v46 = vpop.f32.mrf.mxu1 }
 0xeb9   :  { %v6181_v20 = vpop.f32.mrf.mxu0 }
 0xeba   :  { %v6279_v21 = vpop.f32.mrf.mxu1 }
 0xebb   :  { %v6182_v58 = vpop.f32.mrf.mxu0 }
 0xebc   :  { %v6280_v3 = vadd.f32 %v6279_v21, %v6182_v58  ;;  %v6281_v24 = vpop.f32.mrf.mxu1 }
 0xebd   :  { %v6184_v12 = vpop.f32.mrf.mxu0 }
 0xebe   :  { %v6284_v10 = vpop.f32.mrf.mxu1 }
 0xebf   :  { %v6187_v29 = vpop.f32.mrf.mxu0 }
 0xec0   :  { %v6285_v55 = vadd.f32 %v6284_v10, %v6187_v29  ;;  %v6286_v59 = vpop.f32.mrf.mxu1 }
 0xec1   :  { %v6189_v28 = vpop.f32.mrf.mxu0 }
 0xec2   :  { %v6287_v56 = vpop.f32.mrf.mxu1 }
 0xec3   :  { %v6190_v11 = vpop.f32.mrf.mxu0 }
 0xec4   :  { %v6288_v6 = vadd.f32 %v6287_v56, %v6190_v11  ;;  %v6289_v48 = vpop.f32.mrf.mxu1 }
 0xec5   :  { %v6192_v27 = vpop.f32.mrf.mxu0 }
 0xec6   :  { %v6292_v44 = vpop.f32.mrf.mxu1 }
 0xec7   :  { %v6195_v45 = vpop.f32.mrf.mxu0 }
 0xec8   :  { %v6293_v40 = vadd.f32 %v6292_v44, %v6195_v45  ;;  %v6294_v46 = vpop.f32.mrf.mxu1 }
 0xec9   :  { %v6197_v63 = vpop.f32.mrf.mxu0 }
 0xeca   :  { %v6295_v36 = vpop.f32.mrf.mxu1 }
 0xecb   :  { %v6198_v20 = vpop.f32.mrf.mxu0 }
 0xecc   :  { %v6296_v58 = vadd.f32 %v6295_v36, %v6198_v20  ;;  %v6297_v12 = vpop.f32.mrf.mxu1  ;;  %v20553_v36 = vld [vmem:[#allocation99_spill] sm:$0xff] }
 0xecd   :  { %v6200_v21 = vpop.f32.mrf.mxu0 }
 0xece   :  { %v6300_v39 = vpop.f32.mrf.mxu1 }
 0xecf   :  { %v6203_v24 = vpop.f32.mrf.mxu0 }
 0xed0   :  { %v6301_v10 = vadd.f32 %v6300_v39, %v6203_v24  ;;  %v6302_v28 = vpop.f32.mrf.mxu1 }
 0xed1   :  { %v6205_v29 = vpop.f32.mrf.mxu0 }
 0xed2   :  { %v6303_v22 = vpop.f32.mrf.mxu1 }
 0xed3   :  { %v6206_v59 = vpop.f32.mrf.mxu0 }
 0xed4   :  { %v6304_v56 = vadd.f32 %v6303_v22, %v6206_v59  ;;  %v6305_v27 = vpop.f32.mrf.mxu1  ;;  %v20554_v22 = vld [vmem:[#allocation53_spill] sm:$0xff] }
 0xed5   :  { %v6208_v11 = vpop.f32.mrf.mxu0 }
 0xf1b   :  { %v5901_v48 = vpop.xlane.xlu1 %5900 }
 0xf1c   :  { %14655 = vrcp.f32 %v5901_v48 }
 0xf29   :  { %v14656_v44 = vpop.eup %14655 }
 0xf2a   :  { %v5903_v45 = vmul.f32 %v14656_v44, %v17865_v60 }
 0xf2c   :  { %13231 = vmatprep.subr.msk.mxu0 %vm2113_vm4, %v5903_v45 }
 0xf2d   :  { %13232 = vmatpush3.xpose.msk.msra.mxu0 %vm2113_vm4, %v5903_v45 }
 0xf2e   :  { %6742 = vmatprep.subr.mxu0 %v20553_v36 }
 0xf30   :  { %13234 = vmatmul.mubr.msk.f32.vlgmr.msra.gmra.mxu0 %vm2113_vm4, %v17872_v2 }
 0xf31   :  { %13236 = vmatprep.mubr.msk.f32.mxu0 %vm2113_vm4, %v17874_v0  ;;  %6743 = vmatpush1.msra.mxu0 %v20554_v22 }
 0xf34   :  { %13237 = vmatmul.mubr.msk.f32.gmra.mxu0 %vm2113_vm4, %v17876_v15 }
 0xf35   :  { %13239 = vmatprep.mubr.msk.f32.mxu0 %vm2113_vm4, %v17878_v57 }
 0xf38   :  { %13240 = vmatmul.mubr.msk.f32.gmra.mxu0 %vm2113_vm4, %v17880_v18 }
 0xf39   :  { %13242 = vmatprep.mubr.msk.f32.mxu0 %vm2113_vm4, %v6269_v16 }
 0xf3c   :  { %13243 = vmatmul.mubr.msk.f32.gmra.mxu0 %vm2113_vm4, %v6272_v19 }
 0xf3d   :  { %13245 = vmatprep.mubr.msk.f32.mxu0 %vm2113_vm4, %v6277_v53 }
 0xf40   :  { %13246 = vmatmul.mubr.msk.f32.gmra.mxu0 %vm2113_vm4, %v6280_v3 }
 0xf41   :  { %13248 = vmatprep.mubr.msk.f32.mxu0 %vm2113_vm4, %v6285_v55 }
 0xf44   :  { %13249 = vmatmul.mubr.msk.f32.gmra.mxu0 %vm2113_vm4, %v6288_v6 }
 0xf45   :  { %13251 = vmatprep.mubr.msk.f32.mxu0 %vm2113_vm4, %v6293_v40 }
 0xf48   :  { %13252 = vmatmul.mubr.msk.f32.gmra.mxu0 %vm2113_vm4, %v6296_v58 }
 0xf49   :  { %13254 = vmatprep.mubr.msk.f32.mxu0 %vm2113_vm4, %v6301_v10 }
 0xf4c   :  { %13255 = vmatmul.mubr.msk.f32.gmra.mxu0 %vm2113_vm4, %v6304_v56 }
 0xf4d   :  { %6776 = vmatprep.mubr.f32.mxu0 %v20539_v5 }
 0xff0   :  { %v13235_v39 = vpop.f32.mrf.mxu0 }
 0xff2   :  { %v6424_v18 = vpop.f32.mrf.mxu0 }
 0xff3   :  { %12426 = vmatmul.mubr.msk.f32.vlgmr.msra.gmra.mxu1 %vm2113_vm4, %v6424_v18  ;;  %12442 = vmatmul.mubr.msk.f32.vlgmr.msra.gmra.mxu0 %vm2113_vm4, %v6424_v18 }
 0xff4   :  { %6621 = vmatprep.mubr.f32.mxu1 %v20539_v5  ;;  %6782 = vmatprep.mubr.f32.mxu0 %v20539_v5  ;;  %v13238_v15 = vpop.f32.mrf.mxu0 }
 0xff6   :  { %v6434_v60 = vpop.f32.mrf.mxu0 }
 0xff7   :  { %12427 = vmatmul.mubr.msk.f32.gmra.mxu1 %vm2113_vm4, %v13235_v39  ;;  %12443 = vmatmul.mubr.msk.f32.gmra.mxu0 %vm2113_vm4, %v13235_v39 }
 0xff8   :  { %6627 = vmatprep.mubr.f32.mxu1 %v20539_v5  ;;  %6788 = vmatprep.mubr.f32.mxu0 %v20539_v5  ;;  %v13241_v0 = vpop.f32.mrf.mxu0 }
 0xffa   :  { %v6444_v2 = vpop.f32.mrf.mxu0 }
 0xffb   :  { %12428 = vmatmul.mubr.msk.f32.gmra.mxu1 %vm2113_vm4, %v6434_v60  ;;  %12444 = vmatmul.mubr.msk.f32.gmra.mxu0 %vm2113_vm4, %v6434_v60 }
 0xffc   :  { %6633 = vmatprep.mubr.f32.mxu1 %v20539_v5  ;;  %6794 = vmatprep.mubr.f32.mxu0 %v20539_v5  ;;  %v13244_v57 = vpop.f32.mrf.mxu0 }
 0xffe   :  { %v6454_v16 = vpop.f32.mrf.mxu0 }
 0xfff   :  { %12429 = vmatmul.mubr.msk.f32.gmra.mxu1 %vm2113_vm4, %v13238_v15  ;;  %12445 = vmatmul.mubr.msk.f32.gmra.mxu0 %vm2113_vm4, %v13238_v15 }
0x1000   :  { %6639 = vmatprep.mubr.f32.mxu1 %v20539_v5  ;;  %6800 = vmatprep.mubr.f32.mxu0 %v20539_v5  ;;  %v13247_v19 = vpop.f32.mrf.mxu0 }
0x1002   :  { %v6464_v53 = vpop.f32.mrf.mxu0 }
0x1003   :  { %12430 = vmatmul.mubr.msk.f32.gmra.mxu1 %vm2113_vm4, %v6444_v2  ;;  %12446 = vmatmul.mubr.msk.f32.gmra.mxu0 %vm2113_vm4, %v6444_v2 }
0x1004   :  { %6645 = vmatprep.mubr.f32.mxu1 %v20539_v5  ;;  %6806 = vmatprep.mubr.f32.mxu0 %v20539_v5  ;;  %v13250_v3 = vpop.f32.mrf.mxu0 }
0x1006   :  { %v6474_v55 = vpop.f32.mrf.mxu0 }
0x1007   :  { %12431 = vmatmul.mubr.msk.f32.gmra.mxu1 %vm2113_vm4, %v13241_v0  ;;  %12447 = vmatmul.mubr.msk.f32.gmra.mxu0 %vm2113_vm4, %v13241_v0 }
0x1008   :  { %6651 = vmatprep.mubr.f32.mxu1 %v20539_v5  ;;  %6812 = vmatprep.mubr.f32.mxu0 %v20539_v5  ;;  %v13253_v6 = vpop.f32.mrf.mxu0 }
0x100a   :  { %v6484_v40 = vpop.f32.mrf.mxu0 }
0x100b   :  { %12432 = vmatmul.mubr.msk.f32.gmra.mxu1 %vm2113_vm4, %v6454_v16  ;;  %12448 = vmatmul.mubr.msk.f32.gmra.mxu0 %vm2113_vm4, %v6454_v16 }
0x100c   :  { %6657 = vmatprep.mubr.f32.mxu1 %v20539_v5  ;;  %6818 = vmatprep.mubr.f32.mxu0 %v20539_v5  ;;  %v13256_v63 = vpop.f32.mrf.mxu0 }
0x100e   :  { %v6494_v46 = vpop.f32.mrf.mxu0 }
0x100f   :  { %12433 = vmatmul.mubr.msk.f32.gmra.mxu1 %vm2113_vm4, %v13244_v57  ;;  %12449 = vmatmul.mubr.msk.f32.gmra.mxu0 %vm2113_vm4, %v13244_v57 }
0x1010   :  { %6663 = vmatprep.mubr.f32.mxu1 %v20539_v5  ;;  %6824 = vmatprep.mubr.f32.mxu0 %v20539_v5 }
0x1013   :  { %12434 = vmatmul.mubr.msk.f32.gmra.mxu1 %vm2113_vm4, %v6464_v53  ;;  %12450 = vmatmul.mubr.msk.f32.gmra.mxu0 %vm2113_vm4, %v6464_v53 }
0x1014   :  { %6669 = vmatprep.mubr.f32.mxu1 %v20539_v5  ;;  %6830 = vmatprep.mubr.f32.mxu0 %v20539_v5 }
0x1017   :  { %12435 = vmatmul.mubr.msk.f32.gmra.mxu1 %vm2113_vm4, %v13247_v19  ;;  %12451 = vmatmul.mubr.msk.f32.gmra.mxu0 %vm2113_vm4, %v13247_v19 }
0x1018   :  { %6675 = vmatprep.mubr.f32.mxu1 %v20539_v5  ;;  %6836 = vmatprep.mubr.f32.mxu0 %v20539_v5 }
0x101b   :  { %12436 = vmatmul.mubr.msk.f32.gmra.mxu1 %vm2113_vm4, %v6474_v55  ;;  %12452 = vmatmul.mubr.msk.f32.gmra.mxu0 %vm2113_vm4, %v6474_v55 }
0x101c   :  { %6681 = vmatprep.mubr.f32.mxu1 %v20539_v5  ;;  %6842 = vmatprep.mubr.f32.mxu0 %v20539_v5 }
0x101f   :  { %12437 = vmatmul.mubr.msk.f32.gmra.mxu1 %vm2113_vm4, %v13250_v3  ;;  %12453 = vmatmul.mubr.msk.f32.gmra.mxu0 %vm2113_vm4, %v13250_v3 }
0x1020   :  { %6687 = vmatprep.mubr.f32.mxu1 %v20539_v5  ;;  %6848 = vmatprep.mubr.f32.mxu0 %v20539_v5 }
0x1023   :  { %12438 = vmatmul.mubr.msk.f32.gmra.mxu1 %vm2113_vm4, %v6484_v40  ;;  %12454 = vmatmul.mubr.msk.f32.gmra.mxu0 %vm2113_vm4, %v6484_v40 }
0x1024   :  { %6693 = vmatprep.mubr.f32.mxu1 %v20539_v5  ;;  %6854 = vmatprep.mubr.f32.mxu0 %v20539_v5 }
0x1027   :  { %12439 = vmatmul.mubr.msk.f32.gmra.mxu1 %vm2113_vm4, %v13253_v6  ;;  %12455 = vmatmul.mubr.msk.f32.gmra.mxu0 %vm2113_vm4, %v13253_v6 }
0x1028   :  { %6699 = vmatprep.mubr.f32.mxu1 %v20539_v5  ;;  %6860 = vmatprep.mubr.f32.mxu0 %v20539_v5 }
0x102b   :  { %12440 = vmatmul.mubr.msk.f32.gmra.mxu1 %vm2113_vm4, %v6494_v46  ;;  %12456 = vmatmul.mubr.msk.f32.gmra.mxu0 %vm2113_vm4, %v6494_v46 }
0x102c   :  { %6705 = vmatprep.mubr.f32.mxu1 %v20539_v5  ;;  %6866 = vmatprep.mubr.f32.mxu0 %v20539_v5 }
0x102f   :  { %12441 = vmatmul.mubr.msk.f32.gmra.mxu1 %vm2113_vm4, %v13256_v63  ;;  %12457 = vmatmul.mubr.msk.f32.gmra.mxu0 %vm2113_vm4, %v13256_v63 }
0x1030   :  { %7003 = vmatprep.mubr.f32.mxu1 %v20539_v5  ;;  %7074 = vmatprep.mubr.f32.mxu0 %v20539_v5 }
0x10b3   :  { %v17972_v20 = vpop.f32.mrf.mxu1  ;;  %v17974_v58 = vpop.f32.mrf.mxu0 }
0x10b4   :  { %20555 = vst [vmem:[#allocation103_spill] sm:$0xff] %v17972_v20  ;;  %20556 = vst [vmem:[#allocation61_spill] sm:$0xff] %v17974_v58 }
0x10b5   :  { %v17976_v21 = vpop.f32.mrf.mxu1  ;;  %v17978_v12 = vpop.f32.mrf.mxu0 }
0x10b6   :  { %20557 = vst [vmem:[#allocation104_spill] sm:$0xff] %v17976_v21  ;;  %20558 = vst [vmem:[#allocation28_spill] sm:$0xff] %v17978_v12 }
0x10b7   :  { %v17980_v24 = vpop.f32.mrf.mxu1  ;;  %v17982_v10 = vpop.f32.mrf.mxu0 }
0x10b8   :  { %20559 = vst [vmem:[#allocation105_spill] sm:$0xff] %v17980_v24  ;;  %20560 = vst [vmem:[#allocation60_spill] sm:$0xff] %v17982_v10 }
0x10b9   :  { %v17984_v29 = vpop.f32.mrf.mxu1  ;;  %v17986_v28 = vpop.f32.mrf.mxu0 }
0x10ba   :  { %20561 = vst [vmem:[#allocation106_spill] sm:$0xff] %v17984_v29  ;;  %20562 = vst [vmem:[#allocation27_spill] sm:$0xff] %v17986_v28 }
0x10bb   :  { %v17988_v59 = vpop.f32.mrf.mxu1  ;;  %v17990_v56 = vpop.f32.mrf.mxu0 }
0x10bc   :  { %20563 = vst [vmem:[#allocation107_spill] sm:$0xff] %v17988_v59  ;;  %20564 = vst [vmem:[#allocation59_spill] sm:$0xff] %v17990_v56 }
0x10bd   :  { %v17992_v5 = vpop.f32.mrf.mxu1  ;;  %v17994_v11 = vpop.f32.mrf.mxu0 }
0x10be   :  { %20565 = vst [vmem:[#allocation108_spill] sm:$0xff] %v17992_v5  ;;  %20566 = vst [vmem:[#allocation26_spill] sm:$0xff] %v17994_v11 }
0x10bf   :  { %v17996_v27 = vpop.f32.mrf.mxu1  ;;  %v17998_v48 = vpop.f32.mrf.mxu0 }
0x10c0   :  { %20567 = vst [vmem:[#allocation109_spill] sm:$0xff] %v17996_v27  ;;  %20568 = vst [vmem:[#allocation58_spill] sm:$0xff] %v17998_v48 }
0x10c1   :  { %v18000_v44 = vpop.f32.mrf.mxu1  ;;  %v18002_v45 = vpop.f32.mrf.mxu0 }
0x10c2   :  { %20569 = vst [vmem:[#allocation95_spill] sm:$0xff] %v18000_v44  ;;  %20570 = vst [vmem:[#allocation25_spill] sm:$0xff] %v18002_v45 }
0x10c3   :  { %v18004_v36 = vpop.f32.mrf.mxu1  ;;  %v18006_v22 = vpop.f32.mrf.mxu0 }
0x10c4   :  { %20571 = vst [vmem:[#allocation96_spill] sm:$0xff] %v18004_v36  ;;  %20572 = vst [vmem:[#allocation57_spill] sm:$0xff] %v18006_v22 }
0x10c5   :  { %v18008_v39 = vpop.f32.mrf.mxu1  ;;  %v18010_v18 = vpop.f32.mrf.mxu0 }
0x10c6   :  { %20573 = vst [vmem:[#allocation93_spill] sm:$0xff] %v18008_v39  ;;  %20574 = vst [vmem:[#allocation24_spill] sm:$0xff] %v18010_v18 }
0x10c7   :  { %v18012_v15 = vpop.f32.mrf.mxu1  ;;  %v18014_v60 = vpop.f32.mrf.mxu0 }
0x10c8   :  { %20575 = vst [vmem:[#allocation94_spill] sm:$0xff] %v18012_v15  ;;  %20576 = vst [vmem:[#allocation56_spill] sm:$0xff] %v18014_v60 }
0x10c9   :  { %v18016_v0 = vpop.f32.mrf.mxu1  ;;  %v18018_v2 = vpop.f32.mrf.mxu0 }
0x10ca   :  { %20577 = vst [vmem:[#allocation91_spill] sm:$0xff] %v18016_v0  ;;  %20578 = vst [vmem:[#allocation23_spill] sm:$0xff] %v18018_v2 }
0x10cb   :  { %v18020_v57 = vpop.f32.mrf.mxu1  ;;  %v18022_v16 = vpop.f32.mrf.mxu0 }
0x10cc   :  { %20579 = vst [vmem:[#allocation92_spill] sm:$0xff] %v18020_v57  ;;  %20580 = vst [vmem:[#allocation55_spill] sm:$0xff] %v18022_v16 }
0x10cd   :  { %v18024_v19 = vpop.f32.mrf.mxu1  ;;  %v18026_v53 = vpop.f32.mrf.mxu0 }
0x10ce   :  { %20581 = vst [vmem:[#allocation21_spill] sm:$0xff] %v18024_v19  ;;  %20582 = vst [vmem:[#allocation18_spill] sm:$0xff] %v18026_v53 }
0x10cf   :  { %v18028_v3 = vpop.f32.mrf.mxu1  ;;  %v18030_v55 = vpop.f32.mrf.mxu0 }
0x10d0   :  { %20583 = vst [vmem:[#allocation50_spill] sm:$0xff] %v18028_v3  ;;  %20584 = vst [vmem:[#allocation51_spill] sm:$0xff] %v18030_v55 }
0x10d1   :  { %v18032_v6 = vpop.f32.mrf.mxu1  ;;  %v18034_v40 = vpop.f32.mrf.mxu0 }
0x10d2   :  { %20585 = vst [vmem:[#allocation83_spill] sm:$0xff] %v18032_v6  ;;  %20586 = vst [vmem:[#allocation52_spill] sm:$0xff] %v18034_v40 }
0x10d3   :  { %v18036_v63 = vpop.f32.mrf.mxu1  ;;  %v18038_v46 = vpop.f32.mrf.mxu0 }
0x10d4   :  { %20587 = vst [vmem:[#allocation84_spill] sm:$0xff] %v18036_v63  ;;  %20588 = vst [vmem:[#allocation100_spill] sm:$0xff] %v18038_v46  ;;  %v20593_v46 = vld [vmem:[#allocation81_spill] sm:$0xff]  ;;  %v20594_v63 = vld [vmem:[#allocation48_spill] sm:$0xff] }
0x10d5   :  { %v18040_v58 = vpop.f32.mrf.mxu1  ;;  %v18042_v20 = vpop.f32.mrf.mxu0 }
0x10d6   :  { %20589 = vst [vmem:[#allocation85_spill] sm:$0xff] %v18040_v58  ;;  %20590 = vst [vmem:[#allocation22_spill] sm:$0xff] %v18042_v20 }
0x10d7   :  { %v18044_v12 = vpop.f32.mrf.mxu1  ;;  %v18046_v21 = vpop.f32.mrf.mxu0 }
0x10d9   :  { %v18048_v10 = vpop.f32.mrf.mxu1  ;;  %v18050_v24 = vpop.f32.mrf.mxu0 }
0x10db   :  { %v18052_v28 = vpop.f32.mrf.mxu1  ;;  %v18054_v29 = vpop.f32.mrf.mxu0 }
0x10dd   :  { %v6679_v56 = vpop.f32.mrf.mxu1  ;;  %v6840_v59 = vpop.f32.mrf.mxu0 }
0x10df   :  { %v6683_v11 = vpop.f32.mrf.mxu1  ;;  %v6844_v5 = vpop.f32.mrf.mxu0 }
0x10e1   :  { %v6685_v48 = vpop.f32.mrf.mxu1  ;;  %v6846_v27 = vpop.f32.mrf.mxu0 }
0x10e3   :  { %v6689_v45 = vpop.f32.mrf.mxu1  ;;  %v6850_v44 = vpop.f32.mrf.mxu0 }
0x10e5   :  { %v6691_v22 = vpop.f32.mrf.mxu1  ;;  %v6852_v36 = vpop.f32.mrf.mxu0 }
0x10e7   :  { %v6695_v18 = vpop.f32.mrf.mxu1  ;;  %v6856_v39 = vpop.f32.mrf.mxu0 }
0x10e9   :  { %v6697_v60 = vpop.f32.mrf.mxu1  ;;  %v6858_v15 = vpop.f32.mrf.mxu0 }
0x10eb   :  { %v6701_v2 = vpop.f32.mrf.mxu1  ;;  %v6862_v0 = vpop.f32.mrf.mxu0 }
0x10ec   :  { %v6929_v14 = vmul.f32 %v17342_v17, %v6701_v2  ;;  %v6931_v58 = vmul.f32 %v17348_v43, %v6862_v0  ;;  %v6924_v17 = vmul.f32 %v17384_v61, %v6852_v36  ;;  %v6921_v43 = vmul.f32 %v17390_v26, %v6689_v45  ;;  %v20613_v36 = vld [vmem:[#allocation18_spill] sm:$0xff]  ;;  %v20617_v0 = vld [vmem:[#allocation55_spill] sm:$0xff] }
0x10ed   :  { %v6703_v16 = vpop.f32.mrf.mxu1  ;;  %v6864_v57 = vpop.f32.mrf.mxu0  ;;  %v6914_v61 = vmul.f32 %v17430_v7, %v6679_v56  ;;  %v6916_v26 = vmul.f32 %v17437_v13, %v6840_v59  ;;  %v6911_v7 = vmul.f32 %v17479_v23, %v18046_v21  ;;  %v20595_v13 = vld [vmem:[#allocation85_spill] sm:$0xff]  ;;  %v20604_v23 = vld [vmem:[#allocation78_spill] sm:$0xff] }
0x10ee   :  { %v6930_v51 = vmul.f32 %v20594_v63, %v6703_v16  ;;  %v6932_v20 = vmul.f32 %v17336_v32, %v6864_v57  ;;  %v6927_v16 = vmul.f32 %v17372_v42, %v6856_v39  ;;  %v6922_v32 = vmul.f32 %v17378_v47, %v6691_v22  ;;  %v20608_v59 = vld [vmem:[#allocation77_spill] sm:$0xff]  ;;  %v20614_v22 = vld [vmem:[#allocation43_spill] sm:$0xff]  ;;  %v20618_v2 = vld [vmem:[#allocation42_spill] sm:$0xff] }
0x10ef   :  { %v6707_v53 = vpop.f32.mrf.mxu1  ;;  %v6868_v19 = vpop.f32.mrf.mxu0  ;;  %v6917_v42 = vmul.f32 %v17416_v37, %v6683_v11  ;;  %v6919_v47 = vmul.f32 %v17423_v30, %v6844_v5  ;;  %v6912_v37 = vmul.f32 %v17465_v50, %v18050_v24  ;;  %v6909_v30 = vmul.f32 %v17472_v34, %v18044_v12  ;;  %v20600_v50 = vld [vmem:[#allocation79_spill] sm:$0xff]  ;;  %v20605_v12 = vld [vmem:[#allocation52_spill] sm:$0xff]  ;;  %v20623_v63 = vld [vmem:[#allocation94_spill] sm:$0xff] }
0x10f0   :  { %v6933_v8 = vmul.f32 %v17318_v54, %v6707_v53  ;;  %v6935_v41 = vmul.f32 %v20593_v46, %v6868_v19  ;;  %v6925_v54 = vmul.f32 %v17366_v1, %v6695_v18  ;;  %v6920_v1 = vmul.f32 %v17409_v38, %v6846_v27  ;;  %v20603_v34 = vld [vmem:[#allocation83_spill] sm:$0xff]  ;;  %v20610_v11 = vld [vmem:[#allocation44_spill] sm:$0xff]  ;;  %v20620_v53 = vld [vmem:[#allocation74_spill] sm:$0xff] }
0x10f1   :  { %v6709_v55 = vpop.f32.mrf.mxu1  ;;  %v6870_v3 = vpop.f32.mrf.mxu0  ;;  %v6910_v38 = vmul.f32 %v17458_v4, %v18048_v10  ;;  %v20599_v4 = vld [vmem:[#allocation84_spill] sm:$0xff]  ;;  %v6902_v21 = vmul.f32 %v20604_v23, %v20603_v34  ;;  %v20606_v10 = vld [vmem:[#allocation45_spill] sm:$0xff]  ;;  %v20609_v5 = vld [vmem:[#allocation51_spill] sm:$0xff]  ;;  %v6900_v39 = vmul.f32 %v20614_v22, %v20613_v36  ;;  %v6899_v57 = vmul.f32 %v20618_v2, %v20617_v0 }
0x10f2   :  { %v6934_v40 = vmul.f32 %v20591_v25, %v6709_v55  ;;  %v6936_v6 = vmul.f32 %v20592_v52, %v6870_v3  ;;  %v6926_v25 = vmul.f32 %v17354_v49, %v6697_v60  ;;  %v6928_v52 = vmul.f32 %v17360_v33, %v6858_v15  ;;  %v20615_v18 = vld [vmem:[#allocation92_spill] sm:$0xff]  ;;  %v20616_v15 = vld [vmem:[#allocation75_spill] sm:$0xff]  ;;  %v20624_v46 = vld [vmem:[#allocation73_spill] sm:$0xff] }
0x10f3   :  { %v6923_v49 = vmul.f32 %v17396_v9, %v6850_v44  ;;  %v6918_v33 = vmul.f32 %v17402_v62, %v6685_v48  ;;  %v6913_v9 = vmul.f32 %v17444_v35, %v18052_v28  ;;  %v6915_v62 = vmul.f32 %v17451_v31, %v18054_v29  ;;  %v20596_v35 = vld [vmem:[#allocation80_spill] sm:$0xff]  ;;  %v20607_v28 = vld [vmem:[#allocation50_spill] sm:$0xff]  ;;  %v20611_v48 = vld [vmem:[#allocation21_spill] sm:$0xff] }
0x10f4   :  { %6939 = vmatprep.subr.mxu1 %v6934_v40  ;;  %7010 = vmatprep.subr.mxu0 %v6936_v6  ;;  %v6906_v31 = vmul.f32 %v20596_v35, %v20595_v13  ;;  %v6904_v29 = vmul.f32 %v20606_v10, %v20605_v12  ;;  %v6901_v56 = vmul.f32 %v20608_v59, %v20607_v28  ;;  %v20612_v44 = vld [vmem:[#allocation76_spill] sm:$0xff]  ;;  %v20619_v19 = vld [vmem:[#allocation91_spill] sm:$0xff]  ;;  %v20622_v6 = vld [vmem:[#allocation41_spill] sm:$0xff] }
0x10f5   :  { %6940 = vmatpush1.msra.mxu1 %v6933_v8  ;;  %7011 = vmatpush1.msra.mxu0 %v6935_v41  ;;  %v6905_v8 = vmul.f32 %v20600_v50, %v20599_v4  ;;  %v6903_v27 = vmul.f32 %v20610_v11, %v20609_v5  ;;  %v6898_v45 = vmul.f32 %v20612_v44, %v20611_v48  ;;  %v20621_v55 = vld [vmem:[#allocation23_spill] sm:$0xff]  ;;  %v20638_v13 = vld [vmem:[#allocation37_spill] sm:$0xff]  ;;  %v20642_v4 = vld [vmem:[#allocation36_spill] sm:$0xff] }
0x10f6   :  { %6941 = vmatprep.subr.mxu1 %v6930_v51  ;;  %7012 = vmatprep.subr.mxu0 %v6932_v20  ;;  %v20598_v51 = vld [vmem:[#allocation47_spill] sm:$0xff]  ;;  %v20601_v20 = vld [vmem:[#allocation100_spill] sm:$0xff]  ;;  %v6897_v60 = vmul.f32 %v20616_v15, %v20615_v18  ;;  %v6894_v3 = vmul.f32 %v20620_v53, %v20619_v19  ;;  %v6896_v40 = vmul.f32 %v20622_v6, %v20621_v55  ;;  %v20650_v28 = vld [vmem:[#allocation34_spill] sm:$0xff] }
0x10f7   :  { %6942 = vmatpush1.msra.mxu1 %v6929_v14  ;;  %7013 = vmatpush1.msra.mxu0 %v6931_v58  ;;  %v20597_v14 = vld [vmem:[#allocation22_spill] sm:$0xff]  ;;  %v20646_v34 = vld [vmem:[#allocation35_spill] sm:$0xff]  ;;  %v20654_v48 = vld [vmem:[#allocation33_spill] sm:$0xff] }
0x10f8   :  { %6943 = vmatprep.subr.mxu1 %v6926_v25  ;;  %7014 = vmatprep.subr.mxu0 %v6928_v52  ;;  %v6908_v41 = vmul.f32 %v20598_v51, %v20597_v14  ;;  %v20602_v58 = vld [vmem:[#allocation46_spill] sm:$0xff]  ;;  %v6893_v25 = vmul.f32 %v20624_v46, %v20623_v63  ;;  %v20625_v52 = vld [vmem:[#allocation56_spill] sm:$0xff]  ;;  %v20640_v14 = vld [vmem:[#allocation69_spill] sm:$0xff] }
0x10f9   :  { %6944 = vmatpush1.msra.mxu1 %v6925_v54  ;;  %7015 = vmatpush1.msra.mxu0 %v6927_v16  ;;  %v6907_v24 = vmul.f32 %v20602_v58, %v20601_v20  ;;  %v20626_v54 = vld [vmem:[#allocation40_spill] sm:$0xff]  ;;  %v20648_v12 = vld [vmem:[#allocation67_spill] sm:$0xff]  ;;  %v20652_v5 = vld [vmem:[#allocation66_spill] sm:$0xff] }
0x10fa   :  { %6945 = vmatprep.subr.mxu1 %v6922_v32  ;;  %7016 = vmatprep.subr.mxu0 %v6924_v17  ;;  %v6895_v16 = vmul.f32 %v20626_v54, %v20625_v52  ;;  %v20627_v32 = vld [vmem:[#allocation93_spill] sm:$0xff]  ;;  %v20628_v17 = vld [vmem:[#allocation72_spill] sm:$0xff]  ;;  %v20662_v19 = vld [vmem:[#allocation31_spill] sm:$0xff] }
0x10fb   :  { %6946 = vmatpush1.msra.mxu1 %v6921_v43  ;;  %7017 = vmatpush1.msra.mxu0 %v6923_v49  ;;  %v6890_v43 = vmul.f32 %v20628_v17, %v20627_v32  ;;  %v20629_v49 = vld [vmem:[#allocation24_spill] sm:$0xff]  ;;  %v20656_v36 = vld [vmem:[#allocation65_spill] sm:$0xff]  ;;  %v20664_v55 = vld [vmem:[#allocation63_spill] sm:$0xff] }
0x10fc   :  { %6947 = vmatprep.subr.mxu1 %v6918_v33  ;;  %7018 = vmatprep.subr.mxu0 %v6920_v1  ;;  %v20630_v33 = vld [vmem:[#allocation39_spill] sm:$0xff]  ;;  %v20644_v20 = vld [vmem:[#allocation68_spill] sm:$0xff]  ;;  %v20666_v63 = vld [vmem:[#allocation30_spill] sm:$0xff] }
0x10fd   :  { %6948 = vmatpush1.msra.mxu1 %v6917_v42  ;;  %7019 = vmatpush1.msra.mxu0 %v6919_v47  ;;  %v6892_v1 = vmul.f32 %v20630_v33, %v20629_v49  ;;  %v20631_v42 = vld [vmem:[#allocation96_spill] sm:$0xff]  ;;  %v20632_v47 = vld [vmem:[#allocation71_spill] sm:$0xff] }
0x10fe   :  { %6949 = vmatprep.subr.mxu1 %v6914_v61  ;;  %7020 = vmatprep.subr.mxu0 %v6916_v26  ;;  %v6889_v61 = vmul.f32 %v20632_v47, %v20631_v42  ;;  %v20633_v26 = vld [vmem:[#allocation57_spill] sm:$0xff]  ;;  %v20658_v18 = vld [vmem:[#allocation32_spill] sm:$0xff] }
0x10ff   :  { %6950 = vmatpush1.msra.mxu1 %v6913_v9  ;;  %7021 = vmatpush1.msra.mxu0 %v6915_v62  ;;  %v20634_v9 = vld [vmem:[#allocation38_spill] sm:$0xff]  ;;  %v20660_v0 = vld [vmem:[#allocation64_spill] sm:$0xff]  ;;  %v13797_v52 = vld [vmem:[%s20127_s12 + $0xe4] ss:$16 sps:$4 sm:$0xff]  }
0x1100   :  { %6951 = vmatprep.subr.mxu1 %v6910_v38  ;;  %7022 = vmatprep.subr.mxu0 %v6912_v37  ;;  %v6891_v62 = vmul.f32 %v20634_v9, %v20633_v26  ;;  %v20635_v38 = vld [vmem:[#allocation95_spill] sm:$0xff]  ;;  %v20636_v37 = vld [vmem:[#allocation70_spill] sm:$0xff] }
0x1101   :  { %6952 = vmatpush1.msra.mxu1 %v6909_v30  ;;  %7023 = vmatpush1.msra.mxu0 %v6911_v7  ;;  %v6886_v30 = vmul.f32 %v20636_v37, %v20635_v38  ;;  %v20637_v7 = vld [vmem:[#allocation25_spill] sm:$0xff] }
0x1102   :  { %6953 = vmatprep.subr.mxu1 %v6906_v31  ;;  %7024 = vmatprep.subr.mxu0 %v6908_v41  ;;  %v6888_v35 = vmul.f32 %v20638_v13, %v20637_v7  ;;  %v20639_v31 = vld [vmem:[#allocation109_spill] sm:$0xff]  ;;  %v20641_v41 = vld [vmem:[#allocation58_spill] sm:$0xff] }
0x1103   :  { %6954 = vmatpush1.msra.mxu1 %v6905_v8  ;;  %7025 = vmatpush1.msra.mxu0 %v6907_v24  ;;  %v6885_v51 = vmul.f32 %v20640_v14, %v20639_v31  ;;  %v6887_v50 = vmul.f32 %v20642_v4, %v20641_v41  ;;  %v20643_v8 = vld [vmem:[#allocation108_spill] sm:$0xff]  ;;  %v20645_v24 = vld [vmem:[#allocation26_spill] sm:$0xff]  ;;  %v13821_v54 = vld [vmem:[%s20127_s12 + $0x2e4] ss:$16 sps:$4 sm:$0xff]  }
0x1104   :  { %6955 = vmatprep.subr.mxu1 %v6902_v21  ;;  %7026 = vmatprep.subr.mxu0 %v6904_v29  ;;  %v6882_v58 = vmul.f32 %v20644_v20, %v20643_v8  ;;  %v6884_v23 = vmul.f32 %v20646_v34, %v20645_v24  ;;  %v20647_v21 = vld [vmem:[#allocation107_spill] sm:$0xff] }
0x1105   :  { %6956 = vmatpush1.msra.mxu1 %v6901_v56  ;;  %7027 = vmatpush1.msra.mxu0 %v6903_v27  ;;  %v6881_v10 = vmul.f32 %v20648_v12, %v20647_v21  ;;  %v20649_v29 = vld [vmem:[#allocation59_spill] sm:$0xff]  ;;  %v20651_v56 = vld [vmem:[#allocation106_spill] sm:$0xff] }
0x1106   :  { %6957 = vmatprep.subr.mxu1 %v6898_v45  ;;  %7028 = vmatprep.subr.mxu0 %v6900_v39  ;;  %v6883_v59 = vmul.f32 %v20650_v28, %v20649_v29  ;;  %v6878_v11 = vmul.f32 %v20652_v5, %v20651_v56  ;;  %v20653_v27 = vld [vmem:[#allocation27_spill] sm:$0xff]  ;;  %v20655_v45 = vld [vmem:[#allocation105_spill] sm:$0xff]  ;;  %v20657_v39 = vld [vmem:[#allocation60_spill] sm:$0xff] }
0x1107   :  { %6958 = vmatpush1.msra.mxu1 %v6897_v60  ;;  %7029 = vmatpush1.msra.mxu0 %v6899_v57  ;;  %v6880_v44 = vmul.f32 %v20654_v48, %v20653_v27  ;;  %v6877_v22 = vmul.f32 %v20656_v36, %v20655_v45  ;;  %v6879_v15 = vmul.f32 %v20658_v18, %v20657_v39  ;;  %v20659_v60 = vld [vmem:[#allocation104_spill] sm:$0xff]  ;;  %v13819_v32 = vld [vmem:[%s20127_s12 + $0x2e0] ss:$16 sps:$4 sm:$0xff]   ;;  %v13800_v17 = vld [vmem:[%s20127_s12 + $0xc4] ss:$16 sps:$4 sm:$0xff]  }
0x1108   :  { %6959 = vmatprep.subr.mxu1 %v6894_v3  ;;  %7030 = vmatprep.subr.mxu0 %v6896_v40  ;;  %v6874_v2 = vmul.f32 %v20660_v0, %v20659_v60  ;;  %v20661_v57 = vld [vmem:[#allocation28_spill] sm:$0xff]  ;;  %v20663_v3 = vld [vmem:[#allocation103_spill] sm:$0xff]  ;;  %v20665_v40 = vld [vmem:[#allocation61_spill] sm:$0xff] }
0x1109   :  { %6960 = vmatpush1.msra.mxu1 %v6893_v25  ;;  %7031 = vmatpush1.msra.mxu0 %v6895_v16  ;;  %v6876_v53 = vmul.f32 %v20662_v19, %v20661_v57  ;;  %v6873_v6 = vmul.f32 %v20664_v55, %v20663_v3  ;;  %v6875_v46 = vmul.f32 %v20666_v63, %v20665_v40  ;;  %v12458_v25 = vld [vmem:[%s20126_s11 + $0x18] sm:$0xff]  ;;  %v13795_v16 = vld [vmem:[%s20127_s12 + $0xe0] ss:$16 sps:$4 sm:$0xff]   ;;  %v13833_v42 = vld [vmem:[%s20127_s12 + $0x2a4] ss:$16 sps:$4 sm:$0xff]  }
0x110a   :  { %6961 = vmatprep.subr.mxu1 %v6890_v43  ;;  %7032 = vmatprep.subr.mxu0 %v6892_v1  ;;  %v13827_v43 = vld [vmem:[%s20127_s12 + $0x2c4] ss:$16 sps:$4 sm:$0xff]   ;;  %v13798_v49 = vld [vmem:[%s20127_s12 + $0xc0] ss:$16 sps:$4 sm:$0xff]   ;;  %v13875_v60 = vld [vmem:[%s20127_s12 + $0x2ec] ss:$16 sps:$4 sm:$0xff]  }
0x110b   :  { %6962 = vmatpush1.msra.mxu1 %v6889_v61  ;;  %7033 = vmatpush1.msra.mxu0 %v6891_v62  ;;  %v13825_v33 = vld [vmem:[%s20127_s12 + $0x2c0] ss:$16 sps:$4 sm:$0xff]   ;;  %v13803_v1 = vld [vmem:[%s20127_s12 + $0xa4] ss:$16 sps:$4 sm:$0xff]   ;;  %v20669_v19 = vld [vmem:[#allocation54_spill] sm:$0xff] }
0x110c   :  { %6963 = vmatprep.subr.mxu1 %v6886_v30  ;;  %7034 = vmatprep.subr.mxu0 %v6888_v35  ;;  %v13801_v47 = vld [vmem:[%s20127_s12 + $0xa0] ss:$16 sps:$4 sm:$0xff]   ;;  %v13806_v26 = vld [vmem:[%s20127_s12 + $0x84] ss:$16 sps:$4 sm:$0xff]   ;;  %v20671_v40 = vld [vmem:[#allocation102_spill] sm:$0xff] }
0x110d   :  { %6964 = vmatpush1.msra.mxu1 %v6885_v51  ;;  %7035 = vmatpush1.msra.mxu0 %v6887_v50  ;;  %v13831_v61 = vld [vmem:[%s20127_s12 + $0x2a0] ss:$16 sps:$4 sm:$0xff]   ;;  %v13839_v9 = vld [vmem:[%s20127_s12 + $0x284] ss:$16 sps:$4 sm:$0xff]  }
0x110e   :  { %6965 = vmatprep.subr.mxu1 %v6882_v58  ;;  %7036 = vmatprep.subr.mxu0 %v6884_v23  ;;  %v13804_v62 = vld [vmem:[%s20127_s12 + $0x80] ss:$16 sps:$4 sm:$0xff]   ;;  %v13809_v37 = vld [vmem:[%s20127_s12 + $0x64] ss:$16 sps:$4 sm:$0xff]  }
0x110f   :  { %6966 = vmatpush1.msra.mxu1 %v6881_v10  ;;  %7037 = vmatpush1.msra.mxu0 %v6883_v59  ;;  %v13837_v38 = vld [vmem:[%s20127_s12 + $0x280] ss:$16 sps:$4 sm:$0xff]   ;;  %v13845_v30 = vld [vmem:[%s20127_s12 + $0x264] ss:$16 sps:$4 sm:$0xff]  }
0x1110   :  { %6967 = vmatprep.subr.mxu1 %v6878_v11  ;;  %7038 = vmatprep.subr.mxu0 %v6880_v44  ;;  %v13807_v7 = vld [vmem:[%s20127_s12 + $0x60] ss:$16 sps:$4 sm:$0xff]   ;;  %v13812_v35 = vld [vmem:[%s20127_s12 + $0x44] ss:$16 sps:$4 sm:$0xff]  }
0x1111   :  { %6968 = vmatpush1.msra.mxu1 %v6877_v22  ;;  %7039 = vmatpush1.msra.mxu0 %v6879_v15  ;;  %v13843_v13 = vld [vmem:[%s20127_s12 + $0x260] ss:$16 sps:$4 sm:$0xff]   ;;  %v13851_v31 = vld [vmem:[%s20127_s12 + $0x244] ss:$16 sps:$4 sm:$0xff]   ;;  %v13872_v15 = vld [vmem:[%s20127_s12 + $0xec] ss:$16 sps:$4 sm:$0xff]  }
0x1112   :  { %6969 = vmatprep.subr.mxu1 %v6874_v2  ;;  %7040 = vmatprep.subr.mxu0 %v6876_v53  ;;  %v13810_v14 = vld [vmem:[%s20127_s12 + $0x40] ss:$16 sps:$4 sm:$0xff]   ;;  %v13815_v41 = vld [vmem:[%s20127_s12 + $0x24] ss:$16 sps:$4 sm:$0xff]   ;;  %v20670_v53 = vld [vmem:[#allocation86_spill] sm:$0xff] }
0x1113   :  { %6970 = vmatpush1.msra.mxu1 %v6873_v6  ;;  %7041 = vmatpush1.msra.mxu0 %v6875_v46  ;;  %v13849_v51 = vld [vmem:[%s20127_s12 + $0x240] ss:$16 sps:$4 sm:$0xff]   ;;  %v13857_v4 = vld [vmem:[%s20127_s12 + $0x224] ss:$16 sps:$4 sm:$0xff]   ;;  %v4557_v3 = vadd.f32 %v20670_v53, %v20669_v19  ;;  %v13936_v19 = vld [vmem:[%s20127_s12 + $0x148] ss:$16 sps:$4 sm:$0xff]  }
0x1114   :  { %7004 = vmatmul.mubr.f32.vlgmr.msra.gmra.mxu1 %v12458_v25  ;;  %7075 = vmatmul.mubr.f32.vlgmr.msra.gmra.mxu0 %v12458_v25  ;;  %v13813_v50 = vld [vmem:[%s20127_s12 + $0x20] ss:$16 sps:$4 sm:$0xff]   ;;  %v13818_v20 = vld [vmem:[%s20127_s12 + $0x4] ss:$16 sps:$4 sm:$0xff]   ;;  %v13941_v53 = vld [vmem:[%s20127_s12 + $0x12c] ss:$16 sps:$4 sm:$0xff]  }
0x1115   :  { %7692 = vmatprep.subr.bf16.mxu1 %v13797_v52  ;;  %7733 = vmatprep.subr.bf16.mxu0 %v13821_v54  ;;  %v13855_v8 = vld [vmem:[%s20127_s12 + $0x220] ss:$16 sps:$4 sm:$0xff]   ;;  %v13863_v58 = vld [vmem:[%s20127_s12 + $0x204] ss:$16 sps:$4 sm:$0xff]  }
0x1116   :  { %7693 = vmatpush1.bf16.msra.mxu1 %v13795_v16  ;;  %7734 = vmatpush1.bf16.msra.mxu0 %v13819_v32  ;;  %v13816_v24 = vld [vmem:[%s20127_s12] ss:$16 sps:$4 sm:$0xff]   ;;  %v13824_v23 = vld [vmem:[%s20127_s12 + $0x1e4] ss:$16 sps:$4 sm:$0xff]   ;;  %v20674_v16 = vld [vmem:[#allocation62_spill] sm:$0xff] }
0x1117   :  { %7694 = vmatprep.subr.bf16.mxu1 %v13800_v17  ;;  %7735 = vmatprep.subr.bf16.mxu0 %v13827_v43  ;;  %v13861_v34 = vld [vmem:[%s20127_s12 + $0x200] ss:$16 sps:$4 sm:$0xff]   ;;  %v13830_v12 = vld [vmem:[%s20127_s12 + $0x1c4] ss:$16 sps:$4 sm:$0xff]  }
0x1118   :  { %v13822_v21 = vld [vmem:[%s20127_s12 + $0x1e0] ss:$16 sps:$4 sm:$0xff]   ;;  %v13836_v29 = vld [vmem:[%s20127_s12 + $0x1a4] ss:$16 sps:$4 sm:$0xff]  }
0x1119   :  { %v13828_v10 = vld [vmem:[%s20127_s12 + $0x1c0] ss:$16 sps:$4 sm:$0xff]   ;;  %v13842_v59 = vld [vmem:[%s20127_s12 + $0x184] ss:$16 sps:$4 sm:$0xff]  }
0x111a   :  { %7695 = vmatpush1.bf16.msra.mxu1 %v13798_v49  ;;  %7736 = vmatpush1.bf16.msra.mxu0 %v13825_v33  ;;  %v13834_v28 = vld [vmem:[%s20127_s12 + $0x1a0] ss:$16 sps:$4 sm:$0xff]   ;;  %v13848_v5 = vld [vmem:[%s20127_s12 + $0x164] ss:$16 sps:$4 sm:$0xff]  }
0x111b   :  { %7696 = vmatprep.subr.bf16.mxu1 %v13803_v1  ;;  %7737 = vmatprep.subr.bf16.mxu0 %v13833_v42  ;;  %v13840_v56 = vld [vmem:[%s20127_s12 + $0x180] ss:$16 sps:$4 sm:$0xff]   ;;  %v13854_v27 = vld [vmem:[%s20127_s12 + $0x144] ss:$16 sps:$4 sm:$0xff]  }
0x111c   :  { %v13846_v11 = vld [vmem:[%s20127_s12 + $0x160] ss:$16 sps:$4 sm:$0xff]   ;;  %v13860_v44 = vld [vmem:[%s20127_s12 + $0x124] ss:$16 sps:$4 sm:$0xff]  }
0x111d   :  { %v13852_v48 = vld [vmem:[%s20127_s12 + $0x140] ss:$16 sps:$4 sm:$0xff]   ;;  %v13866_v36 = vld [vmem:[%s20127_s12 + $0x104] ss:$16 sps:$4 sm:$0xff]  }
0x111e   :  { %7697 = vmatpush1.bf16.msra.mxu1 %v13801_v47  ;;  %7738 = vmatpush1.bf16.msra.mxu0 %v13831_v61  ;;  %v13858_v45 = vld [vmem:[%s20127_s12 + $0x120] ss:$16 sps:$4 sm:$0xff]   ;;  %v13869_v22 = vld [vmem:[%s20127_s12 + $0x304] ss:$16 sps:$4 sm:$0xff]   ;;  %v13870_v47 = vld [vmem:[%s20127_s12 + $0xe8] ss:$16 sps:$4 sm:$0xff]  }
0x111f   :  { %7698 = vmatprep.subr.bf16.mxu1 %v13806_v26  ;;  %7739 = vmatprep.subr.bf16.mxu0 %v13839_v9  ;;  %v13864_v39 = vld [vmem:[%s20127_s12 + $0x100] ss:$16 sps:$4 sm:$0xff]   ;;  %v13873_v61 = vld [vmem:[%s20127_s12 + $0x2e8] ss:$16 sps:$4 sm:$0xff]  }
0x1120   :  { %v13867_v18 = vld [vmem:[%s20127_s12 + $0x300] ss:$16 sps:$4 sm:$0xff]  }
0x1121   :  { %v20667_v0 = vld [vmem:[#allocation87_spill] sm:$0xff]  ;;  %v20668_v2 = vld [vmem:[#allocation97_spill] sm:$0xff] }
0x1122   :  { %7699 = vmatpush1.bf16.msra.mxu1 %v13804_v62  ;;  %7740 = vmatpush1.bf16.msra.mxu0 %v13837_v38  ;;  %v4486_v57 = vadd.f32 %v20668_v2, %v20667_v0  ;;  %v20672_v46 = vld [vmem:[#allocation29_spill] sm:$0xff]  ;;  %v13878_v62 = vld [vmem:[%s20127_s12 + $0xcc] ss:$16 sps:$4 sm:$0xff]   ;;  %v13933_v2 = vld [vmem:[%s20127_s12 + $0x168] ss:$16 sps:$4 sm:$0xff]  }
0x1123   :  { %7700 = vmatprep.subr.bf16.mxu1 %v13809_v37  ;;  %7741 = vmatprep.subr.bf16.mxu0 %v13845_v30  ;;  %v5821_v25 = vadd.f32 %v20672_v46, %v4557_v3  ;;  %v20673_v52 = vld [vmem:[#allocation101_spill] sm:$0xff]  ;;  %v13881_v38 = vld [vmem:[%s20127_s12 + $0x2cc] ss:$16 sps:$4 sm:$0xff]   ;;  %v13876_v37 = vld [vmem:[%s20127_s12 + $0xc8] ss:$16 sps:$4 sm:$0xff]  }
0x1124   :  { %v5819_v63 = vadd.f32 %v20671_v40, %v4486_v57  ;;  %v13879_v30 = vld [vmem:[%s20127_s12 + $0x2c8] ss:$16 sps:$4 sm:$0xff]   ;;  %v13935_v0 = vld [vmem:[%s20127_s12 + $0x16c] ss:$16 sps:$4 sm:$0xff]  }
0x1125   :  { %v13938_v57 = vld [vmem:[%s20127_s12 + $0x14c] ss:$16 sps:$4 sm:$0xff]   ;;  %v13939_v3 = vld [vmem:[%s20127_s12 + $0x128] ss:$16 sps:$4 sm:$0xff]  }
0x1126   :  { %7701 = vmatpush1.bf16.msra.mxu1 %v13807_v7  ;;  %7742 = vmatpush1.bf16.msra.mxu0 %v13843_v13  ;;  %v13884_v7 = vld [vmem:[%s20127_s12 + $0xac] ss:$16 sps:$4 sm:$0xff]  }
0x1127   :  { %7702 = vmatprep.subr.bf16.mxu1 %v13812_v35  ;;  %7743 = vmatprep.subr.bf16.mxu0 %v13851_v31  ;;  %v13887_v13 = vld [vmem:[%s20127_s12 + $0x2ac] ss:$16 sps:$4 sm:$0xff]   ;;  %v13882_v35 = vld [vmem:[%s20127_s12 + $0xa8] ss:$16 sps:$4 sm:$0xff]  }
0x1128   :  { %v13885_v31 = vld [vmem:[%s20127_s12 + $0x2a8] ss:$16 sps:$4 sm:$0xff]  }
0x112a   :  { %7703 = vmatpush1.bf16.msra.mxu1 %v13810_v14  ;;  %7744 = vmatpush1.bf16.msra.mxu0 %v13849_v51  ;;  %v13890_v14 = vld [vmem:[%s20127_s12 + $0x8c] ss:$16 sps:$4 sm:$0xff]  }
0x112b   :  { %7704 = vmatprep.subr.bf16.mxu1 %v13815_v41  ;;  %7745 = vmatprep.subr.bf16.mxu0 %v13857_v4  ;;  %v13893_v51 = vld [vmem:[%s20127_s12 + $0x28c] ss:$16 sps:$4 sm:$0xff]   ;;  %v13888_v41 = vld [vmem:[%s20127_s12 + $0x88] ss:$16 sps:$4 sm:$0xff]  }
0x112c   :  { %v13891_v4 = vld [vmem:[%s20127_s12 + $0x288] ss:$16 sps:$4 sm:$0xff]  }
0x112e   :  { %7705 = vmatpush1.bf16.msra.mxu1 %v13813_v50  ;;  %7746 = vmatpush1.bf16.msra.mxu0 %v13855_v8  ;;  %v13896_v50 = vld [vmem:[%s20127_s12 + $0x6c] ss:$16 sps:$4 sm:$0xff]  }
0x112f   :  { %7706 = vmatprep.subr.bf16.mxu1 %v13818_v20  ;;  %7747 = vmatprep.subr.bf16.mxu0 %v13863_v58  ;;  %v13899_v8 = vld [vmem:[%s20127_s12 + $0x26c] ss:$16 sps:$4 sm:$0xff]   ;;  %v13894_v20 = vld [vmem:[%s20127_s12 + $0x68] ss:$16 sps:$4 sm:$0xff]  }
0x1130   :  { %v13897_v58 = vld [vmem:[%s20127_s12 + $0x268] ss:$16 sps:$4 sm:$0xff]  }
0x1132   :  { %7707 = vmatpush1.bf16.msra.mxu1 %v13816_v24  ;;  %7748 = vmatpush1.bf16.msra.mxu0 %v13861_v34  ;;  %v13902_v24 = vld [vmem:[%s20127_s12 + $0x4c] ss:$16 sps:$4 sm:$0xff]  }
0x1133   :  { %7708 = vmatprep.subr.bf16.mxu1 %v13824_v23  ;;  %7763 = vmatprep.subr.bf16.mxu0 %v13869_v22  ;;  %v13905_v34 = vld [vmem:[%s20127_s12 + $0x24c] ss:$16 sps:$4 sm:$0xff]   ;;  %v13900_v23 = vld [vmem:[%s20127_s12 + $0x48] ss:$16 sps:$4 sm:$0xff]  }
0x1134   :  { %v13924_v22 = vld [vmem:[%s20127_s12 + $0x1c8] ss:$16 sps:$4 sm:$0xff]  }
0x1136   :  { %7709 = vmatpush2.bf16.msra.mxu1 %v13822_v21  ;;  %7764 = vmatpush2.bf16.msra.mxu0 %v13867_v18  ;;  %v13903_v21 = vld [vmem:[%s20127_s12 + $0x248] ss:$16 sps:$4 sm:$0xff]  }
0x1137   :  { %7710 = vmatprep.subr.bf16.mxu1 %v13830_v12  ;;  %7774 = vmatprep.subr.bf16.mxu0 %v13872_v15  ;;  %v13908_v12 = vld [vmem:[%s20127_s12 + $0x2c] ss:$16 sps:$4 sm:$0xff]   ;;  %v13927_v18 = vld [vmem:[%s20127_s12 + $0x1a8] ss:$16 sps:$4 sm:$0xff]  }
0x1138   :  { %v13932_v15 = vld [vmem:[%s20127_s12 + $0x18c] ss:$16 sps:$4 sm:$0xff]  }
0x113a   :  { %7711 = vmatpush2.bf16.msra.mxu1 %v13828_v10  ;;  %v13911_v10 = vld [vmem:[%s20127_s12 + $0x22c] ss:$16 sps:$4 sm:$0xff]  }
0x113b   :  { %7712 = vmatprep.subr.bf16.mxu1 %v13836_v29  ;;  %v13906_v29 = vld [vmem:[%s20127_s12 + $0x28] ss:$16 sps:$4 sm:$0xff]  }
0x113e   :  { %7713 = vmatpush2.bf16.msra.mxu1 %v13834_v28  ;;  %v13909_v28 = vld [vmem:[%s20127_s12 + $0x228] ss:$16 sps:$4 sm:$0xff]  }
0x113f   :  { %7714 = vmatprep.subr.bf16.mxu1 %v13842_v59  ;;  %v13914_v59 = vld [vmem:[%s20127_s12 + $0xc] ss:$16 sps:$4 sm:$0xff]  }
0x1142   :  { %7715 = vmatpush2.bf16.msra.mxu1 %v13840_v56  ;;  %v13917_v56 = vld [vmem:[%s20127_s12 + $0x20c] ss:$16 sps:$4 sm:$0xff]  }
0x1143   :  { %7716 = vmatprep.subr.bf16.mxu1 %v13848_v5  ;;  %v13912_v5 = vld [vmem:[%s20127_s12 + $0x8] ss:$16 sps:$4 sm:$0xff]  }
0x1146   :  { %7717 = vmatpush2.bf16.msra.mxu1 %v13846_v11  ;;  %v13915_v11 = vld [vmem:[%s20127_s12 + $0x208] ss:$16 sps:$4 sm:$0xff]  }
0x1147   :  { %7718 = vmatprep.subr.bf16.mxu1 %v13854_v27  ;;  %v13920_v27 = vld [vmem:[%s20127_s12 + $0x1ec] ss:$16 sps:$4 sm:$0xff]  }
0x114a   :  { %7719 = vmatpush2.bf16.msra.mxu1 %v13852_v48  ;;  %v13923_v48 = vld [vmem:[%s20127_s12 + $0x30c] ss:$16 sps:$4 sm:$0xff]  }
0x114b   :  { %7720 = vmatprep.subr.bf16.mxu1 %v13860_v44  ;;  %v13918_v44 = vld [vmem:[%s20127_s12 + $0x1e8] ss:$16 sps:$4 sm:$0xff]  }
0x114e   :  { %7721 = vmatpush2.bf16.msra.mxu1 %v13858_v45  ;;  %v13921_v45 = vld [vmem:[%s20127_s12 + $0x308] ss:$16 sps:$4 sm:$0xff]  }
0x114f   :  { %7722 = vmatprep.subr.bf16.mxu1 %v13866_v36  ;;  %v13926_v36 = vld [vmem:[%s20127_s12 + $0x1cc] ss:$16 sps:$4 sm:$0xff]  }
0x1152   :  { %7723 = vmatpush2.bf16.msra.mxu1 %v13864_v39  ;;  %v13929_v39 = vld [vmem:[%s20127_s12 + $0x1ac] ss:$16 sps:$4 sm:$0xff]  }
0x1153   :  { %7815 = vmatprep.subr.bf16.mxu1 %v13875_v60  ;;  %v13930_v60 = vld [vmem:[%s20127_s12 + $0x188] ss:$16 sps:$4 sm:$0xff]  }
0x11d4   :  { %v7005_v55 = vpop.f32.mrf.mxu1  ;;  %v7076_v6 = vpop.f32.mrf.mxu0 }
0x11d5   :  { %v7081_v54 = vadd.f32 %v7005_v55, %v20673_v52  ;;  %v7083_v32 = vadd.f32 %v7076_v6, %v20674_v16  ;;  %v13944_v55 = vld [vmem:[%s20127_s12 + $0x10c] ss:$16 sps:$4 sm:$0xff]   ;;  %v13942_v6 = vld [vmem:[%s20127_s12 + $0x108] ss:$16 sps:$4 sm:$0xff]  }
0x11d6   :  { %v7007_v17 = vpop.f32.mrf.mxu1  ;;  %v7078_v43 = vpop.f32.mrf.mxu0 }
0x11d7   :  { %v7082_v49 = vadd.f32 %v7007_v17, %v5819_v63  ;;  %v7084_v33 = vadd.f32 %v7078_v43, %v5821_v25  ;;  %v18335_v26 = vpack.c.bf16 %v7081_v54, %v7081_v54  ;;  %v18337_v9 = vpack.c.bf16 %v7083_v32, %v7083_v32 }
0x11d9   :  { %v7186_v1 = vpack.c.bf16 %v7082_v49, %v7082_v49  ;;  %v7188_v42 = vpack.c.bf16 %v7084_v33, %v7084_v33 }
0x11db   :  { %7724 = vmatprep.mubr.bf16.mxu1 %v7186_v1  ;;  %12559 = vmatprep.mubr.msk.bf16.mxu0 %vm1042_vm2, %v7188_v42 }
0x11dc   :  { %7725 = vmatmul.mubr.bf16.vlgmr.msra.gmra.mxu1 %v18335_v26  ;;  %7766 = vmatmul.mubr.bf16.vlgmr.msra.gmra.mxu0 %v18337_v9 }
0x11dd   :  { %7775 = vmatpush1.bf16.msra.mxu0 %v13870_v47  ;;  %7816 = vmatpush1.bf16.msra.mxu1 %v13873_v61  ;;  %v20676_v47 = vld [vmem:[#allocation10_spill] sm:$0xff] }
0x11de   :  { %7806 = vmatprep.mubr.bf16.mxu0 %v7186_v1  ;;  %12560 = vmatprep.mubr.msk.bf16.mxu1 %vm1042_vm2, %v7188_v42  ;;  %v20675_v1 = vld [vmem:[#allocation12_spill] sm:$0xff] }
0x11df   :  { %7776 = vmatprep.subr.bf16.mxu0 %v13878_v62  ;;  %7817 = vmatprep.subr.bf16.mxu1 %v13881_v38  ;;  %v20677_v38 = vld [vmem:[#allocation11_spill] sm:$0xff] }
0x11e1   :  { %7777 = vmatpush1.bf16.msra.mxu0 %v13876_v37  ;;  %7818 = vmatpush1.bf16.msra.mxu1 %v13879_v30 }
0x11e2   :  { %7778 = vmatprep.subr.bf16.mxu0 %v13884_v7  ;;  %7819 = vmatprep.subr.bf16.mxu1 %v13887_v13 }
0x11e5   :  { %7779 = vmatpush1.bf16.msra.mxu0 %v13882_v35  ;;  %7820 = vmatpush1.bf16.msra.mxu1 %v13885_v31  ;;  %v20678_v35 = vld [vmem:[#allocation13_spill] sm:$0xff] }
0x11e6   :  { %7780 = vmatprep.subr.bf16.mxu0 %v13890_v14  ;;  %7821 = vmatprep.subr.bf16.mxu1 %v13893_v51 }
0x11e9   :  { %7781 = vmatpush1.bf16.msra.mxu0 %v13888_v41  ;;  %7822 = vmatpush1.bf16.msra.mxu1 %v13891_v4 }
0x11ea   :  { %7782 = vmatprep.subr.bf16.mxu0 %v13896_v50  ;;  %7823 = vmatprep.subr.bf16.mxu1 %v13899_v8 }
0x11ed   :  { %7783 = vmatpush1.bf16.msra.mxu0 %v13894_v20  ;;  %7824 = vmatpush1.bf16.msra.mxu1 %v13897_v58  ;;  %v13945_v20 = vld [vmem:[%s20130_s15 + $0xe0] ss:$16 sps:$4 sm:$0xff]   ;;  %v13947_v58 = vld [vmem:[%s20130_s15 + $0xe4] ss:$16 sps:$4 sm:$0xff]  }
0x11ee   :  { %7784 = vmatprep.subr.bf16.mxu0 %v13902_v24  ;;  %7825 = vmatprep.subr.bf16.mxu1 %v13905_v34  ;;  %v13950_v24 = vld [vmem:[%s20130_s15 + $0xc4] ss:$16 sps:$4 sm:$0xff]   ;;  %v13948_v34 = vld [vmem:[%s20130_s15 + $0xc0] ss:$16 sps:$4 sm:$0xff]  }
0x11f1   :  { %7785 = vmatpush1.bf16.msra.mxu0 %v13900_v23  ;;  %7826 = vmatpush1.bf16.msra.mxu1 %v13903_v21  ;;  %v13953_v23 = vld [vmem:[%s20130_s15 + $0xa4] ss:$16 sps:$4 sm:$0xff]   ;;  %v13969_v21 = vld [vmem:[%s20130_s15 + $0x2e0] ss:$16 sps:$4 sm:$0xff]  }
0x11f2   :  { %7786 = vmatprep.subr.bf16.mxu0 %v13908_v12  ;;  %7827 = vmatprep.subr.bf16.mxu1 %v13911_v10  ;;  %v13971_v12 = vld [vmem:[%s20130_s15 + $0x2e4] ss:$16 sps:$4 sm:$0xff]   ;;  %v13951_v10 = vld [vmem:[%s20130_s15 + $0xa0] ss:$16 sps:$4 sm:$0xff]  }
0x11f5   :  { %7787 = vmatpush1.bf16.msra.mxu0 %v13906_v29  ;;  %7828 = vmatpush1.bf16.msra.mxu1 %v13909_v28  ;;  %v13977_v29 = vld [vmem:[%s20130_s15 + $0x2c4] ss:$16 sps:$4 sm:$0xff]  }
0x11f6   :  { %7788 = vmatprep.subr.bf16.mxu0 %v13914_v59  ;;  %7829 = vmatprep.subr.bf16.mxu1 %v13917_v56  ;;  %v13956_v28 = vld [vmem:[%s20130_s15 + $0x84] ss:$16 sps:$4 sm:$0xff]   ;;  %v13975_v59 = vld [vmem:[%s20130_s15 + $0x2c0] ss:$16 sps:$4 sm:$0xff]  }
0x11f7   :  { %v13983_v56 = vld [vmem:[%s20130_s15 + $0x2a4] ss:$16 sps:$4 sm:$0xff]  }
0x11f9   :  { %7789 = vmatpush1.bf16.msra.mxu0 %v13912_v5  ;;  %7830 = vmatpush1.bf16.msra.mxu1 %v13915_v11  ;;  %v13954_v5 = vld [vmem:[%s20130_s15 + $0x80] ss:$16 sps:$4 sm:$0xff]   ;;  %v13959_v11 = vld [vmem:[%s20130_s15 + $0x64] ss:$16 sps:$4 sm:$0xff]  }
0x11fa   :  { %7790 = vmatprep.subr.bf16.mxu0 %v13920_v27  ;;  %7845 = vmatprep.subr.bf16.mxu1 %v13923_v48  ;;  %v13981_v27 = vld [vmem:[%s20130_s15 + $0x2a0] ss:$16 sps:$4 sm:$0xff]  }
0x11fb   :  { %v13957_v48 = vld [vmem:[%s20130_s15 + $0x60] ss:$16 sps:$4 sm:$0xff]  }
0x11fd   :  { %7791 = vmatpush2.bf16.msra.mxu0 %v13918_v44  ;;  %7846 = vmatpush2.bf16.msra.mxu1 %v13921_v45  ;;  %v13962_v44 = vld [vmem:[%s20130_s15 + $0x44] ss:$16 sps:$4 sm:$0xff]   ;;  %v13960_v45 = vld [vmem:[%s20130_s15 + $0x40] ss:$16 sps:$4 sm:$0xff]  }
0x11fe   :  { %7792 = vmatprep.subr.bf16.mxu0 %v13926_v36  ;;  %8566 = vmatprep.subr.bf16.mxu1 %v13947_v58  ;;  %v13965_v36 = vld [vmem:[%s20130_s15 + $0x24] ss:$16 sps:$4 sm:$0xff]   ;;  %v14025_v58 = vld [vmem:[%s20130_s15 + $0x2ec] ss:$16 sps:$4 sm:$0xff]  }
0x1200   :  { %7848 = vmatmul.mubr.bf16.vlgmr.msra.gmra.mxu1 %v18337_v9 }
0x1201   :  { %7793 = vmatpush2.bf16.msra.mxu0 %v13924_v22  ;;  %8567 = vmatpush1.bf16.msra.mxu1 %v13945_v20  ;;  %v13963_v22 = vld [vmem:[%s20130_s15 + $0x20] ss:$16 sps:$4 sm:$0xff]   ;;  %v14022_v20 = vld [vmem:[%s20130_s15 + $0xec] ss:$16 sps:$4 sm:$0xff]  }
0x1202   :  { %7794 = vmatprep.subr.bf16.mxu0 %v13929_v39  ;;  %8568 = vmatprep.subr.bf16.mxu1 %v13950_v24  ;;  %v13968_v39 = vld [vmem:[%s20130_s15 + $0x4] ss:$16 sps:$4 sm:$0xff]  }
0x1205   :  { %7795 = vmatpush2.bf16.msra.mxu0 %v13927_v18  ;;  %8569 = vmatpush1.bf16.msra.mxu1 %v13948_v34  ;;  %v13966_v18 = vld [vmem:[%s20130_s15] ss:$16 sps:$4 sm:$0xff]  }
0x1206   :  { %7796 = vmatprep.subr.bf16.mxu0 %v13932_v15  ;;  %8570 = vmatprep.subr.bf16.mxu1 %v13953_v23  ;;  %v13974_v15 = vld [vmem:[%s20130_s15 + $0x1e4] ss:$16 sps:$4 sm:$0xff]  }
0x1209   :  { %7797 = vmatpush2.bf16.msra.mxu0 %v13930_v60  ;;  %8571 = vmatpush1.bf16.msra.mxu1 %v13951_v10  ;;  %v13972_v60 = vld [vmem:[%s20130_s15 + $0x1e0] ss:$16 sps:$4 sm:$0xff]   ;;  %v20679_v10 = vld [vmem:[#allocation8_spill] sm:$0xff] }
0x120a   :  { %7798 = vmatprep.subr.bf16.mxu0 %v13935_v0  ;;  %8572 = vmatprep.subr.bf16.mxu1 %v13956_v28  ;;  %v13980_v0 = vld [vmem:[%s20130_s15 + $0x1c4] ss:$16 sps:$4 sm:$0xff]  }
0x120b   :  { %v20680_v28 = vld [vmem:[#allocation9_spill] sm:$0xff] }
0x120d   :  { %7799 = vmatpush2.bf16.msra.mxu0 %v13933_v2  ;;  %8573 = vmatpush1.bf16.msra.mxu1 %v13954_v5  ;;  %v13978_v2 = vld [vmem:[%s20130_s15 + $0x1c0] ss:$16 sps:$4 sm:$0xff]  }
0x120e   :  { %7800 = vmatprep.subr.bf16.mxu0 %v13938_v57  ;;  %8574 = vmatprep.subr.bf16.mxu1 %v13959_v11  ;;  %v20682_v11 = vld [vmem:[#allocation7_spill] sm:$0xff] }
0x1211   :  { %7801 = vmatpush2.bf16.msra.mxu0 %v13936_v19  ;;  %8575 = vmatpush1.bf16.msra.mxu1 %v13957_v48 }
0x1212   :  { %7802 = vmatprep.subr.bf16.mxu0 %v13941_v53  ;;  %8576 = vmatprep.subr.bf16.mxu1 %v13962_v44 }
0x1215   :  { %7803 = vmatpush2.bf16.msra.mxu0 %v13939_v3  ;;  %8577 = vmatpush1.bf16.msra.mxu1 %v13960_v45 }
0x1216   :  { %7804 = vmatprep.subr.bf16.mxu0 %v13944_v55  ;;  %8578 = vmatprep.subr.bf16.mxu1 %v13965_v36 }
0x1219   :  { %7805 = vmatpush2.bf16.msra.mxu0 %v13942_v6  ;;  %8579 = vmatpush1.bf16.msra.mxu1 %v13963_v22 }
0x121a   :  { %8607 = vmatprep.subr.bf16.mxu0 %v13971_v12  ;;  %8580 = vmatprep.subr.bf16.mxu1 %v13968_v39  ;;  %v7857_v12 = vld [vmem:[%s20129_s14] sm:$0xf] }
0x121b   :  { %v7920_v44 = vrot.slane %v7857_v12, %v20679_v10  ;;  %v7928_v45 = vrot.slane %v7857_v12, %v20680_v28  ;;  %v7924_v22 = vrot.slane %v7857_v12, %v20682_v11 }
0x121c   :  { %7807 = vmatmul.mubr.bf16.vlgmr.msra.gmra.mxu0 %v18335_v26 }
0x121d   :  { %8608 = vmatpush1.bf16.msra.mxu0 %v13969_v21  ;;  %8581 = vmatpush1.bf16.msra.mxu1 %v13966_v18  ;;  %v7856_v21 = vld [vmem:[%s20128_s13] sm:$0xf] }
0x121e   :  { %8609 = vmatprep.subr.bf16.mxu0 %v13977_v29  ;;  %8582 = vmatprep.subr.bf16.mxu1 %v13974_v15  ;;  %v7895_v29 = vrot.slane %v7856_v21, %v20679_v10 }
0x1221   :  { %8610 = vmatpush1.bf16.msra.mxu0 %v13975_v59  ;;  %8583 = vmatpush2.bf16.msra.mxu1 %v13972_v60  ;;  %v7903_v59 = vrot.slane %v7856_v21, %v20680_v28 }
0x1222   :  { %8611 = vmatprep.subr.bf16.mxu0 %v13983_v56  ;;  %8584 = vmatprep.subr.bf16.mxu1 %v13980_v0  ;;  %v20681_v56 = vld [vmem:[#allocation6_spill] sm:$0xff] }
0x1223   :  { %v7891_v5 = vrot.slane %v7856_v21, %v20681_v56  ;;  %v7916_v36 = vrot.slane %v7857_v12, %v20681_v56  ;;  %v14076_v12 = vld [vmem:[%s20130_s15 + $0x1cc] ss:$16 sps:$4 sm:$0xff]  }
0x1225   :  { %8612 = vmatpush1.bf16.msra.mxu0 %v13981_v27  ;;  %8585 = vmatpush2.bf16.msra.mxu1 %v13978_v2  ;;  %v7899_v27 = vrot.slane %v7856_v21, %v20682_v11  ;;  %v14071_v21 = vld [vmem:[%s20130_s15 + $0x308] ss:$16 sps:$4 sm:$0xff]  }
0x129c   :  { %v7726_v40 = vpop.f32.mrf.mxu1  ;;  %v7767_v63 = vpop.f32.mrf.mxu0 }
0x129d   :  { %v7727_v61 = vadd.f32 %v7726_v40, %v20676_v47  ;;  %v13993_v47 = vld [vmem:[%s20130_s15 + $0x260] ss:$16 sps:$4 sm:$0xff]  }
0x129e   :  { %v7728_v46 = vpop.f32.mrf.mxu1  ;;  %v7769_v25 = vpop.f32.mrf.mxu0 }
0x129f   :  { %v7729_v42 = vadd.f32 %v7728_v46, %v20675_v1  ;;  %v18487_v26 = vadd.f32 %v7767_v63, %v7727_v61  ;;  %v13990_v1 = vld [vmem:[%s20130_s15 + $0x180] ss:$16 sps:$4 sm:$0xff]   ;;  %v13995_v61 = vld [vmem:[%s20130_s15 + $0x264] ss:$16 sps:$4 sm:$0xff]  }
0x12a0   :  { %v7730_v52 = vpop.f32.mrf.mxu1  ;;  %v7771_v54 = vpop.f32.mrf.mxu0 }
0x12a1   :  { %v18485_v9 = vadd.f32 %v7769_v25, %v7729_v42  ;;  %v13992_v42 = vld [vmem:[%s20130_s15 + $0x184] ss:$16 sps:$4 sm:$0xff]  }
0x12a2   :  { %v7731_v16 = vpop.f32.mrf.mxu1  ;;  %v7772_v32 = vpop.f32.mrf.mxu0 }
0x12a3   :  { %v7858_v7 = vadd.f32 %v18485_v9, %v18487_v26 }
0x12c0   :  { %v7849_v17 = vpop.f32.mrf.mxu1 }
0x12c2   :  { %v7851_v43 = vpop.f32.mrf.mxu1 }
0x12c4   :  { %v7853_v49 = vpop.f32.mrf.mxu1 }
0x12c5   :  { %v13984_v49 = vld [vmem:[%s20130_s15 + $0x1a0] ss:$16 sps:$4 sm:$0xff]  }
0x12c6   :  { %v7854_v33 = vpop.f32.mrf.mxu1 }
0x12c7   :  { %v13987_v33 = vld [vmem:[%s20130_s15 + $0x280] ss:$16 sps:$4 sm:$0xff]  }
0x12dc   :  { %v7808_v62 = vpop.f32.mrf.mxu0 }
0x12dd   :  { %v7809_v37 = vadd.f32 %v7808_v62, %v20677_v38  ;;  %v14001_v62 = vld [vmem:[%s20130_s15 + $0x244] ss:$16 sps:$4 sm:$0xff]   ;;  %v13999_v38 = vld [vmem:[%s20130_s15 + $0x240] ss:$16 sps:$4 sm:$0xff]  }
0x12de   :  { %v7810_v30 = vpop.f32.mrf.mxu0 }
0x12df   :  { %v18492_v13 = vadd.f32 %v7849_v17, %v7809_v37  ;;  %v7811_v31 = vadd.f32 %v7810_v30, %v20678_v35  ;;  %v13986_v17 = vld [vmem:[%s20130_s15 + $0x1a4] ss:$16 sps:$4 sm:$0xff]  }
0x12e0   :  { %v7812_v14 = vpop.f32.mrf.mxu0  ;;  %8586 = vmatprep.subr.bf16.mxu1 %v13986_v17  ;;  %v14004_v37 = vld [vmem:[%s20130_s15 + $0x144] ss:$16 sps:$4 sm:$0xff]   ;;  %v14026_v17 = vld [vmem:[%s20130_s15 + $0xc8] ss:$16 sps:$4 sm:$0xff]  }
0x12e1   :  { %v18495_v51 = vadd.f32 %v7851_v43, %v7811_v31  ;;  %v7859_v41 = vadd.f32 %v7858_v7, %v18492_v13  ;;  %v13989_v43 = vld [vmem:[%s20130_s15 + $0x284] ss:$16 sps:$4 sm:$0xff]   ;;  %8587 = vmatpush2.bf16.msra.mxu1 %v13984_v49  ;;  %v14002_v7 = vld [vmem:[%s20130_s15 + $0x140] ss:$16 sps:$4 sm:$0xff]   ;;  %v14034_v49 = vld [vmem:[%s20130_s15 + $0xac] ss:$16 sps:$4 sm:$0xff]  }
0x12e2   :  { %v7813_v4 = vpop.f32.mrf.mxu0  ;;  %8613 = vmatprep.subr.bf16.mxu0 %v13989_v43  ;;  %8588 = vmatprep.subr.bf16.mxu1 %v13992_v42  ;;  %v14007_v30 = vld [vmem:[%s20130_s15 + $0x224] ss:$16 sps:$4 sm:$0xff]   ;;  %v14008_v14 = vld [vmem:[%s20130_s15 + $0x120] ss:$16 sps:$4 sm:$0xff]   ;;  %v14029_v43 = vld [vmem:[%s20130_s15 + $0x2c8] ss:$16 sps:$4 sm:$0xff]  }
0x12e3   :  { %v7860_v50 = vsel %vm1042_vm2, %v18495_v51, 0.0  ;;  %8614 = vmatpush1.bf16.msra.mxu0 %v13987_v33  ;;  %v14010_v35 = vld [vmem:[%s20130_s15 + $0x124] ss:$16 sps:$4 sm:$0xff]   ;;  %v14037_v33 = vld [vmem:[%s20130_s15 + $0x2ac] ss:$16 sps:$4 sm:$0xff]  }
0x12e4   :  { %v7861_v8 = vadd.f32 %v7860_v50, %v7859_v41  ;;  %8615 = vmatprep.subr.bf16.mxu0 %v13995_v61  ;;  %v14013_v31 = vld [vmem:[%s20130_s15 + $0x204] ss:$16 sps:$4 sm:$0xff]   ;;  %v14014_v50 = vld [vmem:[%s20130_s15 + $0x100] ss:$16 sps:$4 sm:$0xff]   ;;  %v14035_v42 = vld [vmem:[%s20130_s15 + $0x2a8] ss:$16 sps:$4 sm:$0xff]  }
0x12e5   :  { %8589 = vmatpush2.bf16.msra.mxu1 %v13990_v1  ;;  %v14016_v41 = vld [vmem:[%s20130_s15 + $0x104] ss:$16 sps:$4 sm:$0xff]   ;;  %v14032_v1 = vld [vmem:[%s20130_s15 + $0xa8] ss:$16 sps:$4 sm:$0xff]   ;;  %v14043_v61 = vld [vmem:[%s20130_s15 + $0x28c] ss:$16 sps:$4 sm:$0xff]  }
0x12e6   :  { %7862 = vadd.xlane.f32.xlu0 %v7861_v8  ;;  %v14019_v4 = vld [vmem:[%s20130_s15 + $0x304] ss:$16 sps:$4 sm:$0xff]   ;;  %v14017_v8 = vld [vmem:[%s20130_s15 + $0x300] ss:$16 sps:$4 sm:$0xff]  }
0x12e7   :  { %8616 = vmatpush1.bf16.msra.mxu0 %v13993_v47  ;;  %v14040_v47 = vld [vmem:[%s20130_s15 + $0x8c] ss:$16 sps:$4 sm:$0xff]  }
0x12e8   :  { %8617 = vmatprep.subr.bf16.mxu0 %v14001_v62  ;;  %v14041_v62 = vld [vmem:[%s20130_s15 + $0x288] ss:$16 sps:$4 sm:$0xff]  }
0x12eb   :  { %8618 = vmatpush1.bf16.msra.mxu0 %v13999_v38  ;;  %v14049_v38 = vld [vmem:[%s20130_s15 + $0x26c] ss:$16 sps:$4 sm:$0xff]  }
0x12ec   :  { %8619 = vmatprep.subr.bf16.mxu0 %v14007_v30  ;;  %v14047_v30 = vld [vmem:[%s20130_s15 + $0x268] ss:$16 sps:$4 sm:$0xff]  }
0x136f   :  { %v7863_v57 = vpop.xlane.xlu0 %7862 }
0x1370   :  { %v7865_v19 = vmul.f32 0.0025, %v7863_v57 }
0x1372   :  { %v18579_v53 = vsub.f32 %v18487_v26, %v7865_v19  ;;  %v18582_v3 = vsub.f32 %v18485_v9, %v7865_v19  ;;  %v18585_v55 = vsub.f32 %v18492_v13, %v7865_v19  ;;  %v18588_v6 = vsub.f32 %v18495_v51, %v7865_v19  ;;  %v13998_v9 = vld [vmem:[%s20130_s15 + $0x164] ss:$16 sps:$4 sm:$0xff]   ;;  %v13996_v26 = vld [vmem:[%s20130_s15 + $0x160] ss:$16 sps:$4 sm:$0xff]  }
0x1373   :  { %8590 = vmatprep.subr.bf16.mxu1 %v13998_v9  ;;  %v14005_v13 = vld [vmem:[%s20130_s15 + $0x220] ss:$16 sps:$4 sm:$0xff]   ;;  %v14038_v9 = vld [vmem:[%s20130_s15 + $0x88] ss:$16 sps:$4 sm:$0xff]  }
0x1374   :  { %v7870_v40 = vmul.f32 %v18579_v53, %v18579_v53  ;;  %v7871_v63 = vmul.f32 %v18582_v3, %v18582_v3  ;;  %v7873_v46 = vmul.f32 %v18588_v6, %v18588_v6  ;;  %v7872_v25 = vmul.f32 %v18585_v55, %v18585_v55  ;;  %8591 = vmatpush2.bf16.msra.mxu1 %v13996_v26  ;;  %v14011_v51 = vld [vmem:[%s20130_s15 + $0x200] ss:$16 sps:$4 sm:$0xff]   ;;  %v14046_v26 = vld [vmem:[%s20130_s15 + $0x6c] ss:$16 sps:$4 sm:$0xff]  }
0x1375   :  { %8592 = vmatprep.subr.bf16.mxu1 %v14004_v37  ;;  %8620 = vmatpush1.bf16.msra.mxu0 %v14005_v13  ;;  %v14044_v37 = vld [vmem:[%s20130_s15 + $0x68] ss:$16 sps:$4 sm:$0xff]   ;;  %v14055_v13 = vld [vmem:[%s20130_s15 + $0x24c] ss:$16 sps:$4 sm:$0xff]  }
0x1376   :  { %v7874_v52 = vadd.f32 %v7871_v63, %v7870_v40  ;;  %v7876_v16 = vsel %vm1042_vm2, %v7873_v46, 0.0  ;;  %8621 = vmatprep.subr.bf16.mxu0 %v14013_v31  ;;  %v14053_v31 = vld [vmem:[%s20130_s15 + $0x248] ss:$16 sps:$4 sm:$0xff]  }
0x1378   :  { %v7875_v54 = vadd.f32 %v7874_v52, %v7872_v25  ;;  %8593 = vmatpush2.bf16.msra.mxu1 %v14002_v7  ;;  %v14052_v7 = vld [vmem:[%s20130_s15 + $0x4c] ss:$16 sps:$4 sm:$0xff]  }
0x1379   :  { %8594 = vmatprep.subr.bf16.mxu1 %v14010_v35  ;;  %8622 = vmatpush1.bf16.msra.mxu0 %v14011_v51  ;;  %v14050_v35 = vld [vmem:[%s20130_s15 + $0x48] ss:$16 sps:$4 sm:$0xff]   ;;  %v14061_v51 = vld [vmem:[%s20130_s15 + $0x22c] ss:$16 sps:$4 sm:$0xff]  }
0x137a   :  { %v7877_v32 = vadd.f32 %v7876_v16, %v7875_v54  ;;  %8637 = vmatprep.subr.bf16.mxu0 %v14019_v4  ;;  %v14028_v16 = vld [vmem:[%s20130_s15 + $0xcc] ss:$16 sps:$4 sm:$0xff]   ;;  %v14059_v4 = vld [vmem:[%s20130_s15 + $0x228] ss:$16 sps:$4 sm:$0xff]  }
0x137c   :  { %7878 = vadd.xlane.f32.xlu1 %v7877_v32  ;;  %8595 = vmatpush2.bf16.msra.mxu1 %v14008_v14  ;;  %v14031_v32 = vld [vmem:[%s20130_s15 + $0x2cc] ss:$16 sps:$4 sm:$0xff]  }
0x137d   :  { %8596 = vmatprep.subr.bf16.mxu1 %v14016_v41  ;;  %8638 = vmatpush2.bf16.msra.mxu0 %v14017_v8  ;;  %v14058_v14 = vld [vmem:[%s20130_s15 + $0x2c] ss:$16 sps:$4 sm:$0xff]   ;;  %v14056_v41 = vld [vmem:[%s20130_s15 + $0x28] ss:$16 sps:$4 sm:$0xff]  }
0x137e   :  { %8648 = vmatprep.subr.bf16.mxu0 %v14022_v20  ;;  %v14067_v8 = vld [vmem:[%s20130_s15 + $0x20c] ss:$16 sps:$4 sm:$0xff]   ;;  %v14062_v20 = vld [vmem:[%s20130_s15 + $0x8] ss:$16 sps:$4 sm:$0xff]  }
0x1380   :  { %8597 = vmatpush2.bf16.msra.mxu1 %v14014_v50  ;;  %v14064_v50 = vld [vmem:[%s20130_s15 + $0xc] ss:$16 sps:$4 sm:$0xff]  }
0x1381   :  { %8689 = vmatprep.subr.bf16.mxu1 %v14025_v58  ;;  %v14065_v58 = vld [vmem:[%s20130_s15 + $0x208] ss:$16 sps:$4 sm:$0xff]  }
0x1405   :  { %v7879_v24 = vpop.xlane.xlu1 %7878 }
0x1406   :  { %v7880_v34 = vmul.f32 0.0025, %v7879_v24  ;;  %v14070_v24 = vld [vmem:[%s20130_s15 + $0x1ec] ss:$16 sps:$4 sm:$0xff]  }
0x1408   :  { %v7881_v23 = vadd.f32 1e-05, %v7880_v34  ;;  %v14073_v34 = vld [vmem:[%s20130_s15 + $0x30c] ss:$16 sps:$4 sm:$0xff]  }
0x140a   :  { %14657 = vrsqrt.f32 %v7881_v23  ;;  %v14068_v23 = vld [vmem:[%s20130_s15 + $0x1e8] ss:$16 sps:$4 sm:$0xff]  }
0x1417   :  { %v14658_v48 = vpop.eup %14657 }
0x1418   :  { %v7884_v39 = vmul.f32 %v14658_v48, %v18582_v3  ;;  %v7886_v18 = vmul.f32 %v14658_v48, %v18588_v6  ;;  %v7883_v15 = vmul.f32 %v14658_v48, %v18579_v53  ;;  %v7885_v60 = vmul.f32 %v14658_v48, %v18585_v55  ;;  %v14020_v55 = vld [vmem:[%s20130_s15 + $0xe8] ss:$16 sps:$4 sm:$0xff]  }
0x1419   :  { %v14023_v6 = vld [vmem:[%s20130_s15 + $0x2e8] ss:$16 sps:$4 sm:$0xff]  }
0x141a   :  { %v7909_v0 = vmul.f32 %v7895_v29, %v7884_v39  ;;  %v7911_v2 = vmul.f32 %v7903_v59, %v7886_v18  ;;  %v7908_v57 = vmul.f32 %v7891_v5, %v7883_v15  ;;  %v7910_v19 = vmul.f32 %v7899_v27, %v7885_v60  ;;  %v14074_v29 = vld [vmem:[%s20130_s15 + $0x1c8] ss:$16 sps:$4 sm:$0xff]   ;;  %v14079_v59 = vld [vmem:[%s20130_s15 + $0x1ac] ss:$16 sps:$4 sm:$0xff]  }
0x141b   :  { %v14077_v5 = vld [vmem:[%s20130_s15 + $0x1a8] ss:$16 sps:$4 sm:$0xff]   ;;  %v14082_v27 = vld [vmem:[%s20130_s15 + $0x18c] ss:$16 sps:$4 sm:$0xff]  }
0x141c   :  { %v18695_v40 = vadd.f32 %v7920_v44, %v7909_v0  ;;  %v18697_v63 = vadd.f32 %v7928_v45, %v7911_v2  ;;  %v18699_v46 = vadd.f32 %v7916_v36, %v7908_v57  ;;  %v18701_v25 = vadd.f32 %v7924_v22, %v7910_v19  ;;  %v14080_v48 = vld [vmem:[%s20130_s15 + $0x188] ss:$16 sps:$4 sm:$0xff]   ;;  %v14085_v44 = vld [vmem:[%s20130_s15 + $0x16c] ss:$16 sps:$4 sm:$0xff]  }
0x141d   :  { %v14083_v45 = vld [vmem:[%s20130_s15 + $0x168] ss:$16 sps:$4 sm:$0xff]   ;;  %v14088_v36 = vld [vmem:[%s20130_s15 + $0x14c] ss:$16 sps:$4 sm:$0xff]  }
0x141e   :  { %v8038_v3 = vpack.c.bf16 %v18695_v40, %v18695_v40  ;;  %v8040_v53 = vpack.c.bf16 %v18697_v63, %v18697_v63  ;;  %v18715_v52 = vpack.c.bf16 %v18699_v46, %v18699_v46  ;;  %v18719_v54 = vpack.c.bf16 %v18701_v25, %v18701_v25  ;;  %v14086_v22 = vld [vmem:[%s20130_s15 + $0x148] ss:$16 sps:$4 sm:$0xff]   ;;  %v14091_v39 = vld [vmem:[%s20130_s15 + $0x12c] ss:$16 sps:$4 sm:$0xff]  }
0x141f   :  { %v14089_v18 = vld [vmem:[%s20130_s15 + $0x128] ss:$16 sps:$4 sm:$0xff]   ;;  %v14094_v15 = vld [vmem:[%s20130_s15 + $0x10c] ss:$16 sps:$4 sm:$0xff]  }
0x1420   :  { %8598 = vmatprep.mubr.bf16.mxu1 %v8038_v3  ;;  %12661 = vmatprep.mubr.msk.bf16.mxu0 %vm1042_vm2, %v8040_v53  ;;  %v14092_v60 = vld [vmem:[%s20130_s15 + $0x108] ss:$16 sps:$4 sm:$0xff]  }
0x1421   :  { %8599 = vmatmul.mubr.bf16.vlgmr.msra.gmra.mxu1 %v18715_v52  ;;  %8640 = vmatmul.mubr.bf16.vlgmr.msra.gmra.mxu0 %v18719_v54 }
0x1422   :  { %8649 = vmatpush1.bf16.msra.mxu0 %v14020_v55  ;;  %8690 = vmatpush1.bf16.msra.mxu1 %v14023_v6 }
0x1423   :  { %8680 = vmatprep.mubr.bf16.mxu0 %v8038_v3  ;;  %12662 = vmatprep.mubr.msk.bf16.mxu1 %vm1042_vm2, %v8040_v53 }
0x1424   :  { %8650 = vmatprep.subr.bf16.mxu0 %v14028_v16  ;;  %8691 = vmatprep.subr.bf16.mxu1 %v14031_v32 }
0x1426   :  { %8651 = vmatpush1.bf16.msra.mxu0 %v14026_v17  ;;  %8692 = vmatpush1.bf16.msra.mxu1 %v14029_v43  ;;  %v8041_v43 = vld [vmem:[%s20131_s16] sm:$0xf] }
0x1427   :  { %8652 = vmatprep.subr.bf16.mxu0 %v14034_v49  ;;  %8693 = vmatprep.subr.bf16.mxu1 %v14037_v33  ;;  %v8050_v49 = vrot.slane %v8041_v43, %v20679_v10 }
0x142a   :  { %8653 = vmatpush1.bf16.msra.mxu0 %v14032_v1  ;;  %8694 = vmatpush1.bf16.msra.mxu1 %v14035_v42 }
0x142b   :  { %8654 = vmatprep.subr.bf16.mxu0 %v14040_v47  ;;  %8695 = vmatprep.subr.bf16.mxu1 %v14043_v61  ;;  %v8054_v47 = vrot.slane %v8041_v43, %v20682_v11 }
0x142e   :  { %8655 = vmatpush1.bf16.msra.mxu0 %v14038_v9  ;;  %8696 = vmatpush1.bf16.msra.mxu1 %v14041_v62  ;;  %v8058_v9 = vrot.slane %v8041_v43, %v20680_v28 }
0x142f   :  { %8656 = vmatprep.subr.bf16.mxu0 %v14046_v26  ;;  %8697 = vmatprep.subr.bf16.mxu1 %v14049_v38 }
0x1432   :  { %8657 = vmatpush1.bf16.msra.mxu0 %v14044_v37  ;;  %8698 = vmatpush1.bf16.msra.mxu1 %v14047_v30 }
0x1433   :  { %8658 = vmatprep.subr.bf16.mxu0 %v14052_v7  ;;  %8699 = vmatprep.subr.bf16.mxu1 %v14055_v13 }
0x1436   :  { %8659 = vmatpush1.bf16.msra.mxu0 %v14050_v35  ;;  %8700 = vmatpush1.bf16.msra.mxu1 %v14053_v31 }
0x1437   :  { %8660 = vmatprep.subr.bf16.mxu0 %v14058_v14  ;;  %8701 = vmatprep.subr.bf16.mxu1 %v14061_v51 }
0x143a   :  { %8661 = vmatpush1.bf16.msra.mxu0 %v14056_v41  ;;  %8702 = vmatpush1.bf16.msra.mxu1 %v14059_v4 }
0x143b   :  { %8662 = vmatprep.subr.bf16.mxu0 %v14064_v50  ;;  %8703 = vmatprep.subr.bf16.mxu1 %v14067_v8 }
0x143e   :  { %8663 = vmatpush1.bf16.msra.mxu0 %v14062_v20  ;;  %8704 = vmatpush1.bf16.msra.mxu1 %v14065_v58  ;;  %v14097_v20 = vld [vmem:[%s20134_s19 + $0x154] ss:$24 sps:$4 sm:$0xff]  }
0x143f   :  { %8664 = vmatprep.subr.bf16.mxu0 %v14070_v24  ;;  %8719 = vmatprep.subr.bf16.mxu1 %v14073_v34  ;;  %v14103_v58 = vld [vmem:[%s20134_s19 + $0xf4] ss:$24 sps:$4 sm:$0xff]   ;;  %v14119_v24 = vld [vmem:[%s20134_s19 + $0x450] ss:$24 sps:$4 sm:$0xff]  }
0x1440   :  { %v14121_v34 = vld [vmem:[%s20134_s19 + $0x454] ss:$24 sps:$4 sm:$0xff]  }
0x1442   :  { %8665 = vmatpush2.bf16.msra.mxu0 %v14068_v23  ;;  %8720 = vmatpush2.bf16.msra.mxu1 %v14071_v21  ;;  %v14101_v23 = vld [vmem:[%s20134_s19 + $0xf0] ss:$24 sps:$4 sm:$0xff]   ;;  %v14127_v21 = vld [vmem:[%s20134_s19 + $0x424] ss:$24 sps:$4 sm:$0xff]  }
0x1443   :  { %8666 = vmatprep.subr.bf16.mxu0 %v14076_v12  ;;  %9753 = vmatprep.subr.bf16.mxu1 %v14097_v20  ;;  %v14106_v12 = vld [vmem:[%s20134_s19 + $0xc4] ss:$24 sps:$4 sm:$0xff]  }
0x1444   :  { %v14169_v20 = vld [vmem:[%s20134_s19 + $0x484] ss:$24 sps:$4 sm:$0xff]  }
0x1445   :  { %8722 = vmatmul.mubr.bf16.vlgmr.msra.gmra.mxu1 %v18719_v54 }
0x1446   :  { %8667 = vmatpush2.bf16.msra.mxu0 %v14074_v29  ;;  %v14125_v29 = vld [vmem:[%s20134_s19 + $0x420] ss:$24 sps:$4 sm:$0xff]  }
0x1447   :  { %8668 = vmatprep.subr.bf16.mxu0 %v14079_v59  ;;  %v14133_v59 = vld [vmem:[%s20134_s19 + $0x3f4] ss:$24 sps:$4 sm:$0xff]  }
0x144a   :  { %8669 = vmatpush2.bf16.msra.mxu0 %v14077_v5  ;;  %v14104_v5 = vld [vmem:[%s20134_s19 + $0xc0] ss:$24 sps:$4 sm:$0xff]  }
0x144b   :  { %8670 = vmatprep.subr.bf16.mxu0 %v14082_v27  ;;  %v14109_v27 = vld [vmem:[%s20134_s19 + $0x94] ss:$24 sps:$4 sm:$0xff]  }
0x144e   :  { %8671 = vmatpush2.bf16.msra.mxu0 %v14080_v48  ;;  %v14131_v48 = vld [vmem:[%s20134_s19 + $0x3f0] ss:$24 sps:$4 sm:$0xff]  }
0x144f   :  { %8672 = vmatprep.subr.bf16.mxu0 %v14085_v44  ;;  %v14107_v44 = vld [vmem:[%s20134_s19 + $0x90] ss:$24 sps:$4 sm:$0xff]  }
0x1452   :  { %8673 = vmatpush2.bf16.msra.mxu0 %v14083_v45  ;;  %v14112_v45 = vld [vmem:[%s20134_s19 + $0x64] ss:$24 sps:$4 sm:$0xff]  }
0x1453   :  { %8674 = vmatprep.subr.bf16.mxu0 %v14088_v36  ;;  %v14110_v36 = vld [vmem:[%s20134_s19 + $0x60] ss:$24 sps:$4 sm:$0xff]  }
0x1456   :  { %8675 = vmatpush2.bf16.msra.mxu0 %v14086_v22  ;;  %v14115_v22 = vld [vmem:[%s20134_s19 + $0x34] ss:$24 sps:$4 sm:$0xff]  }
0x1457   :  { %8676 = vmatprep.subr.bf16.mxu0 %v14091_v39  ;;  %v14113_v39 = vld [vmem:[%s20134_s19 + $0x30] ss:$24 sps:$4 sm:$0xff]  }
0x145a   :  { %8677 = vmatpush2.bf16.msra.mxu0 %v14089_v18  ;;  %v14118_v18 = vld [vmem:[%s20134_s19 + $0x4] ss:$24 sps:$4 sm:$0xff]  }
0x145b   :  { %8678 = vmatprep.subr.bf16.mxu0 %v14094_v15  ;;  %v14116_v15 = vld [vmem:[%s20134_s19] ss:$24 sps:$4 sm:$0xff]  }
0x145e   :  { %8679 = vmatpush2.bf16.msra.mxu0 %v14092_v60  ;;  %v14124_v60 = vld [vmem:[%s20134_s19 + $0x2d4] ss:$24 sps:$4 sm:$0xff]  }
0x145f   :  { %9794 = vmatprep.subr.bf16.mxu0 %v14121_v34 }
0x1461   :  { %8681 = vmatmul.mubr.bf16.vlgmr.msra.gmra.mxu0 %v18715_v52  ;;  %v8046_v52 = vrot.slane %v8041_v43, %v20681_v56 }
0x1462   :  { %9795 = vmatpush1.bf16.msra.mxu0 %v14119_v24  ;;  %v14175_v24 = vld [vmem:[%s20134_s19 + $0x45c] ss:$24 sps:$4 sm:$0xff]  }
0x1463   :  { %9796 = vmatprep.subr.bf16.mxu0 %v14127_v21 }
0x1466   :  { %9797 = vmatpush1.bf16.msra.mxu0 %v14125_v29  ;;  %v8735_v29 = vld [vmem:[%s20133_s18] sm:$0xf] }
0x1467   :  { %9798 = vmatprep.subr.bf16.mxu0 %v14133_v59 }
0x146a   :  { %9799 = vmatpush1.bf16.msra.mxu0 %v14131_v48 }
0x14e1   :  { %v8600_v0 = vpop.f32.mrf.mxu1  ;;  %v8641_v2 = vpop.f32.mrf.mxu0 }
0x14e2   :  { %v8601_v1 = vadd.f32 %v8600_v0, %v8046_v52  ;;  %v14122_v0 = vld [vmem:[%s20134_s19 + $0x2d0] ss:$24 sps:$4 sm:$0xff]  }
0x14e3   :  { %v8602_v57 = vpop.f32.mrf.mxu1  ;;  %v8643_v19 = vpop.f32.mrf.mxu0 }
0x14e4   :  { %v8603_v33 = vadd.f32 %v8602_v57, %v8050_v49  ;;  %v8642_v61 = vadd.f32 %v8641_v2, %v8601_v1  ;;  %v14130_v2 = vld [vmem:[%s20134_s19 + $0x2a4] ss:$24 sps:$4 sm:$0xff]   ;;  %v14128_v57 = vld [vmem:[%s20134_s19 + $0x2a0] ss:$24 sps:$4 sm:$0xff]  }
0x14e5   :  { %v8604_v3 = vpop.f32.mrf.mxu1  ;;  %v8645_v53 = vpop.f32.mrf.mxu0 }
0x14e6   :  { %v8644_v42 = vadd.f32 %v8643_v19, %v8603_v33  ;;  %v18876_v30 = vadd.f32 %v8642_v61, %v18699_v46  ;;  %v14095_v46 = vld [vmem:[%s20134_s19 + $0x150] ss:$24 sps:$4 sm:$0xff]  }
0x14e7   :  { %v8605_v55 = vpop.f32.mrf.mxu1  ;;  %v8646_v6 = vpop.f32.mrf.mxu0  ;;  %9754 = vmatpush1.bf16.msra.mxu1 %v14095_v46  ;;  %v14134_v61 = vld [vmem:[%s20134_s19 + $0x270] ss:$24 sps:$4 sm:$0xff]   ;;  %v14166_v46 = vld [vmem:[%s20134_s19 + $0x184] ss:$24 sps:$4 sm:$0xff]  }
0x14e8   :  { %v18873_v26 = vadd.f32 %v8644_v42, %v18695_v40  ;;  %v14136_v42 = vld [vmem:[%s20134_s19 + $0x274] ss:$24 sps:$4 sm:$0xff]  }
0x14ea   :  { %v8736_v31 = vadd.f32 %v18873_v26, %v18876_v30 }
0x1505   :  { %v8723_v54 = vpop.f32.mrf.mxu1 }
0x1507   :  { %v8725_v16 = vpop.f32.mrf.mxu1 }
0x1509   :  { %v8727_v32 = vpop.f32.mrf.mxu1 }
0x150b   :  { %v8728_v17 = vpop.f32.mrf.mxu1 }
0x1521   :  { %v8682_v62 = vpop.f32.mrf.mxu0 }
0x1522   :  { %v8683_v38 = vadd.f32 %v8682_v62, %v8054_v47  ;;  %v14139_v47 = vld [vmem:[%s20134_s19 + $0x3c4] ss:$24 sps:$4 sm:$0xff]   ;;  %v14140_v62 = vld [vmem:[%s20134_s19 + $0x240] ss:$24 sps:$4 sm:$0xff]  }
0x1523   :  { %v8684_v37 = vpop.f32.mrf.mxu0  ;;  %9800 = vmatprep.subr.bf16.mxu0 %v14139_v47  ;;  %v14179_v47 = vld [vmem:[%s20134_s19 + $0x428] ss:$24 sps:$4 sm:$0xff]  }
0x1524   :  { %v8724_v7 = vadd.f32 %v8723_v54, %v8683_v38  ;;  %v8685_v13 = vadd.f32 %v8684_v37, %v8058_v9  ;;  %v14137_v9 = vld [vmem:[%s20134_s19 + $0x3c0] ss:$24 sps:$4 sm:$0xff]   ;;  %v14143_v38 = vld [vmem:[%s20134_s19 + $0x390] ss:$24 sps:$4 sm:$0xff]   ;;  %v14145_v37 = vld [vmem:[%s20134_s19 + $0x394] ss:$24 sps:$4 sm:$0xff]  }
0x1525   :  { %v8686_v35 = vpop.f32.mrf.mxu0  ;;  %9801 = vmatpush1.bf16.msra.mxu0 %v14137_v9  ;;  %v14187_v9 = vld [vmem:[%s20134_s19 + $0x3fc] ss:$24 sps:$4 sm:$0xff]  }
0x1526   :  { %v18881_v14 = vadd.f32 %v8724_v7, %v18701_v25  ;;  %v8726_v51 = vadd.f32 %v8725_v16, %v8685_v13  ;;  %v14100_v25 = vld [vmem:[%s20134_s19 + $0x124] ss:$24 sps:$4 sm:$0xff]   ;;  %9802 = vmatprep.subr.bf16.mxu0 %v14145_v37  ;;  %v14146_v13 = vld [vmem:[%s20134_s19 + $0x210] ss:$24 sps:$4 sm:$0xff]   ;;  %v14149_v35 = vld [vmem:[%s20134_s19 + $0x360] ss:$24 sps:$4 sm:$0xff]  }
0x1527   :  { %v8687_v41 = vpop.f32.mrf.mxu0  ;;  %9755 = vmatprep.subr.bf16.mxu1 %v14100_v25  ;;  %v14151_v7 = vld [vmem:[%s20134_s19 + $0x364] ss:$24 sps:$4 sm:$0xff]   ;;  %v14164_v25 = vld [vmem:[%s20134_s19 + $0x180] ss:$24 sps:$4 sm:$0xff]  }
0x1528   :  { %v8733_v4 = vadd.f32 %v8726_v51, %v18697_v63  ;;  %v8737_v40 = vadd.f32 %v8736_v31, %v18881_v14  ;;  %v14098_v63 = vld [vmem:[%s20134_s19 + $0x120] ss:$24 sps:$4 sm:$0xff]   ;;  %v14154_v31 = vld [vmem:[%s20134_s19 + $0x1e4] ss:$24 sps:$4 sm:$0xff]   ;;  %v14155_v41 = vld [vmem:[%s20134_s19 + $0x330] ss:$24 sps:$4 sm:$0xff]  }
0x1529   :  { %9756 = vmatpush1.bf16.msra.mxu1 %v14098_v63  ;;  %9803 = vmatpush1.bf16.msra.mxu0 %v14143_v38  ;;  %v14152_v51 = vld [vmem:[%s20134_s19 + $0x1e0] ss:$24 sps:$4 sm:$0xff]   ;;  %v14190_v38 = vld [vmem:[%s20134_s19 + $0xcc] ss:$24 sps:$4 sm:$0xff]  }
0x152a   :  { %v8738_v50 = vsel %vm1042_vm2, %v8733_v4, 0.0  ;;  %9757 = vmatprep.subr.bf16.mxu1 %v14103_v58  ;;  %9804 = vmatprep.subr.bf16.mxu0 %v14151_v7  ;;  %v14167_v63 = vld [vmem:[%s20134_s19 + $0x480] ss:$24 sps:$4 sm:$0xff]   ;;  %v14172_v58 = vld [vmem:[%s20134_s19 + $0x15c] ss:$24 sps:$4 sm:$0xff]  }
0x152b   :  { %v8739_v8 = vadd.f32 %v8738_v50, %v8737_v40  ;;  %v14163_v40 = vld [vmem:[%s20134_s19 + $0x304] ss:$24 sps:$4 sm:$0xff]   ;;  %v14158_v50 = vld [vmem:[%s20134_s19 + $0x1b0] ss:$24 sps:$4 sm:$0xff]  }
0x152c   :  { %v14193_v37 = vld [vmem:[%s20134_s19 + $0x3cc] ss:$24 sps:$4 sm:$0xff]   ;;  %v14191_v7 = vld [vmem:[%s20134_s19 + $0x3c8] ss:$24 sps:$4 sm:$0xff]  }
0x152d   :  { %8740 = vadd.xlane.f32.xlu0 %v8739_v8  ;;  %9758 = vmatpush1.bf16.msra.mxu1 %v14101_v23  ;;  %v14161_v8 = vld [vmem:[%s20134_s19 + $0x300] ss:$24 sps:$4 sm:$0xff]  }
0x152e   :  { %9759 = vmatprep.subr.bf16.mxu1 %v14106_v12  ;;  %9805 = vmatpush1.bf16.msra.mxu0 %v14149_v35  ;;  %v8734_v12 = vld [vmem:[%s20132_s17] sm:$0xf]  ;;  %v14199_v35 = vld [vmem:[%s20134_s19 + $0x39c] ss:$24 sps:$4 sm:$0xff]  }
0x152f   :  { %v8772_v59 = vrot.slane %v8734_v12, %v20679_v10  ;;  %v8776_v48 = vrot.slane %v8734_v12, %v20682_v11 }
0x1531   :  { %9760 = vmatpush1.bf16.msra.mxu1 %v14104_v5  ;;  %v8780_v5 = vrot.slane %v8734_v12, %v20680_v28 }
0x1532   :  { %9761 = vmatprep.subr.bf16.mxu1 %v14109_v27  ;;  %v8768_v27 = vrot.slane %v8734_v12, %v20681_v56  ;;  %v14221_v12 = vld [vmem:[%s20134_s19 + $0x488] ss:$24 sps:$4 sm:$0xff]  }
0x1535   :  { %9762 = vmatpush1.bf16.msra.mxu1 %v14107_v44 }
0x1536   :  { %9763 = vmatprep.subr.bf16.mxu1 %v14112_v45  ;;  %v8797_v45 = vrot.slane %v8735_v29, %v20679_v10 }
0x1539   :  { %9764 = vmatpush1.bf16.msra.mxu1 %v14110_v36  ;;  %v8805_v36 = vrot.slane %v8735_v29, %v20680_v28 }
0x153a   :  { %9765 = vmatprep.subr.bf16.mxu1 %v14115_v22  ;;  %v8793_v22 = vrot.slane %v8735_v29, %v20681_v56 }
0x153d   :  { %9766 = vmatpush1.bf16.msra.mxu1 %v14113_v39  ;;  %v8801_v39 = vrot.slane %v8735_v29, %v20682_v11  ;;  %v14226_v29 = vld [vmem:[%s20134_s19 + $0x2ac] ss:$24 sps:$4 sm:$0xff]  }
0x153e   :  { %9767 = vmatprep.subr.bf16.mxu1 %v14118_v18 }
0x1541   :  { %9768 = vmatpush1.bf16.msra.mxu1 %v14116_v15 }
0x1542   :  { %9769 = vmatprep.subr.bf16.mxu1 %v14124_v60 }
0x1545   :  { %9770 = vmatpush2.bf16.msra.mxu1 %v14122_v0 }
0x1546   :  { %9771 = vmatprep.subr.bf16.mxu1 %v14130_v2 }
0x1549   :  { %9772 = vmatpush2.bf16.msra.mxu1 %v14128_v57 }
0x154a   :  { %9773 = vmatprep.subr.bf16.mxu1 %v14136_v42  ;;  %v14176_v42 = vld [vmem:[%s20134_s19 + $0x128] ss:$24 sps:$4 sm:$0xff]  }
0x154d   :  { %9774 = vmatpush2.bf16.msra.mxu1 %v14134_v61  ;;  %v14184_v61 = vld [vmem:[%s20134_s19 + $0xfc] ss:$24 sps:$4 sm:$0xff]  }
0x15b6   :  { %v8741_v19 = vpop.xlane.xlu0 %8740 }
0x15b7   :  { %v8742_v3 = vmul.f32 0.0025, %v8741_v19 }
0x15b9   :  { %v18965_v53 = vsub.f32 %v18876_v30, %v8742_v3  ;;  %v18968_v55 = vsub.f32 %v18873_v26, %v8742_v3  ;;  %v18971_v6 = vsub.f32 %v18881_v14, %v8742_v3  ;;  %v18973_v54 = vsub.f32 %v8733_v4, %v8742_v3  ;;  %v14142_v26 = vld [vmem:[%s20134_s19 + $0x244] ss:$24 sps:$4 sm:$0xff]   ;;  %v14148_v30 = vld [vmem:[%s20134_s19 + $0x214] ss:$24 sps:$4 sm:$0xff]  }
0x15ba   :  { %9775 = vmatprep.subr.bf16.mxu1 %v14142_v26  ;;  %v14157_v14 = vld [vmem:[%s20134_s19 + $0x334] ss:$24 sps:$4 sm:$0xff]   ;;  %v14185_v26 = vld [vmem:[%s20134_s19 + $0x3f8] ss:$24 sps:$4 sm:$0xff]  }
0x15bb   :  { %v8747_v16 = vmul.f32 %v18965_v53, %v18965_v53  ;;  %v8748_v32 = vmul.f32 %v18968_v55, %v18968_v55  ;;  %v8750_v17 = vmul.f32 %v18973_v54, %v18973_v54  ;;  %v8749_v43 = vmul.f32 %v18971_v6, %v18971_v6  ;;  %9776 = vmatpush2.bf16.msra.mxu1 %v14140_v62  ;;  %v14160_v4 = vld [vmem:[%s20134_s19 + $0x1b4] ss:$24 sps:$4 sm:$0xff]   ;;  %v14182_v62 = vld [vmem:[%s20134_s19 + $0xf8] ss:$24 sps:$4 sm:$0xff]  }
0x15bc   :  { %9777 = vmatprep.subr.bf16.mxu1 %v14148_v30  ;;  %9806 = vmatprep.subr.bf16.mxu0 %v14157_v14  ;;  %v14188_v30 = vld [vmem:[%s20134_s19 + $0xc8] ss:$24 sps:$4 sm:$0xff]   ;;  %v14197_v14 = vld [vmem:[%s20134_s19 + $0x398] ss:$24 sps:$4 sm:$0xff]  }
0x15bd   :  { %v8751_v49 = vadd.f32 %v8748_v32, %v8747_v16  ;;  %v8753_v33 = vsel %vm1042_vm2, %v8750_v17, 0.0  ;;  %9807 = vmatpush1.bf16.msra.mxu0 %v14155_v41  ;;  %v14205_v41 = vld [vmem:[%s20134_s19 + $0x36c] ss:$24 sps:$4 sm:$0xff]  }
0x15be   :  { %9808 = vmatprep.subr.bf16.mxu0 %v14163_v40  ;;  %v14203_v40 = vld [vmem:[%s20134_s19 + $0x368] ss:$24 sps:$4 sm:$0xff]  }
0x15bf   :  { %v8752_v52 = vadd.f32 %v8751_v49, %v8749_v43  ;;  %9778 = vmatpush2.bf16.msra.mxu1 %v14146_v13  ;;  %v14196_v13 = vld [vmem:[%s20134_s19 + $0x9c] ss:$24 sps:$4 sm:$0xff]  }
0x15c0   :  { %9779 = vmatprep.subr.bf16.mxu1 %v14154_v31  ;;  %v14194_v31 = vld [vmem:[%s20134_s19 + $0x98] ss:$24 sps:$4 sm:$0xff]  }
0x15c1   :  { %v8754_v1 = vadd.f32 %v8753_v33, %v8752_v52  ;;  %9809 = vmatpush1.bf16.msra.mxu0 %v14161_v8  ;;  %v14178_v33 = vld [vmem:[%s20134_s19 + $0x12c] ss:$24 sps:$4 sm:$0xff]   ;;  %v14211_v8 = vld [vmem:[%s20134_s19 + $0x33c] ss:$24 sps:$4 sm:$0xff]  }
0x15c2   :  { %9824 = vmatprep.subr.bf16.mxu0 %v14169_v20  ;;  %v14209_v20 = vld [vmem:[%s20134_s19 + $0x338] ss:$24 sps:$4 sm:$0xff]  }
0x15c3   :  { %8755 = vadd.xlane.f32.xlu1 %v8754_v1  ;;  %9780 = vmatpush2.bf16.msra.mxu1 %v14152_v51  ;;  %v14181_v1 = vld [vmem:[%s20134_s19 + $0x42c] ss:$24 sps:$4 sm:$0xff]  }
0x15c4   :  { %9781 = vmatprep.subr.bf16.mxu1 %v14160_v4  ;;  %v14202_v51 = vld [vmem:[%s20134_s19 + $0x6c] ss:$24 sps:$4 sm:$0xff]   ;;  %v14200_v4 = vld [vmem:[%s20134_s19 + $0x68] ss:$24 sps:$4 sm:$0xff]  }
0x15c5   :  { %9825 = vmatpush2.bf16.msra.mxu0 %v14167_v63  ;;  %v14217_v63 = vld [vmem:[%s20134_s19 + $0x30c] ss:$24 sps:$4 sm:$0xff]  }
0x15c6   :  { %9835 = vmatprep.subr.bf16.mxu0 %v14172_v58  ;;  %v14212_v58 = vld [vmem:[%s20134_s19 + $0x8] ss:$24 sps:$4 sm:$0xff]  }
0x15c7   :  { %9782 = vmatpush2.bf16.msra.mxu1 %v14158_v50  ;;  %v14208_v50 = vld [vmem:[%s20134_s19 + $0x3c] ss:$24 sps:$4 sm:$0xff]  }
0x15c8   :  { %9783 = vmatprep.subr.bf16.mxu1 %v14166_v46  ;;  %v14206_v46 = vld [vmem:[%s20134_s19 + $0x38] ss:$24 sps:$4 sm:$0xff]  }
0x15cb   :  { %9784 = vmatpush2.bf16.msra.mxu1 %v14164_v25  ;;  %v14214_v25 = vld [vmem:[%s20134_s19 + $0xc] ss:$24 sps:$4 sm:$0xff]  }
0x15cc   :  { %9876 = vmatprep.subr.bf16.mxu1 %v14175_v24  ;;  %v14215_v24 = vld [vmem:[%s20134_s19 + $0x308] ss:$24 sps:$4 sm:$0xff]  }
0x164c   :  { %v8756_v34 = vpop.xlane.xlu1 %8755 }
0x164d   :  { %v8757_v23 = vmul.f32 0.0025, %v8756_v34  ;;  %v14220_v34 = vld [vmem:[%s20134_s19 + $0x2dc] ss:$24 sps:$4 sm:$0xff]  }
0x164f   :  { %v8758_v21 = vadd.f32 1e-05, %v8757_v23  ;;  %v14223_v23 = vld [vmem:[%s20134_s19 + $0x48c] ss:$24 sps:$4 sm:$0xff]  }
0x1651   :  { %14659 = vrsqrt.f32 %v8758_v21  ;;  %v14218_v21 = vld [vmem:[%s20134_s19 + $0x2d8] ss:$24 sps:$4 sm:$0xff]  }
0x165e   :  { %v14660_v44 = vpop.eup %14659 }
0x165f   :  { %v8761_v18 = vmul.f32 %v14660_v44, %v18968_v55  ;;  %v8763_v15 = vmul.f32 %v14660_v44, %v18973_v54  ;;  %v8760_v60 = vmul.f32 %v14660_v44, %v18965_v53  ;;  %v8762_v0 = vmul.f32 %v14660_v44, %v18971_v6  ;;  %v14170_v55 = vld [vmem:[%s20134_s19 + $0x158] ss:$24 sps:$4 sm:$0xff]   ;;  %v14235_v44 = vld [vmem:[%s20134_s19 + $0x134] ss:$24 sps:$4 sm:$0xff]  }
0x1660   :  { %v14173_v53 = vld [vmem:[%s20134_s19 + $0x458] ss:$24 sps:$4 sm:$0xff]  }
0x1661   :  { %v8786_v2 = vmul.f32 %v8772_v59, %v8761_v18  ;;  %v8788_v57 = vmul.f32 %v8780_v5, %v8763_v15  ;;  %v8785_v19 = vmul.f32 %v8768_v27, %v8760_v60  ;;  %v8787_v3 = vmul.f32 %v8776_v48, %v8762_v0  ;;  %v14229_v59 = vld [vmem:[%s20134_s19 + $0x164] ss:$24 sps:$4 sm:$0xff]   ;;  %v14224_v5 = vld [vmem:[%s20134_s19 + $0x2a8] ss:$24 sps:$4 sm:$0xff]   ;;  %v14247_v0 = vld [vmem:[%s20134_s19 + $0xd4] ss:$24 sps:$4 sm:$0xff]  }
0x1662   :  { %v14227_v27 = vld [vmem:[%s20134_s19 + $0x160] ss:$24 sps:$4 sm:$0xff]   ;;  %v14232_v48 = vld [vmem:[%s20134_s19 + $0x27c] ss:$24 sps:$4 sm:$0xff]  }
0x1663   :  { %v8811_v16 = vadd.f32 %v8797_v45, %v8786_v2  ;;  %v8813_v32 = vadd.f32 %v8805_v36, %v8788_v57  ;;  %v8810_v17 = vadd.f32 %v8793_v22, %v8785_v19  ;;  %v8812_v43 = vadd.f32 %v8801_v39, %v8787_v3  ;;  %v14230_v45 = vld [vmem:[%s20134_s19 + $0x278] ss:$24 sps:$4 sm:$0xff]   ;;  %v14238_v22 = vld [vmem:[%s20134_s19 + $0x24c] ss:$24 sps:$4 sm:$0xff]   ;;  %v14236_v18 = vld [vmem:[%s20134_s19 + $0x248] ss:$24 sps:$4 sm:$0xff]  }
0x1664   :  { %v14233_v36 = vld [vmem:[%s20134_s19 + $0x130] ss:$24 sps:$4 sm:$0xff]   ;;  %v14241_v39 = vld [vmem:[%s20134_s19 + $0x104] ss:$24 sps:$4 sm:$0xff]   ;;  %v14239_v15 = vld [vmem:[%s20134_s19 + $0x100] ss:$24 sps:$4 sm:$0xff]  }
0x1665   :  { %v19080_v49 = vpack.c.bf16 %v8811_v16, %v8811_v16  ;;  %v19082_v52 = vpack.c.bf16 %v8813_v32, %v8813_v32  ;;  %v19090_v6 = vpack.c.bf16 %v8810_v17, %v8810_v17  ;;  %v19092_v54 = vpack.c.bf16 %v8812_v43, %v8812_v43  ;;  %v14244_v60 = vld [vmem:[%s20134_s19 + $0x21c] ss:$24 sps:$4 sm:$0xff]   ;;  %v14242_v2 = vld [vmem:[%s20134_s19 + $0x218] ss:$24 sps:$4 sm:$0xff]   ;;  %v14250_v19 = vld [vmem:[%s20134_s19 + $0x1ec] ss:$24 sps:$4 sm:$0xff]  }
0x1666   :  { %v14245_v57 = vld [vmem:[%s20134_s19 + $0xd0] ss:$24 sps:$4 sm:$0xff]   ;;  %v14253_v3 = vld [vmem:[%s20134_s19 + $0xa4] ss:$24 sps:$4 sm:$0xff]   ;;  %v14251_v32 = vld [vmem:[%s20134_s19 + $0xa0] ss:$24 sps:$4 sm:$0xff]  }
0x1667   :  { %9785 = vmatprep.mubr.bf16.mxu1 %v19080_v49  ;;  %12813 = vmatprep.mubr.msk.bf16.mxu0 %vm1042_vm2, %v19082_v52  ;;  %v14248_v16 = vld [vmem:[%s20134_s19 + $0x1e8] ss:$24 sps:$4 sm:$0xff]   ;;  %v14256_v17 = vld [vmem:[%s20134_s19 + $0x1bc] ss:$24 sps:$4 sm:$0xff]  }
0x1668   :  { %9786 = vmatmul.mubr.bf16.vlgmr.msra.gmra.mxu1 %v19090_v6  ;;  %9827 = vmatmul.mubr.bf16.vlgmr.msra.gmra.mxu0 %v19092_v54  ;;  %v14259_v43 = vld [vmem:[%s20134_s19 + $0x74] ss:$24 sps:$4 sm:$0xff]  }
0x1669   :  { %9836 = vmatpush1.bf16.msra.mxu0 %v14170_v55  ;;  %9877 = vmatpush1.bf16.msra.mxu1 %v14173_v53  ;;  %v14257_v55 = vld [vmem:[%s20134_s19 + $0x70] ss:$24 sps:$4 sm:$0xff]   ;;  %v14262_v53 = vld [vmem:[%s20134_s19 + $0x18c] ss:$24 sps:$4 sm:$0xff]  }
0x166a   :  { %9867 = vmatprep.mubr.bf16.mxu0 %v19080_v49  ;;  %12814 = vmatprep.mubr.msk.bf16.mxu1 %vm1042_vm2, %v19082_v52 }
0x166b   :  { %9837 = vmatprep.subr.bf16.mxu0 %v14178_v33  ;;  %9878 = vmatprep.subr.bf16.mxu1 %v14181_v1  ;;  %v14265_v33 = vld [vmem:[%s20134_s19 + $0x44] ss:$24 sps:$4 sm:$0xff]   ;;  %v14260_v1 = vld [vmem:[%s20134_s19 + $0x188] ss:$24 sps:$4 sm:$0xff]  }
0x166d   :  { %9838 = vmatpush1.bf16.msra.mxu0 %v14176_v42  ;;  %9879 = vmatpush1.bf16.msra.mxu1 %v14179_v47  ;;  %v14263_v42 = vld [vmem:[%s20134_s19 + $0x40] ss:$24 sps:$4 sm:$0xff]   ;;  %v14268_v47 = vld [vmem:[%s20134_s19 + $0x14] ss:$24 sps:$4 sm:$0xff]  }
0x166e   :  { %9839 = vmatprep.subr.bf16.mxu0 %v14184_v61  ;;  %9880 = vmatprep.subr.bf16.mxu1 %v14187_v9  ;;  %v14271_v61 = vld [vmem:[%s20134_s19 + $0x464] ss:$24 sps:$4 sm:$0xff]   ;;  %v14266_v9 = vld [vmem:[%s20134_s19 + $0x10] ss:$24 sps:$4 sm:$0xff]  }
0x1671   :  { %9840 = vmatpush1.bf16.msra.mxu0 %v14182_v62  ;;  %9881 = vmatpush1.bf16.msra.mxu1 %v14185_v26  ;;  %v14269_v62 = vld [vmem:[%s20134_s19 + $0x460] ss:$24 sps:$4 sm:$0xff]   ;;  %v14274_v26 = vld [vmem:[%s20134_s19 + $0x2e4] ss:$24 sps:$4 sm:$0xff]  }
0x1672   :  { %9841 = vmatprep.subr.bf16.mxu0 %v14190_v38  ;;  %9882 = vmatprep.subr.bf16.mxu1 %v14193_v37  ;;  %v14277_v38 = vld [vmem:[%s20134_s19 + $0x434] ss:$24 sps:$4 sm:$0xff]   ;;  %v14272_v37 = vld [vmem:[%s20134_s19 + $0x2e0] ss:$24 sps:$4 sm:$0xff]  }
0x1675   :  { %9842 = vmatpush1.bf16.msra.mxu0 %v14188_v30  ;;  %9883 = vmatpush1.bf16.msra.mxu1 %v14191_v7  ;;  %v14275_v30 = vld [vmem:[%s20134_s19 + $0x430] ss:$24 sps:$4 sm:$0xff]   ;;  %v14280_v7 = vld [vmem:[%s20134_s19 + $0x2b4] ss:$24 sps:$4 sm:$0xff]  }
0x1676   :  { %9843 = vmatprep.subr.bf16.mxu0 %v14196_v13  ;;  %9884 = vmatprep.subr.bf16.mxu1 %v14199_v35  ;;  %v14283_v13 = vld [vmem:[%s20134_s19 + $0x404] ss:$24 sps:$4 sm:$0xff]   ;;  %v14278_v35 = vld [vmem:[%s20134_s19 + $0x2b0] ss:$24 sps:$4 sm:$0xff]  }
0x1679   :  { %9844 = vmatpush1.bf16.msra.mxu0 %v14194_v31  ;;  %9885 = vmatpush1.bf16.msra.mxu1 %v14197_v14  ;;  %v14286_v31 = vld [vmem:[%s20134_s19 + $0x284] ss:$24 sps:$4 sm:$0xff]   ;;  %v14289_v14 = vld [vmem:[%s20134_s19 + $0x3d4] ss:$24 sps:$4 sm:$0xff]  }
0x167a   :  { %9845 = vmatprep.subr.bf16.mxu0 %v14202_v51  ;;  %9886 = vmatprep.subr.bf16.mxu1 %v14205_v41  ;;  %v14284_v51 = vld [vmem:[%s20134_s19 + $0x280] ss:$24 sps:$4 sm:$0xff]   ;;  %v14287_v41 = vld [vmem:[%s20134_s19 + $0x3d0] ss:$24 sps:$4 sm:$0xff]  }
0x167d   :  { %9846 = vmatpush1.bf16.msra.mxu0 %v14200_v4  ;;  %9887 = vmatpush1.bf16.msra.mxu1 %v14203_v40  ;;  %v14292_v4 = vld [vmem:[%s20134_s19 + $0x254] ss:$24 sps:$4 sm:$0xff]   ;;  %v14295_v40 = vld [vmem:[%s20134_s19 + $0x3a4] ss:$24 sps:$4 sm:$0xff]  }
0x167e   :  { %9847 = vmatprep.subr.bf16.mxu0 %v14208_v50  ;;  %9888 = vmatprep.subr.bf16.mxu1 %v14211_v8  ;;  %v14290_v50 = vld [vmem:[%s20134_s19 + $0x250] ss:$24 sps:$4 sm:$0xff]   ;;  %v14293_v8 = vld [vmem:[%s20134_s19 + $0x3a0] ss:$24 sps:$4 sm:$0xff]  }
0x1681   :  { %9848 = vmatpush1.bf16.msra.mxu0 %v14206_v46  ;;  %9889 = vmatpush1.bf16.msra.mxu1 %v14209_v20  ;;  %v14298_v46 = vld [vmem:[%s20134_s19 + $0x224] ss:$24 sps:$4 sm:$0xff]   ;;  %v14301_v20 = vld [vmem:[%s20134_s19 + $0x374] ss:$24 sps:$4 sm:$0xff]  }
0x1682   :  { %9849 = vmatprep.subr.bf16.mxu0 %v14214_v25  ;;  %9890 = vmatprep.subr.bf16.mxu1 %v14217_v63  ;;  %v14296_v25 = vld [vmem:[%s20134_s19 + $0x220] ss:$24 sps:$4 sm:$0xff]   ;;  %v14299_v63 = vld [vmem:[%s20134_s19 + $0x370] ss:$24 sps:$4 sm:$0xff]  }
0x1685   :  { %9850 = vmatpush1.bf16.msra.mxu0 %v14212_v58  ;;  %9891 = vmatpush1.bf16.msra.mxu1 %v14215_v24  ;;  %v14304_v58 = vld [vmem:[%s20134_s19 + $0x1f4] ss:$24 sps:$4 sm:$0xff]   ;;  %v14307_v24 = vld [vmem:[%s20134_s19 + $0x344] ss:$24 sps:$4 sm:$0xff]  }
0x1686   :  { %9851 = vmatprep.subr.bf16.mxu0 %v14220_v34  ;;  %9906 = vmatprep.subr.bf16.mxu1 %v14223_v23  ;;  %v14302_v34 = vld [vmem:[%s20134_s19 + $0x1f0] ss:$24 sps:$4 sm:$0xff]   ;;  %v14305_v23 = vld [vmem:[%s20134_s19 + $0x340] ss:$24 sps:$4 sm:$0xff]  }
0x1689   :  { %9852 = vmatpush2.bf16.msra.mxu0 %v14218_v21  ;;  %9907 = vmatpush2.bf16.msra.mxu1 %v14221_v12  ;;  %v14310_v21 = vld [vmem:[%s20134_s19 + $0x1c4] ss:$24 sps:$4 sm:$0xff]   ;;  %v14313_v12 = vld [vmem:[%s20134_s19 + $0x314] ss:$24 sps:$4 sm:$0xff]  }
0x168a   :  { %9853 = vmatprep.subr.bf16.mxu0 %v14226_v29  ;;  %9917 = vmatprep.subr.bf16.mxu1 %v14229_v59  ;;  %v14308_v29 = vld [vmem:[%s20134_s19 + $0x1c0] ss:$24 sps:$4 sm:$0xff]   ;;  %v14311_v59 = vld [vmem:[%s20134_s19 + $0x310] ss:$24 sps:$4 sm:$0xff]  }
0x168c   :  { %9909 = vmatmul.mubr.bf16.vlgmr.msra.gmra.mxu1 %v19092_v54 }
0x168d   :  { %9854 = vmatpush2.bf16.msra.mxu0 %v14224_v5  ;;  %9918 = vmatpush1.bf16.msra.mxu1 %v14227_v27  ;;  %v14316_v5 = vld [vmem:[%s20134_s19 + $0x194] ss:$24 sps:$4 sm:$0xff]  }
0x168e   :  { %9949 = vmatprep.mubr.bf16.mxu1 %v19080_v49  ;;  %9855 = vmatprep.subr.bf16.mxu0 %v14232_v48  ;;  %v14254_v49 = vld [vmem:[%s20134_s19 + $0x1b8] ss:$24 sps:$4 sm:$0xff]   ;;  %v14319_v27 = vld [vmem:[%s20134_s19 + $0x494] ss:$24 sps:$4 sm:$0xff]  }
0x168f   :  { %9919 = vmatprep.subr.bf16.mxu1 %v14235_v44  ;;  %v14314_v48 = vld [vmem:[%s20134_s19 + $0x190] ss:$24 sps:$4 sm:$0xff]  }
0x1690   :  { %v14317_v44 = vld [vmem:[%s20134_s19 + $0x490] ss:$24 sps:$4 sm:$0xff]  }
0x1691   :  { %9856 = vmatpush2.bf16.msra.mxu0 %v14230_v45  ;;  %9920 = vmatpush1.bf16.msra.mxu1 %v14233_v36  ;;  %v14322_v45 = vld [vmem:[%s20136_s21 + $0xe4] ss:$16 sps:$4 sm:$0xff]  }
0x1692   :  { %9857 = vmatprep.subr.bf16.mxu0 %v14238_v22  ;;  %9921 = vmatprep.subr.bf16.mxu1 %v14241_v39  ;;  %v14370_v36 = vld [vmem:[%s20136_s21 + $0x2e4] ss:$16 sps:$4 sm:$0xff]   ;;  %v14320_v22 = vld [vmem:[%s20136_s21 + $0xe0] ss:$16 sps:$4 sm:$0xff]  }
0x1693   :  { %v14368_v39 = vld [vmem:[%s20136_s21 + $0x2e0] ss:$16 sps:$4 sm:$0xff]  }
0x1695   :  { %9858 = vmatpush2.bf16.msra.mxu0 %v14236_v18  ;;  %9922 = vmatpush1.bf16.msra.mxu1 %v14239_v15  ;;  %v14325_v18 = vld [vmem:[%s20136_s21 + $0xc4] ss:$16 sps:$4 sm:$0xff]  }
0x1696   :  { %9859 = vmatprep.subr.bf16.mxu0 %v14244_v60  ;;  %9923 = vmatprep.subr.bf16.mxu1 %v14247_v0  ;;  %v14373_v15 = vld [vmem:[%s20136_s21 + $0x2c4] ss:$16 sps:$4 sm:$0xff]   ;;  %v14323_v60 = vld [vmem:[%s20136_s21 + $0xc0] ss:$16 sps:$4 sm:$0xff]  }
0x1697   :  { %v14371_v0 = vld [vmem:[%s20136_s21 + $0x2c0] ss:$16 sps:$4 sm:$0xff]  }
0x1699   :  { %9860 = vmatpush2.bf16.msra.mxu0 %v14242_v2  ;;  %9924 = vmatpush1.bf16.msra.mxu1 %v14245_v57  ;;  %v14328_v2 = vld [vmem:[%s20136_s21 + $0xa4] ss:$16 sps:$4 sm:$0xff]   ;;  %v14374_v57 = vld [vmem:[%s20136_s21 + $0x2a0] ss:$16 sps:$4 sm:$0xff]  }
0x169a   :  { %9861 = vmatprep.subr.bf16.mxu0 %v14250_v19  ;;  %9925 = vmatprep.subr.bf16.mxu1 %v14253_v3  ;;  %v14331_v19 = vld [vmem:[%s20136_s21 + $0x84] ss:$16 sps:$4 sm:$0xff]  }
0x169b   :  { %v14379_v3 = vld [vmem:[%s20136_s21 + $0x284] ss:$16 sps:$4 sm:$0xff]  }
0x169d   :  { %9862 = vmatpush2.bf16.msra.mxu0 %v14248_v16  ;;  %9926 = vmatpush1.bf16.msra.mxu1 %v14251_v32  ;;  %v14329_v16 = vld [vmem:[%s20136_s21 + $0x80] ss:$16 sps:$4 sm:$0xff]  }
0x169e   :  { %9863 = vmatprep.subr.bf16.mxu0 %v14256_v17  ;;  %9927 = vmatprep.subr.bf16.mxu1 %v14259_v43  ;;  %v14377_v32 = vld [vmem:[%s20136_s21 + $0x280] ss:$16 sps:$4 sm:$0xff]   ;;  %v14334_v17 = vld [vmem:[%s20136_s21 + $0x64] ss:$16 sps:$4 sm:$0xff]  }
0x169f   :  { %v14382_v43 = vld [vmem:[%s20136_s21 + $0x264] ss:$16 sps:$4 sm:$0xff]  }
0x16a1   :  { %9864 = vmatpush2.bf16.msra.mxu0 %v14254_v49  ;;  %9928 = vmatpush1.bf16.msra.mxu1 %v14257_v55  ;;  %v14332_v49 = vld [vmem:[%s20136_s21 + $0x60] ss:$16 sps:$4 sm:$0xff]  }
0x16a2   :  { %9865 = vmatprep.subr.bf16.mxu0 %v14262_v53  ;;  %9929 = vmatprep.subr.bf16.mxu1 %v14265_v33  ;;  %v14380_v55 = vld [vmem:[%s20136_s21 + $0x260] ss:$16 sps:$4 sm:$0xff]   ;;  %v14337_v53 = vld [vmem:[%s20136_s21 + $0x44] ss:$16 sps:$4 sm:$0xff]  }
0x16a3   :  { %v14385_v33 = vld [vmem:[%s20136_s21 + $0x244] ss:$16 sps:$4 sm:$0xff]  }
0x16a5   :  { %9866 = vmatpush2.bf16.msra.mxu0 %v14260_v1  ;;  %9930 = vmatpush1.bf16.msra.mxu1 %v14263_v42  ;;  %v14335_v1 = vld [vmem:[%s20136_s21 + $0x40] ss:$16 sps:$4 sm:$0xff]  }
0x16a6   :  { %9931 = vmatprep.subr.bf16.mxu1 %v14268_v47  ;;  %9958 = vmatprep.subr.bf16.mxu0 %v14271_v61  ;;  %v14383_v42 = vld [vmem:[%s20136_s21 + $0x240] ss:$16 sps:$4 sm:$0xff]   ;;  %v14340_v47 = vld [vmem:[%s20136_s21 + $0x24] ss:$16 sps:$4 sm:$0xff]  }
0x16a7   :  { %v14388_v61 = vld [vmem:[%s20136_s21 + $0x224] ss:$16 sps:$4 sm:$0xff]  }
0x16a8   :  { %9868 = vmatmul.mubr.bf16.vlgmr.msra.gmra.mxu0 %v19090_v6 }
0x16a9   :  { %9932 = vmatpush1.bf16.msra.mxu1 %v14266_v9  ;;  %9959 = vmatpush1.bf16.msra.mxu0 %v14269_v62  ;;  %v14338_v9 = vld [vmem:[%s20136_s21 + $0x20] ss:$16 sps:$4 sm:$0xff]  }
0x16aa   :  { %12815 = vmatprep.mubr.msk.bf16.mxu0 %vm1042_vm2, %v19082_v52  ;;  %9933 = vmatprep.subr.bf16.mxu1 %v14274_v26  ;;  %v14281_v52 = vld [vmem:[%s20134_s19 + $0x400] ss:$24 sps:$4 sm:$0xff]   ;;  %v14343_v26 = vld [vmem:[%s20136_s21 + $0x4] ss:$16 sps:$4 sm:$0xff]  }
0x16ab   :  { %9960 = vmatprep.subr.bf16.mxu0 %v14277_v38  ;;  %v14386_v62 = vld [vmem:[%s20136_s21 + $0x220] ss:$16 sps:$4 sm:$0xff]   ;;  %v14391_v38 = vld [vmem:[%s20136_s21 + $0x204] ss:$16 sps:$4 sm:$0xff]  }
0x16ad   :  { %9934 = vmatpush2.bf16.msra.mxu1 %v14272_v37  ;;  %9961 = vmatpush1.bf16.msra.mxu0 %v14275_v30  ;;  %v14341_v37 = vld [vmem:[%s20136_s21] ss:$16 sps:$4 sm:$0xff]  }
0x16ae   :  { %9935 = vmatprep.subr.bf16.mxu1 %v14280_v7  ;;  %9962 = vmatprep.subr.bf16.mxu0 %v14283_v13  ;;  %v14389_v30 = vld [vmem:[%s20136_s21 + $0x200] ss:$16 sps:$4 sm:$0xff]   ;;  %v14346_v7 = vld [vmem:[%s20136_s21 + $0x1e4] ss:$16 sps:$4 sm:$0xff]  }
0x16af   :  { %v14394_v13 = vld [vmem:[%s20136_s21 + $0x3e4] ss:$16 sps:$4 sm:$0xff]  }
0x16b1   :  { %9936 = vmatpush2.bf16.msra.mxu1 %v14278_v35  ;;  %9963 = vmatpush1.bf16.msra.mxu0 %v14281_v52  ;;  %v14344_v35 = vld [vmem:[%s20136_s21 + $0x1e0] ss:$16 sps:$4 sm:$0xff]  }
0x16b2   :  { %9937 = vmatprep.subr.bf16.mxu1 %v14286_v31  ;;  %9964 = vmatprep.subr.bf16.mxu0 %v14289_v14  ;;  %v14392_v52 = vld [vmem:[%s20136_s21 + $0x3e0] ss:$16 sps:$4 sm:$0xff]   ;;  %v14349_v31 = vld [vmem:[%s20136_s21 + $0x1c4] ss:$16 sps:$4 sm:$0xff]  }
0x16b3   :  { %v14397_v14 = vld [vmem:[%s20136_s21 + $0x3c4] ss:$16 sps:$4 sm:$0xff]  }
0x16b5   :  { %9938 = vmatpush2.bf16.msra.mxu1 %v14284_v51  ;;  %9965 = vmatpush1.bf16.msra.mxu0 %v14287_v41  ;;  %v14347_v51 = vld [vmem:[%s20136_s21 + $0x1c0] ss:$16 sps:$4 sm:$0xff]  }
0x16b6   :  { %9939 = vmatprep.subr.bf16.mxu1 %v14292_v4  ;;  %9966 = vmatprep.subr.bf16.mxu0 %v14295_v40  ;;  %v14395_v41 = vld [vmem:[%s20136_s21 + $0x3c0] ss:$16 sps:$4 sm:$0xff]   ;;  %v14352_v4 = vld [vmem:[%s20136_s21 + $0x1a4] ss:$16 sps:$4 sm:$0xff]  }
0x16b7   :  { %v14403_v40 = vld [vmem:[%s20136_s21 + $0x3a4] ss:$16 sps:$4 sm:$0xff]  }
0x16b9   :  { %9940 = vmatpush2.bf16.msra.mxu1 %v14290_v50  ;;  %9967 = vmatpush1.bf16.msra.mxu0 %v14293_v8  ;;  %v14350_v50 = vld [vmem:[%s20136_s21 + $0x1a0] ss:$16 sps:$4 sm:$0xff]  }
0x16ba   :  { %9941 = vmatprep.subr.bf16.mxu1 %v14298_v46  ;;  %9968 = vmatprep.subr.bf16.mxu0 %v14301_v20  ;;  %v14401_v8 = vld [vmem:[%s20136_s21 + $0x3a0] ss:$16 sps:$4 sm:$0xff]   ;;  %v14355_v46 = vld [vmem:[%s20136_s21 + $0x184] ss:$16 sps:$4 sm:$0xff]  }
0x16bb   :  { %v14409_v20 = vld [vmem:[%s20136_s21 + $0x384] ss:$16 sps:$4 sm:$0xff]  }
0x16bd   :  { %9942 = vmatpush2.bf16.msra.mxu1 %v14296_v25  ;;  %9969 = vmatpush1.bf16.msra.mxu0 %v14299_v63  ;;  %v14353_v25 = vld [vmem:[%s20136_s21 + $0x180] ss:$16 sps:$4 sm:$0xff]  }
0x16be   :  { %9943 = vmatprep.subr.bf16.mxu1 %v14304_v58  ;;  %9970 = vmatprep.subr.bf16.mxu0 %v14307_v24  ;;  %v14407_v63 = vld [vmem:[%s20136_s21 + $0x380] ss:$16 sps:$4 sm:$0xff]   ;;  %v14358_v58 = vld [vmem:[%s20136_s21 + $0x164] ss:$16 sps:$4 sm:$0xff]  }
0x16bf   :  { %v14415_v24 = vld [vmem:[%s20136_s21 + $0x364] ss:$16 sps:$4 sm:$0xff]  }
0x16c1   :  { %9944 = vmatpush2.bf16.msra.mxu1 %v14302_v34  ;;  %9971 = vmatpush1.bf16.msra.mxu0 %v14305_v23  ;;  %v14356_v34 = vld [vmem:[%s20136_s21 + $0x160] ss:$16 sps:$4 sm:$0xff]  }
0x16c2   :  { %9945 = vmatprep.subr.bf16.mxu1 %v14310_v21  ;;  %9972 = vmatprep.subr.bf16.mxu0 %v14313_v12  ;;  %v14413_v23 = vld [vmem:[%s20136_s21 + $0x360] ss:$16 sps:$4 sm:$0xff]   ;;  %v14361_v21 = vld [vmem:[%s20136_s21 + $0x144] ss:$16 sps:$4 sm:$0xff]  }
0x16c3   :  { %v14421_v12 = vld [vmem:[%s20136_s21 + $0x344] ss:$16 sps:$4 sm:$0xff]  }
0x16c5   :  { %9946 = vmatpush2.bf16.msra.mxu1 %v14308_v29  ;;  %9973 = vmatpush1.bf16.msra.mxu0 %v14311_v59  ;;  %v14359_v29 = vld [vmem:[%s20136_s21 + $0x140] ss:$16 sps:$4 sm:$0xff]  }
0x16c6   :  { %9947 = vmatprep.subr.bf16.mxu1 %v14316_v5  ;;  %9988 = vmatprep.subr.bf16.mxu0 %v14319_v27  ;;  %v14419_v59 = vld [vmem:[%s20136_s21 + $0x340] ss:$16 sps:$4 sm:$0xff]   ;;  %v14364_v5 = vld [vmem:[%s20136_s21 + $0x124] ss:$16 sps:$4 sm:$0xff]  }
0x16c7   :  { %v14427_v27 = vld [vmem:[%s20136_s21 + $0x324] ss:$16 sps:$4 sm:$0xff]  }
0x16c9   :  { %9948 = vmatpush2.bf16.msra.mxu1 %v14314_v48  ;;  %9989 = vmatpush2.bf16.msra.mxu0 %v14317_v44  ;;  %v14362_v48 = vld [vmem:[%s20136_s21 + $0x120] ss:$16 sps:$4 sm:$0xff]  }
0x16ca   :  { %11185 = vmatprep.subr.bf16.mxu0 %v14322_v45  ;;  %11226 = vmatprep.subr.bf16.mxu1 %v14370_v36  ;;  %v14425_v44 = vld [vmem:[%s20136_s21 + $0x320] ss:$16 sps:$4 sm:$0xff]   ;;  %v14367_v45 = vld [vmem:[%s20136_s21 + $0x104] ss:$16 sps:$4 sm:$0xff]  }
0x16cb   :  { %v14433_v36 = vld [vmem:[%s20136_s21 + $0x304] ss:$16 sps:$4 sm:$0xff]  }
0x16cc   :  { %9950 = vmatmul.mubr.bf16.vlgmr.msra.gmra.mxu1 %v19090_v6  ;;  %9991 = vmatmul.mubr.bf16.vlgmr.msra.gmra.mxu0 %v19092_v54  ;;  %v14376_v6 = vld [vmem:[%s20136_s21 + $0x2a4] ss:$16 sps:$4 sm:$0xff]   ;;  %v14326_v54 = vld [vmem:[%s20136_s21 + $0xa0] ss:$16 sps:$4 sm:$0xff]  }
0x16cd   :  { %11186 = vmatpush1.bf16.msra.mxu0 %v14320_v22  ;;  %11227 = vmatpush1.bf16.msra.mxu1 %v14368_v39  ;;  %v14365_v22 = vld [vmem:[%s20136_s21 + $0x100] ss:$16 sps:$4 sm:$0xff]  }
0x16ce   :  { %11187 = vmatprep.subr.bf16.mxu0 %v14325_v18  ;;  %11228 = vmatprep.subr.bf16.mxu1 %v14373_v15  ;;  %v14431_v39 = vld [vmem:[%s20136_s21 + $0x300] ss:$16 sps:$4 sm:$0xff]   ;;  %v14400_v18 = vld [vmem:[%s20136_s21 + $0x4e4] ss:$16 sps:$4 sm:$0xff]   ;;  %v14442_v15 = vld [vmem:[%s20136_s21 + $0xec] ss:$16 sps:$4 sm:$0xff]  }
0x16d1   :  { %11188 = vmatpush1.bf16.msra.mxu0 %v14323_v60  ;;  %11229 = vmatpush1.bf16.msra.mxu1 %v14371_v0  ;;  %v19598_v60 = vld [vmem:[%s20135_s20] sm:$0x3f] }
0x16d2   :  { %11189 = vmatprep.subr.bf16.mxu0 %v14328_v2  ;;  %11230 = vmatprep.subr.bf16.mxu1 %v14376_v6  ;;  %v8973_v0 = vrot.slane %v19598_v60, %v20681_v56  ;;  %v8977_v2 = vrot.slane %v19598_v60, %v20679_v10 }
0x16d5   :  { %11190 = vmatpush1.bf16.msra.mxu0 %v14326_v54  ;;  %11231 = vmatpush1.bf16.msra.mxu1 %v14374_v57 }
0x16d6   :  { %11191 = vmatprep.subr.bf16.mxu0 %v14331_v19  ;;  %11232 = vmatprep.subr.bf16.mxu1 %v14379_v3 }
0x16d9   :  { %11192 = vmatpush1.bf16.msra.mxu0 %v14329_v16  ;;  %11233 = vmatpush1.bf16.msra.mxu1 %v14377_v32 }
0x16da   :  { %11193 = vmatprep.subr.bf16.mxu0 %v14334_v17  ;;  %11234 = vmatprep.subr.bf16.mxu1 %v14382_v43 }
0x16dd   :  { %11194 = vmatpush1.bf16.msra.mxu0 %v14332_v49  ;;  %11235 = vmatpush1.bf16.msra.mxu1 %v14380_v55 }
0x16de   :  { %11195 = vmatprep.subr.bf16.mxu0 %v14337_v53  ;;  %11236 = vmatprep.subr.bf16.mxu1 %v14385_v33 }
0x16e1   :  { %11196 = vmatpush1.bf16.msra.mxu0 %v14335_v1  ;;  %11237 = vmatpush1.bf16.msra.mxu1 %v14383_v42  ;;  %v14398_v1 = vld [vmem:[%s20136_s21 + $0x4e0] ss:$16 sps:$4 sm:$0xff]  }
0x16e2   :  { %11197 = vmatprep.subr.bf16.mxu0 %v14340_v47  ;;  %11238 = vmatprep.subr.bf16.mxu1 %v14388_v61  ;;  %v14406_v47 = vld [vmem:[%s20136_s21 + $0x4c4] ss:$16 sps:$4 sm:$0xff]   ;;  %v14404_v61 = vld [vmem:[%s20136_s21 + $0x4c0] ss:$16 sps:$4 sm:$0xff]  }
0x16e5   :  { %11198 = vmatpush1.bf16.msra.mxu0 %v14338_v9  ;;  %11239 = vmatpush1.bf16.msra.mxu1 %v14386_v62  ;;  %v14412_v9 = vld [vmem:[%s20136_s21 + $0x4a4] ss:$16 sps:$4 sm:$0xff]   ;;  %v14410_v62 = vld [vmem:[%s20136_s21 + $0x4a0] ss:$16 sps:$4 sm:$0xff]  }
0x16e6   :  { %11199 = vmatprep.subr.bf16.mxu0 %v14343_v26  ;;  %11240 = vmatprep.subr.bf16.mxu1 %v14391_v38  ;;  %v14418_v26 = vld [vmem:[%s20136_s21 + $0x484] ss:$16 sps:$4 sm:$0xff]   ;;  %v14416_v38 = vld [vmem:[%s20136_s21 + $0x480] ss:$16 sps:$4 sm:$0xff]  }
0x16e9   :  { %11200 = vmatpush1.bf16.msra.mxu0 %v14341_v37  ;;  %11241 = vmatpush1.bf16.msra.mxu1 %v14389_v30  ;;  %v14424_v37 = vld [vmem:[%s20136_s21 + $0x464] ss:$16 sps:$4 sm:$0xff]   ;;  %v14422_v30 = vld [vmem:[%s20136_s21 + $0x460] ss:$16 sps:$4 sm:$0xff]  }
0x16ea   :  { %11201 = vmatprep.subr.bf16.mxu0 %v14346_v7  ;;  %11242 = vmatprep.subr.bf16.mxu1 %v14394_v13  ;;  %v14430_v7 = vld [vmem:[%s20136_s21 + $0x444] ss:$16 sps:$4 sm:$0xff]   ;;  %v14428_v13 = vld [vmem:[%s20136_s21 + $0x440] ss:$16 sps:$4 sm:$0xff]  }
0x16ed   :  { %11202 = vmatpush2.bf16.msra.mxu0 %v14344_v35  ;;  %11243 = vmatpush2.bf16.msra.mxu1 %v14392_v52  ;;  %v14436_v35 = vld [vmem:[%s20136_s21 + $0x424] ss:$16 sps:$4 sm:$0xff]   ;;  %v14434_v52 = vld [vmem:[%s20136_s21 + $0x420] ss:$16 sps:$4 sm:$0xff]  }
0x16ee   :  { %11203 = vmatprep.subr.bf16.mxu0 %v14349_v31  ;;  %11244 = vmatprep.subr.bf16.mxu1 %v14397_v14  ;;  %v14439_v31 = vld [vmem:[%s20136_s21 + $0x404] ss:$16 sps:$4 sm:$0xff]   ;;  %v14437_v14 = vld [vmem:[%s20136_s21 + $0x400] ss:$16 sps:$4 sm:$0xff]  }
0x16f1   :  { %11204 = vmatpush2.bf16.msra.mxu0 %v14347_v51  ;;  %11245 = vmatpush2.bf16.msra.mxu1 %v14395_v41  ;;  %v14445_v41 = vld [vmem:[%s20136_s21 + $0x5e4] ss:$16 sps:$4 sm:$0xff]  }
0x16f2   :  { %11205 = vmatprep.subr.bf16.mxu0 %v14352_v4  ;;  %11246 = vmatprep.subr.bf16.mxu1 %v14403_v40  ;;  %v14443_v40 = vld [vmem:[%s20136_s21 + $0x5e0] ss:$16 sps:$4 sm:$0xff]  }
0x16f5   :  { %11206 = vmatpush2.bf16.msra.mxu0 %v14350_v50  ;;  %11247 = vmatpush2.bf16.msra.mxu1 %v14401_v8  ;;  %v14451_v8 = vld [vmem:[%s20136_s21 + $0x5c4] ss:$16 sps:$4 sm:$0xff]  }
0x16f6   :  { %11207 = vmatprep.subr.bf16.mxu0 %v14355_v46  ;;  %11248 = vmatprep.subr.bf16.mxu1 %v14409_v20  ;;  %v14449_v20 = vld [vmem:[%s20136_s21 + $0x5c0] ss:$16 sps:$4 sm:$0xff]  }
0x16f9   :  { %11208 = vmatpush2.bf16.msra.mxu0 %v14353_v25  ;;  %11249 = vmatpush2.bf16.msra.mxu1 %v14407_v63  ;;  %v14457_v25 = vld [vmem:[%s20136_s21 + $0x5a4] ss:$16 sps:$4 sm:$0xff]   ;;  %v14455_v63 = vld [vmem:[%s20136_s21 + $0x5a0] ss:$16 sps:$4 sm:$0xff]  }
0x16fa   :  { %11209 = vmatprep.subr.bf16.mxu0 %v14358_v58  ;;  %11250 = vmatprep.subr.bf16.mxu1 %v14415_v24  ;;  %v14463_v58 = vld [vmem:[%s20136_s21 + $0x584] ss:$16 sps:$4 sm:$0xff]   ;;  %v14461_v24 = vld [vmem:[%s20136_s21 + $0x580] ss:$16 sps:$4 sm:$0xff]  }
0x16fd   :  { %11210 = vmatpush2.bf16.msra.mxu0 %v14356_v34  ;;  %11251 = vmatpush2.bf16.msra.mxu1 %v14413_v23  ;;  %v14469_v34 = vld [vmem:[%s20136_s21 + $0x564] ss:$16 sps:$4 sm:$0xff]   ;;  %v14467_v23 = vld [vmem:[%s20136_s21 + $0x560] ss:$16 sps:$4 sm:$0xff]  }
0x16fe   :  { %11211 = vmatprep.subr.bf16.mxu0 %v14361_v21  ;;  %11252 = vmatprep.subr.bf16.mxu1 %v14421_v12  ;;  %v14475_v21 = vld [vmem:[%s20136_s21 + $0x544] ss:$16 sps:$4 sm:$0xff]   ;;  %v14473_v12 = vld [vmem:[%s20136_s21 + $0x540] ss:$16 sps:$4 sm:$0xff]  }
0x1701   :  { %11212 = vmatpush2.bf16.msra.mxu0 %v14359_v29  ;;  %11253 = vmatpush2.bf16.msra.mxu1 %v14419_v59  ;;  %v14481_v29 = vld [vmem:[%s20136_s21 + $0x524] ss:$16 sps:$4 sm:$0xff]   ;;  %v8981_v59 = vrot.slane %v19598_v60, %v20682_v11 }
0x1702   :  { %11213 = vmatprep.subr.bf16.mxu0 %v14364_v5  ;;  %11254 = vmatprep.subr.bf16.mxu1 %v14427_v27  ;;  %v8985_v5 = vrot.slane %v19598_v60, %v20680_v28  ;;  %v14479_v27 = vld [vmem:[%s20136_s21 + $0x520] ss:$16 sps:$4 sm:$0xff]  }
0x1705   :  { %11214 = vmatpush2.bf16.msra.mxu0 %v14362_v48  ;;  %11255 = vmatpush2.bf16.msra.mxu1 %v14425_v44  ;;  %v14487_v44 = vld [vmem:[%s20136_s21 + $0x504] ss:$16 sps:$4 sm:$0xff]  }
0x1706   :  { %11215 = vmatprep.subr.bf16.mxu0 %v14367_v45  ;;  %11256 = vmatprep.subr.bf16.mxu1 %v14433_v36 }
0x1709   :  { %11216 = vmatpush2.bf16.msra.mxu0 %v14365_v22  ;;  %11257 = vmatpush2.bf16.msra.mxu1 %v14431_v39 }
0x170a   :  { %11267 = vmatprep.subr.bf16.mxu0 %v14400_v18  ;;  %11308 = vmatprep.subr.bf16.mxu1 %v14442_v15  ;;  %v14485_v18 = vld [vmem:[%s20136_s21 + $0x500] ss:$16 sps:$4 sm:$0xff]  }
0x1728   :  { %v9787_v6 = vpop.f32.mrf.mxu1  ;;  %v9828_v54 = vpop.f32.mrf.mxu0 }
0x1729   :  { %v9788_v57 = vadd.f32 %v9787_v6, %v8973_v0  ;;  %v14496_v0 = vld [vmem:[%s20136_s21 + $0x2ec] ss:$16 sps:$4 sm:$0xff]  }
0x172a   :  { %v9789_v19 = vpop.f32.mrf.mxu1  ;;  %v9830_v3 = vpop.f32.mrf.mxu0 }
0x172b   :  { %v9829_v16 = vadd.f32 %v9828_v54, %v9788_v57  ;;  %v9790_v32 = vadd.f32 %v9789_v19, %v8977_v2  ;;  %v14440_v57 = vld [vmem:[%s20136_s21 + $0xe8] ss:$16 sps:$4 sm:$0xff]  }
0x172c   :  { %v9791_v17 = vpop.f32.mrf.mxu1  ;;  %v9832_v43 = vpop.f32.mrf.mxu0 }
0x172d   :  { %9999 = vst [vmem:[#allocation2] sm:$0xff] %v9829_v16  ;;  %v9831_v49 = vadd.f32 %v9830_v3, %v9790_v32  ;;  %v19609_v42 = vpack.c.bf16 %v9829_v16, %v9829_v16  ;;  %v14448_v3 = vld [vmem:[%s20136_s21 + $0xcc] ss:$16 sps:$4 sm:$0xff]   ;;  %v14446_v16 = vld [vmem:[%s20136_s21 + $0xc8] ss:$16 sps:$4 sm:$0xff]  }
0x172e   :  { %v9792_v55 = vpop.f32.mrf.mxu1  ;;  %v9833_v53 = vpop.f32.mrf.mxu0  ;;  %v14454_v32 = vld [vmem:[%s20136_s21 + $0xac] ss:$16 sps:$4 sm:$0xff]   ;;  %v14452_v17 = vld [vmem:[%s20136_s21 + $0xa8] ss:$16 sps:$4 sm:$0xff]  }
0x172f   :  { %10000 = vst [vmem:[#allocation2 + $0x8] sm:$0xff] %v9831_v49  ;;  %v19604_v33 = vpack.c.bf16 %v9831_v49, %v9831_v49  ;;  %v14460_v43 = vld [vmem:[%s20136_s21 + $0x8c] ss:$16 sps:$4 sm:$0xff]   ;;  %v14458_v49 = vld [vmem:[%s20136_s21 + $0x88] ss:$16 sps:$4 sm:$0xff]  }
0x1730   :  { %v14466_v55 = vld [vmem:[%s20136_s21 + $0x6c] ss:$16 sps:$4 sm:$0xff]   ;;  %v14464_v53 = vld [vmem:[%s20136_s21 + $0x68] ss:$16 sps:$4 sm:$0xff]  }
0x1731   :  { %11217 = vmatprep.mubr.bf16.mxu0 %v19604_v33 }
0x1732   :  { %11218 = vmatmul.mubr.bf16.vlgmr.msra.gmra.mxu0 %v19609_v42 }
0x1733   :  { %11268 = vmatpush1.bf16.msra.mxu0 %v14398_v1  ;;  %v14470_v1 = vld [vmem:[%s20136_s21 + $0x48] ss:$16 sps:$4 sm:$0xff]  }
0x1734   :  { %11269 = vmatprep.subr.bf16.mxu0 %v14406_v47  ;;  %v14478_v47 = vld [vmem:[%s20136_s21 + $0x2c] ss:$16 sps:$4 sm:$0xff]  }
0x1737   :  { %11270 = vmatpush1.bf16.msra.mxu0 %v14404_v61  ;;  %v20683_v61 = vld [vmem:[#allocation5_spill] sm:$0xff] }
0x1738   :  { %11271 = vmatprep.subr.bf16.mxu0 %v14412_v9  ;;  %v8988_v9 = vsub.s32 4, %v20683_v61 }
0x173b   :  { %11272 = vmatpush1.bf16.msra.mxu0 %v14410_v62  ;;  %v14476_v62 = vld [vmem:[%s20136_s21 + $0x28] ss:$16 sps:$4 sm:$0xff]  }
0x173c   :  { %11273 = vmatprep.subr.bf16.mxu0 %v14418_v26  ;;  %v8992_v26 = vsub.s32 5, %v20683_v61  ;;  %v14542_v61 = vld [vmem:[%s20136_s21 + $0x4c8] ss:$16 sps:$4 sm:$0xff]  }
0x173f   :  { %11274 = vmatpush1.bf16.msra.mxu0 %v14416_v38  ;;  %v14484_v38 = vld [vmem:[%s20136_s21 + $0xc] ss:$16 sps:$4 sm:$0xff]  }
0x1740   :  { %11275 = vmatprep.subr.bf16.mxu0 %v14424_v37  ;;  %v8989_v37 = vrot.slane %v19598_v60, %v8988_v9  ;;  %v14547_v9 = vld [vmem:[%s20136_s21 + $0x3cc] ss:$16 sps:$4 sm:$0xff]  }
0x1743   :  { %11276 = vmatpush1.bf16.msra.mxu0 %v14422_v30  ;;  %v14482_v30 = vld [vmem:[%s20136_s21 + $0x8] ss:$16 sps:$4 sm:$0xff]  }
0x1744   :  { %11277 = vmatprep.subr.bf16.mxu0 %v14430_v7  ;;  %v8993_v7 = vrot.slane %v19598_v60, %v8992_v26  ;;  %v14493_v60 = vld [vmem:[%s20136_s21 + $0x1cc] ss:$16 sps:$4 sm:$0xff]   ;;  %v14548_v26 = vld [vmem:[%s20136_s21 + $0x4a8] ss:$16 sps:$4 sm:$0xff]  }
0x1747   :  { %11278 = vmatpush1.bf16.msra.mxu0 %v14428_v13 }
0x1748   :  { %11279 = vmatprep.subr.bf16.mxu0 %v14436_v35 }
0x174b   :  { %11280 = vmatpush1.bf16.msra.mxu0 %v14434_v52  ;;  %v14490_v52 = vld [vmem:[%s20136_s21 + $0x1ec] ss:$16 sps:$4 sm:$0xff]  }
0x174c   :  { %v9910_v51 = vpop.f32.mrf.mxu1  ;;  %11281 = vmatprep.subr.bf16.mxu0 %v14439_v31 }
0x174e   :  { %v9912_v4 = vpop.f32.mrf.mxu1 }
0x174f   :  { %11282 = vmatpush1.bf16.msra.mxu0 %v14437_v14 }
0x1750   :  { %v9914_v50 = vpop.f32.mrf.mxu1  ;;  %11283 = vmatprep.subr.bf16.mxu0 %v14445_v41 }
0x1752   :  { %v9915_v46 = vpop.f32.mrf.mxu1 }
0x1753   :  { %11284 = vmatpush2.bf16.msra.mxu0 %v14443_v40  ;;  %v14488_v40 = vld [vmem:[%s20136_s21 + $0x1e8] ss:$16 sps:$4 sm:$0xff]  }
0x1754   :  { %11285 = vmatprep.subr.bf16.mxu0 %v14451_v8 }
0x1757   :  { %11286 = vmatpush2.bf16.msra.mxu0 %v14449_v20 }
0x1758   :  { %11287 = vmatprep.subr.bf16.mxu0 %v14457_v25 }
0x175b   :  { %11288 = vmatpush2.bf16.msra.mxu0 %v14455_v63 }
0x175c   :  { %11289 = vmatprep.subr.bf16.mxu0 %v14463_v58  ;;  %v14491_v58 = vld [vmem:[%s20136_s21 + $0x1c8] ss:$16 sps:$4 sm:$0xff]  }
0x175f   :  { %11290 = vmatpush2.bf16.msra.mxu0 %v14461_v24  ;;  %v14494_v24 = vld [vmem:[%s20136_s21 + $0x2e8] ss:$16 sps:$4 sm:$0xff]  }
0x1760   :  { %11291 = vmatprep.subr.bf16.mxu0 %v14469_v34 }
0x1763   :  { %11292 = vmatpush2.bf16.msra.mxu0 %v14467_v23  ;;  %v14499_v23 = vld [vmem:[%s20136_s21 + $0x1ac] ss:$16 sps:$4 sm:$0xff]  }
0x1764   :  { %11293 = vmatprep.subr.bf16.mxu0 %v14475_v21  ;;  %v14502_v21 = vld [vmem:[%s20136_s21 + $0x2cc] ss:$16 sps:$4 sm:$0xff]  }
0x1767   :  { %11294 = vmatpush2.bf16.msra.mxu0 %v14473_v12  ;;  %v14497_v12 = vld [vmem:[%s20136_s21 + $0x1a8] ss:$16 sps:$4 sm:$0xff]  }
0x1768   :  { %v9869_v48 = vpop.f32.mrf.mxu0  ;;  %11295 = vmatprep.subr.bf16.mxu0 %v14481_v29  ;;  %v14500_v29 = vld [vmem:[%s20136_s21 + $0x2c8] ss:$16 sps:$4 sm:$0xff]  }
0x1769   :  { %v9870_v45 = vadd.f32 %v9869_v48, %v8981_v59  ;;  %v14505_v59 = vld [vmem:[%s20136_s21 + $0x18c] ss:$16 sps:$4 sm:$0xff]   ;;  %v14506_v48 = vld [vmem:[%s20136_s21 + $0x2a8] ss:$16 sps:$4 sm:$0xff]  }
0x176a   :  { %v9871_v36 = vpop.f32.mrf.mxu0 }
0x176b   :  { %v9911_v22 = vadd.f32 %v9910_v51, %v9870_v45  ;;  %v9872_v39 = vadd.f32 %v9871_v36, %v8985_v5  ;;  %11296 = vmatpush2.bf16.msra.mxu0 %v14479_v27  ;;  %v14508_v5 = vld [vmem:[%s20136_s21 + $0x2ac] ss:$16 sps:$4 sm:$0xff]   ;;  %v14503_v27 = vld [vmem:[%s20136_s21 + $0x188] ss:$16 sps:$4 sm:$0xff]  }
0x176c   :  { %v9873_v15 = vpop.f32.mrf.mxu0  ;;  %11297 = vmatprep.subr.bf16.mxu0 %v14487_v44  ;;  %v14511_v44 = vld [vmem:[%s20136_s21 + $0x16c] ss:$16 sps:$4 sm:$0xff]   ;;  %v14509_v36 = vld [vmem:[%s20136_s21 + $0x168] ss:$16 sps:$4 sm:$0xff]  }
0x176d   :  { %10001 = vst [vmem:[#allocation2 + $0x10] sm:$0xff] %v9911_v22  ;;  %v9913_v2 = vadd.f32 %v9912_v4, %v9872_v39  ;;  %v19715_v19 = vpack.c.bf16 %v9911_v22, %v9911_v22  ;;  %v14514_v45 = vld [vmem:[%s20136_s21 + $0x28c] ss:$16 sps:$4 sm:$0xff]   ;;  %v14512_v22 = vld [vmem:[%s20136_s21 + $0x288] ss:$16 sps:$4 sm:$0xff]  }
0x176e   :  { %v9874_v6 = vpop.f32.mrf.mxu0  ;;  %v14517_v39 = vld [vmem:[%s20136_s21 + $0x14c] ss:$16 sps:$4 sm:$0xff]   ;;  %v14515_v15 = vld [vmem:[%s20136_s21 + $0x148] ss:$16 sps:$4 sm:$0xff]  }
0x176f   :  { %10002 = vst [vmem:[#allocation2 + $0x18] sm:$0xff] %v9913_v2  ;;  %v19710_v54 = vpack.c.bf16 %v9913_v2, %v9913_v2  ;;  %11298 = vmatpush2.bf16.msra.mxu0 %v14485_v18  ;;  %v14520_v18 = vld [vmem:[%s20136_s21 + $0x26c] ss:$16 sps:$4 sm:$0xff]  }
0x1770   :  { %11349 = vmatprep.subr.bf16.mxu0 %v14496_v0  ;;  %v14518_v0 = vld [vmem:[%s20136_s21 + $0x268] ss:$16 sps:$4 sm:$0xff]   ;;  %v14523_v2 = vld [vmem:[%s20136_s21 + $0x12c] ss:$16 sps:$4 sm:$0xff]  }
0x1771   :  { %11258 = vmatprep.mubr.bf16.mxu1 %v19710_v54  ;;  %v14526_v6 = vld [vmem:[%s20136_s21 + $0x24c] ss:$16 sps:$4 sm:$0xff]  }
0x1772   :  { %11259 = vmatmul.mubr.bf16.vlgmr.msra.gmra.mxu1 %v19715_v19 }
0x1773   :  { %11309 = vmatpush1.bf16.msra.mxu1 %v14440_v57  ;;  %11340 = vmatprep.mubr.bf16.mxu1 %v19604_v33  ;;  %v14472_v33 = vld [vmem:[%s20136_s21 + $0x4c] ss:$16 sps:$4 sm:$0xff]   ;;  %v14524_v57 = vld [vmem:[%s20136_s21 + $0x248] ss:$16 sps:$4 sm:$0xff]  }
0x1774   :  { %11310 = vmatprep.subr.bf16.mxu1 %v14448_v3  ;;  %v14529_v3 = vld [vmem:[%s20136_s21 + $0x10c] ss:$16 sps:$4 sm:$0xff]  }
0x1777   :  { %11311 = vmatpush1.bf16.msra.mxu1 %v14446_v16  ;;  %v14532_v16 = vld [vmem:[%s20136_s21 + $0x22c] ss:$16 sps:$4 sm:$0xff]  }
0x1778   :  { %11312 = vmatprep.subr.bf16.mxu1 %v14454_v32  ;;  %v14527_v32 = vld [vmem:[%s20136_s21 + $0x108] ss:$16 sps:$4 sm:$0xff]  }
0x177b   :  { %11313 = vmatpush1.bf16.msra.mxu1 %v14452_v17  ;;  %v14530_v17 = vld [vmem:[%s20136_s21 + $0x228] ss:$16 sps:$4 sm:$0xff]  }
0x177c   :  { %11314 = vmatprep.subr.bf16.mxu1 %v14460_v43  ;;  %v14535_v43 = vld [vmem:[%s20136_s21 + $0x20c] ss:$16 sps:$4 sm:$0xff]  }
0x177f   :  { %11315 = vmatpush1.bf16.msra.mxu1 %v14458_v49  ;;  %v14538_v49 = vld [vmem:[%s20136_s21 + $0x4ec] ss:$16 sps:$4 sm:$0xff]  }
0x1780   :  { %11316 = vmatprep.subr.bf16.mxu1 %v14466_v55  ;;  %v14533_v55 = vld [vmem:[%s20136_s21 + $0x208] ss:$16 sps:$4 sm:$0xff]  }
0x1783   :  { %11317 = vmatpush1.bf16.msra.mxu1 %v14464_v53  ;;  %v14536_v53 = vld [vmem:[%s20136_s21 + $0x4e8] ss:$16 sps:$4 sm:$0xff]  }
0x1784   :  { %11318 = vmatprep.subr.bf16.mxu1 %v14472_v33  ;;  %v14541_v33 = vld [vmem:[%s20136_s21 + $0x3ec] ss:$16 sps:$4 sm:$0xff]  }
0x1787   :  { %11319 = vmatpush1.bf16.msra.mxu1 %v14470_v1  ;;  %v14544_v1 = vld [vmem:[%s20136_s21 + $0x4cc] ss:$16 sps:$4 sm:$0xff]  }
0x1788   :  { %11320 = vmatprep.subr.bf16.mxu1 %v14478_v47  ;;  %v14539_v47 = vld [vmem:[%s20136_s21 + $0x3e8] ss:$16 sps:$4 sm:$0xff]  }
0x178b   :  { %11321 = vmatpush1.bf16.msra.mxu1 %v14476_v62  ;;  %v14545_v62 = vld [vmem:[%s20136_s21 + $0x3c8] ss:$16 sps:$4 sm:$0xff]  }
0x178c   :  { %v9951_v13 = vpop.f32.mrf.mxu1  ;;  %v9992_v35 = vpop.f32.mrf.mxu0  ;;  %11322 = vmatprep.subr.bf16.mxu1 %v14484_v38  ;;  %v14553_v38 = vld [vmem:[%s20136_s21 + $0x3ac] ss:$16 sps:$4 sm:$0xff]  }
0x178d   :  { %v9952_v31 = vadd.f32 %v9951_v13, %v8989_v37  ;;  %v14556_v37 = vld [vmem:[%s20136_s21 + $0x48c] ss:$16 sps:$4 sm:$0xff]  }
0x178e   :  { %v9953_v14 = vpop.f32.mrf.mxu1  ;;  %v9994_v51 = vpop.f32.mrf.mxu0  ;;  %v14559_v13 = vld [vmem:[%s20136_s21 + $0x38c] ss:$16 sps:$4 sm:$0xff]  }
0x178f   :  { %v9993_v41 = vadd.f32 %v9992_v35, %v9952_v31  ;;  %v9954_v4 = vadd.f32 %v9953_v14, %v8993_v7  ;;  %11323 = vmatpush1.bf16.msra.mxu1 %v14482_v30  ;;  %v14551_v30 = vld [vmem:[%s20136_s21 + $0x3a8] ss:$16 sps:$4 sm:$0xff]   ;;  %v14562_v35 = vld [vmem:[%s20136_s21 + $0x46c] ss:$16 sps:$4 sm:$0xff]  }
0x1790   :  { %v9955_v50 = vpop.f32.mrf.mxu1  ;;  %v9996_v8 = vpop.f32.mrf.mxu0  ;;  %11324 = vmatprep.subr.bf16.mxu1 %v14490_v52  ;;  %v14554_v7 = vld [vmem:[%s20136_s21 + $0x488] ss:$16 sps:$4 sm:$0xff]   ;;  %v14565_v14 = vld [vmem:[%s20136_s21 + $0x36c] ss:$16 sps:$4 sm:$0xff]  }
0x1791   :  { %10003 = vst [vmem:[#allocation2 + $0x20] sm:$0xff] %v9993_v41  ;;  %v9995_v46 = vadd.f32 %v9994_v51, %v9954_v4  ;;  %v19783_v34 = vpack.c.bf16 %v9993_v41, %v9993_v41  ;;  %v14557_v52 = vld [vmem:[%s20136_s21 + $0x388] ss:$16 sps:$4 sm:$0xff]   ;;  %v14568_v51 = vld [vmem:[%s20136_s21 + $0x44c] ss:$16 sps:$4 sm:$0xff]  }
0x1792   :  { %v9956_v20 = vpop.f32.mrf.mxu1  ;;  %v9997_v25 = vpop.f32.mrf.mxu0  ;;  %v14560_v31 = vld [vmem:[%s20136_s21 + $0x468] ss:$16 sps:$4 sm:$0xff]   ;;  %v14574_v50 = vld [vmem:[%s20136_s21 + $0x42c] ss:$16 sps:$4 sm:$0xff]  }
0x1793   :  { %10004 = vst [vmem:[#allocation2 + $0x28] sm:$0xff] %v9995_v46  ;;  %v19775_v63 = vpack.c.bf16 %v9995_v46, %v9995_v46  ;;  %11325 = vmatpush2.bf16.msra.mxu1 %v14488_v40  ;;  %v14563_v41 = vld [vmem:[%s20136_s21 + $0x368] ss:$16 sps:$4 sm:$0xff]   ;;  %v14571_v40 = vld [vmem:[%s20136_s21 + $0x34c] ss:$16 sps:$4 sm:$0xff]  }
0x1794   :  { %11326 = vmatprep.subr.bf16.mxu1 %v14493_v60  ;;  %v14566_v4 = vld [vmem:[%s20136_s21 + $0x448] ss:$16 sps:$4 sm:$0xff]   ;;  %v14577_v46 = vld [vmem:[%s20136_s21 + $0x32c] ss:$16 sps:$4 sm:$0xff]  }
0x1795   :  { %11299 = vmatprep.mubr.bf16.mxu0 %v19775_v63  ;;  %v14569_v8 = vld [vmem:[%s20136_s21 + $0x348] ss:$16 sps:$4 sm:$0xff]   ;;  %v14580_v20 = vld [vmem:[%s20136_s21 + $0x40c] ss:$16 sps:$4 sm:$0xff]  }
0x1796   :  { %11300 = vmatmul.mubr.bf16.vlgmr.msra.gmra.mxu0 %v19783_v34  ;;  %v14572_v60 = vld [vmem:[%s20136_s21 + $0x428] ss:$16 sps:$4 sm:$0xff]  }
0x1797   :  { %11327 = vmatpush2.bf16.msra.mxu1 %v14491_v58  ;;  %11350 = vmatpush1.bf16.msra.mxu0 %v14494_v24  ;;  %v14575_v25 = vld [vmem:[%s20136_s21 + $0x328] ss:$16 sps:$4 sm:$0xff]   ;;  %v14583_v58 = vld [vmem:[%s20136_s21 + $0x30c] ss:$16 sps:$4 sm:$0xff]  }
0x1798   :  { %11381 = vmatprep.mubr.bf16.mxu0 %v19710_v54  ;;  %11328 = vmatprep.subr.bf16.mxu1 %v14499_v23  ;;  %v14521_v54 = vld [vmem:[%s20136_s21 + $0x128] ss:$16 sps:$4 sm:$0xff]   ;;  %v14586_v24 = vld [vmem:[%s20136_s21 + $0x5ec] ss:$16 sps:$4 sm:$0xff]  }
0x1799   :  { %11351 = vmatprep.subr.bf16.mxu0 %v14502_v21  ;;  %v14581_v23 = vld [vmem:[%s20136_s21 + $0x308] ss:$16 sps:$4 sm:$0xff]  }
0x179a   :  { %v14584_v21 = vld [vmem:[%s20136_s21 + $0x5e8] ss:$16 sps:$4 sm:$0xff]  }
0x179b   :  { %11329 = vmatpush2.bf16.msra.mxu1 %v14497_v12  ;;  %11352 = vmatpush1.bf16.msra.mxu0 %v14500_v29  ;;  %v14589_v12 = vld [vmem:[%s20136_s21 + $0x5cc] ss:$16 sps:$4 sm:$0xff]  }
0x179c   :  { %11330 = vmatprep.subr.bf16.mxu1 %v14505_v59  ;;  %11353 = vmatprep.subr.bf16.mxu0 %v14508_v5  ;;  %v14608_v29 = vld [vmem:[%s20138_s23 + $0x78] sm:$0xff]  }
0x179d   :  { %v14587_v59 = vld [vmem:[%s20136_s21 + $0x5c8] ss:$16 sps:$4 sm:$0xff]  }
0x179e   :  { %v14609_v5 = vld [vmem:[%s20138_s23 + $0x38] sm:$0xff]  }
0x179f   :  { %11331 = vmatpush2.bf16.msra.mxu1 %v14503_v27  ;;  %11354 = vmatpush1.bf16.msra.mxu0 %v14506_v48  ;;  %v14592_v27 = vld [vmem:[%s20136_s21 + $0x5ac] ss:$16 sps:$4 sm:$0xff]   ;;  %v14610_v48 = vld [vmem:[%s20138_s23 + $0x70] sm:$0xff]  }
0x17a0   :  { %11332 = vmatprep.subr.bf16.mxu1 %v14511_v44  ;;  %11355 = vmatprep.subr.bf16.mxu0 %v14514_v45  ;;  %v14590_v44 = vld [vmem:[%s20136_s21 + $0x5a8] ss:$16 sps:$4 sm:$0xff]   ;;  %v14611_v45 = vld [vmem:[%s20138_s23 + $0x30] sm:$0xff]  }
0x17a3   :  { %11333 = vmatpush2.bf16.msra.mxu1 %v14509_v36  ;;  %11356 = vmatpush1.bf16.msra.mxu0 %v14512_v22  ;;  %v14595_v36 = vld [vmem:[%s20136_s21 + $0x58c] ss:$16 sps:$4 sm:$0xff]   ;;  %v14593_v22 = vld [vmem:[%s20136_s21 + $0x588] ss:$16 sps:$4 sm:$0xff]  }
0x17a4   :  { %11334 = vmatprep.subr.bf16.mxu1 %v14517_v39  ;;  %11357 = vmatprep.subr.bf16.mxu0 %v14520_v18  ;;  %v14613_v39 = vld [vmem:[%s20138_s23 + $0x28] sm:$0xff]  }
0x17a5   :  { %v14598_v18 = vld [vmem:[%s20136_s21 + $0x56c] ss:$16 sps:$4 sm:$0xff]  }
0x17a7   :  { %11335 = vmatpush2.bf16.msra.mxu1 %v14515_v15  ;;  %11358 = vmatpush1.bf16.msra.mxu0 %v14518_v0  ;;  %v14614_v15 = vld [vmem:[%s20138_s23 + $0x60] sm:$0xff]   ;;  %v14596_v0 = vld [vmem:[%s20136_s21 + $0x568] ss:$16 sps:$4 sm:$0xff]  }
0x17a8   :  { %11336 = vmatprep.subr.bf16.mxu1 %v14523_v2  ;;  %11359 = vmatprep.subr.bf16.mxu0 %v14526_v6  ;;  %v14615_v2 = vld [vmem:[%s20138_s23 + $0x20] sm:$0xff]   ;;  %v14601_v6 = vld [vmem:[%s20136_s21 + $0x54c] ss:$16 sps:$4 sm:$0xff]  }
0x17ab   :  { %11337 = vmatpush2.bf16.msra.mxu1 %v14521_v54  ;;  %11360 = vmatpush1.bf16.msra.mxu0 %v14524_v57  ;;  %v14616_v54 = vld [vmem:[%s20138_s23 + $0x58] sm:$0xff]  }
0x17ac   :  { %11338 = vmatprep.subr.bf16.mxu1 %v14529_v3  ;;  %11361 = vmatprep.subr.bf16.mxu0 %v14532_v16  ;;  %v14599_v57 = vld [vmem:[%s20136_s21 + $0x548] ss:$16 sps:$4 sm:$0xff]   ;;  %v14604_v16 = vld [vmem:[%s20136_s21 + $0x52c] ss:$16 sps:$4 sm:$0xff]  }
0x17ad   :  { %v14617_v3 = vld [vmem:[%s20138_s23 + $0x18] sm:$0xff]  }
0x17af   :  { %11339 = vmatpush2.bf16.msra.mxu1 %v14527_v32  ;;  %11362 = vmatpush1.bf16.msra.mxu0 %v14530_v17  ;;  %v14618_v32 = vld [vmem:[%s20138_s23 + $0x50] sm:$0xff]   ;;  %v14602_v17 = vld [vmem:[%s20136_s21 + $0x528] ss:$16 sps:$4 sm:$0xff]  }
0x17b0   :  { %11363 = vmatprep.subr.bf16.mxu0 %v14535_v43  ;;  %11390 = vmatprep.subr.bf16.mxu1 %v14538_v49  ;;  %v14619_v43 = vld [vmem:[%s20138_s23 + $0x10] sm:$0xff]   ;;  %v14607_v49 = vld [vmem:[%s20136_s21 + $0x50c] ss:$16 sps:$4 sm:$0xff]  }
0x17b2   :  { %11341 = vmatmul.mubr.bf16.vlgmr.msra.gmra.mxu1 %v19609_v42  ;;  %v14550_v42 = vld [vmem:[%s20136_s21 + $0x4ac] ss:$16 sps:$4 sm:$0xff]  }
0x17b3   :  { %11364 = vmatpush1.bf16.msra.mxu0 %v14533_v55  ;;  %11391 = vmatpush1.bf16.msra.mxu1 %v14536_v53  ;;  %v14620_v55 = vld [vmem:[%s20138_s23 + $0x48] sm:$0xff]  }
0x17b4   :  { %11422 = vmatprep.mubr.bf16.mxu1 %v19775_v63  ;;  %11365 = vmatprep.subr.bf16.mxu0 %v14541_v33  ;;  %v14578_v63 = vld [vmem:[%s20136_s21 + $0x408] ss:$16 sps:$4 sm:$0xff]  }
0x17b5   :  { %11392 = vmatprep.subr.bf16.mxu1 %v14544_v1  ;;  %v14605_v53 = vld [vmem:[%s20136_s21 + $0x508] ss:$16 sps:$4 sm:$0xff]   ;;  %v14622_v1 = vld [vmem:[%s20138_s23 + $0x40] sm:$0xff]  }
0x17b6   :  { %v14621_v33 = vld [vmem:[%s20138_s23 + $0x8] sm:$0xff]  }
0x17b7   :  { %11366 = vmatpush2.bf16.msra.mxu0 %v14539_v47  ;;  %11393 = vmatpush1.bf16.msra.mxu1 %v14542_v61  ;;  %v14623_v47 = vld [vmem:[%s20138_s23] sm:$0xff]   ;;  %v20684_v61 = vmov 0  }
0x17b8   :  { %11367 = vmatprep.subr.bf16.mxu0 %v14547_v9  ;;  %11394 = vmatprep.subr.bf16.mxu1 %v14550_v42 }
0x17bb   :  { %11368 = vmatpush2.bf16.msra.mxu0 %v14545_v62  ;;  %11395 = vmatpush1.bf16.msra.mxu1 %v14548_v26 }
0x17bc   :  { %11369 = vmatprep.subr.bf16.mxu0 %v14553_v38  ;;  %11396 = vmatprep.subr.bf16.mxu1 %v14556_v37  ;;  %v14624_v38 = vld [vmem:[%s20138_s23 + $0xb8] sm:$0xff]   ;;  %v14625_v37 = vld [vmem:[%s20138_s23 + $0xb0] sm:$0xff]  }
0x17bf   :  { %11370 = vmatpush2.bf16.msra.mxu0 %v14551_v30  ;;  %11397 = vmatpush1.bf16.msra.mxu1 %v14554_v7  ;;  %v14626_v30 = vld [vmem:[%s20138_s23 + $0xa8] sm:$0xff]  }
0x17c0   :  { %11371 = vmatprep.subr.bf16.mxu0 %v14559_v13  ;;  %11398 = vmatprep.subr.bf16.mxu1 %v14562_v35  ;;  %v14627_v35 = vld [vmem:[%s20138_s23 + $0xa0] sm:$0xff]  }
0x17c3   :  { %11372 = vmatpush2.bf16.msra.mxu0 %v14557_v52  ;;  %11399 = vmatpush1.bf16.msra.mxu1 %v14560_v31  ;;  %v14628_v31 = vld [vmem:[%s20138_s23 + $0x98] sm:$0xff]  }
0x17c4   :  { %11373 = vmatprep.subr.bf16.mxu0 %v14565_v14  ;;  %11400 = vmatprep.subr.bf16.mxu1 %v14568_v51  ;;  %v14629_v14 = vld [vmem:[%s20138_s23 + $0x90] sm:$0xff]   ;;  %v14630_v51 = vld [vmem:[%s20138_s23 + $0x88] sm:$0xff]  }
0x17c7   :  { %11374 = vmatpush2.bf16.msra.mxu0 %v14563_v41  ;;  %11401 = vmatpush1.bf16.msra.mxu1 %v14566_v4  ;;  %v14631_v41 = vld [vmem:[%s20138_s23 + $0x80] sm:$0xff]  }
0x17c8   :  { %11375 = vmatprep.subr.bf16.mxu0 %v14571_v40  ;;  %11402 = vmatprep.subr.bf16.mxu1 %v14574_v50  ;;  %v14632_v4 = vld [vmem:[%s20138_s23 + $0xc0] sm:$0xff]  }
0x17c9   :  { %v10203_v40 = vld [vmem:[%s20137_s22] sm:$0xf]  ;;  %s14762_s22 = smov [#allocation2]  }
0x17ca   :  { %v10208_v50 = vrot.slane %v10203_v40, %v20681_v56 }
0x17cb   :  { %11376 = vmatpush2.bf16.msra.mxu0 %v14569_v8  ;;  %11403 = vmatpush1.bf16.msra.mxu1 %v14572_v60  ;;  %v10212_v8 = vrot.slane %v10203_v40, %v20679_v10 }
0x17cc   :  { %11377 = vmatprep.subr.bf16.mxu0 %v14577_v46  ;;  %11404 = vmatprep.subr.bf16.mxu1 %v14580_v20 }
0x17cf   :  { %11378 = vmatpush2.bf16.msra.mxu0 %v14575_v25  ;;  %11405 = vmatpush1.bf16.msra.mxu1 %v14578_v63 }
0x17d0   :  { %11379 = vmatprep.subr.bf16.mxu0 %v14583_v58  ;;  %11406 = vmatprep.subr.bf16.mxu1 %v14586_v24 }
0x17d3   :  { %11380 = vmatpush2.bf16.msra.mxu0 %v14581_v23  ;;  %11407 = vmatpush2.bf16.msra.mxu1 %v14584_v21 }
0x17d4   :  { %11408 = vmatprep.subr.bf16.mxu1 %v14589_v12  ;;  %13111 = vmatprep.subr.bf16.mxu0 %v14608_v29 }
0x17d6   :  { %11382 = vmatmul.mubr.bf16.vlgmr.msra.gmra.mxu0 %v19715_v19  ;;  %v14612_v19 = vld [vmem:[%s20138_s23 + $0x68] sm:$0xff]   ;;  %s11752_s23 = sshll.u32 %s14762_s22, 4  ;;  %s11753_s23 = int_to_ptr.vmem [resolvable:$true] %s11752_s23 }
0x17d7   :  { %11409 = vmatpush2.bf16.msra.mxu1 %v14587_v59  ;;  %13112 = vmatpush3.bf16.msra.mxu0 %v14609_v5  ;;  %s14737_s2 = scalar_lea.vmem %s11753_s23, 768  ;;  %p14742_p1 = scmp.lt.s32.totalorder %s11753_s23, %s11753_s23 }
0x17d8   :  { %11410 = vmatprep.subr.bf16.mxu1 %v14592_v27  ;;  %13113 = vmatprep.subr.bf16.mxu0 %v14610_v48  ;;  %p14738_p0 = scmp.ne.s32.totalorder %s11753_s23, %s14737_s2  ;;  %p14743_p2 = scmp.lt.s32.totalorder %s14737_s2, %s14737_s2 }
0x17da   :  { %p14744_p3 = por %p14743_p2, %p14742_p1 }
0x17db   :  { %11411 = vmatpush2.bf16.msra.mxu1 %v14590_v44  ;;  %13114 = vmatpush3.bf16.msra.mxu0 %v14611_v45 }
0x17dc   :  { %11412 = vmatprep.subr.bf16.mxu1 %v14595_v36  ;;  %13115 = vmatprep.subr.bf16.mxu0 %v14612_v19  ;;  %p14745_p4 = pnand %p14744_p3, %p14738_p0 }
0x17df   :  { %11413 = vmatpush2.bf16.msra.mxu1 %v14593_v22  ;;  %13116 = vmatpush3.bf16.msra.mxu0 %v14613_v39 }
0x17e0   :  { %11414 = vmatprep.subr.bf16.mxu1 %v14598_v18  ;;  %13117 = vmatprep.subr.bf16.mxu0 %v14614_v15 }
0x17e3   :  { %11415 = vmatpush2.bf16.msra.mxu1 %v14596_v0  ;;  %13118 = vmatpush3.bf16.msra.mxu0 %v14615_v2 }
0x17e4   :  { %11416 = vmatprep.subr.bf16.mxu1 %v14601_v6  ;;  %13119 = vmatprep.subr.bf16.mxu0 %v14616_v54 }
0x17e7   :  { %11417 = vmatpush2.bf16.msra.mxu1 %v14599_v57  ;;  %13120 = vmatpush3.bf16.msra.mxu0 %v14617_v3  ;;  %v10216_v3 = vrot.slane %v10203_v40, %v20682_v11 }
0x17e8   :  { %11418 = vmatprep.subr.bf16.mxu1 %v14604_v16  ;;  %13121 = vmatprep.subr.bf16.mxu0 %v14618_v32  ;;  %v10220_v16 = vrot.slane %v10203_v40, %v20680_v28 }
0x17eb   :  { %11419 = vmatpush2.bf16.msra.mxu1 %v14602_v17  ;;  %13122 = vmatpush3.bf16.msra.mxu0 %v14619_v43 }
0x17ec   :  { %11420 = vmatprep.subr.bf16.mxu1 %v14607_v49  ;;  %13123 = vmatprep.subr.bf16.mxu0 %v14620_v55 }
0x17ef   :  { %11421 = vmatpush2.bf16.msra.mxu1 %v14605_v53  ;;  %13124 = vmatpush3.bf16.msra.mxu0 %v14621_v33 }
0x17f0   :  { %13125 = vmatprep.subr.bf16.mxu0 %v14622_v1  ;;  %11705 = vmatprep.subr.bf16.mxu1 %v20684_v61 }
0x17f2   :  { %11423 = vmatmul.mubr.bf16.vlgmr.msra.gmra.mxu1 %v19783_v34  ;;  %v11219_v9 = vpop.f32.mrf.mxu0 }
0x17f3   :  { %13126 = vmatpush3.bf16.msra.mxu0 %v14623_v47  ;;  %11706 = vmatpush1.bf16.msra.mxu1 %v14624_v38  ;;  %v11220_v60 = vadd.f32 %v11219_v9, %v10208_v50 }
0x17f4   :  { %v11221_v42 = vpop.f32.mrf.mxu0  ;;  %11707 = vmatprep.subr.bf16.mxu1 %v20684_v61 }
0x17f5   :  { %v11222_v46 = vadd.f32 %v11221_v42, %v10212_v8 }
0x17f6   :  { %v11223_v62 = vpop.f32.mrf.mxu0 }
0x17f7   :  { %11708 = vmatpush1.bf16.msra.mxu1 %v14625_v37 }
0x17f8   :  { %v11224_v26 = vpop.f32.mrf.mxu0  ;;  %11709 = vmatprep.subr.bf16.mxu1 %v20684_v61 }
0x17fb   :  { %11710 = vmatpush1.bf16.msra.mxu1 %v14626_v30 }
0x17fc   :  { %11711 = vmatprep.subr.bf16.mxu1 %v20684_v61 }
0x17ff   :  { %11712 = vmatpush1.bf16.msra.mxu1 %v14627_v35 }
0x1800   :  { %11713 = vmatprep.subr.bf16.mxu1 %v20684_v61 }
0x1803   :  { %11714 = vmatpush1.bf16.msra.mxu1 %v14628_v31 }
0x1804   :  { %11715 = vmatprep.subr.bf16.mxu1 %v20684_v61 }
0x1807   :  { %11716 = vmatpush1.bf16.msra.mxu1 %v14629_v14 }
0x1808   :  { %11717 = vmatprep.subr.bf16.mxu1 %v20684_v61 }
0x180b   :  { %11718 = vmatpush1.bf16.msra.mxu1 %v14630_v51 }
0x180c   :  { %11719 = vmatprep.subr.bf16.mxu1 %v20684_v61 }
0x180f   :  { %11720 = vmatpush1.bf16.msra.mxu1 %v14631_v41 }
0x1810   :  { %11735 = vmatprep.subr.bf16.mxu1 %v20684_v61 }
0x1813   :  { %11736 = vmatpush2.bf16.msra.mxu1 %v14632_v4 }
0x1832   :  { %v11260_v34 = vpop.f32.mrf.mxu1 }
0x1833   :  { %v11261_v20 = vadd.f32 %v11260_v34, %v11220_v60 }
0x1834   :  { %v11262_v7 = vpop.f32.mrf.mxu1 }
0x1835   :  { %v11263_v63 = vadd.f32 %v11262_v7, %v11222_v46 }
0x1836   :  { %v11264_v13 = vpop.f32.mrf.mxu1 }
0x1838   :  { %v11265_v52 = vpop.f32.mrf.mxu1 }
0x1856   :  { %v11301_v25 = vpop.f32.mrf.mxu0 }
0x1857   :  { %v11302_v58 = vadd.f32 %v11301_v25, %v11261_v20 }
0x1858   :  { %v11303_v24 = vpop.f32.mrf.mxu0 }
0x1859   :  { %v11435_v23 = vmul.f32 0.70710677, %v11302_v58  ;;  %v11304_v21 = vadd.f32 %v11303_v24, %v11263_v63  ;;  %v11431_v56 = vmul.f32 0.5, %v11302_v58 }
0x185a   :  { %v11305_v12 = vpop.f32.mrf.mxu0 }
0x185b   :  { %14661 = verf.f32 %v11435_v23  ;;  %v11436_v29 = vmul.f32 0.70710677, %v11304_v21  ;;  %v11432_v44 = vmul.f32 0.5, %v11304_v21 }
0x185c   :  { %v11306_v59 = vpop.f32.mrf.mxu0 }
0x185d   :  { %14663 = verf.f32 %v11436_v29 }
0x1868   :  { %v14662_v5 = vpop.eup %14661 }
0x1869   :  { %v11443_v27 = vadd.f32 1.0, %v14662_v5 }
0x186a   :  { %v14664_v48 = vpop.eup %14663 }
0x186b   :  { %v11444_v10 = vadd.f32 1.0, %v14664_v48  ;;  %v11447_v45 = vmul.f32 %v11443_v27, %v11431_v56 }
0x186d   :  { %v11448_v36 = vmul.f32 %v11444_v10, %v11432_v44  ;;  %v11501_v22 = vpack.c.bf16 %v11447_v45, %v11447_v45 }
0x186f   :  { %v11502_v19 = vpack.c.bf16 %v11448_v36, %v11448_v36 }
0x1871   :  { %11697 = vmatprep.mubr.bf16.mxu0 %v11502_v19 }
0x1872   :  { %v11342_v39 = vpop.f32.mrf.mxu1  ;;  %11698 = vmatmul.mubr.bf16.vlgmr.msra.gmra.mxu0 %v11501_v22 }
0x1873   :  { %v11343_v32 = vadd.f32 %v11342_v39, %v10216_v3 }
0x1874   :  { %v11344_v18 = vpop.f32.mrf.mxu1 }
0x1875   :  { %v11345_v17 = vadd.f32 %v11344_v18, %v10220_v16 }
0x1876   :  { %v11346_v15 = vpop.f32.mrf.mxu1 }
0x1878   :  { %v11347_v0 = vpop.f32.mrf.mxu1 }
0x1896   :  { %v11383_v2 = vpop.f32.mrf.mxu0 }
0x1897   :  { %v11384_v43 = vadd.f32 %v11383_v2, %v11343_v32 }
0x1898   :  { %v11385_v6 = vpop.f32.mrf.mxu0 }
0x1899   :  { %v11386_v55 = vadd.f32 %v11385_v6, %v11345_v17 }
0x189a   :  { %v11387_v54 = vpop.f32.mrf.mxu0 }
0x189c   :  { %v11388_v57 = vpop.f32.mrf.mxu0 }
0x18b2   :  { %v11424_v49 = vpop.f32.mrf.mxu1 }
0x18b3   :  { %v11425_v53 = vadd.f32 %v11424_v49, %v11384_v43 }
0x18b4   :  { %v11426_v33 = vpop.f32.mrf.mxu1 }
0x18b5   :  { %v11437_v1 = vmul.f32 0.70710677, %v11425_v53  ;;  %v11427_v47 = vadd.f32 %v11426_v33, %v11386_v55  ;;  %v11433_v11 = vmul.f32 0.5, %v11425_v53 }
0x18b6   :  { %v11428_v61 = vpop.f32.mrf.mxu1 }
0x18b7   :  { %14665 = verf.f32 %v11437_v1  ;;  %v11438_v9 = vmul.f32 0.70710677, %v11427_v47  ;;  %v11434_v37 = vmul.f32 0.5, %v11427_v47 }
0x18b8   :  { %v11429_v42 = vpop.f32.mrf.mxu1 }
0x18b9   :  { %14667 = verf.f32 %v11438_v9 }
0x18c4   :  { %v14666_v62 = vpop.eup %14665 }
0x18c5   :  { %v11445_v26 = vadd.f32 1.0, %v14666_v62 }
0x18c6   :  { %v14668_v38 = vpop.eup %14667 }
0x18c7   :  { %v11446_v28 = vadd.f32 1.0, %v14668_v38  ;;  %v11449_v34 = vmul.f32 %v11445_v26, %v11433_v11 }
0x18c9   :  { %v11450_v30 = vmul.f32 %v11446_v28, %v11434_v37  ;;  %v11503_v13 = vpack.c.bf16 %v11449_v34, %v11449_v34 }
0x18cb   :  { %v11504_v7 = vpack.c.bf16 %v11450_v30, %v11450_v30 }
0x18cd   :  { %13034 = vmatprep.mubr.msk.bf16.mxu1 %vm1042_vm2, %v11504_v7 }
0x18ce   :  { %11738 = vmatmul.mubr.bf16.vlgmr.msra.gmra.mxu1 %v11503_v13 }
0x18cf   :  { %14748 = shalt.err (!%p14745_p4)
}
0x18d0   :  { %11755 = dma.vmem_to_hbm [thread:$0]  %s11753_s23, 768, %s20140_s25, [#allocation3]   ;;  %v13008_v41 = vld [vmem:[%s20139_s24] ss:$0 sm:$0xff] }
0x1932   :  { %v13127_v35 = vpop.f32.mrf.mxu0 }
0x1934   :  { %v13128_v52 = vpop.f32.mrf.mxu0 }
0x1935   :  { %v13129_v31 = vadd.f32 %v13128_v52, %v13127_v35 }
0x1936   :  { %v13130_v14 = vpop.f32.mrf.mxu0 }
0x1937   :  { %v11700_v4 = vadd.f32 %v13129_v31, %v13008_v41 }
0x1938   :  { %v13131_v51 = vpop.f32.mrf.mxu0 }
0x198e   :  { %v11739_v40 = vpop.f32.mrf.mxu1 }
0x198f   :  { %v11740_v50 = vadd.f32 %v11739_v40, %v11700_v4 }
0x1990   :  { %v11741_v8 = vpop.f32.mrf.mxu1 }
0x1991   :  { %11745 = vst [vmem:[%s20141_s26] sm:$0xff] %v11740_v50 }
0x1992   :  { %v11742_v60 = vpop.f32.mrf.mxu1 }
0x1994   :  { %v11743_v46 = vpop.f32.mrf.mxu1 }
0x1995   :  { %14757 = dma.done.wait [#allocation3], 768  }
0x1996   :  { %14758 = vsyncadd [#allocation3], 4294966528 }
0x1997   :  { %11763 = vsyncpa [#allocation3], 1 }

</bundles_post_ra>
